<compile_context>
chip_gen: v7x
topology: tpu7x:2x2x1
jax: 0.10.0
libtpu: 0.0.40
codegen_flags: <defaults>
</compile_context>

<pallas_src>
import functools

import jax
import jax.numpy as jnp
from jax.experimental import pallas as pl
from jax.experimental.pallas import tpu as pltpu

_LANE = 128


def _round_up(n, m):
    return ((n + m - 1) // m) * m


def _fused_mlp_kernel(x_ref, w1_ref, b1_ref, w2_hbm, b2_ref, w3_hbm, b3_ref,
                      w4_hbm, b4_ref, o_ref, w2_v, w3_v, w4_v, sem):
    """Entire MLP forward.  w1/biases are auto-DMA'd VMEM refs (small);
    w2/w3/w4 are raw HBM refs streamed manually so their DMA overlaps the
    per-layer compute."""
    # Kick off the big weight streams immediately.
    cp2 = pltpu.make_async_copy(w2_hbm, w2_v, sem.at[0])
    cp3 = pltpu.make_async_copy(w3_hbm, w3_v, sem.at[1])
    cp4 = pltpu.make_async_copy(w4_hbm, w4_v, sem.at[2])
    cp2.start()
    cp3.start()
    cp4.start()

    # Layer 1 (w1 is only ~128 KiB bf16; already resident via BlockSpec).
    h = jnp.dot(x_ref[...].astype(jnp.bfloat16), w1_ref[...],
                preferred_element_type=jnp.float32) + b1_ref[...]
    h = jnp.logaddexp(h, 0.0)                 # numerically stable softplus

    # Layer 2.
    cp2.wait()
    h = jnp.dot(h.astype(jnp.bfloat16), w2_v[...],
                preferred_element_type=jnp.float32) + b2_ref[...]
    h = jnp.logaddexp(h, 0.0)

    # Layer 3.
    cp3.wait()
    h = jnp.dot(h.astype(jnp.bfloat16), w3_v[...],
                preferred_element_type=jnp.float32) + b3_ref[...]
    h = jnp.logaddexp(h, 0.0)

    # Output layer (lane-padded N -> unmasked stores).
    cp4.wait()
    o_ref[...] = (jnp.dot(h.astype(jnp.bfloat16), w4_v[...],
                          preferred_element_type=jnp.float32)
                  + b4_ref[...]).astype(o_ref.dtype)


def init_mlp_params(key, input_len, num_classes, dtype=jnp.float32):
    dims = [(input_len, 2048), (2048, 1024), (1024, 1024), (1024, num_classes)]
    params = []
    for (fan_in, fan_out) in dims:
        key, kw, kb = jax.random.split(key, 3)
        bound = 1.0 / jnp.sqrt(fan_in)
        w = jax.random.uniform(kw, (fan_in, fan_out), dtype, -bound, bound)
        b = jax.random.uniform(kb, (fan_out,), dtype, -bound, bound)
        params.append((w, b))
    return params


def pack_params(params):
    """One-time prep: weights -> bf16 (halves HBM bytes; f32 accumulation kept
    in-kernel), biases stay f32 and become (1, N), final layer's N padded up to
    a 128-lane multiple so the kernel's output store is lane-dense."""
    (w1, b1), (w2, b2), (w3, b3), (w4, b4) = params
    n_out = w4.shape[1]
    n_pad = _round_up(n_out, _LANE)
    w4p = jnp.zeros((w4.shape[0], n_pad), w4.dtype).at[:, :n_out].set(w4)
    b4p = jnp.zeros((n_pad,), b4.dtype).at[:n_out].set(b4)
    bf = jnp.bfloat16
    return (w1.astype(bf), b1.reshape(1, -1),
            w2.astype(bf), b2.reshape(1, -1),
            w3.astype(bf), b3.reshape(1, -1),
            w4p.astype(bf), b4p.reshape(1, -1))


def mlp_forward(packed_params, x, *, num_classes):
    """Single fused pallas_call for the whole MLP; returns (M, num_classes)."""
    w1, b1, w2, b2, w3, b3, w4, b4 = packed_params
    M = x.shape[0]
    n_pad = w4.shape[1]

    vmem = pl.BlockSpec(memory_space=pltpu.MemorySpace.VMEM)
    hbm = pl.BlockSpec(memory_space=pl.ANY)   # manual DMA inside the kernel

    weight_bytes = 2 * (w1.size + w2.size + w3.size + w4.size)  # bf16
    flops = 2 * M * (w1.shape[0] * w1.shape[1] + w2.shape[0] * w2.shape[1]
                     + w3.shape[0] * w3.shape[1] + w4.shape[0] * w4.shape[1])
    transcendentals = 2 * M * (w1.shape[1] + w2.shape[1] + w3.shape[1])

    out_padded = pl.pallas_call(
        _fused_mlp_kernel,
        out_shape=jax.ShapeDtypeStruct((M, n_pad), x.dtype),
        in_specs=[vmem, vmem, vmem,   # x, w1, b1
                  hbm,  vmem,         # w2 (manual), b2
                  hbm,  vmem,         # w3 (manual), b3
                  hbm,  vmem],        # w4 (manual), b4
        out_specs=vmem,
        scratch_shapes=[
            pltpu.VMEM(w2.shape, w2.dtype),
            pltpu.VMEM(w3.shape, w3.dtype),
            pltpu.VMEM(w4.shape, w4.dtype),
            pltpu.SemaphoreType.DMA((3,)),
        ],
        cost_estimate=pl.CostEstimate(
            flops=flops,
            transcendentals=transcendentals,
            bytes_accessed=weight_bytes + 4 * (x.size + M * n_pad),
        ),
        compiler_params=pltpu.CompilerParams(
            # bf16 weights + scratch ~7 MiB; 20 MiB leaves ample headroom and
            # stays far below v7x's 64 MiB physical VMEM.
            vmem_limit_bytes=20 * 1024 * 1024,
        ),
    )(x, w1, b1, w2, b2, w3, b3, w4, b4)

    return out_padded[:, :num_classes]


if __name__ == "__main__":
    input_len = 32
    num_classes = 10
    batch = 8

    key = jax.random.PRNGKey(0)
    key, kx = jax.random.split(key)
    x = jax.random.normal(kx, (batch, input_len), jnp.float32)

    params = init_mlp_params(key, input_len, num_classes)
    packed = pack_params(params)

    fwd = jax.jit(functools.partial(mlp_forward, num_classes=num_classes))
    out = jax.block_until_ready(fwd(packed, x))
    assert out.shape == (batch, num_classes)

    # Reference 1: same bf16-weight / f32-accumulate math in pure JAX — should
    # match the kernel very tightly.
    bf = jnp.bfloat16
    ref_bf16 = x
    for i, (w, b) in enumerate(params):
        ref_bf16 = jnp.dot(ref_bf16.astype(bf), w.astype(bf),
                           preferred_element_type=jnp.float32) + b
        if i < 3:
            ref_bf16 = jnp.logaddexp(ref_bf16, 0.0)
    assert jnp.allclose(out, ref_bf16, atol=2e-3, rtol=2e-3)

    # Reference 2: original f32 master-weight forward — semantics preserved up
    # to bf16 weight-cast error.
    ref_f32 = x
    for i, (w, b) in enumerate(params):
        ref_f32 = ref_f32 @ w + b
        if i < 3:
            ref_f32 = jnp.logaddexp(ref_f32, 0.0)
    assert jnp.allclose(out, ref_f32, atol=5e-2, rtol=5e-2)

    print("KERNEL_OK")
</pallas_src>

<mosaic_0001>
module attributes {stable_mosaic.version = 11 : i64} {
  func.func @_fused_mlp_kernel(%arg0: memref<8x32xf32, #tpu.memory_space<vmem>>, %arg1: memref<32x2048xbf16, #tpu.memory_space<vmem>>, %arg2: memref<1x2048xf32, #tpu.memory_space<vmem>>, %arg3: memref<2048x1024xbf16, #tpu.memory_space<any>>, %arg4: memref<1x1024xf32, #tpu.memory_space<vmem>>, %arg5: memref<1024x1024xbf16, #tpu.memory_space<any>>, %arg6: memref<1x1024xf32, #tpu.memory_space<vmem>>, %arg7: memref<1024x128xbf16, #tpu.memory_space<any>>, %arg8: memref<1x128xf32, #tpu.memory_space<vmem>>, %arg9: memref<8x128xf32, #tpu.memory_space<vmem>>, %arg10: memref<2048x1024xbf16, #tpu.memory_space<vmem>>, %arg11: memref<1024x1024xbf16, #tpu.memory_space<vmem>>, %arg12: memref<1024x128xbf16, #tpu.memory_space<vmem>>, %arg13: memref<3x!tpu.dma_semaphore, #tpu.memory_space<semaphore_mem>>) attributes {dimension_semantics = [], scalar_prefetch = 0 : i64, scratch_operands = 4 : i64, tpu.core_type = #tpu.core_type<tc>} {
    %c0_i32 = arith.constant 0 : i32
    %0 = tpu.memref_slice %arg13[%c0_i32] : memref<3x!tpu.dma_semaphore, #tpu.memory_space<semaphore_mem>> -> memref<1x!tpu.dma_semaphore, #tpu.memory_space<semaphore_mem>>
    %1 = tpu.memref_squeeze %0 : memref<1x!tpu.dma_semaphore, #tpu.memory_space<semaphore_mem>> -> memref<!tpu.dma_semaphore, #tpu.memory_space<semaphore_mem>>
    tpu.enqueue_dma source(%arg3 : memref<2048x1024xbf16, #tpu.memory_space<any>>) target(%arg10 : memref<2048x1024xbf16, #tpu.memory_space<vmem>>) target_semaphore(%1 : memref<!tpu.dma_semaphore, #tpu.memory_space<semaphore_mem>>)
    %c1_i32 = arith.constant 1 : i32
    %2 = tpu.memref_slice %arg13[%c1_i32] : memref<3x!tpu.dma_semaphore, #tpu.memory_space<semaphore_mem>> -> memref<1x!tpu.dma_semaphore, #tpu.memory_space<semaphore_mem>>
    %3 = tpu.memref_squeeze %2 : memref<1x!tpu.dma_semaphore, #tpu.memory_space<semaphore_mem>> -> memref<!tpu.dma_semaphore, #tpu.memory_space<semaphore_mem>>
    tpu.enqueue_dma source(%arg5 : memref<1024x1024xbf16, #tpu.memory_space<any>>) target(%arg11 : memref<1024x1024xbf16, #tpu.memory_space<vmem>>) target_semaphore(%3 : memref<!tpu.dma_semaphore, #tpu.memory_space<semaphore_mem>>)
    %c2_i32 = arith.constant 2 : i32
    %4 = tpu.memref_slice %arg13[%c2_i32] : memref<3x!tpu.dma_semaphore, #tpu.memory_space<semaphore_mem>> -> memref<1x!tpu.dma_semaphore, #tpu.memory_space<semaphore_mem>>
    %5 = tpu.memref_squeeze %4 : memref<1x!tpu.dma_semaphore, #tpu.memory_space<semaphore_mem>> -> memref<!tpu.dma_semaphore, #tpu.memory_space<semaphore_mem>>
    tpu.enqueue_dma source(%arg7 : memref<1024x128xbf16, #tpu.memory_space<any>>) target(%arg12 : memref<1024x128xbf16, #tpu.memory_space<vmem>>) target_semaphore(%5 : memref<!tpu.dma_semaphore, #tpu.memory_space<semaphore_mem>>)
    %c0 = arith.constant 0 : index
    %c0_0 = arith.constant 0 : index
    %6 = vector.load %arg0[%c0, %c0_0] : memref<8x32xf32, #tpu.memory_space<vmem>>, vector<8x32xf32>
    %7 = arith.truncf %6 : vector<8x32xf32> to vector<8x32xbf16>
    %c0_1 = arith.constant 0 : index
    %c0_2 = arith.constant 0 : index
    %8 = vector.load %arg1[%c0_1, %c0_2] : memref<32x2048xbf16, #tpu.memory_space<vmem>>, vector<32x2048xbf16>
    %cst = arith.constant dense<0.000000e+00> : vector<8x2048xf32>
    %9 = tpu.matmul %7, %8, %cst {dimension_numbers = #tpu.dot_dimension_numbers<[1], [0], [0], [1], [0, 0, 1, 1], [], []>} : vector<8x32xbf16>, vector<32x2048xbf16>, vector<8x2048xf32> -> vector<8x2048xf32>
    %c0_3 = arith.constant 0 : index
    %c0_4 = arith.constant 0 : index
    %10 = vector.load %arg2[%c0_3, %c0_4] : memref<1x2048xf32, #tpu.memory_space<vmem>>, vector<1x2048xf32>
    %11 = vector.broadcast %10 : vector<1x2048xf32> to vector<8x2048xf32>
    %12 = arith.addf %9, %11 : vector<8x2048xf32>
    %cst_5 = arith.constant 0.000000e+00 : f32
    %13 = vector.broadcast %cst_5 : f32 to vector<8x2048xf32>
    %14 = arith.maximumf %12, %13 : vector<8x2048xf32>
    %15 = vector.broadcast %cst_5 : f32 to vector<8x2048xf32>
    %16 = arith.subf %12, %15 : vector<8x2048xf32>
    %17 = arith.cmpf one, %16, %16 : vector<8x2048xf32>
    %18 = vector.broadcast %cst_5 : f32 to vector<8x2048xf32>
    %19 = arith.addf %12, %18 : vector<8x2048xf32>
    %20 = math.absf %16 : vector<8x2048xf32>
    %cst_6 = arith.constant 0.000000e+00 : f32
    %21 = vector.broadcast %cst_6 : f32 to vector<8x2048xf32>
    %22 = arith.subf %21, %20 : vector<8x2048xf32>
    %23 = math.exp %22 : vector<8x2048xf32>
    %24 = math.log1p %23 : vector<8x2048xf32>
    %25 = arith.addf %14, %24 : vector<8x2048xf32>
    %26 = arith.select %17, %19, %25 : vector<8x2048xi1>, vector<8x2048xf32>
    %c0_i32_7 = arith.constant 0 : i32
    %27 = tpu.memref_slice %arg13[%c0_i32_7] : memref<3x!tpu.dma_semaphore, #tpu.memory_space<semaphore_mem>> -> memref<1x!tpu.dma_semaphore, #tpu.memory_space<semaphore_mem>>
    %28 = tpu.memref_squeeze %27 : memref<1x!tpu.dma_semaphore, #tpu.memory_space<semaphore_mem>> -> memref<!tpu.dma_semaphore, #tpu.memory_space<semaphore_mem>>
    tpu.wait_dma2 semaphore(%28 : memref<!tpu.dma_semaphore, #tpu.memory_space<semaphore_mem>>) src(%arg3 : memref<2048x1024xbf16, #tpu.memory_space<any>>) dst(%arg10 : memref<2048x1024xbf16, #tpu.memory_space<vmem>>)
    %29 = arith.truncf %26 : vector<8x2048xf32> to vector<8x2048xbf16>
    %c0_8 = arith.constant 0 : index
    %c0_9 = arith.constant 0 : index
    %30 = vector.load %arg10[%c0_8, %c0_9] : memref<2048x1024xbf16, #tpu.memory_space<vmem>>, vector<2048x1024xbf16>
    %cst_10 = arith.constant dense<0.000000e+00> : vector<8x1024xf32>
    %31 = tpu.matmul %29, %30, %cst_10 {dimension_numbers = #tpu.dot_dimension_numbers<[1], [0], [0], [1], [0, 0, 1, 1], [], []>} : vector<8x2048xbf16>, vector<2048x1024xbf16>, vector<8x1024xf32> -> vector<8x1024xf32>
    %c0_11 = arith.constant 0 : index
    %c0_12 = arith.constant 0 : index
    %32 = vector.load %arg4[%c0_11, %c0_12] : memref<1x1024xf32, #tpu.memory_space<vmem>>, vector<1x1024xf32>
    %33 = vector.broadcast %32 : vector<1x1024xf32> to vector<8x1024xf32>
    %34 = arith.addf %31, %33 : vector<8x1024xf32>
    %cst_13 = arith.constant 0.000000e+00 : f32
    %35 = vector.broadcast %cst_13 : f32 to vector<8x1024xf32>
    %36 = arith.maximumf %34, %35 : vector<8x1024xf32>
    %37 = vector.broadcast %cst_13 : f32 to vector<8x1024xf32>
    %38 = arith.subf %34, %37 : vector<8x1024xf32>
    %39 = arith.cmpf one, %38, %38 : vector<8x1024xf32>
    %40 = vector.broadcast %cst_13 : f32 to vector<8x1024xf32>
    %41 = arith.addf %34, %40 : vector<8x1024xf32>
    %42 = math.absf %38 : vector<8x1024xf32>
    %cst_14 = arith.constant 0.000000e+00 : f32
    %43 = vector.broadcast %cst_14 : f32 to vector<8x1024xf32>
    %44 = arith.subf %43, %42 : vector<8x1024xf32>
    %45 = math.exp %44 : vector<8x1024xf32>
    %46 = math.log1p %45 : vector<8x1024xf32>
    %47 = arith.addf %36, %46 : vector<8x1024xf32>
    %48 = arith.select %39, %41, %47 : vector<8x1024xi1>, vector<8x1024xf32>
    %c1_i32_15 = arith.constant 1 : i32
    %49 = tpu.memref_slice %arg13[%c1_i32_15] : memref<3x!tpu.dma_semaphore, #tpu.memory_space<semaphore_mem>> -> memref<1x!tpu.dma_semaphore, #tpu.memory_space<semaphore_mem>>
    %50 = tpu.memref_squeeze %49 : memref<1x!tpu.dma_semaphore, #tpu.memory_space<semaphore_mem>> -> memref<!tpu.dma_semaphore, #tpu.memory_space<semaphore_mem>>
    tpu.wait_dma2 semaphore(%50 : memref<!tpu.dma_semaphore, #tpu.memory_space<semaphore_mem>>) src(%arg5 : memref<1024x1024xbf16, #tpu.memory_space<any>>) dst(%arg11 : memref<1024x1024xbf16, #tpu.memory_space<vmem>>)
    %51 = arith.truncf %48 : vector<8x1024xf32> to vector<8x1024xbf16>
    %c0_16 = arith.constant 0 : index
    %c0_17 = arith.constant 0 : index
    %52 = vector.load %arg11[%c0_16, %c0_17] : memref<1024x1024xbf16, #tpu.memory_space<vmem>>, vector<1024x1024xbf16>
    %cst_18 = arith.constant dense<0.000000e+00> : vector<8x1024xf32>
    %53 = tpu.matmul %51, %52, %cst_18 {dimension_numbers = #tpu.dot_dimension_numbers<[1], [0], [0], [1], [0, 0, 1, 1], [], []>} : vector<8x1024xbf16>, vector<1024x1024xbf16>, vector<8x1024xf32> -> vector<8x1024xf32>
    %c0_19 = arith.constant 0 : index
    %c0_20 = arith.constant 0 : index
    %54 = vector.load %arg6[%c0_19, %c0_20] : memref<1x1024xf32, #tpu.memory_space<vmem>>, vector<1x1024xf32>
    %55 = vector.broadcast %54 : vector<1x1024xf32> to vector<8x1024xf32>
    %56 = arith.addf %53, %55 : vector<8x1024xf32>
    %cst_21 = arith.constant 0.000000e+00 : f32
    %57 = vector.broadcast %cst_21 : f32 to vector<8x1024xf32>
    %58 = arith.maximumf %56, %57 : vector<8x1024xf32>
    %59 = vector.broadcast %cst_21 : f32 to vector<8x1024xf32>
    %60 = arith.subf %56, %59 : vector<8x1024xf32>
    %61 = arith.cmpf one, %60, %60 : vector<8x1024xf32>
    %62 = vector.broadcast %cst_21 : f32 to vector<8x1024xf32>
    %63 = arith.addf %56, %62 : vector<8x1024xf32>
    %64 = math.absf %60 : vector<8x1024xf32>
    %cst_22 = arith.constant 0.000000e+00 : f32
    %65 = vector.broadcast %cst_22 : f32 to vector<8x1024xf32>
    %66 = arith.subf %65, %64 : vector<8x1024xf32>
    %67 = math.exp %66 : vector<8x1024xf32>
    %68 = math.log1p %67 : vector<8x1024xf32>
    %69 = arith.addf %58, %68 : vector<8x1024xf32>
    %70 = arith.select %61, %63, %69 : vector<8x1024xi1>, vector<8x1024xf32>
    %c2_i32_23 = arith.constant 2 : i32
    %71 = tpu.memref_slice %arg13[%c2_i32_23] : memref<3x!tpu.dma_semaphore, #tpu.memory_space<semaphore_mem>> -> memref<1x!tpu.dma_semaphore, #tpu.memory_space<semaphore_mem>>
    %72 = tpu.memref_squeeze %71 : memref<1x!tpu.dma_semaphore, #tpu.memory_space<semaphore_mem>> -> memref<!tpu.dma_semaphore, #tpu.memory_space<semaphore_mem>>
    tpu.wait_dma2 semaphore(%72 : memref<!tpu.dma_semaphore, #tpu.memory_space<semaphore_mem>>) src(%arg7 : memref<1024x128xbf16, #tpu.memory_space<any>>) dst(%arg12 : memref<1024x128xbf16, #tpu.memory_space<vmem>>)
    %73 = arith.truncf %70 : vector<8x1024xf32> to vector<8x1024xbf16>
    %c0_24 = arith.constant 0 : index
    %c0_25 = arith.constant 0 : index
    %74 = vector.load %arg12[%c0_24, %c0_25] : memref<1024x128xbf16, #tpu.memory_space<vmem>>, vector<1024x128xbf16>
    %cst_26 = arith.constant dense<0.000000e+00> : vector<8x128xf32>
    %75 = tpu.matmul %73, %74, %cst_26 {dimension_numbers = #tpu.dot_dimension_numbers<[1], [0], [0], [1], [0, 0, 1, 1], [], []>} : vector<8x1024xbf16>, vector<1024x128xbf16>, vector<8x128xf32> -> vector<8x128xf32>
    %c0_27 = arith.constant 0 : index
    %c0_28 = arith.constant 0 : index
    %76 = vector.load %arg8[%c0_27, %c0_28] : memref<1x128xf32, #tpu.memory_space<vmem>>, vector<1x128xf32>
    %77 = vector.broadcast %76 : vector<1x128xf32> to vector<8x128xf32>
    %78 = arith.addf %75, %77 : vector<8x128xf32>
    %c0_29 = arith.constant 0 : index
    %c0_30 = arith.constant 0 : index
    %79 = vector.load %arg9[%c0_29, %c0_30] : memref<8x128xf32, #tpu.memory_space<vmem>>, vector<8x128xf32>
    tpu.vector_store %arg9[%c0_29, %c0_30], %78 {strides = array<i32>} : memref<8x128xf32, #tpu.memory_space<vmem>>, vector<8x128xf32>,
    return
  }
}

</mosaic_0001>

<bundles_post_ra>
// kernel: mlp_forward.1
= control target key start
LH: loop header
LB: loop body
LE: loop exit
PB: predicated region body
PF: predicated region fallthrough
CT: control target
= control target key end

     0   :  { %14 = vsyncpa [#allocation7], 0  ;;  %s6930_s0 = inlined_call_operand.hbm [shape: f32[8,32], index: 0, kind: input, shape index: {}]   ;;  %s6931_s1 = inlined_call_operand.hbm [shape: bf16[32,2048], index: 1, kind: input, shape index: {}]   ;;  %s6932_s2 = inlined_call_operand.hbm [shape: f32[1,2048], index: 2, kind: input, shape index: {}]   ;;  %s6933_s3 = inlined_call_operand.hbm [shape: bf16[2048,1024], index: 3, kind: input, shape index: {}]   ;;  %s6934_s4 = inlined_call_operand.hbm [shape: f32[1,1024], index: 4, kind: input, shape index: {}]   ;;  %s6935_s5 = inlined_call_operand.hbm [shape: bf16[1024,1024], index: 5, kind: input, shape index: {}]   ;;  %s6936_s6 = inlined_call_operand.hbm [shape: f32[1,1024], index: 6, kind: input, shape index: {}]   ;;  %s6937_s7 = inlined_call_operand.hbm [shape: bf16[1024,128], index: 7, kind: input, shape index: {}]   ;;  %s6938_s8 = inlined_call_operand.hbm [shape: f32[1,128], index: 8, kind: input, shape index: {}]   ;;  %s6939_s9 = inlined_call_operand.hbm [shape: f32[8,128], index: 9, kind: output, shape index: {}]  }
   0x1   :  { %15 = vsyncpa [#allocation10], 0 }
   0x2   :  { %16 = vsyncpa [#allocation13], 0 }
   0x3   :  { %17 = vsyncpa [#allocation16], 0 }
   0x4   :  { %18 = vsyncpa [#allocation8], 0  ;;  %s5924_s30 = smov [#allocation9]   ;;  %s5732_s13 = scalar_lea.hbm %s6931_s1, 4096 }
   0x5   :  { %s34_s10 = sshll.u32 %s5924_s30, 4  ;;  %p5733_p0 = scmp.ne.s32.totalorder %s6931_s1, %s5732_s13  ;;  %s35_s10 = int_to_ptr.vmem [resolvable:$true] %s34_s10 }
   0x6   :  { %p5736_p1 = scmp.lt.u32.totalorder %s5732_s13, %s6931_s1 }
   0x8   :  { %p5738_p2 = pnand %p5736_p1, %p5733_p0 }
   0xa   :  { %5741 = shalt.err (!%p5738_p2)
}
   0xb   :  { %s5742_s18 = scalar_lea.vmem %s35_s10, 4096  ;;  %p5747_p4 = scmp.lt.s32.totalorder %s35_s10, %s35_s10 }
   0xc   :  { %p5743_p3 = scmp.ne.s32.totalorder %s35_s10, %s5742_s18  ;;  %p5748_p5 = scmp.lt.s32.totalorder %s5742_s18, %s5742_s18 }
   0xe   :  { %p5749_p6 = por %p5748_p5, %p5747_p4 }
  0x10   :  { %p5750_p7 = pnand %p5749_p6, %p5743_p3 }
  0x12   :  { %5753 = shalt.err (!%p5750_p7)
}
  0x13   :  { %s5925_s19 = smov 1024   ;;  %s5926_s20 = smov 64  }
  0x14   :  { %40 = dma.hbm_to_vmem [thread:$0]  %s6931_s1, 4096, %s35_s10, [#allocation10], %s5925_s19, %s5925_s19, %s5926_s20  }
  0x15   :  { %s5927_s23 = smov [#allocation12]   ;;  %s5928_s25 = smov [#allocation6]  }
  0x16   :  { %s57_s24 = sshll.u32 %s5927_s23, 4  ;;  %s25_s26 = sshll.u32 %s5928_s25, 4  ;;  %s58_s24 = int_to_ptr.vmem [resolvable:$true] %s57_s24  ;;  %s26_s26 = int_to_ptr.vmem [resolvable:$true] %s25_s26 }
  0x17   :  { %s5754_s29 = scalar_lea.hbm %s6934_s4, 128 }
  0x18   :  { %p5755_p8 = scmp.ne.s32.totalorder %s6934_s4, %s5754_s29  ;;  %p5758_p9 = scmp.lt.u32.totalorder %s5754_s29, %s6934_s4 }
  0x1a   :  { %p5760_p10 = pnand %p5758_p9, %p5755_p8 }
  0x1c   :  { %5763 = shalt.err (!%p5760_p10)
}
  0x1d   :  { %s5764_s1 = scalar_lea.vmem %s58_s24, 128  ;;  %p5769_p12 = scmp.lt.s32.totalorder %s58_s24, %s58_s24 }
  0x1e   :  { %p5765_p11 = scmp.ne.s32.totalorder %s58_s24, %s5764_s1  ;;  %p5770_p13 = scmp.lt.s32.totalorder %s5764_s1, %s5764_s1 }
  0x20   :  { %p5771_p0 = por %p5770_p13, %p5769_p12 }
  0x22   :  { %p5772_p1 = pnand %p5771_p0, %p5765_p11 }
  0x24   :  { %5775 = shalt.err (!%p5772_p1)
}
  0x25   :  { %60 = dma.hbm_to_vmem [thread:$0]  %s6934_s4, 128, %s58_s24, [#allocation13]  }
  0x26   :  { %s5776_s17 = scalar_lea.hbm %s6930_s0, 128 }
  0x27   :  { %p5777_p2 = scmp.ne.s32.totalorder %s6930_s0, %s5776_s17  ;;  %p5780_p3 = scmp.lt.u32.totalorder %s5776_s17, %s6930_s0 }
  0x29   :  { %p5782_p4 = pnand %p5780_p3, %p5777_p2 }
  0x2b   :  { %5785 = shalt.err (!%p5782_p4)
}
  0x2c   :  { %s5786_s25 = scalar_lea.vmem %s26_s26, 128  ;;  %p5791_p6 = scmp.lt.s32.totalorder %s26_s26, %s26_s26 }
  0x2d   :  { %p5787_p5 = scmp.ne.s32.totalorder %s26_s26, %s5786_s25  ;;  %p5792_p7 = scmp.lt.s32.totalorder %s5786_s25, %s5786_s25 }
  0x2f   :  { %p5793_p8 = por %p5792_p7, %p5791_p6 }
  0x31   :  { %p5794_p9 = pnand %p5793_p8, %p5787_p5 }
  0x33   :  { %5797 = shalt.err (!%p5794_p9)
}
  0x34   :  { %28 = dma.hbm_to_vmem [thread:$0]  %s6930_s0, 128, %s26_s26, [#allocation7]  }
  0x35   :  { %s5929_s27 = smov [#allocation11]   ;;  %s5930_s29 = smov [#allocation14]  }
  0x36   :  { %s47_s28 = sshll.u32 %s5929_s27, 4  ;;  %s67_s30 = sshll.u32 %s5930_s29, 4  ;;  %s48_s28 = int_to_ptr.vmem [resolvable:$true] %s47_s28  ;;  %s68_s30 = int_to_ptr.vmem [resolvable:$true] %s67_s30 }
  0x37   :  { %s5798_s13 = scalar_lea.hbm %s6932_s2, 256 }
  0x38   :  { %p5799_p10 = scmp.ne.s32.totalorder %s6932_s2, %s5798_s13  ;;  %p5802_p11 = scmp.lt.u32.totalorder %s5798_s13, %s6932_s2 }
  0x3a   :  { %p5804_p12 = pnand %p5802_p11, %p5799_p10 }
  0x3c   :  { %5807 = shalt.err (!%p5804_p12)
}
  0x3d   :  { %s5808_s0 = scalar_lea.vmem %s48_s28, 256  ;;  %p5813_p0 = scmp.lt.s32.totalorder %s48_s28, %s48_s28 }
  0x3e   :  { %p5809_p13 = scmp.ne.s32.totalorder %s48_s28, %s5808_s0  ;;  %p5814_p1 = scmp.lt.s32.totalorder %s5808_s0, %s5808_s0 }
  0x40   :  { %p5815_p2 = por %p5814_p1, %p5813_p0 }
  0x42   :  { %p5816_p3 = pnand %p5815_p2, %p5809_p13 }
  0x44   :  { %5819 = shalt.err (!%p5816_p3)
}
  0x45   :  { %50 = dma.hbm_to_vmem [thread:$0]  %s6932_s2, 256, %s48_s28, [#allocation10]  }
  0x46   :  { %s5820_s21 = scalar_lea.hbm %s6936_s6, 128 }
  0x47   :  { %p5821_p4 = scmp.ne.s32.totalorder %s6936_s6, %s5820_s21  ;;  %p5824_p5 = scmp.lt.u32.totalorder %s5820_s21, %s6936_s6 }
  0x49   :  { %p5826_p6 = pnand %p5824_p5, %p5821_p4 }
  0x4b   :  { %5829 = shalt.err (!%p5826_p6)
}
  0x4c   :  { %s5830_s24 = scalar_lea.vmem %s68_s30, 128  ;;  %p5835_p8 = scmp.lt.s32.totalorder %s68_s30, %s68_s30 }
  0x4d   :  { %p5831_p7 = scmp.ne.s32.totalorder %s68_s30, %s5830_s24  ;;  %p5836_p9 = scmp.lt.s32.totalorder %s5830_s24, %s5830_s24 }
  0x4f   :  { %p5837_p10 = por %p5836_p9, %p5835_p8 }
  0x51   :  { %p5838_p11 = pnand %p5837_p10, %p5831_p7 }
  0x53   :  { %5841 = shalt.err (!%p5838_p11)
}
  0x54   :  { %70 = dma.hbm_to_vmem [thread:$0]  %s6936_s6, 128, %s68_s30, [#allocation13]  }
  0x55   :  { %s5931_s28 = smov [#allocation15]   ;;  %s5842_s13 = scalar_lea.hbm %s6938_s8, 16 }
  0x56   :  { %s77_s29 = sshll.u32 %s5931_s28, 4  ;;  %p5843_p12 = scmp.ne.s32.totalorder %s6938_s8, %s5842_s13  ;;  %s78_s29 = int_to_ptr.vmem [resolvable:$true] %s77_s29 }
  0x57   :  { %p5846_p13 = scmp.lt.u32.totalorder %s5842_s13, %s6938_s8 }
  0x59   :  { %p5848_p0 = pnand %p5846_p13, %p5843_p12 }
  0x5b   :  { %5851 = shalt.err (!%p5848_p0)
}
  0x5c   :  { %s5852_s0 = scalar_lea.vmem %s78_s29, 16  ;;  %s5856_s6 = scalar_lea.vmem %s78_s29, 32 }
  0x5d   :  { %p5853_p1 = scmp.ne.s32.totalorder %s78_s29, %s5852_s0  ;;  %p5857_p2 = scmp.lt.s32.totalorder %s78_s29, %s78_s29 }
  0x5e   :  { %p5858_p3 = scmp.lt.s32.totalorder %s5856_s6, %s5852_s0 }
  0x60   :  { %p5859_p4 = por %p5858_p3, %p5857_p2 }
  0x62   :  { %p5860_p5 = pnand %p5859_p4, %p5853_p1 }
  0x64   :  { %5863 = shalt.err (!%p5860_p5)
}
  0x65   :  { %80 = dma.hbm_to_vmem [thread:$0]  %s6938_s8, 16, %s78_s29, [#allocation16]  }
  0x66   :  { %5908 = dma.done.wait [#allocation7], 128  }
  0x67   :  { %5909 = vsyncadd [#allocation7], 4294967168 }
  0x68   :  { %5910 = dma.done.wait [#allocation10], 4352  }
  0x69   :  { %5911 = vsyncadd [#allocation10], 4294962944 }
  0x6a   :  { %5912 = dma.done.wait [#allocation13], 256  }
  0x6b   :  { %5913 = vsyncadd [#allocation13], 4294967040 }
  0x6c   :  { %5914 = dma.done.wait [#allocation16], 16  }
  0x6d   :  { %5915 = vsyncadd [#allocation16], 4294967280  ;;  %s104_s16 = sld [smem:[#allocation0]]   ;;  %116 = sst [smem:[#allocation19]] %s5925_s19  ;;  %v5932_v0 = vmov 0   ;;  %vm460_vm0 = vcmask 261120  }
  0x6e   :  { %496 = vmatprep.mubr.bf16.mxu0 %v5932_v0  ;;  %537 = vmatprep.mubr.bf16.mxu1 %v5932_v0  ;;  %118 = sst [smem:[#allocation19 + $0x1]] %s5925_s19  ;;  %s5933_s17 = smov [#allocation2]  }
  0x6f   :  { %s112_s8 = sshll.u32 %s5933_s17, 4  ;;  %122 = sst [smem:[#allocation19 + $0x3]] %s5926_s20  ;;  %s113_s8 = int_to_ptr.vmem [resolvable:$true] %s112_s8 }
  0x70   :  { %130 = sst [smem:[#allocation19 + $0x7]] %s5926_s20  ;;  %s5934_s18 = smov 8  }
  0x71   :  { %120 = sst [smem:[#allocation19 + $0x2]] %s5934_s18  ;;  %s5935_s21 = smov 128  }
  0x72   :  { %124 = sst [smem:[#allocation19 + $0x4]] %s5935_s21  ;;  %s5936_s23 = smov 2  }
  0x73   :  { %s5269_s22 = sshll.u32 %s104_s16, 26  ;;  %126 = sst [smem:[#allocation19 + $0x5]] %s5936_s23 }
  0x74   :  { %s5270_s25 = sadd.s32 134217728, %s5269_s22  ;;  %s5937_s4 = smov 512  }
  0x75   :  { %128 = sst [smem:[#allocation19 + $0x6]] %s5937_s4  ;;  %s5938_s24 = smov 4  }
  0x76   :  { %132 = sst [smem:[#allocation19 + $0x8]] %s5938_s24  ;;  %s5939_s2 = smov [#allocation5]  }
  0x77   :  { %s5940_s27 = smov [#allocation18]   ;;  %s5941_s11 = smov [#allocation3]  }
  0x78   :  { %134 = dma.general %s6933_s3, 131072, %s113_s8, %s5939_s2, %s5940_s27, [#allocation19], %s5270_s25, 0  }
  0x79   :  { %151 = sst [smem:[#allocation21]] %s5925_s19  ;;  %s147_s12 = sshll.u32 %s5941_s11, 4  ;;  %s148_s12 = int_to_ptr.vmem [resolvable:$true] %s147_s12 }
  0x7a   :  { %153 = sst [smem:[#allocation21 + $0x1]] %s5925_s19  ;;  %s5942_s13 = smov [#allocation5 + $0x1]  }
  0x7b   :  { %155 = sst [smem:[#allocation21 + $0x2]] %s5934_s18  ;;  %s5943_s1 = smov [#allocation20]  }
  0x7c   :  { %157 = sst [smem:[#allocation21 + $0x3]] %s5926_s20  ;;  %s5864_s15 = scalar_lea.hbm %s6937_s7, 8192 }
  0x7d   :  { %159 = sst [smem:[#allocation21 + $0x4]] %s5935_s21  ;;  %p5865_p6 = scmp.ne.s32.totalorder %s6937_s7, %s5864_s15 }
  0x7e   :  { %161 = sst [smem:[#allocation21 + $0x5]] %s5936_s23  ;;  %p5868_p7 = scmp.lt.u32.totalorder %s5864_s15, %s6937_s7 }
  0x7f   :  { %163 = sst [smem:[#allocation21 + $0x6]] %s5937_s4 }
  0x80   :  { %165 = sst [smem:[#allocation21 + $0x7]] %s5926_s20  ;;  %p5870_p8 = pnand %p5868_p7, %p5865_p6 }
  0x81   :  { %167 = sst [smem:[#allocation21 + $0x8]] %s5938_s24 }
  0x82   :  { %169 = dma.general %s6935_s5, 65536, %s148_s12, %s5942_s13, %s5943_s1, [#allocation21], %s5270_s25, 0  }
  0x83   :  { %v184_v1 = vld [vmem:[#allocation9] sm:$0xff]  ;;  %v185_v3 = vld [vmem:[#allocation9 + $0x8] sm:$0xff]  ;;  %v186_v15 = vld [vmem:[#allocation9 + $0x10] sm:$0xff]  ;;  %s5944_s5 = smov [#allocation4]  }
  0x84   :  { %v192_v2 = vld [vmem:[#allocation9 + $0x40] sm:$0xff]  ;;  %v193_v5 = vld [vmem:[#allocation9 + $0x48] sm:$0xff]  ;;  %v194_v16 = vld [vmem:[#allocation9 + $0x50] sm:$0xff]  ;;  %s178_s19 = sshll.u32 %s5944_s5, 4  ;;  %s179_s19 = int_to_ptr.vmem [resolvable:$true] %s178_s19 }
  0x85   :  { %v5274_v4 = vcombine.high %v184_v1, %v192_v2  ;;  %v5273_v6 = vcombine.low %v184_v1, %v192_v2  ;;  %v200_v7 = vld [vmem:[#allocation9 + $0x80] sm:$0xff]  ;;  %v5276_v9 = vcombine.high %v185_v3, %v193_v5  ;;  %v5275_v10 = vcombine.low %v185_v3, %v193_v5  ;;  %v201_v12 = vld [vmem:[#allocation9 + $0x88] sm:$0xff]  ;;  %v187_v17 = vld [vmem:[#allocation9 + $0x18] sm:$0xff] }
  0x86   :  { %v208_v8 = vld [vmem:[#allocation9 + $0xc0] sm:$0xff]  ;;  %v209_v13 = vld [vmem:[#allocation9 + $0xc8] sm:$0xff]  ;;  %v182_v19 = vld [vmem:[#allocation6] sm:$0xff]  ;;  %v5278_v22 = vcombine.high %v186_v15, %v194_v16  ;;  %v5277_v29 = vcombine.low %v186_v15, %v194_v16 }
  0x87   :  { %v5290_v11 = vcombine.high %v200_v7, %v208_v8  ;;  %464 = vmatprep.subr.bf16.mxu0 %v5274_v4  ;;  %v5292_v14 = vcombine.high %v201_v12, %v209_v13  ;;  %505 = vmatprep.subr.bf16.mxu1 %v5276_v9  ;;  %v5289_v18 = vcombine.low %v200_v7, %v208_v8  ;;  %v195_v20 = vld [vmem:[#allocation9 + $0x58] sm:$0xff]  ;;  %v202_v24 = vld [vmem:[#allocation9 + $0x90] sm:$0xff]  ;;  %v188_v33 = vld [vmem:[#allocation9 + $0x20] sm:$0xff] }
  0x88   :  { %465 = vmatpush1.bf16.msra.mxu0 %v5273_v6  ;;  %506 = vmatpush1.bf16.msra.mxu1 %v5275_v10  ;;  %v5291_v21 = vcombine.low %v201_v12, %v209_v13  ;;  %v5280_v23 = vcombine.high %v187_v17, %v195_v20  ;;  %v210_v25 = vld [vmem:[#allocation9 + $0xd0] sm:$0xff]  ;;  %v6087_v26 = vpack.c.bf16 %v182_v19, %v182_v19  ;;  %v203_v27 = vld [vmem:[#allocation9 + $0x98] sm:$0xff]  ;;  %v196_v34 = vld [vmem:[#allocation9 + $0x60] sm:$0xff] }
  0x89   :  { %466 = vmatprep.subr.bf16.mxu0 %v5290_v11  ;;  %507 = vmatprep.subr.bf16.mxu1 %v5292_v14  ;;  %v211_v28 = vld [vmem:[#allocation9 + $0xd8] sm:$0xff]  ;;  %v5279_v30 = vcombine.low %v187_v17, %v195_v20  ;;  %v5294_v31 = vcombine.high %v202_v24, %v210_v25  ;;  %v189_v35 = vld [vmem:[#allocation9 + $0x28] sm:$0xff]  ;;  %v5293_v37 = vcombine.low %v202_v24, %v210_v25  ;;  %v204_v41 = vld [vmem:[#allocation9 + $0xa0] sm:$0xff] }
  0x8a   :  { %v5296_v32 = vcombine.high %v203_v27, %v211_v28  ;;  %v197_v36 = vld [vmem:[#allocation9 + $0x68] sm:$0xff]  ;;  %v5295_v38 = vcombine.low %v203_v27, %v211_v28  ;;  %v5282_v39 = vcombine.high %v188_v33, %v196_v34  ;;  %v212_v42 = vld [vmem:[#allocation9 + $0xe0] sm:$0xff]  ;;  %v5281_v45 = vcombine.low %v188_v33, %v196_v34  ;;  %v190_v49 = vld [vmem:[#allocation9 + $0x30] sm:$0xff] }
  0x8b   :  { %v5284_v40 = vcombine.high %v189_v35, %v197_v36  ;;  %v205_v43 = vld [vmem:[#allocation9 + $0xa8] sm:$0xff]  ;;  %v5283_v46 = vcombine.low %v189_v35, %v197_v36  ;;  %v5298_v47 = vcombine.high %v204_v41, %v212_v42  ;;  %v198_v50 = vld [vmem:[#allocation9 + $0x70] sm:$0xff]  ;;  %v191_v51 = vld [vmem:[#allocation9 + $0x38] sm:$0xff]  ;;  %v5297_v53 = vcombine.low %v204_v41, %v212_v42 }
  0x8c   :  { %467 = vmatpush1.bf16.msra.mxu0 %v5289_v18  ;;  %508 = vmatpush1.bf16.msra.mxu1 %v5291_v21  ;;  %v213_v44 = vld [vmem:[#allocation9 + $0xe8] sm:$0xff]  ;;  %v199_v52 = vld [vmem:[#allocation9 + $0x78] sm:$0xff]  ;;  %v5286_v55 = vcombine.high %v190_v49, %v198_v50  ;;  %v206_v57 = vld [vmem:[#allocation9 + $0xb0] sm:$0xff]  ;;  %v5285_v61 = vcombine.low %v190_v49, %v198_v50 }
  0x8d   :  { %546 = vmatprep.subr.bf16.mxu0 %v5278_v22  ;;  %587 = vmatprep.subr.bf16.mxu1 %v5280_v23  ;;  %v5300_v48 = vcombine.high %v205_v43, %v213_v44  ;;  %v5299_v54 = vcombine.low %v205_v43, %v213_v44  ;;  %v5288_v56 = vcombine.high %v191_v51, %v199_v52  ;;  %v214_v58 = vld [vmem:[#allocation9 + $0xf0] sm:$0xff]  ;;  %v207_v59 = vld [vmem:[#allocation9 + $0xb8] sm:$0xff] }
  0x8e   :  { %v215_v60 = vld [vmem:[#allocation9 + $0xf8] sm:$0xff]  ;;  %v5287_v62 = vcombine.low %v191_v51, %v199_v52  ;;  %v5302_v63 = vcombine.high %v206_v57, %v214_v58  ;;  %v5301_v2 = vcombine.low %v206_v57, %v214_v58 }
  0x8f   :  { %5305 = vmatmul.mubr.msk.bf16.vlgmr.msra.gmra.mrb[0].mxu0 %vm460_vm0, %v6087_v26  ;;  %5306 = vmatmul.mubr.msk.bf16.vlgmr.msra.gmra.mrb[0].mxu1 %vm460_vm0, %v6087_v26  ;;  %v5304_v1 = vcombine.high %v207_v59, %v215_v60  ;;  %v5303_v3 = vcombine.low %v207_v59, %v215_v60 }
  0x90   :  { %547 = vmatpush1.bf16.msra.mxu0 %v5277_v29  ;;  %588 = vmatpush1.bf16.msra.mxu1 %v5279_v30 }
  0x91   :  { %548 = vmatprep.subr.bf16.mxu0 %v5294_v31  ;;  %589 = vmatprep.subr.bf16.mxu1 %v5296_v32 }
  0x92   :  { %578 = vmatprep.mubr.bf16.mxu0 %v5932_v0  ;;  %619 = vmatprep.mubr.bf16.mxu1 %v5932_v0 }
  0x94   :  { %549 = vmatpush1.bf16.msra.mxu0 %v5293_v37  ;;  %590 = vmatpush1.bf16.msra.mxu1 %v5295_v38 }
  0x95   :  { %628 = vmatprep.subr.bf16.mxu0 %v5282_v39  ;;  %669 = vmatprep.subr.bf16.mxu1 %v5284_v40 }
  0x97   :  { %5307 = vmatmul.mubr.msk.bf16.vlgmr.msra.gmra.mrb[4].mxu0 %vm460_vm0, %v6087_v26  ;;  %5308 = vmatmul.mubr.msk.bf16.vlgmr.msra.gmra.mrb[4].mxu1 %vm460_vm0, %v6087_v26 }
  0x98   :  { %629 = vmatpush1.bf16.msra.mxu0 %v5281_v45  ;;  %670 = vmatpush1.bf16.msra.mxu1 %v5283_v46 }
  0x99   :  { %630 = vmatprep.subr.bf16.mxu0 %v5298_v47  ;;  %671 = vmatprep.subr.bf16.mxu1 %v5300_v48 }
  0x9a   :  { %660 = vmatprep.mubr.bf16.mxu0 %v5932_v0  ;;  %701 = vmatprep.mubr.bf16.mxu1 %v5932_v0 }
  0x9c   :  { %631 = vmatpush1.bf16.msra.mxu0 %v5297_v53  ;;  %672 = vmatpush1.bf16.msra.mxu1 %v5299_v54 }
  0x9d   :  { %710 = vmatprep.subr.bf16.mxu0 %v5286_v55  ;;  %751 = vmatprep.subr.bf16.mxu1 %v5288_v56 }
  0x9f   :  { %5309 = vmatmul.mubr.msk.bf16.vlgmr.msra.gmra.mrb[8].mxu0 %vm460_vm0, %v6087_v26  ;;  %5310 = vmatmul.mubr.msk.bf16.vlgmr.msra.gmra.mrb[8].mxu1 %vm460_vm0, %v6087_v26 }
  0xa0   :  { %711 = vmatpush1.bf16.msra.mxu0 %v5285_v61  ;;  %752 = vmatpush1.bf16.msra.mxu1 %v5287_v62 }
  0xa1   :  { %712 = vmatprep.subr.bf16.mxu0 %v5302_v63  ;;  %753 = vmatprep.subr.bf16.mxu1 %v5304_v1 }
  0xa2   :  { %742 = vmatprep.mubr.bf16.mxu0 %v5932_v0  ;;  %783 = vmatprep.mubr.bf16.mxu1 %v5932_v0 }
  0xa4   :  { %713 = vmatpush1.bf16.msra.mxu0 %v5301_v2  ;;  %754 = vmatpush1.bf16.msra.mxu1 %v5303_v3 }
  0xa7   :  { %5311 = vmatmul.mubr.msk.bf16.vlgmr.msra.gmra.mrb[12].mxu0 %vm460_vm0, %v6087_v26  ;;  %5312 = vmatmul.mubr.msk.bf16.vlgmr.msra.gmra.mrb[12].mxu1 %vm460_vm0, %v6087_v26 }
  0xa8   :  { %5873 = shalt.err (!%p5870_p8)  }
  0xa9   :  { %s5874_s16 = scalar_lea.vmem %s179_s19, 8192  ;;  %p5879_p10 = scmp.lt.s32.totalorder %s179_s19, %s179_s19 }
  0xaa   :  { %p5875_p9 = scmp.ne.s32.totalorder %s179_s19, %s5874_s16  ;;  %p5880_p11 = scmp.lt.s32.totalorder %s5874_s16, %s5874_s16 }
  0xac   :  { %p5881_p12 = por %p5880_p11, %p5879_p10 }
  0xae   :  { %p5882_p13 = pnand %p5881_p12, %p5875_p9 }
  0xb0   :  { %5885 = shalt.err (!%p5882_p13)  }
  0xb1   :  { %181 = dma.hbm_to_vmem [thread:$0]  %s6937_s7, 8192, %s179_s19, [#allocation5 + $0x2]  ;;  %v220_v0 = vlaneseq  ;;  %v6125_v6 = vld [vmem:[#allocation11] sm:$0xff]  ;;  %v6175_v54 = vld [vmem:[#allocation11 + $0x8] sm:$0xff] }
  0xb3   :  { %v221_v4 = vshrl.u32 %v220_v0, 7 }
  0xb5   :  { %v6123_v5 = vsub.s32 0, %v221_v4  ;;  %v6127_v7 = vsub.s32 2, %v221_v4  ;;  %v6129_v8 = vsub.s32 1, %v221_v4  ;;  %v6131_v9 = vsub.s32 3, %v221_v4 }
  0xb6   :  { %v6143_v18 = vsub.s32 4, %v221_v4  ;;  %v6149_v23 = vsub.s32 6, %v221_v4  ;;  %v6151_v24 = vsub.s32 5, %v221_v4  ;;  %v6160_v34 = vsub.s32 7, %v221_v4 }
  0xb7   :  { %v223_v10 = vrot.slane %v6125_v6, %v6123_v5  ;;  %v231_v11 = vrot.slane %v6125_v6, %v6127_v7  ;;  %v227_v12 = vrot.slane %v6125_v6, %v6129_v8  ;;  %v235_v13 = vrot.slane %v6125_v6, %v6131_v9 }
  0xb8   :  { %v239_v33 = vrot.slane %v6125_v6, %v6143_v18  ;;  %v247_v37 = vrot.slane %v6125_v6, %v6149_v23  ;;  %v243_v38 = vrot.slane %v6125_v6, %v6151_v24  ;;  %v251_v48 = vrot.slane %v6125_v6, %v6160_v34 }
  0xb9   :  { %v255_v62 = vrot.slane %v6175_v54, %v6123_v5 }
 0x162   :  { %v498_v14 = vpop.f32.mrb[0].mxu0  ;;  %v539_v16 = vpop.f32.mrb[0].mxu1 }
 0x163   :  { %v6141_v15 = vadd.f32 %v498_v14, %v223_v10  ;;  %v500_v17 = vpop.f32.mrb[1].mxu0  ;;  %v6145_v19 = vadd.f32 %v539_v16, %v231_v11  ;;  %v541_v21 = vpop.f32.mrb[1].mxu1  ;;  %v259_v16 = vrot.slane %v6175_v54, %v6129_v8 }
 0x164   :  { %v6147_v20 = vadd.f32 %v500_v17, %v227_v12  ;;  %v502_v22 = vpop.f32.mrb[2].mxu0  ;;  %v6154_v26 = vadd.f32 %v541_v21, %v235_v13  ;;  %v543_v27 = vpop.f32.mrb[2].mxu1  ;;  %v263_v12 = vrot.slane %v6175_v54, %v6127_v7  ;;  %v267_v17 = vrot.slane %v6175_v54, %v6131_v9 }
 0x165   :  { %v840_v25 = vand.u32 2147483647, %v6141_v15  ;;  %v503_v28 = vpop.f32.mrb[3].mxu0  ;;  %v842_v29 = vand.u32 2147483647, %v6145_v19  ;;  %v544_v30 = vpop.f32.mrb[3].mxu1  ;;  %vm808_vm2 = vcmp.ne.f32.partialorder %v6141_v15, %v6141_v15  ;;  %vm810_vm4 = vcmp.ne.f32.partialorder %v6145_v19, %v6145_v19 }
 0x166   :  { %v841_v32 = vand.u32 2147483647, %v6147_v20  ;;  %v843_v36 = vand.u32 2147483647, %v6154_v26  ;;  %vm809_vm5 = vcmp.ne.f32.partialorder %v6147_v20, %v6147_v20  ;;  %vm811_vm7 = vcmp.ne.f32.partialorder %v6154_v26, %v6154_v26 }
 0x167   :  { %v856_v31 = vsub.f32 0.0, %v840_v25  ;;  %v858_v35 = vsub.f32 0.0, %v842_v29  ;;  %v271_v25 = vrot.slane %v6175_v54, %v6143_v18 }
 0x168   :  { %v857_v40 = vsub.f32 0.0, %v841_v32  ;;  %v859_v42 = vsub.f32 0.0, %v843_v36 }
 0x169   :  { %v872_v39 = vmul.f32 1.442695, %v856_v31  ;;  %v876_v41 = vmul.f32 1.442695, %v858_v35  ;;  %v792_v35 = vmax.f32 %v6141_v15, 0.0 }
 0x16a   :  { %v580_v43 = vpop.f32.mrb[4].mxu0  ;;  %v874_v44 = vmul.f32 1.442695, %v857_v40  ;;  %v621_v46 = vpop.f32.mrb[4].mxu1  ;;  %v878_v49 = vmul.f32 1.442695, %v859_v42 }
 0x16b   :  { %5603 = vpow2.f32 %v872_v39  ;;  %v6167_v45 = vadd.f32 %v580_v43, %v239_v33  ;;  %v582_v47 = vpop.f32.mrb[5].mxu0  ;;  %v6171_v50 = vadd.f32 %v621_v46, %v247_v37  ;;  %v623_v52 = vpop.f32.mrb[5].mxu1  ;;  %v794_v40 = vmax.f32 %v6145_v19, 0.0 }
 0x16c   :  { %5605 = vpow2.f32 %v876_v41  ;;  %v6173_v51 = vadd.f32 %v582_v47, %v243_v38  ;;  %v584_v53 = vpop.f32.mrb[6].mxu0  ;;  %v625_v56 = vpop.f32.mrb[6].mxu1  ;;  %v6182_v1 = vadd.f32 %v623_v52, %v251_v48  ;;  %v793_v42 = vmax.f32 %v6147_v20, 0.0 }
 0x16d   :  { %5607 = vpow2.f32 %v874_v44  ;;  %v844_v55 = vand.u32 2147483647, %v6167_v45  ;;  %v585_v57 = vpop.f32.mrb[7].mxu0  ;;  %v846_v58 = vand.u32 2147483647, %v6171_v50  ;;  %v626_v59 = vpop.f32.mrb[7].mxu1  ;;  %vm812_vm11 = vcmp.ne.f32.partialorder %v6167_v45, %v6167_v45 }
 0x16e   :  { %5609 = vpow2.f32 %v878_v49  ;;  %v845_v61 = vand.u32 2147483647, %v6173_v51  ;;  %v847_v4 = vand.u32 2147483647, %v6182_v1  ;;  %v795_v43 = vmax.f32 %v6154_v26, 0.0 }
 0x16f   :  { %v860_v60 = vsub.f32 0.0, %v844_v55  ;;  %v862_v63 = vsub.f32 0.0, %v846_v58  ;;  %v796_v57 = vmax.f32 %v6167_v45, 0.0  ;;  %v798_v58 = vmax.f32 %v6171_v50, 0.0 }
 0x170   :  { %v861_v3 = vsub.f32 0.0, %v845_v61  ;;  %v863_v28 = vsub.f32 0.0, %v847_v4  ;;  %vm814_vm12 = vcmp.ne.f32.partialorder %v6171_v50, %v6171_v50  ;;  %vm813_vm13 = vcmp.ne.f32.partialorder %v6173_v51, %v6173_v51 }
 0x171   :  { %v880_v2 = vmul.f32 1.442695, %v860_v60  ;;  %v884_v0 = vmul.f32 1.442695, %v862_v63 }
 0x172   :  { %v662_v6 = vpop.f32.mrb[8].mxu0  ;;  %v882_v10 = vmul.f32 1.442695, %v861_v3  ;;  %v703_v13 = vpop.f32.mrb[8].mxu1  ;;  %v886_v55 = vmul.f32 1.442695, %v863_v28 }
 0x173   :  { %5611 = vpow2.f32 %v880_v2  ;;  %v6185_v11 = vadd.f32 %v662_v6, %v255_v62  ;;  %v664_v14 = vpop.f32.mrb[9].mxu0  ;;  %v6193_v21 = vpop.f32.mrb[9].mxu1  ;;  %v797_v62 = vmax.f32 %v6173_v51, 0.0  ;;  %v6225_v63 = vadd.f32 %v703_v13, %v263_v12 }
 0x174   :  { %5613 = vpow2.f32 %v884_v0  ;;  %v666_v22 = vpop.f32.mrb[10].mxu0  ;;  %v707_v30 = vpop.f32.mrb[10].mxu1  ;;  %v6232_v6 = vadd.f32 %v664_v14, %v259_v16 }
 0x175   :  { %v6197_v27 = vpop.eup %5603  ;;  %5615 = vpow2.f32 %v882_v10  ;;  %v848_v29 = vand.u32 2147483647, %v6185_v11  ;;  %v667_v31 = vpop.f32.mrb[11].mxu0 }
 0x176   :  { %v5606_v33 = vpop.eup %5605  ;;  %v904_v36 = vadd.f32 1.0, %v6197_v27  ;;  %v708_v44 = vpop.f32.mrb[11].mxu1  ;;  %v907_v47 = vmul.f32 -0.5, %v6197_v27  ;;  %v910_v52 = vand.u32 2147483647, %v6197_v27 }
 0x177   :  { %v6208_v39 = vpop.eup %5607  ;;  %v922_v41 = vadd.f32 1.0, %v5606_v33  ;;  %v864_v49 = vsub.f32 0.0, %v848_v29  ;;  %v925_v53 = vmul.f32 -0.5, %v5606_v33  ;;  %v928_v60 = vand.u32 2147483647, %v5606_v33 }
 0x178   :  { %v6213_v46 = vpop.eup %5609  ;;  %5617 = vlog2.f32 %v904_v36  ;;  %v913_v48 = vadd.f32 1.0, %v6208_v39  ;;  %v916_v61 = vmul.f32 -0.5, %v6208_v39  ;;  %v908_v28 = vadd.f32 1.0, %v907_v47 }
 0x179   :  { %5619 = vlog2.f32 %v922_v41  ;;  %v931_v56 = vadd.f32 1.0, %v6213_v46  ;;  %v934_v0 = vmul.f32 -0.5, %v6213_v46  ;;  %v888_v4 = vmul.f32 1.442695, %v864_v49 }
 0x17a   :  { %5621 = vlog2.f32 %v913_v48  ;;  %v6221_v59 = vpop.f32.mrb[12].mxu0  ;;  %v6227_v2 = vpop.f32.mrb[12].mxu1  ;;  %vm6236_vm1 = vcmp.lt.f32.partialorder %v910_v52, 0.0004427343  ;;  %v926_v12 = vadd.f32 1.0, %v925_v53  ;;  %v917_v49 = vadd.f32 1.0, %v916_v61 }
 0x17b   :  { %v6229_v3 = vpop.f32.mrb[13].mxu0  ;;  %5623 = vlog2.f32 %v931_v56  ;;  %v6234_v10 = vpop.f32.mrb[13].mxu1  ;;  %v919_v36 = vand.u32 2147483647, %v6208_v39  ;;  %vm6247_vm3 = vcmp.lt.f32.partialorder %v928_v60, 0.0004427343 }
 0x17c   :  { %5625 = vpow2.f32 %v886_v55  ;;  %v748_v13 = vpop.f32.mrb[14].mxu0  ;;  %v789_v30 = vpop.f32.mrb[14].mxu1  ;;  %v937_v52 = vand.u32 2147483647, %v6213_v46  ;;  %v935_v55 = vadd.f32 1.0, %v934_v0 }
 0x17d   :  { %v5612_v22 = vpop.eup %5611  ;;  %5627 = vpow2.f32 %v888_v4  ;;  %v749_v14 = vpop.f32.mrb[15].mxu0  ;;  %v909_v13 = vmul.f32 %v6197_v27, %v908_v28  ;;  %v927_v30 = vmul.f32 %v5606_v33, %v926_v12  ;;  %vm6260_vm6 = vcmp.lt.f32.partialorder %v919_v36, 0.0004427343 }
 0x17e   :  { %v6240_v31 = vpop.eup %5613  ;;  %v940_v41 = vadd.f32 1.0, %v5612_v22  ;;  %v943_v44 = vmul.f32 -0.5, %v5612_v22  ;;  %v790_v16 = vpop.f32.mrb[15].mxu1  ;;  %v946_v56 = vand.u32 2147483647, %v5612_v22  ;;  %v918_v27 = vmul.f32 %v6208_v39, %v917_v49 }
 0x17f   :  { %v6243_v48 = vpop.eup %5615  ;;  %v958_v53 = vadd.f32 1.0, %v6240_v31  ;;  %v961_v60 = vmul.f32 -0.5, %v6240_v31  ;;  %v964_v0 = vand.u32 2147483647, %v6240_v31  ;;  %vm6268_vm8 = vcmp.lt.f32.partialorder %v937_v52, 0.0004427343 }
 0x180   :  { %5629 = vlog2.f32 %v940_v41  ;;  %v949_v4 = vadd.f32 1.0, %v6243_v48  ;;  %v944_v16 = vadd.f32 1.0, %v943_v44  ;;  %v850_v28 = vand.u32 2147483647, %v6225_v63 }
 0x181   :  { %5631 = vlog2.f32 %v958_v53  ;;  %v936_v44 = vmul.f32 %v6213_v46, %v935_v55  ;;  %vm6274_vm9 = vcmp.lt.f32.partialorder %v946_v56, 0.0004427343  ;;  %v962_v52 = vadd.f32 1.0, %v961_v60 }
 0x182   :  { %v5618_v61 = vpop.eup %5617  ;;  %5633 = vlog2.f32 %v949_v4  ;;  %v952_v4 = vmul.f32 -0.5, %v6243_v48  ;;  %v945_v46 = vmul.f32 %v5612_v22, %v944_v16  ;;  %vm6285_vm10 = vcmp.lt.f32.partialorder %v964_v0, 0.0004427343 }
 0x183   :  { %v5620_v41 = vpop.eup %5619  ;;  %v906_v38 = vmul.f32 0.6931472, %v5618_v61  ;;  %v866_v61 = vsub.f32 0.0, %v850_v28  ;;  %v849_v0 = vand.u32 2147483647, %v6232_v6  ;;  %v963_v28 = vmul.f32 %v6240_v31, %v962_v52 }
 0x184   :  { %v5622_v12 = vpop.eup %5621  ;;  %v924_v36 = vmul.f32 0.6931472, %v5620_v41  ;;  %v6346_v31 = vadd.f32 %v6193_v21, %v267_v17 }
 0x185   :  { %v912_v39 = vsel %vm6236_vm1, %v909_v13, %v906_v38  ;;  %v915_v49 = vmul.f32 0.6931472, %v5622_v12  ;;  %v5624_v37 = vpop.eup %5623  ;;  %v865_v52 = vsub.f32 0.0, %v849_v0  ;;  %vm815_vm1 = vcmp.ne.f32.partialorder %v6182_v1, %v6182_v1 }
 0x186   :  { %v1048_v32 = vadd.f32 %v912_v39, %v792_v35  ;;  %v930_v41 = vsel %vm6247_vm3, %v927_v30, %v924_v36  ;;  %v6289_v56 = vpop.eup %5625  ;;  %v933_v13 = vmul.f32 0.6931472, %v5624_v37  ;;  %v955_v35 = vand.u32 2147483647, %v6243_v48 }
 0x187   :  { %v1050_v38 = vadd.f32 %v930_v41, %v794_v40  ;;  %v921_v29 = vsel %vm6260_vm6, %v918_v27, %v915_v49  ;;  %v6298_v47 = vpop.eup %5627  ;;  %v953_v37 = vadd.f32 1.0, %v952_v4  ;;  %v967_v30 = vadd.f32 1.0, %v6289_v56 }
 0x188   :  { %v6304_v22 = vsel %vm808_vm2, %v6141_v15, %v1048_v32  ;;  %v1049_v40 = vadd.f32 %v921_v29, %v793_v42  ;;  %v939_v14 = vsel %vm6268_vm8, %v936_v44, %v933_v13  ;;  %v976_v15 = vadd.f32 1.0, %v6298_v47 }
 0x189   :  { %v6315_v60 = vsel %vm810_vm4, %v6145_v19, %v1050_v38  ;;  %v892_v32 = vmul.f32 1.442695, %v866_v61  ;;  %v1051_v19 = vadd.f32 %v939_v14, %v795_v43  ;;  %5635 = vlog2.f32 %v967_v30 }
 0x18a   :  { %v5630_v42 = vpop.eup %5629  ;;  %v6326_v16 = vsel %vm809_vm5, %v6147_v20, %v1049_v40  ;;  %v970_v12 = vmul.f32 -0.5, %v6289_v56  ;;  %5637 = vlog2.f32 %v976_v15  ;;  %v954_v43 = vmul.f32 %v6243_v48, %v953_v37 }
 0x18b   :  { %v5632_v27 = vpop.eup %5631  ;;  %v942_v33 = vmul.f32 0.6931472, %v5630_v42  ;;  %v6337_v20 = vsel %vm811_vm7, %v6154_v26, %v1051_v19  ;;  %vm956_vm14 = vcmp.lt.f32.partialorder %v955_v35, 0.0004427343  ;;  %5639 = vpow2.f32 %v892_v32 }
 0x18c   :  { %v5634_v36 = vpop.eup %5633  ;;  %v960_v44 = vmul.f32 0.6931472, %v5632_v27  ;;  %v979_v48 = vmul.f32 -0.5, %v6298_v47  ;;  %v971_v41 = vadd.f32 1.0, %v970_v12  ;;  %v890_v55 = vmul.f32 1.442695, %v865_v52 }
 0x18d   :  { %v948_v4 = vsel %vm6274_vm9, %v945_v46, %v942_v33  ;;  %v951_v39 = vmul.f32 0.6931472, %v5634_v36  ;;  %v973_v46 = vand.u32 2147483647, %v6289_v56  ;;  %v851_v38 = vand.u32 2147483647, %v6346_v31 }
 0x18e   :  { %v1052_v49 = vadd.f32 %v948_v4, %v796_v57  ;;  %v966_v26 = vsel %vm6285_vm10, %v963_v28, %v960_v44  ;;  %v982_v57 = vand.u32 2147483647, %v6298_v47  ;;  %v980_v13 = vadd.f32 1.0, %v979_v48 }
 0x18f   :  { %v1054_v53 = vadd.f32 %v966_v26, %v798_v58  ;;  %v957_v61 = vsel %vm956_vm14, %v954_v43, %v951_v39  ;;  %5641 = vpow2.f32 %v890_v55  ;;  %v6953_v35 = vrot.slane %v6175_v54, %v6151_v24 }
 0x190   :  { %v6360_v17 = vsel %vm812_vm11, %v6167_v45, %v1052_v49  ;;  %v1053_v21 = vadd.f32 %v957_v61, %v797_v62  ;;  %v6376_v45 = vadd.f32 %v6221_v59, %v271_v25  ;;  %v6952_v62 = vrot.slane %v6175_v54, %v6149_v23 }
 0x191   :  { %v6369_v58 = vsel %vm814_vm12, %v6171_v50, %v1054_v53  ;;  %v6394_v25 = vadd.f32 %v6229_v3, %v6953_v35  ;;  %v799_v59 = vmax.f32 %v6182_v1, 0.0  ;;  %v800_v40 = vmax.f32 %v6185_v11, 0.0 }
 0x192   :  { %v6382_v29 = vadd.f32 %v6227_v2, %v6952_v62  ;;  %v6388_v50 = vsel %vm813_vm13, %v6173_v51, %v1053_v21  ;;  %v867_v2 = vsub.f32 0.0, %v851_v38  ;;  %v852_v37 = vand.u32 2147483647, %v6376_v45 }
 0x193   :  { %v5636_v30 = vpop.eup %5635  ;;  %vm6399_vm15 = vcmp.lt.f32.partialorder %v973_v46, 0.0004427343  ;;  %vm6403_vm0 = vcmp.lt.f32.partialorder %v982_v57, 0.0004427343  ;;  %v972_v42 = vmul.f32 %v6289_v56, %v971_v41  ;;  %v981_v33 = vmul.f32 %v6298_v47, %v980_v13 }
 0x194   :  { %v854_v15 = vand.u32 2147483647, %v6382_v29  ;;  %v5638_v3 = vpop.eup %5637  ;;  %v969_v32 = vmul.f32 0.6931472, %v5636_v30  ;;  %v894_v19 = vmul.f32 1.442695, %v867_v2  ;;  %v6958_v4 = vrot.slane %v6175_v54, %v6160_v34 }
 0x195   :  { %v868_v0 = vsub.f32 0.0, %v852_v37  ;;  %v978_v27 = vmul.f32 0.6931472, %v5638_v3  ;;  %v853_v12 = vand.u32 2147483647, %v6394_v25  ;;  %v5640_v36 = vpop.eup %5639  ;;  %vm816_vm2 = vcmp.ne.f32.partialorder %v6185_v11, %v6185_v11 }
 0x196   :  { %v870_v28 = vsub.f32 0.0, %v854_v15  ;;  %v975_v44 = vsel %vm6399_vm15, %v972_v42, %v969_v32  ;;  %5643 = vpow2.f32 %v894_v19  ;;  %v6417_v39 = vadd.f32 %v6234_v10, %v6958_v4 }
 0x197   :  { %v896_v43 = vmul.f32 1.442695, %v868_v0  ;;  %v1055_v56 = vadd.f32 %v975_v44, %v799_v59  ;;  %v984_v49 = vsel %vm6403_vm0, %v981_v33, %v978_v27  ;;  %v994_v47 = vadd.f32 1.0, %v5640_v36 }
 0x198   :  { %v1056_v26 = vadd.f32 %v984_v49, %v800_v40  ;;  %v900_v48 = vmul.f32 1.442695, %v870_v28  ;;  %v869_v54 = vsub.f32 0.0, %v853_v12  ;;  %v855_v53 = vand.u32 2147483647, %v6417_v39 }
 0x199   :  { %5645 = vpow2.f32 %v896_v43  ;;  %v6424_v52 = vsel %vm815_vm1, %v6182_v1, %v1055_v56  ;;  %v5642_v61 = vpop.eup %5641  ;;  %v997_v46 = vmul.f32 -0.5, %v5640_v36  ;;  %v1000_v62 = vand.u32 2147483647, %v5640_v36 }
 0x19a   :  { %5647 = vlog2.f32 %v994_v47  ;;  %v6429_v10 = vsel %vm816_vm2, %v6185_v11, %v1056_v26  ;;  %v898_v41 = vmul.f32 1.442695, %v869_v54  ;;  %v985_v21 = vadd.f32 1.0, %v5642_v61 }
 0x19b   :  { %5649 = vpow2.f32 %v900_v48  ;;  %v871_v57 = vsub.f32 0.0, %v855_v53  ;;  %v998_v38 = vadd.f32 1.0, %v997_v46  ;;  %v988_v13 = vmul.f32 -0.5, %v5642_v61 }
 0x19c   :  { %5651 = vpow2.f32 %v898_v41  ;;  %v802_v37 = vmax.f32 %v6225_v63, 0.0  ;;  %vm1001_vm3 = vcmp.lt.f32.partialorder %v1000_v62, 0.0004427343  ;;  %v991_v32 = vand.u32 2147483647, %v5642_v61 }
 0x19d   :  { %5653 = vlog2.f32 %v985_v21  ;;  %v902_v1 = vmul.f32 1.442695, %v871_v57  ;;  %v999_v14 = vmul.f32 %v5640_v36, %v998_v38  ;;  %v989_v51 = vadd.f32 1.0, %v988_v13 }
 0x19e   :  { %vm818_vm4 = vcmp.ne.f32.partialorder %v6225_v63, %v6225_v63  ;;  %v801_v36 = vmax.f32 %v6232_v6, 0.0  ;;  %vm992_vm5 = vcmp.lt.f32.partialorder %v991_v32, 0.0004427343  ;;  %vm817_vm6 = vcmp.ne.f32.partialorder %v6232_v6, %v6232_v6 }
 0x19f   :  { %5655 = vpow2.f32 %v902_v1  ;;  %v990_v43 = vmul.f32 %v5642_v61, %v989_v51  ;;  %v803_v62 = vmax.f32 %v6346_v31, 0.0  ;;  %vm819_vm8 = vcmp.ne.f32.partialorder %v6346_v31, %v6346_v31 }
 0x1a0   :  { %v5644_v55 = vpop.eup %5643  ;;  %vm820_vm11 = vcmp.ne.f32.partialorder %v6376_v45, %v6376_v45  ;;  %vm822_vm12 = vcmp.ne.f32.partialorder %v6382_v29, %v6382_v29  ;;  %vm821_vm14 = vcmp.ne.f32.partialorder %v6394_v25, %v6394_v25  ;;  %vm823_vm0 = vcmp.ne.f32.partialorder %v6417_v39, %v6417_v39 }
 0x1a1   :  { %v1003_v35 = vadd.f32 1.0, %v5644_v55  ;;  %v1006_v42 = vmul.f32 -0.5, %v5644_v55  ;;  %v1009_v26 = vand.u32 2147483647, %v5644_v55 }
 0x1a3   :  { %v5646_v59 = vpop.eup %5645  ;;  %5657 = vlog2.f32 %v1003_v35  ;;  %v1007_v56 = vadd.f32 1.0, %v1006_v42  ;;  %vm1010_vm7 = vcmp.lt.f32.partialorder %v1009_v26, 0.0004427343 }
 0x1a4   :  { %v5648_v11 = vpop.eup %5647  ;;  %v1012_v40 = vadd.f32 1.0, %v5646_v59  ;;  %v1015_v27 = vmul.f32 -0.5, %v5646_v59 }
 0x1a5   :  { %v5650_v2 = vpop.eup %5649  ;;  %v996_v30 = vmul.f32 0.6931472, %v5648_v11  ;;  %v1008_v57 = vmul.f32 %v5644_v55, %v1007_v56 }
 0x1a6   :  { %5659 = vlog2.f32 %v1012_v40  ;;  %v1030_v15 = vadd.f32 1.0, %v5650_v2  ;;  %v6433_v19 = vpop.eup %5651  ;;  %v1033_v49 = vmul.f32 -0.5, %v5650_v2  ;;  %v1016_v48 = vadd.f32 1.0, %v1015_v27 }
 0x1a7   :  { %v1002_v3 = vsel %vm1001_vm3, %v999_v14, %v996_v30  ;;  %v5654_v33 = vpop.eup %5653  ;;  %v1021_v28 = vadd.f32 1.0, %v6433_v19  ;;  %v1024_v41 = vmul.f32 -0.5, %v6433_v19  ;;  %v1036_v35 = vand.u32 2147483647, %v5650_v2 }
 0x1a8   :  { %v1058_v0 = vadd.f32 %v1002_v3, %v802_v37  ;;  %5661 = vlog2.f32 %v1030_v15  ;;  %v987_v44 = vmul.f32 0.6931472, %v5654_v33  ;;  %v1034_v1 = vadd.f32 1.0, %v1033_v49 }
 0x1a9   :  { %v5656_v4 = vpop.eup %5655  ;;  %5663 = vlog2.f32 %v1021_v28  ;;  %v1017_v13 = vmul.f32 %v5646_v59, %v1016_v48  ;;  %v1025_v37 = vadd.f32 1.0, %v1024_v41  ;;  %v1027_v32 = vand.u32 2147483647, %v6433_v19 }
 0x1aa   :  { %v6439_v12 = vsel %vm818_vm4, %v6225_v63, %v1058_v0  ;;  %v993_v47 = vsel %vm992_vm5, %v990_v43, %v987_v44  ;;  %v1039_v54 = vadd.f32 1.0, %v5656_v4  ;;  %v1018_v63 = vand.u32 2147483647, %v5646_v59 }
 0x1ab   :  { %v1057_v53 = vadd.f32 %v993_v47, %v801_v36  ;;  %v1042_v30 = vmul.f32 -0.5, %v5656_v4  ;;  %v1035_v3 = vmul.f32 %v5650_v2, %v1034_v1  ;;  %v806_v0 = vmax.f32 %v6382_v29, 0.0 }
 0x1ac   :  { %5665 = vlog2.f32 %v1039_v54  ;;  %vm1019_vm9 = vcmp.lt.f32.partialorder %v1018_v63, 0.0004427343  ;;  %vm1037_vm10 = vcmp.lt.f32.partialorder %v1036_v35, 0.0004427343  ;;  %v1026_v28 = vmul.f32 %v6433_v19, %v1025_v37 }
 0x1ad   :  { %v5658_v46 = vpop.eup %5657  ;;  %v6446_v61 = vsel %vm817_vm6, %v6232_v6, %v1057_v53  ;;  %v804_v6 = vmax.f32 %v6376_v45, 0.0  ;;  %v1043_v36 = vadd.f32 1.0, %v1042_v30  ;;  %v1045_v56 = vand.u32 2147483647, %v5656_v4 }
 0x1ae   :  { %v1005_v21 = vmul.f32 0.6931472, %v5658_v46  ;;  %vm1028_vm13 = vcmp.lt.f32.partialorder %v1027_v32, 0.0004427343 }
 0x1af   :  { %v1044_v54 = vmul.f32 %v5656_v4, %v1043_v36  ;;  %vm1046_vm15 = vcmp.lt.f32.partialorder %v1045_v56, 0.0004427343 }
 0x1b0   :  { %v5660_v38 = vpop.eup %5659  ;;  %v1011_v11 = vsel %vm1010_vm7, %v1008_v57, %v1005_v21 }
 0x1b1   :  { %v1014_v40 = vmul.f32 0.6931472, %v5660_v38  ;;  %v1059_v51 = vadd.f32 %v1011_v11, %v803_v62 }
 0x1b2   :  { %v5662_v14 = vpop.eup %5661 }
 0x1b3   :  { %v1020_v55 = vsel %vm1019_vm9, %v1017_v13, %v1014_v40  ;;  %v1032_v15 = vmul.f32 0.6931472, %v5662_v14  ;;  %v6454_v59 = vsel %vm819_vm8, %v6346_v31, %v1059_v51  ;;  %v5664_v27 = vpop.eup %5663  ;;  %v805_v31 = vmax.f32 %v6394_v25, 0.0 }
 0x1b4   :  { %v1060_v42 = vadd.f32 %v1020_v55, %v804_v6  ;;  %v1023_v43 = vmul.f32 0.6931472, %v5664_v27 }
 0x1b5   :  { %v1038_v33 = vsel %vm1037_vm10, %v1035_v3, %v1032_v15 }
 0x1b6   :  { %v6461_v44 = vsel %vm820_vm11, %v6376_v45, %v1060_v42  ;;  %v1062_v2 = vadd.f32 %v1038_v33, %v806_v0  ;;  %v5666_v49 = vpop.eup %5665  ;;  %v1029_v26 = vsel %vm1028_vm13, %v1026_v28, %v1023_v43  ;;  %v807_v45 = vmax.f32 %v6417_v39, 0.0 }
 0x1b7   :  { %v1061_v48 = vadd.f32 %v1029_v26, %v805_v31  ;;  %v1041_v19 = vmul.f32 0.6931472, %v5666_v49 }
 0x1b8   :  { %v6467_v47 = vsel %vm822_vm12, %v6382_v29, %v1062_v2 }
 0x1b9   :  { %v6473_v53 = vsel %vm821_vm14, %v6394_v25, %v1061_v48  ;;  %v1047_v41 = vsel %vm1046_vm15, %v1044_v54, %v1041_v19 }
 0x1ba   :  { %v1063_v46 = vadd.f32 %v1047_v41, %v807_v45 }
 0x1bc   :  { %v6478_v29 = vsel %vm823_vm0, %v6417_v39, %v1063_v46 }
 0x1bd   :  { %5916 = dma.done.wait [#allocation5], 131072 }
 0x1be   :  { %5917 = vsyncadd [#allocation5], 4294836224  ;;  %v6482_v4 = vpack.c.bf16 %v6326_v16, %v6326_v16  ;;  %v1101_v25 = vld [vmem:[#allocation2 + $0x8] sm:$0xff]  ;;  %v1103_v63 = vld [vmem:[#allocation2 + $0x18] sm:$0xff] }
 0x1bf   :  { %v1100_v21 = vld [vmem:[#allocation2] sm:$0xff]  ;;  %2166 = vmatprep.subr.bf16.mxu0 %v1101_v25  ;;  %2494 = vmatprep.subr.bf16.mxu1 %v1103_v63  ;;  %v1102_v57 = vld [vmem:[#allocation2 + $0x10] sm:$0xff]  ;;  %v1109_v1 = vld [vmem:[#allocation2 + $0x48] sm:$0xff] }
 0x1c0   :  { %2198 = vmatprep.mubr.bf16.mxu0 %v6482_v4  ;;  %2526 = vmatprep.mubr.bf16.mxu1 %v6482_v4  ;;  %v1111_v38 = vld [vmem:[#allocation2 + $0x58] sm:$0xff]  ;;  %v1108_v39 = vld [vmem:[#allocation2 + $0x40] sm:$0xff]  ;;  %v1110_v62 = vld [vmem:[#allocation2 + $0x50] sm:$0xff] }
 0x1c1   :  { %2167 = vmatpush1.bf16.msra.mxu0 %v1100_v21  ;;  %2495 = vmatpush1.bf16.msra.mxu1 %v1102_v57  ;;  %v1117_v16 = vld [vmem:[#allocation2 + $0x88] sm:$0xff]  ;;  %v1119_v13 = vld [vmem:[#allocation2 + $0x98] sm:$0xff]  ;;  %v1116_v35 = vld [vmem:[#allocation2 + $0x80] sm:$0xff] }
 0x1c2   :  { %2168 = vmatprep.subr.bf16.mxu0 %v1109_v1  ;;  %2496 = vmatprep.subr.bf16.mxu1 %v1111_v38  ;;  %v1118_v11 = vld [vmem:[#allocation2 + $0x90] sm:$0xff]  ;;  %v1125_v40 = vld [vmem:[#allocation2 + $0xc8] sm:$0xff]  ;;  %v1127_v37 = vld [vmem:[#allocation2 + $0xd8] sm:$0xff] }
 0x1c3   :  { %v1124_v30 = vld [vmem:[#allocation2 + $0xc0] sm:$0xff]  ;;  %v1126_v14 = vld [vmem:[#allocation2 + $0xd0] sm:$0xff]  ;;  %v1133_v51 = vld [vmem:[#allocation2 + $0x108] sm:$0xff] }
 0x1c4   :  { %v1135_v6 = vld [vmem:[#allocation2 + $0x118] sm:$0xff]  ;;  %v1132_v55 = vld [vmem:[#allocation2 + $0x100] sm:$0xff]  ;;  %v1134_v15 = vld [vmem:[#allocation2 + $0x110] sm:$0xff] }
 0x1c5   :  { %2169 = vmatpush1.bf16.msra.mxu0 %v1108_v39  ;;  %2497 = vmatpush1.bf16.msra.mxu1 %v1110_v62  ;;  %v1141_v3 = vld [vmem:[#allocation2 + $0x148] sm:$0xff]  ;;  %v1143_v32 = vld [vmem:[#allocation2 + $0x158] sm:$0xff]  ;;  %v1140_v42 = vld [vmem:[#allocation2 + $0x140] sm:$0xff] }
 0x1c6   :  { %2170 = vmatprep.subr.bf16.mxu0 %v1117_v16  ;;  %2498 = vmatprep.subr.bf16.mxu1 %v1119_v13  ;;  %v1142_v0 = vld [vmem:[#allocation2 + $0x150] sm:$0xff]  ;;  %v1149_v27 = vld [vmem:[#allocation2 + $0x188] sm:$0xff]  ;;  %v1151_v33 = vld [vmem:[#allocation2 + $0x198] sm:$0xff] }
 0x1c7   :  { %v1148_v28 = vld [vmem:[#allocation2 + $0x180] sm:$0xff]  ;;  %v1150_v36 = vld [vmem:[#allocation2 + $0x190] sm:$0xff]  ;;  %v1157_v2 = vld [vmem:[#allocation2 + $0x1c8] sm:$0xff] }
 0x1c8   :  { %v1159_v43 = vld [vmem:[#allocation2 + $0x1d8] sm:$0xff]  ;;  %v1156_v56 = vld [vmem:[#allocation2 + $0x1c0] sm:$0xff]  ;;  %v1158_v31 = vld [vmem:[#allocation2 + $0x1d0] sm:$0xff] }
 0x1c9   :  { %2171 = vmatpush1.bf16.msra.mxu0 %v1116_v35  ;;  %2499 = vmatpush1.bf16.msra.mxu1 %v1118_v11  ;;  %v1165_v49 = vld [vmem:[#allocation2 + $0x208] sm:$0xff]  ;;  %v1167_v26 = vld [vmem:[#allocation2 + $0x218] sm:$0xff]  ;;  %v1164_v48 = vld [vmem:[#allocation2 + $0x200] sm:$0xff] }
 0x1ca   :  { %2172 = vmatprep.subr.bf16.mxu0 %v1125_v40  ;;  %2500 = vmatprep.subr.bf16.mxu1 %v1127_v37  ;;  %v1166_v19 = vld [vmem:[#allocation2 + $0x210] sm:$0xff]  ;;  %v1173_v54 = vld [vmem:[#allocation2 + $0x248] sm:$0xff]  ;;  %v1175_v45 = vld [vmem:[#allocation2 + $0x258] sm:$0xff] }
 0x1cb   :  { %v1172_v41 = vld [vmem:[#allocation2 + $0x240] sm:$0xff]  ;;  %v1174_v46 = vld [vmem:[#allocation2 + $0x250] sm:$0xff]  ;;  %v1181_v25 = vld [vmem:[#allocation2 + $0x288] sm:$0xff] }
 0x1cc   :  { %v1183_v63 = vld [vmem:[#allocation2 + $0x298] sm:$0xff]  ;;  %v1180_v21 = vld [vmem:[#allocation2 + $0x280] sm:$0xff]  ;;  %v1182_v57 = vld [vmem:[#allocation2 + $0x290] sm:$0xff] }
 0x1cd   :  { %2173 = vmatpush1.bf16.msra.mxu0 %v1124_v30  ;;  %2501 = vmatpush1.bf16.msra.mxu1 %v1126_v14  ;;  %v1189_v1 = vld [vmem:[#allocation2 + $0x2c8] sm:$0xff]  ;;  %v1191_v38 = vld [vmem:[#allocation2 + $0x2d8] sm:$0xff]  ;;  %v1188_v39 = vld [vmem:[#allocation2 + $0x2c0] sm:$0xff] }
 0x1ce   :  { %2174 = vmatprep.subr.bf16.mxu0 %v1133_v51  ;;  %2502 = vmatprep.subr.bf16.mxu1 %v1135_v6  ;;  %v1190_v62 = vld [vmem:[#allocation2 + $0x2d0] sm:$0xff]  ;;  %v1197_v16 = vld [vmem:[#allocation2 + $0x308] sm:$0xff]  ;;  %v1199_v13 = vld [vmem:[#allocation2 + $0x318] sm:$0xff] }
 0x1cf   :  { %v1196_v35 = vld [vmem:[#allocation2 + $0x300] sm:$0xff]  ;;  %v1198_v11 = vld [vmem:[#allocation2 + $0x310] sm:$0xff]  ;;  %v1205_v40 = vld [vmem:[#allocation2 + $0x348] sm:$0xff] }
 0x1d0   :  { %v1207_v37 = vld [vmem:[#allocation2 + $0x358] sm:$0xff]  ;;  %v1204_v30 = vld [vmem:[#allocation2 + $0x340] sm:$0xff]  ;;  %v1206_v14 = vld [vmem:[#allocation2 + $0x350] sm:$0xff] }
 0x1d1   :  { %2175 = vmatpush1.bf16.msra.mxu0 %v1132_v55  ;;  %2503 = vmatpush1.bf16.msra.mxu1 %v1134_v15  ;;  %v1213_v51 = vld [vmem:[#allocation2 + $0x388] sm:$0xff]  ;;  %v1215_v6 = vld [vmem:[#allocation2 + $0x398] sm:$0xff]  ;;  %v1212_v55 = vld [vmem:[#allocation2 + $0x380] sm:$0xff] }
 0x1d2   :  { %2176 = vmatprep.subr.bf16.mxu0 %v1141_v3  ;;  %2504 = vmatprep.subr.bf16.mxu1 %v1143_v32  ;;  %v1214_v15 = vld [vmem:[#allocation2 + $0x390] sm:$0xff]  ;;  %v1221_v3 = vld [vmem:[#allocation2 + $0x3c8] sm:$0xff]  ;;  %v1223_v32 = vld [vmem:[#allocation2 + $0x3d8] sm:$0xff] }
 0x1d5   :  { %2177 = vmatpush1.bf16.msra.mxu0 %v1140_v42  ;;  %2505 = vmatpush1.bf16.msra.mxu1 %v1142_v0  ;;  %v1220_v42 = vld [vmem:[#allocation2 + $0x3c0] sm:$0xff]  ;;  %v1222_v0 = vld [vmem:[#allocation2 + $0x3d0] sm:$0xff] }
 0x1d6   :  { %2178 = vmatprep.subr.bf16.mxu0 %v1149_v27  ;;  %2506 = vmatprep.subr.bf16.mxu1 %v1151_v33  ;;  %v1229_v27 = vld [vmem:[#allocation2 + $0x408] sm:$0xff]  ;;  %v1231_v33 = vld [vmem:[#allocation2 + $0x418] sm:$0xff] }
 0x1d9   :  { %2179 = vmatpush1.bf16.msra.mxu0 %v1148_v28  ;;  %2507 = vmatpush1.bf16.msra.mxu1 %v1150_v36  ;;  %v6488_v28 = vpack.c.bf16 %v6304_v22, %v6304_v22  ;;  %v1228_v36 = vld [vmem:[#allocation2 + $0x400] sm:$0xff] }
 0x1da   :  { %2180 = vmatprep.subr.bf16.mxu0 %v1157_v2  ;;  %2508 = vmatprep.subr.bf16.mxu1 %v1159_v43  ;;  %v1230_v2 = vld [vmem:[#allocation2 + $0x410] sm:$0xff]  ;;  %v1237_v43 = vld [vmem:[#allocation2 + $0x448] sm:$0xff]  ;;  %v1236_v22 = vld [vmem:[#allocation2 + $0x440] sm:$0xff] }
 0x1dd   :  { %2181 = vmatpush1.bf16.msra.mxu0 %v1156_v56  ;;  %2509 = vmatpush1.bf16.msra.mxu1 %v1158_v31  ;;  %v1239_v56 = vld [vmem:[#allocation2 + $0x458] sm:$0xff]  ;;  %v6492_v31 = vpack.c.bf16 %v6337_v20, %v6337_v20  ;;  %v1244_v20 = vld [vmem:[#allocation2 + $0x480] sm:$0xff] }
 0x1de   :  { %2182 = vmatprep.subr.bf16.mxu0 %v1165_v49  ;;  %2510 = vmatprep.subr.bf16.mxu1 %v1167_v26  ;;  %v1238_v49 = vld [vmem:[#allocation2 + $0x450] sm:$0xff]  ;;  %v1245_v26 = vld [vmem:[#allocation2 + $0x488] sm:$0xff] }
 0x1e1   :  { %2183 = vmatpush1.bf16.msra.mxu0 %v1164_v48  ;;  %2511 = vmatpush1.bf16.msra.mxu1 %v1166_v19  ;;  %v1247_v48 = vld [vmem:[#allocation2 + $0x498] sm:$0xff]  ;;  %v1246_v19 = vld [vmem:[#allocation2 + $0x490] sm:$0xff] }
 0x1e2   :  { %2184 = vmatprep.subr.bf16.mxu0 %v1173_v54  ;;  %2512 = vmatprep.subr.bf16.mxu1 %v1175_v45  ;;  %v1253_v54 = vld [vmem:[#allocation2 + $0x4c8] sm:$0xff]  ;;  %v1255_v45 = vld [vmem:[#allocation2 + $0x4d8] sm:$0xff] }
 0x1e5   :  { %2185 = vmatpush1.bf16.msra.mxu0 %v1172_v41  ;;  %2513 = vmatpush1.bf16.msra.mxu1 %v1174_v46  ;;  %v1252_v41 = vld [vmem:[#allocation2 + $0x4c0] sm:$0xff]  ;;  %v1254_v46 = vld [vmem:[#allocation2 + $0x4d0] sm:$0xff] }
 0x1e6   :  { %2186 = vmatprep.subr.bf16.mxu0 %v1181_v25  ;;  %2514 = vmatprep.subr.bf16.mxu1 %v1183_v63  ;;  %v1261_v25 = vld [vmem:[#allocation2 + $0x508] sm:$0xff]  ;;  %v1263_v63 = vld [vmem:[#allocation2 + $0x518] sm:$0xff] }
 0x1e9   :  { %2187 = vmatpush1.bf16.msra.mxu0 %v1180_v21  ;;  %2515 = vmatpush1.bf16.msra.mxu1 %v1182_v57  ;;  %v1260_v21 = vld [vmem:[#allocation2 + $0x500] sm:$0xff]  ;;  %v1262_v57 = vld [vmem:[#allocation2 + $0x510] sm:$0xff] }
 0x1ea   :  { %2188 = vmatprep.subr.bf16.mxu0 %v1189_v1  ;;  %2516 = vmatprep.subr.bf16.mxu1 %v1191_v38  ;;  %v1269_v1 = vld [vmem:[#allocation2 + $0x548] sm:$0xff]  ;;  %v1271_v38 = vld [vmem:[#allocation2 + $0x558] sm:$0xff] }
 0x1ed   :  { %2189 = vmatpush1.bf16.msra.mxu0 %v1188_v39  ;;  %2517 = vmatpush1.bf16.msra.mxu1 %v1190_v62  ;;  %v1268_v39 = vld [vmem:[#allocation2 + $0x540] sm:$0xff]  ;;  %v1270_v62 = vld [vmem:[#allocation2 + $0x550] sm:$0xff] }
 0x1ee   :  { %2190 = vmatprep.subr.bf16.mxu0 %v1197_v16  ;;  %2518 = vmatprep.subr.bf16.mxu1 %v1199_v13  ;;  %v1277_v16 = vld [vmem:[#allocation2 + $0x588] sm:$0xff]  ;;  %v1279_v13 = vld [vmem:[#allocation2 + $0x598] sm:$0xff] }
 0x1f1   :  { %2191 = vmatpush1.bf16.msra.mxu0 %v1196_v35  ;;  %2519 = vmatpush1.bf16.msra.mxu1 %v1198_v11  ;;  %v1276_v35 = vld [vmem:[#allocation2 + $0x580] sm:$0xff]  ;;  %v1278_v11 = vld [vmem:[#allocation2 + $0x590] sm:$0xff] }
 0x1f2   :  { %2192 = vmatprep.subr.bf16.mxu0 %v1205_v40  ;;  %2520 = vmatprep.subr.bf16.mxu1 %v1207_v37  ;;  %v1285_v40 = vld [vmem:[#allocation2 + $0x5c8] sm:$0xff]  ;;  %v1287_v37 = vld [vmem:[#allocation2 + $0x5d8] sm:$0xff] }
 0x1f5   :  { %2193 = vmatpush1.bf16.msra.mxu0 %v1204_v30  ;;  %2521 = vmatpush1.bf16.msra.mxu1 %v1206_v14  ;;  %v1284_v30 = vld [vmem:[#allocation2 + $0x5c0] sm:$0xff]  ;;  %v1286_v14 = vld [vmem:[#allocation2 + $0x5d0] sm:$0xff] }
 0x1f6   :  { %2194 = vmatprep.subr.bf16.mxu0 %v1213_v51  ;;  %2522 = vmatprep.subr.bf16.mxu1 %v1215_v6  ;;  %v1293_v51 = vld [vmem:[#allocation2 + $0x608] sm:$0xff]  ;;  %v1295_v6 = vld [vmem:[#allocation2 + $0x618] sm:$0xff] }
 0x1f9   :  { %2195 = vmatpush1.bf16.msra.mxu0 %v1212_v55  ;;  %2523 = vmatpush1.bf16.msra.mxu1 %v1214_v15  ;;  %v1292_v55 = vld [vmem:[#allocation2 + $0x600] sm:$0xff]  ;;  %v1294_v15 = vld [vmem:[#allocation2 + $0x610] sm:$0xff] }
 0x1fa   :  { %2196 = vmatprep.subr.bf16.mxu0 %v1221_v3  ;;  %2524 = vmatprep.subr.bf16.mxu1 %v1223_v32  ;;  %v1301_v3 = vld [vmem:[#allocation2 + $0x648] sm:$0xff]  ;;  %v1303_v32 = vld [vmem:[#allocation2 + $0x658] sm:$0xff] }
 0x1fd   :  { %2197 = vmatpush1.bf16.msra.mxu0 %v1220_v42  ;;  %2525 = vmatpush1.bf16.msra.mxu1 %v1222_v0  ;;  %v1300_v42 = vld [vmem:[#allocation2 + $0x640] sm:$0xff]  ;;  %v1302_v0 = vld [vmem:[#allocation2 + $0x650] sm:$0xff] }
 0x1fe   :  { %2207 = vmatprep.subr.bf16.mxu0 %v1229_v27  ;;  %2535 = vmatprep.subr.bf16.mxu1 %v1231_v33  ;;  %v1309_v27 = vld [vmem:[#allocation2 + $0x688] sm:$0xff]  ;;  %v1311_v33 = vld [vmem:[#allocation2 + $0x698] sm:$0xff] }
 0x200   :  { %2199 = vmatmul.mubr.bf16.vlgmr.msra.gmra.mrb[16].mxu0 %v6488_v28  ;;  %2527 = vmatmul.mubr.bf16.vlgmr.msra.gmra.mrb[16].mxu1 %v6488_v28 }
 0x201   :  { %2208 = vmatpush1.bf16.msra.mxu0 %v1228_v36  ;;  %2536 = vmatpush1.bf16.msra.mxu1 %v1230_v2  ;;  %v1308_v36 = vld [vmem:[#allocation2 + $0x680] sm:$0xff]  ;;  %v1310_v2 = vld [vmem:[#allocation2 + $0x690] sm:$0xff] }
 0x202   :  { %2209 = vmatprep.subr.bf16.mxu0 %v1237_v43  ;;  %2537 = vmatprep.subr.bf16.mxu1 %v1239_v56  ;;  %v1317_v43 = vld [vmem:[#allocation2 + $0x6c8] sm:$0xff]  ;;  %v1319_v56 = vld [vmem:[#allocation2 + $0x6d8] sm:$0xff] }
 0x203   :  { %2239 = vmatprep.mubr.bf16.mxu0 %v6492_v31  ;;  %2567 = vmatprep.mubr.bf16.mxu1 %v6492_v31 }
 0x205   :  { %2210 = vmatpush1.bf16.msra.mxu0 %v1236_v22  ;;  %2538 = vmatpush1.bf16.msra.mxu1 %v1238_v49  ;;  %v1316_v22 = vld [vmem:[#allocation2 + $0x6c0] sm:$0xff]  ;;  %v1318_v49 = vld [vmem:[#allocation2 + $0x6d0] sm:$0xff] }
 0x206   :  { %2211 = vmatprep.subr.bf16.mxu0 %v1245_v26  ;;  %2539 = vmatprep.subr.bf16.mxu1 %v1247_v48  ;;  %v1325_v26 = vld [vmem:[#allocation2 + $0x708] sm:$0xff]  ;;  %v1327_v48 = vld [vmem:[#allocation2 + $0x718] sm:$0xff] }
 0x209   :  { %2212 = vmatpush1.bf16.msra.mxu0 %v1244_v20  ;;  %2540 = vmatpush1.bf16.msra.mxu1 %v1246_v19  ;;  %v1324_v20 = vld [vmem:[#allocation2 + $0x700] sm:$0xff]  ;;  %v1326_v19 = vld [vmem:[#allocation2 + $0x710] sm:$0xff] }
 0x20a   :  { %2213 = vmatprep.subr.bf16.mxu0 %v1253_v54  ;;  %2541 = vmatprep.subr.bf16.mxu1 %v1255_v45  ;;  %v1333_v54 = vld [vmem:[#allocation2 + $0x748] sm:$0xff]  ;;  %v1335_v45 = vld [vmem:[#allocation2 + $0x758] sm:$0xff] }
 0x20d   :  { %2214 = vmatpush1.bf16.msra.mxu0 %v1252_v41  ;;  %2542 = vmatpush1.bf16.msra.mxu1 %v1254_v46  ;;  %v1332_v41 = vld [vmem:[#allocation2 + $0x740] sm:$0xff]  ;;  %v1334_v46 = vld [vmem:[#allocation2 + $0x750] sm:$0xff] }
 0x20e   :  { %2215 = vmatprep.subr.bf16.mxu0 %v1261_v25  ;;  %2543 = vmatprep.subr.bf16.mxu1 %v1263_v63  ;;  %v1341_v25 = vld [vmem:[#allocation2 + $0x788] sm:$0xff]  ;;  %v1343_v63 = vld [vmem:[#allocation2 + $0x798] sm:$0xff] }
 0x211   :  { %2216 = vmatpush1.bf16.msra.mxu0 %v1260_v21  ;;  %2544 = vmatpush1.bf16.msra.mxu1 %v1262_v57  ;;  %v1340_v21 = vld [vmem:[#allocation2 + $0x780] sm:$0xff]  ;;  %v1342_v57 = vld [vmem:[#allocation2 + $0x790] sm:$0xff] }
 0x212   :  { %2217 = vmatprep.subr.bf16.mxu0 %v1269_v1  ;;  %2545 = vmatprep.subr.bf16.mxu1 %v1271_v38  ;;  %v1349_v1 = vld [vmem:[#allocation2 + $0x7c8] sm:$0xff]  ;;  %v1351_v38 = vld [vmem:[#allocation2 + $0x7d8] sm:$0xff] }
 0x215   :  { %2218 = vmatpush1.bf16.msra.mxu0 %v1268_v39  ;;  %2546 = vmatpush1.bf16.msra.mxu1 %v1270_v62  ;;  %v1348_v39 = vld [vmem:[#allocation2 + $0x7c0] sm:$0xff]  ;;  %v1350_v62 = vld [vmem:[#allocation2 + $0x7d0] sm:$0xff] }
 0x216   :  { %2219 = vmatprep.subr.bf16.mxu0 %v1277_v16  ;;  %2547 = vmatprep.subr.bf16.mxu1 %v1279_v13  ;;  %v1357_v16 = vld [vmem:[#allocation2 + $0x808] sm:$0xff]  ;;  %v1359_v13 = vld [vmem:[#allocation2 + $0x818] sm:$0xff] }
 0x219   :  { %2220 = vmatpush1.bf16.msra.mxu0 %v1276_v35  ;;  %2548 = vmatpush1.bf16.msra.mxu1 %v1278_v11  ;;  %v6500_v35 = vpack.c.bf16 %v6315_v60, %v6315_v60  ;;  %v1356_v11 = vld [vmem:[#allocation2 + $0x800] sm:$0xff] }
 0x21a   :  { %2221 = vmatprep.subr.bf16.mxu0 %v1285_v40  ;;  %2549 = vmatprep.subr.bf16.mxu1 %v1287_v37  ;;  %v1358_v40 = vld [vmem:[#allocation2 + $0x810] sm:$0xff]  ;;  %v1365_v37 = vld [vmem:[#allocation2 + $0x848] sm:$0xff]  ;;  %v1364_v60 = vld [vmem:[#allocation2 + $0x840] sm:$0xff] }
 0x21d   :  { %2222 = vmatpush1.bf16.msra.mxu0 %v1284_v30  ;;  %2550 = vmatpush1.bf16.msra.mxu1 %v1286_v14  ;;  %v1367_v30 = vld [vmem:[#allocation2 + $0x858] sm:$0xff]  ;;  %v6504_v14 = vpack.c.bf16 %v6388_v50, %v6388_v50  ;;  %v1372_v50 = vld [vmem:[#allocation2 + $0x880] sm:$0xff] }
 0x21e   :  { %2223 = vmatprep.subr.bf16.mxu0 %v1293_v51  ;;  %2551 = vmatprep.subr.bf16.mxu1 %v1295_v6  ;;  %v1366_v51 = vld [vmem:[#allocation2 + $0x850] sm:$0xff]  ;;  %v1373_v6 = vld [vmem:[#allocation2 + $0x888] sm:$0xff] }
 0x221   :  { %2224 = vmatpush1.bf16.msra.mxu0 %v1292_v55  ;;  %2552 = vmatpush1.bf16.msra.mxu1 %v1294_v15  ;;  %v1375_v55 = vld [vmem:[#allocation2 + $0x898] sm:$0xff]  ;;  %v1374_v15 = vld [vmem:[#allocation2 + $0x890] sm:$0xff] }
 0x222   :  { %2225 = vmatprep.subr.bf16.mxu0 %v1301_v3  ;;  %2553 = vmatprep.subr.bf16.mxu1 %v1303_v32  ;;  %v1381_v3 = vld [vmem:[#allocation2 + $0x8c8] sm:$0xff]  ;;  %v1383_v32 = vld [vmem:[#allocation2 + $0x8d8] sm:$0xff] }
 0x225   :  { %2226 = vmatpush1.bf16.msra.mxu0 %v1300_v42  ;;  %2554 = vmatpush1.bf16.msra.mxu1 %v1302_v0  ;;  %v1380_v42 = vld [vmem:[#allocation2 + $0x8c0] sm:$0xff]  ;;  %v1382_v0 = vld [vmem:[#allocation2 + $0x8d0] sm:$0xff] }
 0x226   :  { %2227 = vmatprep.subr.bf16.mxu0 %v1309_v27  ;;  %2555 = vmatprep.subr.bf16.mxu1 %v1311_v33  ;;  %v1389_v27 = vld [vmem:[#allocation2 + $0x908] sm:$0xff]  ;;  %v1391_v33 = vld [vmem:[#allocation2 + $0x918] sm:$0xff] }
 0x229   :  { %2228 = vmatpush1.bf16.msra.mxu0 %v1308_v36  ;;  %2556 = vmatpush1.bf16.msra.mxu1 %v1310_v2  ;;  %v1388_v36 = vld [vmem:[#allocation2 + $0x900] sm:$0xff]  ;;  %v1390_v2 = vld [vmem:[#allocation2 + $0x910] sm:$0xff] }
 0x22a   :  { %2229 = vmatprep.subr.bf16.mxu0 %v1317_v43  ;;  %2557 = vmatprep.subr.bf16.mxu1 %v1319_v56  ;;  %v1397_v43 = vld [vmem:[#allocation2 + $0x948] sm:$0xff]  ;;  %v1399_v56 = vld [vmem:[#allocation2 + $0x958] sm:$0xff] }
 0x22d   :  { %2230 = vmatpush1.bf16.msra.mxu0 %v1316_v22  ;;  %2558 = vmatpush1.bf16.msra.mxu1 %v1318_v49  ;;  %v1396_v22 = vld [vmem:[#allocation2 + $0x940] sm:$0xff]  ;;  %v1398_v49 = vld [vmem:[#allocation2 + $0x950] sm:$0xff] }
 0x22e   :  { %2231 = vmatprep.subr.bf16.mxu0 %v1325_v26  ;;  %2559 = vmatprep.subr.bf16.mxu1 %v1327_v48  ;;  %v1405_v26 = vld [vmem:[#allocation2 + $0x988] sm:$0xff]  ;;  %v1407_v48 = vld [vmem:[#allocation2 + $0x998] sm:$0xff] }
 0x231   :  { %2232 = vmatpush1.bf16.msra.mxu0 %v1324_v20  ;;  %2560 = vmatpush1.bf16.msra.mxu1 %v1326_v19  ;;  %v1404_v20 = vld [vmem:[#allocation2 + $0x980] sm:$0xff]  ;;  %v1406_v19 = vld [vmem:[#allocation2 + $0x990] sm:$0xff] }
 0x232   :  { %2233 = vmatprep.subr.bf16.mxu0 %v1333_v54  ;;  %2561 = vmatprep.subr.bf16.mxu1 %v1335_v45  ;;  %v1413_v54 = vld [vmem:[#allocation2 + $0x9c8] sm:$0xff]  ;;  %v1415_v45 = vld [vmem:[#allocation2 + $0x9d8] sm:$0xff] }
 0x235   :  { %2234 = vmatpush1.bf16.msra.mxu0 %v1332_v41  ;;  %2562 = vmatpush1.bf16.msra.mxu1 %v1334_v46  ;;  %v1412_v41 = vld [vmem:[#allocation2 + $0x9c0] sm:$0xff]  ;;  %v1414_v46 = vld [vmem:[#allocation2 + $0x9d0] sm:$0xff] }
 0x236   :  { %2235 = vmatprep.subr.bf16.mxu0 %v1341_v25  ;;  %2563 = vmatprep.subr.bf16.mxu1 %v1343_v63  ;;  %v1421_v25 = vld [vmem:[#allocation2 + $0xa08] sm:$0xff]  ;;  %v1423_v63 = vld [vmem:[#allocation2 + $0xa18] sm:$0xff] }
 0x239   :  { %2236 = vmatpush1.bf16.msra.mxu0 %v1340_v21  ;;  %2564 = vmatpush1.bf16.msra.mxu1 %v1342_v57  ;;  %v1420_v21 = vld [vmem:[#allocation2 + $0xa00] sm:$0xff]  ;;  %v1422_v57 = vld [vmem:[#allocation2 + $0xa10] sm:$0xff] }
 0x23a   :  { %2237 = vmatprep.subr.bf16.mxu0 %v1349_v1  ;;  %2565 = vmatprep.subr.bf16.mxu1 %v1351_v38  ;;  %v1429_v1 = vld [vmem:[#allocation2 + $0xa48] sm:$0xff]  ;;  %v1431_v38 = vld [vmem:[#allocation2 + $0xa58] sm:$0xff] }
 0x23d   :  { %2238 = vmatpush1.bf16.msra.mxu0 %v1348_v39  ;;  %2566 = vmatpush1.bf16.msra.mxu1 %v1350_v62  ;;  %v1428_v39 = vld [vmem:[#allocation2 + $0xa40] sm:$0xff]  ;;  %v1430_v62 = vld [vmem:[#allocation2 + $0xa50] sm:$0xff] }
 0x23e   :  { %2248 = vmatprep.subr.bf16.mxu0 %v1357_v16  ;;  %2576 = vmatprep.subr.bf16.mxu1 %v1359_v13  ;;  %v1437_v16 = vld [vmem:[#allocation2 + $0xa88] sm:$0xff]  ;;  %v1439_v13 = vld [vmem:[#allocation2 + $0xa98] sm:$0xff] }
 0x240   :  { %2240 = vmatmul.mubr.bf16.vlgmr.msra.gmra.mrb[16].mxu0 %v6500_v35  ;;  %2568 = vmatmul.mubr.bf16.vlgmr.msra.gmra.mrb[16].mxu1 %v6500_v35 }
 0x241   :  { %2249 = vmatpush1.bf16.msra.mxu0 %v1356_v11  ;;  %2577 = vmatpush1.bf16.msra.mxu1 %v1358_v40  ;;  %v1436_v11 = vld [vmem:[#allocation2 + $0xa80] sm:$0xff]  ;;  %v1438_v40 = vld [vmem:[#allocation2 + $0xa90] sm:$0xff] }
 0x242   :  { %2250 = vmatprep.subr.bf16.mxu0 %v1365_v37  ;;  %2578 = vmatprep.subr.bf16.mxu1 %v1367_v30  ;;  %v1445_v37 = vld [vmem:[#allocation2 + $0xac8] sm:$0xff]  ;;  %v1447_v30 = vld [vmem:[#allocation2 + $0xad8] sm:$0xff] }
 0x243   :  { %2280 = vmatprep.mubr.bf16.mxu0 %v6504_v14  ;;  %2608 = vmatprep.mubr.bf16.mxu1 %v6504_v14 }
 0x245   :  { %2251 = vmatpush1.bf16.msra.mxu0 %v1364_v60  ;;  %2579 = vmatpush1.bf16.msra.mxu1 %v1366_v51  ;;  %v1444_v60 = vld [vmem:[#allocation2 + $0xac0] sm:$0xff]  ;;  %v1446_v51 = vld [vmem:[#allocation2 + $0xad0] sm:$0xff] }
 0x246   :  { %2252 = vmatprep.subr.bf16.mxu0 %v1373_v6  ;;  %2580 = vmatprep.subr.bf16.mxu1 %v1375_v55  ;;  %v1453_v6 = vld [vmem:[#allocation2 + $0xb08] sm:$0xff]  ;;  %v1455_v55 = vld [vmem:[#allocation2 + $0xb18] sm:$0xff] }
 0x249   :  { %2253 = vmatpush1.bf16.msra.mxu0 %v1372_v50  ;;  %2581 = vmatpush1.bf16.msra.mxu1 %v1374_v15  ;;  %v1452_v50 = vld [vmem:[#allocation2 + $0xb00] sm:$0xff]  ;;  %v1454_v15 = vld [vmem:[#allocation2 + $0xb10] sm:$0xff] }
 0x24a   :  { %2254 = vmatprep.subr.bf16.mxu0 %v1381_v3  ;;  %2582 = vmatprep.subr.bf16.mxu1 %v1383_v32  ;;  %v1461_v3 = vld [vmem:[#allocation2 + $0xb48] sm:$0xff]  ;;  %v1463_v32 = vld [vmem:[#allocation2 + $0xb58] sm:$0xff] }
 0x24d   :  { %2255 = vmatpush1.bf16.msra.mxu0 %v1380_v42  ;;  %2583 = vmatpush1.bf16.msra.mxu1 %v1382_v0  ;;  %v1460_v42 = vld [vmem:[#allocation2 + $0xb40] sm:$0xff]  ;;  %v1462_v0 = vld [vmem:[#allocation2 + $0xb50] sm:$0xff] }
 0x24e   :  { %2256 = vmatprep.subr.bf16.mxu0 %v1389_v27  ;;  %2584 = vmatprep.subr.bf16.mxu1 %v1391_v33  ;;  %v1469_v27 = vld [vmem:[#allocation2 + $0xb88] sm:$0xff]  ;;  %v1471_v33 = vld [vmem:[#allocation2 + $0xb98] sm:$0xff] }
 0x251   :  { %2257 = vmatpush1.bf16.msra.mxu0 %v1388_v36  ;;  %2585 = vmatpush1.bf16.msra.mxu1 %v1390_v2  ;;  %v1468_v36 = vld [vmem:[#allocation2 + $0xb80] sm:$0xff]  ;;  %v1470_v2 = vld [vmem:[#allocation2 + $0xb90] sm:$0xff] }
 0x252   :  { %2258 = vmatprep.subr.bf16.mxu0 %v1397_v43  ;;  %2586 = vmatprep.subr.bf16.mxu1 %v1399_v56  ;;  %v1477_v43 = vld [vmem:[#allocation2 + $0xbc8] sm:$0xff]  ;;  %v1479_v56 = vld [vmem:[#allocation2 + $0xbd8] sm:$0xff] }
 0x255   :  { %2259 = vmatpush1.bf16.msra.mxu0 %v1396_v22  ;;  %2587 = vmatpush1.bf16.msra.mxu1 %v1398_v49  ;;  %v1476_v22 = vld [vmem:[#allocation2 + $0xbc0] sm:$0xff]  ;;  %v1478_v49 = vld [vmem:[#allocation2 + $0xbd0] sm:$0xff] }
 0x256   :  { %2260 = vmatprep.subr.bf16.mxu0 %v1405_v26  ;;  %2588 = vmatprep.subr.bf16.mxu1 %v1407_v48  ;;  %v1485_v26 = vld [vmem:[#allocation2 + $0xc08] sm:$0xff]  ;;  %v1487_v48 = vld [vmem:[#allocation2 + $0xc18] sm:$0xff] }
 0x259   :  { %2261 = vmatpush1.bf16.msra.mxu0 %v1404_v20  ;;  %2589 = vmatpush1.bf16.msra.mxu1 %v1406_v19  ;;  %v6512_v20 = vpack.c.bf16 %v6360_v17, %v6360_v17  ;;  %v1484_v19 = vld [vmem:[#allocation2 + $0xc00] sm:$0xff] }
 0x25a   :  { %2262 = vmatprep.subr.bf16.mxu0 %v1413_v54  ;;  %2590 = vmatprep.subr.bf16.mxu1 %v1415_v45  ;;  %v1486_v54 = vld [vmem:[#allocation2 + $0xc10] sm:$0xff]  ;;  %v1493_v45 = vld [vmem:[#allocation2 + $0xc48] sm:$0xff]  ;;  %v1492_v17 = vld [vmem:[#allocation2 + $0xc40] sm:$0xff] }
 0x25d   :  { %2263 = vmatpush1.bf16.msra.mxu0 %v1412_v41  ;;  %2591 = vmatpush1.bf16.msra.mxu1 %v1414_v46  ;;  %v1495_v41 = vld [vmem:[#allocation2 + $0xc58] sm:$0xff]  ;;  %v6516_v46 = vpack.c.bf16 %v6424_v52, %v6424_v52  ;;  %v1500_v52 = vld [vmem:[#allocation2 + $0xc80] sm:$0xff] }
 0x25e   :  { %2264 = vmatprep.subr.bf16.mxu0 %v1421_v25  ;;  %2592 = vmatprep.subr.bf16.mxu1 %v1423_v63  ;;  %v1494_v25 = vld [vmem:[#allocation2 + $0xc50] sm:$0xff]  ;;  %v1501_v63 = vld [vmem:[#allocation2 + $0xc88] sm:$0xff] }
 0x261   :  { %2265 = vmatpush1.bf16.msra.mxu0 %v1420_v21  ;;  %2593 = vmatpush1.bf16.msra.mxu1 %v1422_v57  ;;  %v1503_v21 = vld [vmem:[#allocation2 + $0xc98] sm:$0xff]  ;;  %v1502_v57 = vld [vmem:[#allocation2 + $0xc90] sm:$0xff] }
 0x262   :  { %2266 = vmatprep.subr.bf16.mxu0 %v1429_v1  ;;  %2594 = vmatprep.subr.bf16.mxu1 %v1431_v38  ;;  %v1509_v1 = vld [vmem:[#allocation2 + $0xcc8] sm:$0xff]  ;;  %v1511_v38 = vld [vmem:[#allocation2 + $0xcd8] sm:$0xff] }
 0x265   :  { %2267 = vmatpush1.bf16.msra.mxu0 %v1428_v39  ;;  %2595 = vmatpush1.bf16.msra.mxu1 %v1430_v62  ;;  %v1508_v39 = vld [vmem:[#allocation2 + $0xcc0] sm:$0xff]  ;;  %v1510_v62 = vld [vmem:[#allocation2 + $0xcd0] sm:$0xff] }
 0x266   :  { %2268 = vmatprep.subr.bf16.mxu0 %v1437_v16  ;;  %2596 = vmatprep.subr.bf16.mxu1 %v1439_v13  ;;  %v1517_v16 = vld [vmem:[#allocation2 + $0xd08] sm:$0xff]  ;;  %v1519_v13 = vld [vmem:[#allocation2 + $0xd18] sm:$0xff] }
 0x269   :  { %2269 = vmatpush1.bf16.msra.mxu0 %v1436_v11  ;;  %2597 = vmatpush1.bf16.msra.mxu1 %v1438_v40  ;;  %v1516_v11 = vld [vmem:[#allocation2 + $0xd00] sm:$0xff]  ;;  %v1518_v40 = vld [vmem:[#allocation2 + $0xd10] sm:$0xff] }
 0x26a   :  { %2270 = vmatprep.subr.bf16.mxu0 %v1445_v37  ;;  %2598 = vmatprep.subr.bf16.mxu1 %v1447_v30  ;;  %v1525_v37 = vld [vmem:[#allocation2 + $0xd48] sm:$0xff]  ;;  %v1527_v30 = vld [vmem:[#allocation2 + $0xd58] sm:$0xff] }
 0x26d   :  { %2271 = vmatpush1.bf16.msra.mxu0 %v1444_v60  ;;  %2599 = vmatpush1.bf16.msra.mxu1 %v1446_v51  ;;  %v1524_v60 = vld [vmem:[#allocation2 + $0xd40] sm:$0xff]  ;;  %v1526_v51 = vld [vmem:[#allocation2 + $0xd50] sm:$0xff] }
 0x26e   :  { %2272 = vmatprep.subr.bf16.mxu0 %v1453_v6  ;;  %2600 = vmatprep.subr.bf16.mxu1 %v1455_v55  ;;  %v1533_v6 = vld [vmem:[#allocation2 + $0xd88] sm:$0xff]  ;;  %v1535_v55 = vld [vmem:[#allocation2 + $0xd98] sm:$0xff] }
 0x271   :  { %2273 = vmatpush1.bf16.msra.mxu0 %v1452_v50  ;;  %2601 = vmatpush1.bf16.msra.mxu1 %v1454_v15  ;;  %v1532_v50 = vld [vmem:[#allocation2 + $0xd80] sm:$0xff]  ;;  %v1534_v15 = vld [vmem:[#allocation2 + $0xd90] sm:$0xff] }
 0x272   :  { %2274 = vmatprep.subr.bf16.mxu0 %v1461_v3  ;;  %2602 = vmatprep.subr.bf16.mxu1 %v1463_v32  ;;  %v1541_v3 = vld [vmem:[#allocation2 + $0xdc8] sm:$0xff]  ;;  %v1543_v32 = vld [vmem:[#allocation2 + $0xdd8] sm:$0xff] }
 0x275   :  { %2275 = vmatpush1.bf16.msra.mxu0 %v1460_v42  ;;  %2603 = vmatpush1.bf16.msra.mxu1 %v1462_v0  ;;  %v1540_v42 = vld [vmem:[#allocation2 + $0xdc0] sm:$0xff]  ;;  %v1542_v0 = vld [vmem:[#allocation2 + $0xdd0] sm:$0xff] }
 0x276   :  { %2276 = vmatprep.subr.bf16.mxu0 %v1469_v27  ;;  %2604 = vmatprep.subr.bf16.mxu1 %v1471_v33  ;;  %v1549_v27 = vld [vmem:[#allocation2 + $0xe08] sm:$0xff]  ;;  %v1551_v33 = vld [vmem:[#allocation2 + $0xe18] sm:$0xff] }
 0x279   :  { %2277 = vmatpush1.bf16.msra.mxu0 %v1468_v36  ;;  %2605 = vmatpush1.bf16.msra.mxu1 %v1470_v2  ;;  %v1548_v36 = vld [vmem:[#allocation2 + $0xe00] sm:$0xff]  ;;  %v1550_v2 = vld [vmem:[#allocation2 + $0xe10] sm:$0xff] }
 0x27a   :  { %2278 = vmatprep.subr.bf16.mxu0 %v1477_v43  ;;  %2606 = vmatprep.subr.bf16.mxu1 %v1479_v56  ;;  %v1557_v43 = vld [vmem:[#allocation2 + $0xe48] sm:$0xff]  ;;  %v1559_v56 = vld [vmem:[#allocation2 + $0xe58] sm:$0xff] }
 0x27d   :  { %2279 = vmatpush1.bf16.msra.mxu0 %v1476_v22  ;;  %2607 = vmatpush1.bf16.msra.mxu1 %v1478_v49  ;;  %v1556_v22 = vld [vmem:[#allocation2 + $0xe40] sm:$0xff]  ;;  %v1558_v49 = vld [vmem:[#allocation2 + $0xe50] sm:$0xff] }
 0x27e   :  { %2289 = vmatprep.subr.bf16.mxu0 %v1485_v26  ;;  %2617 = vmatprep.subr.bf16.mxu1 %v1487_v48  ;;  %v1565_v26 = vld [vmem:[#allocation2 + $0xe88] sm:$0xff]  ;;  %v1567_v48 = vld [vmem:[#allocation2 + $0xe98] sm:$0xff] }
 0x280   :  { %2281 = vmatmul.mubr.bf16.vlgmr.msra.gmra.mrb[16].mxu0 %v6512_v20  ;;  %2609 = vmatmul.mubr.bf16.vlgmr.msra.gmra.mrb[16].mxu1 %v6512_v20 }
 0x281   :  { %2290 = vmatpush1.bf16.msra.mxu0 %v1484_v19  ;;  %2618 = vmatpush1.bf16.msra.mxu1 %v1486_v54  ;;  %v1564_v19 = vld [vmem:[#allocation2 + $0xe80] sm:$0xff]  ;;  %v1566_v54 = vld [vmem:[#allocation2 + $0xe90] sm:$0xff] }
 0x282   :  { %2291 = vmatprep.subr.bf16.mxu0 %v1493_v45  ;;  %2619 = vmatprep.subr.bf16.mxu1 %v1495_v41  ;;  %v1573_v45 = vld [vmem:[#allocation2 + $0xec8] sm:$0xff]  ;;  %v1575_v41 = vld [vmem:[#allocation2 + $0xed8] sm:$0xff] }
 0x283   :  { %2321 = vmatprep.mubr.bf16.mxu0 %v6516_v46  ;;  %2649 = vmatprep.mubr.bf16.mxu1 %v6516_v46 }
 0x285   :  { %2292 = vmatpush1.bf16.msra.mxu0 %v1492_v17  ;;  %2620 = vmatpush1.bf16.msra.mxu1 %v1494_v25  ;;  %v1572_v17 = vld [vmem:[#allocation2 + $0xec0] sm:$0xff]  ;;  %v1574_v25 = vld [vmem:[#allocation2 + $0xed0] sm:$0xff] }
 0x286   :  { %2293 = vmatprep.subr.bf16.mxu0 %v1501_v63  ;;  %2621 = vmatprep.subr.bf16.mxu1 %v1503_v21  ;;  %v1581_v63 = vld [vmem:[#allocation2 + $0xf08] sm:$0xff]  ;;  %v1583_v21 = vld [vmem:[#allocation2 + $0xf18] sm:$0xff] }
 0x289   :  { %2294 = vmatpush1.bf16.msra.mxu0 %v1500_v52  ;;  %2622 = vmatpush1.bf16.msra.mxu1 %v1502_v57  ;;  %v1580_v52 = vld [vmem:[#allocation2 + $0xf00] sm:$0xff]  ;;  %v1582_v57 = vld [vmem:[#allocation2 + $0xf10] sm:$0xff] }
 0x28a   :  { %2295 = vmatprep.subr.bf16.mxu0 %v1509_v1  ;;  %2623 = vmatprep.subr.bf16.mxu1 %v1511_v38  ;;  %v1589_v1 = vld [vmem:[#allocation2 + $0xf48] sm:$0xff]  ;;  %v1591_v38 = vld [vmem:[#allocation2 + $0xf58] sm:$0xff] }
 0x28d   :  { %2296 = vmatpush1.bf16.msra.mxu0 %v1508_v39  ;;  %2624 = vmatpush1.bf16.msra.mxu1 %v1510_v62  ;;  %v1588_v39 = vld [vmem:[#allocation2 + $0xf40] sm:$0xff]  ;;  %v1590_v62 = vld [vmem:[#allocation2 + $0xf50] sm:$0xff] }
 0x28e   :  { %2297 = vmatprep.subr.bf16.mxu0 %v1517_v16  ;;  %2625 = vmatprep.subr.bf16.mxu1 %v1519_v13  ;;  %v1597_v16 = vld [vmem:[#allocation2 + $0xf88] sm:$0xff]  ;;  %v1599_v13 = vld [vmem:[#allocation2 + $0xf98] sm:$0xff] }
 0x291   :  { %2298 = vmatpush1.bf16.msra.mxu0 %v1516_v11  ;;  %2626 = vmatpush1.bf16.msra.mxu1 %v1518_v40  ;;  %v1596_v11 = vld [vmem:[#allocation2 + $0xf80] sm:$0xff]  ;;  %v1598_v40 = vld [vmem:[#allocation2 + $0xf90] sm:$0xff] }
 0x292   :  { %2299 = vmatprep.subr.bf16.mxu0 %v1525_v37  ;;  %2627 = vmatprep.subr.bf16.mxu1 %v1527_v30  ;;  %v1605_v37 = vld [vmem:[#allocation2 + $0xfc8] sm:$0xff]  ;;  %v1607_v30 = vld [vmem:[#allocation2 + $0xfd8] sm:$0xff] }
 0x295   :  { %2300 = vmatpush1.bf16.msra.mxu0 %v1524_v60  ;;  %2628 = vmatpush1.bf16.msra.mxu1 %v1526_v51  ;;  %v1604_v60 = vld [vmem:[#allocation2 + $0xfc0] sm:$0xff]  ;;  %v1606_v51 = vld [vmem:[#allocation2 + $0xfd0] sm:$0xff] }
 0x296   :  { %2301 = vmatprep.subr.bf16.mxu0 %v1533_v6  ;;  %2629 = vmatprep.subr.bf16.mxu1 %v1535_v55  ;;  %v1613_v6 = vld [vmem:[#allocation2 + $0x1008] sm:$0xff]  ;;  %v1615_v55 = vld [vmem:[#allocation2 + $0x1018] sm:$0xff] }
 0x299   :  { %2302 = vmatpush1.bf16.msra.mxu0 %v1532_v50  ;;  %2630 = vmatpush1.bf16.msra.mxu1 %v1534_v15  ;;  %v6524_v50 = vpack.c.bf16 %v6369_v58, %v6369_v58  ;;  %v1612_v15 = vld [vmem:[#allocation2 + $0x1000] sm:$0xff] }
 0x29a   :  { %2303 = vmatprep.subr.bf16.mxu0 %v1541_v3  ;;  %2631 = vmatprep.subr.bf16.mxu1 %v1543_v32  ;;  %v1614_v3 = vld [vmem:[#allocation2 + $0x1010] sm:$0xff]  ;;  %v1621_v32 = vld [vmem:[#allocation2 + $0x1048] sm:$0xff]  ;;  %v1620_v58 = vld [vmem:[#allocation2 + $0x1040] sm:$0xff] }
 0x29d   :  { %2304 = vmatpush1.bf16.msra.mxu0 %v1540_v42  ;;  %2632 = vmatpush1.bf16.msra.mxu1 %v1542_v0  ;;  %v1623_v42 = vld [vmem:[#allocation2 + $0x1058] sm:$0xff]  ;;  %v6528_v0 = vpack.c.bf16 %v6446_v61, %v6446_v61  ;;  %v1628_v61 = vld [vmem:[#allocation2 + $0x1080] sm:$0xff] }
 0x29e   :  { %2305 = vmatprep.subr.bf16.mxu0 %v1549_v27  ;;  %2633 = vmatprep.subr.bf16.mxu1 %v1551_v33  ;;  %v1622_v27 = vld [vmem:[#allocation2 + $0x1050] sm:$0xff]  ;;  %v1629_v33 = vld [vmem:[#allocation2 + $0x1088] sm:$0xff] }
 0x2a1   :  { %2306 = vmatpush1.bf16.msra.mxu0 %v1548_v36  ;;  %2634 = vmatpush1.bf16.msra.mxu1 %v1550_v2  ;;  %v1631_v36 = vld [vmem:[#allocation2 + $0x1098] sm:$0xff]  ;;  %v1630_v2 = vld [vmem:[#allocation2 + $0x1090] sm:$0xff] }
 0x2a2   :  { %2307 = vmatprep.subr.bf16.mxu0 %v1557_v43  ;;  %2635 = vmatprep.subr.bf16.mxu1 %v1559_v56  ;;  %v1637_v43 = vld [vmem:[#allocation2 + $0x10c8] sm:$0xff]  ;;  %v1639_v56 = vld [vmem:[#allocation2 + $0x10d8] sm:$0xff] }
 0x2a5   :  { %2308 = vmatpush1.bf16.msra.mxu0 %v1556_v22  ;;  %2636 = vmatpush1.bf16.msra.mxu1 %v1558_v49  ;;  %v1636_v22 = vld [vmem:[#allocation2 + $0x10c0] sm:$0xff]  ;;  %v1638_v49 = vld [vmem:[#allocation2 + $0x10d0] sm:$0xff] }
 0x2a6   :  { %2309 = vmatprep.subr.bf16.mxu0 %v1565_v26  ;;  %2637 = vmatprep.subr.bf16.mxu1 %v1567_v48  ;;  %v1645_v26 = vld [vmem:[#allocation2 + $0x1108] sm:$0xff]  ;;  %v1647_v48 = vld [vmem:[#allocation2 + $0x1118] sm:$0xff] }
 0x2a9   :  { %2310 = vmatpush1.bf16.msra.mxu0 %v1564_v19  ;;  %2638 = vmatpush1.bf16.msra.mxu1 %v1566_v54  ;;  %v1644_v19 = vld [vmem:[#allocation2 + $0x1100] sm:$0xff]  ;;  %v1646_v54 = vld [vmem:[#allocation2 + $0x1110] sm:$0xff] }
 0x2aa   :  { %2311 = vmatprep.subr.bf16.mxu0 %v1573_v45  ;;  %2639 = vmatprep.subr.bf16.mxu1 %v1575_v41  ;;  %v1653_v45 = vld [vmem:[#allocation2 + $0x1148] sm:$0xff]  ;;  %v1655_v41 = vld [vmem:[#allocation2 + $0x1158] sm:$0xff] }
 0x2ad   :  { %2312 = vmatpush1.bf16.msra.mxu0 %v1572_v17  ;;  %2640 = vmatpush1.bf16.msra.mxu1 %v1574_v25  ;;  %v1652_v17 = vld [vmem:[#allocation2 + $0x1140] sm:$0xff]  ;;  %v1654_v25 = vld [vmem:[#allocation2 + $0x1150] sm:$0xff] }
 0x2ae   :  { %2313 = vmatprep.subr.bf16.mxu0 %v1581_v63  ;;  %2641 = vmatprep.subr.bf16.mxu1 %v1583_v21  ;;  %v1661_v63 = vld [vmem:[#allocation2 + $0x1188] sm:$0xff]  ;;  %v1663_v21 = vld [vmem:[#allocation2 + $0x1198] sm:$0xff] }
 0x2b1   :  { %2314 = vmatpush1.bf16.msra.mxu0 %v1580_v52  ;;  %2642 = vmatpush1.bf16.msra.mxu1 %v1582_v57  ;;  %v1660_v52 = vld [vmem:[#allocation2 + $0x1180] sm:$0xff]  ;;  %v1662_v57 = vld [vmem:[#allocation2 + $0x1190] sm:$0xff] }
 0x2b2   :  { %2315 = vmatprep.subr.bf16.mxu0 %v1589_v1  ;;  %2643 = vmatprep.subr.bf16.mxu1 %v1591_v38  ;;  %v1669_v1 = vld [vmem:[#allocation2 + $0x11c8] sm:$0xff]  ;;  %v1671_v38 = vld [vmem:[#allocation2 + $0x11d8] sm:$0xff] }
 0x2b5   :  { %2316 = vmatpush1.bf16.msra.mxu0 %v1588_v39  ;;  %2644 = vmatpush1.bf16.msra.mxu1 %v1590_v62  ;;  %v1668_v39 = vld [vmem:[#allocation2 + $0x11c0] sm:$0xff]  ;;  %v1670_v62 = vld [vmem:[#allocation2 + $0x11d0] sm:$0xff] }
 0x2b6   :  { %2317 = vmatprep.subr.bf16.mxu0 %v1597_v16  ;;  %2645 = vmatprep.subr.bf16.mxu1 %v1599_v13  ;;  %v1677_v16 = vld [vmem:[#allocation2 + $0x1208] sm:$0xff]  ;;  %v1679_v13 = vld [vmem:[#allocation2 + $0x1218] sm:$0xff] }
 0x2b9   :  { %2318 = vmatpush1.bf16.msra.mxu0 %v1596_v11  ;;  %2646 = vmatpush1.bf16.msra.mxu1 %v1598_v40  ;;  %v1676_v11 = vld [vmem:[#allocation2 + $0x1200] sm:$0xff]  ;;  %v1678_v40 = vld [vmem:[#allocation2 + $0x1210] sm:$0xff] }
 0x2ba   :  { %2319 = vmatprep.subr.bf16.mxu0 %v1605_v37  ;;  %2647 = vmatprep.subr.bf16.mxu1 %v1607_v30  ;;  %v1685_v37 = vld [vmem:[#allocation2 + $0x1248] sm:$0xff]  ;;  %v1687_v30 = vld [vmem:[#allocation2 + $0x1258] sm:$0xff] }
 0x2bd   :  { %2320 = vmatpush1.bf16.msra.mxu0 %v1604_v60  ;;  %2648 = vmatpush1.bf16.msra.mxu1 %v1606_v51  ;;  %v1684_v60 = vld [vmem:[#allocation2 + $0x1240] sm:$0xff]  ;;  %v1686_v51 = vld [vmem:[#allocation2 + $0x1250] sm:$0xff] }
 0x2be   :  { %2330 = vmatprep.subr.bf16.mxu0 %v1613_v6  ;;  %2658 = vmatprep.subr.bf16.mxu1 %v1615_v55  ;;  %v1693_v6 = vld [vmem:[#allocation2 + $0x1288] sm:$0xff]  ;;  %v1695_v55 = vld [vmem:[#allocation2 + $0x1298] sm:$0xff] }
 0x2c0   :  { %2322 = vmatmul.mubr.bf16.vlgmr.msra.gmra.mrb[16].mxu0 %v6524_v50  ;;  %2650 = vmatmul.mubr.bf16.vlgmr.msra.gmra.mrb[16].mxu1 %v6524_v50 }
 0x2c1   :  { %2331 = vmatpush1.bf16.msra.mxu0 %v1612_v15  ;;  %2659 = vmatpush1.bf16.msra.mxu1 %v1614_v3  ;;  %v1692_v15 = vld [vmem:[#allocation2 + $0x1280] sm:$0xff]  ;;  %v1694_v3 = vld [vmem:[#allocation2 + $0x1290] sm:$0xff] }
 0x2c2   :  { %2332 = vmatprep.subr.bf16.mxu0 %v1621_v32  ;;  %2660 = vmatprep.subr.bf16.mxu1 %v1623_v42  ;;  %v1701_v32 = vld [vmem:[#allocation2 + $0x12c8] sm:$0xff]  ;;  %v1703_v42 = vld [vmem:[#allocation2 + $0x12d8] sm:$0xff] }
 0x2c3   :  { %2362 = vmatprep.mubr.bf16.mxu0 %v6528_v0  ;;  %2690 = vmatprep.mubr.bf16.mxu1 %v6528_v0 }
 0x2c5   :  { %2333 = vmatpush1.bf16.msra.mxu0 %v1620_v58  ;;  %2661 = vmatpush1.bf16.msra.mxu1 %v1622_v27  ;;  %v1700_v58 = vld [vmem:[#allocation2 + $0x12c0] sm:$0xff]  ;;  %v1702_v27 = vld [vmem:[#allocation2 + $0x12d0] sm:$0xff] }
 0x2c6   :  { %2334 = vmatprep.subr.bf16.mxu0 %v1629_v33  ;;  %2662 = vmatprep.subr.bf16.mxu1 %v1631_v36  ;;  %v1709_v33 = vld [vmem:[#allocation2 + $0x1308] sm:$0xff]  ;;  %v1711_v36 = vld [vmem:[#allocation2 + $0x1318] sm:$0xff] }
 0x2c9   :  { %2335 = vmatpush1.bf16.msra.mxu0 %v1628_v61  ;;  %2663 = vmatpush1.bf16.msra.mxu1 %v1630_v2  ;;  %v1708_v61 = vld [vmem:[#allocation2 + $0x1300] sm:$0xff]  ;;  %v1710_v2 = vld [vmem:[#allocation2 + $0x1310] sm:$0xff] }
 0x2ca   :  { %2336 = vmatprep.subr.bf16.mxu0 %v1637_v43  ;;  %2664 = vmatprep.subr.bf16.mxu1 %v1639_v56  ;;  %v1717_v43 = vld [vmem:[#allocation2 + $0x1348] sm:$0xff]  ;;  %v1719_v56 = vld [vmem:[#allocation2 + $0x1358] sm:$0xff] }
 0x2cd   :  { %2337 = vmatpush1.bf16.msra.mxu0 %v1636_v22  ;;  %2665 = vmatpush1.bf16.msra.mxu1 %v1638_v49  ;;  %v1716_v22 = vld [vmem:[#allocation2 + $0x1340] sm:$0xff]  ;;  %v1718_v49 = vld [vmem:[#allocation2 + $0x1350] sm:$0xff] }
 0x2ce   :  { %2338 = vmatprep.subr.bf16.mxu0 %v1645_v26  ;;  %2666 = vmatprep.subr.bf16.mxu1 %v1647_v48  ;;  %v1725_v26 = vld [vmem:[#allocation2 + $0x1388] sm:$0xff]  ;;  %v1727_v48 = vld [vmem:[#allocation2 + $0x1398] sm:$0xff] }
 0x2d1   :  { %2339 = vmatpush1.bf16.msra.mxu0 %v1644_v19  ;;  %2667 = vmatpush1.bf16.msra.mxu1 %v1646_v54  ;;  %v1724_v19 = vld [vmem:[#allocation2 + $0x1380] sm:$0xff]  ;;  %v1726_v54 = vld [vmem:[#allocation2 + $0x1390] sm:$0xff] }
 0x2d2   :  { %2340 = vmatprep.subr.bf16.mxu0 %v1653_v45  ;;  %2668 = vmatprep.subr.bf16.mxu1 %v1655_v41  ;;  %v1733_v45 = vld [vmem:[#allocation2 + $0x13c8] sm:$0xff]  ;;  %v1735_v41 = vld [vmem:[#allocation2 + $0x13d8] sm:$0xff] }
 0x2d5   :  { %2341 = vmatpush1.bf16.msra.mxu0 %v1652_v17  ;;  %2669 = vmatpush1.bf16.msra.mxu1 %v1654_v25  ;;  %v1732_v17 = vld [vmem:[#allocation2 + $0x13c0] sm:$0xff]  ;;  %v1734_v25 = vld [vmem:[#allocation2 + $0x13d0] sm:$0xff] }
 0x2d6   :  { %2342 = vmatprep.subr.bf16.mxu0 %v1661_v63  ;;  %2670 = vmatprep.subr.bf16.mxu1 %v1663_v21  ;;  %v1741_v63 = vld [vmem:[#allocation2 + $0x1408] sm:$0xff]  ;;  %v1743_v21 = vld [vmem:[#allocation2 + $0x1418] sm:$0xff] }
 0x2d9   :  { %2343 = vmatpush1.bf16.msra.mxu0 %v1660_v52  ;;  %2671 = vmatpush1.bf16.msra.mxu1 %v1662_v57  ;;  %v6536_v52 = vpack.c.bf16 %v6429_v10, %v6429_v10  ;;  %v1740_v57 = vld [vmem:[#allocation2 + $0x1400] sm:$0xff] }
 0x2da   :  { %2344 = vmatprep.subr.bf16.mxu0 %v1669_v1  ;;  %2672 = vmatprep.subr.bf16.mxu1 %v1671_v38  ;;  %v1742_v1 = vld [vmem:[#allocation2 + $0x1410] sm:$0xff]  ;;  %v1749_v38 = vld [vmem:[#allocation2 + $0x1448] sm:$0xff]  ;;  %v1748_v10 = vld [vmem:[#allocation2 + $0x1440] sm:$0xff] }
 0x2dd   :  { %2345 = vmatpush1.bf16.msra.mxu0 %v1668_v39  ;;  %2673 = vmatpush1.bf16.msra.mxu1 %v1670_v62  ;;  %v1751_v39 = vld [vmem:[#allocation2 + $0x1458] sm:$0xff]  ;;  %v6540_v62 = vpack.c.bf16 %v6454_v59, %v6454_v59  ;;  %v1756_v59 = vld [vmem:[#allocation2 + $0x1480] sm:$0xff] }
 0x2de   :  { %2346 = vmatprep.subr.bf16.mxu0 %v1677_v16  ;;  %2674 = vmatprep.subr.bf16.mxu1 %v1679_v13  ;;  %v1750_v16 = vld [vmem:[#allocation2 + $0x1450] sm:$0xff]  ;;  %v1757_v13 = vld [vmem:[#allocation2 + $0x1488] sm:$0xff] }
 0x2e1   :  { %2347 = vmatpush1.bf16.msra.mxu0 %v1676_v11  ;;  %2675 = vmatpush1.bf16.msra.mxu1 %v1678_v40  ;;  %v1759_v11 = vld [vmem:[#allocation2 + $0x1498] sm:$0xff]  ;;  %v1758_v40 = vld [vmem:[#allocation2 + $0x1490] sm:$0xff] }
 0x2e2   :  { %2348 = vmatprep.subr.bf16.mxu0 %v1685_v37  ;;  %2676 = vmatprep.subr.bf16.mxu1 %v1687_v30  ;;  %v1765_v37 = vld [vmem:[#allocation2 + $0x14c8] sm:$0xff]  ;;  %v1767_v30 = vld [vmem:[#allocation2 + $0x14d8] sm:$0xff] }
 0x2e5   :  { %2349 = vmatpush1.bf16.msra.mxu0 %v1684_v60  ;;  %2677 = vmatpush1.bf16.msra.mxu1 %v1686_v51  ;;  %v1764_v60 = vld [vmem:[#allocation2 + $0x14c0] sm:$0xff]  ;;  %v1766_v51 = vld [vmem:[#allocation2 + $0x14d0] sm:$0xff] }
 0x2e6   :  { %2350 = vmatprep.subr.bf16.mxu0 %v1693_v6  ;;  %2678 = vmatprep.subr.bf16.mxu1 %v1695_v55  ;;  %v1773_v6 = vld [vmem:[#allocation2 + $0x1508] sm:$0xff]  ;;  %v1775_v55 = vld [vmem:[#allocation2 + $0x1518] sm:$0xff] }
 0x2e9   :  { %2351 = vmatpush1.bf16.msra.mxu0 %v1692_v15  ;;  %2679 = vmatpush1.bf16.msra.mxu1 %v1694_v3  ;;  %v1772_v15 = vld [vmem:[#allocation2 + $0x1500] sm:$0xff]  ;;  %v1774_v3 = vld [vmem:[#allocation2 + $0x1510] sm:$0xff] }
 0x2ea   :  { %2352 = vmatprep.subr.bf16.mxu0 %v1701_v32  ;;  %2680 = vmatprep.subr.bf16.mxu1 %v1703_v42  ;;  %v1781_v32 = vld [vmem:[#allocation2 + $0x1548] sm:$0xff]  ;;  %v1783_v42 = vld [vmem:[#allocation2 + $0x1558] sm:$0xff] }
 0x2ed   :  { %2353 = vmatpush1.bf16.msra.mxu0 %v1700_v58  ;;  %2681 = vmatpush1.bf16.msra.mxu1 %v1702_v27  ;;  %v1780_v58 = vld [vmem:[#allocation2 + $0x1540] sm:$0xff]  ;;  %v1782_v27 = vld [vmem:[#allocation2 + $0x1550] sm:$0xff] }
 0x2ee   :  { %2354 = vmatprep.subr.bf16.mxu0 %v1709_v33  ;;  %2682 = vmatprep.subr.bf16.mxu1 %v1711_v36  ;;  %v1789_v33 = vld [vmem:[#allocation2 + $0x1588] sm:$0xff]  ;;  %v1791_v36 = vld [vmem:[#allocation2 + $0x1598] sm:$0xff] }
 0x2f1   :  { %2355 = vmatpush1.bf16.msra.mxu0 %v1708_v61  ;;  %2683 = vmatpush1.bf16.msra.mxu1 %v1710_v2  ;;  %v1788_v61 = vld [vmem:[#allocation2 + $0x1580] sm:$0xff]  ;;  %v1790_v2 = vld [vmem:[#allocation2 + $0x1590] sm:$0xff] }
 0x2f2   :  { %2356 = vmatprep.subr.bf16.mxu0 %v1717_v43  ;;  %2684 = vmatprep.subr.bf16.mxu1 %v1719_v56  ;;  %v1797_v43 = vld [vmem:[#allocation2 + $0x15c8] sm:$0xff]  ;;  %v1799_v56 = vld [vmem:[#allocation2 + $0x15d8] sm:$0xff] }
 0x2f5   :  { %2357 = vmatpush1.bf16.msra.mxu0 %v1716_v22  ;;  %2685 = vmatpush1.bf16.msra.mxu1 %v1718_v49  ;;  %v1796_v22 = vld [vmem:[#allocation2 + $0x15c0] sm:$0xff]  ;;  %v1798_v49 = vld [vmem:[#allocation2 + $0x15d0] sm:$0xff] }
 0x2f6   :  { %2358 = vmatprep.subr.bf16.mxu0 %v1725_v26  ;;  %2686 = vmatprep.subr.bf16.mxu1 %v1727_v48  ;;  %v1805_v26 = vld [vmem:[#allocation2 + $0x1608] sm:$0xff]  ;;  %v1807_v48 = vld [vmem:[#allocation2 + $0x1618] sm:$0xff] }
 0x2f9   :  { %2359 = vmatpush1.bf16.msra.mxu0 %v1724_v19  ;;  %2687 = vmatpush1.bf16.msra.mxu1 %v1726_v54  ;;  %v1804_v19 = vld [vmem:[#allocation2 + $0x1600] sm:$0xff]  ;;  %v1806_v54 = vld [vmem:[#allocation2 + $0x1610] sm:$0xff] }
 0x2fa   :  { %2360 = vmatprep.subr.bf16.mxu0 %v1733_v45  ;;  %2688 = vmatprep.subr.bf16.mxu1 %v1735_v41  ;;  %v1813_v45 = vld [vmem:[#allocation2 + $0x1648] sm:$0xff]  ;;  %v1815_v41 = vld [vmem:[#allocation2 + $0x1658] sm:$0xff] }
 0x2fd   :  { %2361 = vmatpush1.bf16.msra.mxu0 %v1732_v17  ;;  %2689 = vmatpush1.bf16.msra.mxu1 %v1734_v25  ;;  %v1812_v17 = vld [vmem:[#allocation2 + $0x1640] sm:$0xff]  ;;  %v1814_v25 = vld [vmem:[#allocation2 + $0x1650] sm:$0xff] }
 0x2fe   :  { %2371 = vmatprep.subr.bf16.mxu0 %v1741_v63  ;;  %2699 = vmatprep.subr.bf16.mxu1 %v1743_v21  ;;  %v1821_v63 = vld [vmem:[#allocation2 + $0x1688] sm:$0xff]  ;;  %v1823_v21 = vld [vmem:[#allocation2 + $0x1698] sm:$0xff] }
 0x300   :  { %2363 = vmatmul.mubr.bf16.vlgmr.msra.gmra.mrb[16].mxu0 %v6536_v52  ;;  %2691 = vmatmul.mubr.bf16.vlgmr.msra.gmra.mrb[16].mxu1 %v6536_v52 }
 0x301   :  { %2372 = vmatpush1.bf16.msra.mxu0 %v1740_v57  ;;  %2700 = vmatpush1.bf16.msra.mxu1 %v1742_v1  ;;  %v1820_v57 = vld [vmem:[#allocation2 + $0x1680] sm:$0xff]  ;;  %v1822_v1 = vld [vmem:[#allocation2 + $0x1690] sm:$0xff] }
 0x302   :  { %2373 = vmatprep.subr.bf16.mxu0 %v1749_v38  ;;  %2701 = vmatprep.subr.bf16.mxu1 %v1751_v39  ;;  %v1829_v38 = vld [vmem:[#allocation2 + $0x16c8] sm:$0xff]  ;;  %v1831_v39 = vld [vmem:[#allocation2 + $0x16d8] sm:$0xff] }
 0x303   :  { %2403 = vmatprep.mubr.bf16.mxu0 %v6540_v62  ;;  %2731 = vmatprep.mubr.bf16.mxu1 %v6540_v62 }
 0x305   :  { %2374 = vmatpush1.bf16.msra.mxu0 %v1748_v10  ;;  %2702 = vmatpush1.bf16.msra.mxu1 %v1750_v16  ;;  %v1828_v10 = vld [vmem:[#allocation2 + $0x16c0] sm:$0xff]  ;;  %v1830_v16 = vld [vmem:[#allocation2 + $0x16d0] sm:$0xff] }
 0x306   :  { %2375 = vmatprep.subr.bf16.mxu0 %v1757_v13  ;;  %2703 = vmatprep.subr.bf16.mxu1 %v1759_v11  ;;  %v1837_v13 = vld [vmem:[#allocation2 + $0x1708] sm:$0xff]  ;;  %v1839_v11 = vld [vmem:[#allocation2 + $0x1718] sm:$0xff] }
 0x309   :  { %2376 = vmatpush1.bf16.msra.mxu0 %v1756_v59  ;;  %2704 = vmatpush1.bf16.msra.mxu1 %v1758_v40  ;;  %v1836_v59 = vld [vmem:[#allocation2 + $0x1700] sm:$0xff]  ;;  %v1838_v40 = vld [vmem:[#allocation2 + $0x1710] sm:$0xff] }
 0x30a   :  { %2377 = vmatprep.subr.bf16.mxu0 %v1765_v37  ;;  %2705 = vmatprep.subr.bf16.mxu1 %v1767_v30  ;;  %v1845_v37 = vld [vmem:[#allocation2 + $0x1748] sm:$0xff]  ;;  %v1847_v30 = vld [vmem:[#allocation2 + $0x1758] sm:$0xff] }
 0x30d   :  { %2378 = vmatpush1.bf16.msra.mxu0 %v1764_v60  ;;  %2706 = vmatpush1.bf16.msra.mxu1 %v1766_v51  ;;  %v1844_v60 = vld [vmem:[#allocation2 + $0x1740] sm:$0xff]  ;;  %v1846_v51 = vld [vmem:[#allocation2 + $0x1750] sm:$0xff] }
 0x30e   :  { %2379 = vmatprep.subr.bf16.mxu0 %v1773_v6  ;;  %2707 = vmatprep.subr.bf16.mxu1 %v1775_v55  ;;  %v1853_v6 = vld [vmem:[#allocation2 + $0x1788] sm:$0xff]  ;;  %v1855_v55 = vld [vmem:[#allocation2 + $0x1798] sm:$0xff] }
 0x311   :  { %2380 = vmatpush1.bf16.msra.mxu0 %v1772_v15  ;;  %2708 = vmatpush1.bf16.msra.mxu1 %v1774_v3  ;;  %v1852_v15 = vld [vmem:[#allocation2 + $0x1780] sm:$0xff]  ;;  %v1854_v3 = vld [vmem:[#allocation2 + $0x1790] sm:$0xff] }
 0x312   :  { %2381 = vmatprep.subr.bf16.mxu0 %v1781_v32  ;;  %2709 = vmatprep.subr.bf16.mxu1 %v1783_v42  ;;  %v1861_v32 = vld [vmem:[#allocation2 + $0x17c8] sm:$0xff]  ;;  %v1863_v42 = vld [vmem:[#allocation2 + $0x17d8] sm:$0xff] }
 0x315   :  { %2382 = vmatpush1.bf16.msra.mxu0 %v1780_v58  ;;  %2710 = vmatpush1.bf16.msra.mxu1 %v1782_v27  ;;  %v1860_v58 = vld [vmem:[#allocation2 + $0x17c0] sm:$0xff]  ;;  %v1862_v27 = vld [vmem:[#allocation2 + $0x17d0] sm:$0xff] }
 0x316   :  { %2383 = vmatprep.subr.bf16.mxu0 %v1789_v33  ;;  %2711 = vmatprep.subr.bf16.mxu1 %v1791_v36  ;;  %v1869_v33 = vld [vmem:[#allocation2 + $0x1808] sm:$0xff]  ;;  %v1871_v36 = vld [vmem:[#allocation2 + $0x1818] sm:$0xff] }
 0x319   :  { %2384 = vmatpush1.bf16.msra.mxu0 %v1788_v61  ;;  %2712 = vmatpush1.bf16.msra.mxu1 %v1790_v2  ;;  %v6548_v61 = vpack.c.bf16 %v6439_v12, %v6439_v12  ;;  %v1868_v2 = vld [vmem:[#allocation2 + $0x1800] sm:$0xff] }
 0x31a   :  { %2385 = vmatprep.subr.bf16.mxu0 %v1797_v43  ;;  %2713 = vmatprep.subr.bf16.mxu1 %v1799_v56  ;;  %v1870_v43 = vld [vmem:[#allocation2 + $0x1810] sm:$0xff]  ;;  %v1877_v56 = vld [vmem:[#allocation2 + $0x1848] sm:$0xff]  ;;  %v1876_v12 = vld [vmem:[#allocation2 + $0x1840] sm:$0xff] }
 0x31d   :  { %2386 = vmatpush1.bf16.msra.mxu0 %v1796_v22  ;;  %2714 = vmatpush1.bf16.msra.mxu1 %v1798_v49  ;;  %v1879_v22 = vld [vmem:[#allocation2 + $0x1858] sm:$0xff]  ;;  %v6552_v49 = vpack.c.bf16 %v6473_v53, %v6473_v53  ;;  %v1884_v53 = vld [vmem:[#allocation2 + $0x1880] sm:$0xff] }
 0x31e   :  { %2387 = vmatprep.subr.bf16.mxu0 %v1805_v26  ;;  %2715 = vmatprep.subr.bf16.mxu1 %v1807_v48  ;;  %v1878_v26 = vld [vmem:[#allocation2 + $0x1850] sm:$0xff]  ;;  %v1885_v48 = vld [vmem:[#allocation2 + $0x1888] sm:$0xff] }
 0x321   :  { %2388 = vmatpush1.bf16.msra.mxu0 %v1804_v19  ;;  %2716 = vmatpush1.bf16.msra.mxu1 %v1806_v54  ;;  %v1887_v19 = vld [vmem:[#allocation2 + $0x1898] sm:$0xff]  ;;  %v1886_v54 = vld [vmem:[#allocation2 + $0x1890] sm:$0xff] }
 0x322   :  { %2389 = vmatprep.subr.bf16.mxu0 %v1813_v45  ;;  %2717 = vmatprep.subr.bf16.mxu1 %v1815_v41  ;;  %v1893_v45 = vld [vmem:[#allocation2 + $0x18c8] sm:$0xff]  ;;  %v1895_v41 = vld [vmem:[#allocation2 + $0x18d8] sm:$0xff] }
 0x325   :  { %2390 = vmatpush1.bf16.msra.mxu0 %v1812_v17  ;;  %2718 = vmatpush1.bf16.msra.mxu1 %v1814_v25  ;;  %v1892_v17 = vld [vmem:[#allocation2 + $0x18c0] sm:$0xff]  ;;  %v1894_v25 = vld [vmem:[#allocation2 + $0x18d0] sm:$0xff] }
 0x326   :  { %2391 = vmatprep.subr.bf16.mxu0 %v1821_v63  ;;  %2719 = vmatprep.subr.bf16.mxu1 %v1823_v21  ;;  %v1901_v63 = vld [vmem:[#allocation2 + $0x1908] sm:$0xff]  ;;  %v1903_v21 = vld [vmem:[#allocation2 + $0x1918] sm:$0xff] }
 0x329   :  { %2392 = vmatpush1.bf16.msra.mxu0 %v1820_v57  ;;  %2720 = vmatpush1.bf16.msra.mxu1 %v1822_v1  ;;  %v1900_v57 = vld [vmem:[#allocation2 + $0x1900] sm:$0xff]  ;;  %v1902_v1 = vld [vmem:[#allocation2 + $0x1910] sm:$0xff] }
 0x32a   :  { %2393 = vmatprep.subr.bf16.mxu0 %v1829_v38  ;;  %2721 = vmatprep.subr.bf16.mxu1 %v1831_v39  ;;  %v1909_v38 = vld [vmem:[#allocation2 + $0x1948] sm:$0xff]  ;;  %v1911_v39 = vld [vmem:[#allocation2 + $0x1958] sm:$0xff] }
 0x32d   :  { %2394 = vmatpush1.bf16.msra.mxu0 %v1828_v10  ;;  %2722 = vmatpush1.bf16.msra.mxu1 %v1830_v16  ;;  %v1908_v10 = vld [vmem:[#allocation2 + $0x1940] sm:$0xff]  ;;  %v1910_v16 = vld [vmem:[#allocation2 + $0x1950] sm:$0xff] }
 0x32e   :  { %2395 = vmatprep.subr.bf16.mxu0 %v1837_v13  ;;  %2723 = vmatprep.subr.bf16.mxu1 %v1839_v11  ;;  %v1917_v13 = vld [vmem:[#allocation2 + $0x1988] sm:$0xff]  ;;  %v1919_v11 = vld [vmem:[#allocation2 + $0x1998] sm:$0xff] }
 0x331   :  { %2396 = vmatpush1.bf16.msra.mxu0 %v1836_v59  ;;  %2724 = vmatpush1.bf16.msra.mxu1 %v1838_v40  ;;  %v1916_v59 = vld [vmem:[#allocation2 + $0x1980] sm:$0xff]  ;;  %v1918_v40 = vld [vmem:[#allocation2 + $0x1990] sm:$0xff] }
 0x332   :  { %2397 = vmatprep.subr.bf16.mxu0 %v1845_v37  ;;  %2725 = vmatprep.subr.bf16.mxu1 %v1847_v30  ;;  %v1925_v37 = vld [vmem:[#allocation2 + $0x19c8] sm:$0xff]  ;;  %v1927_v30 = vld [vmem:[#allocation2 + $0x19d8] sm:$0xff] }
 0x335   :  { %2398 = vmatpush1.bf16.msra.mxu0 %v1844_v60  ;;  %2726 = vmatpush1.bf16.msra.mxu1 %v1846_v51  ;;  %v1924_v60 = vld [vmem:[#allocation2 + $0x19c0] sm:$0xff]  ;;  %v1926_v51 = vld [vmem:[#allocation2 + $0x19d0] sm:$0xff] }
 0x336   :  { %2399 = vmatprep.subr.bf16.mxu0 %v1853_v6  ;;  %2727 = vmatprep.subr.bf16.mxu1 %v1855_v55  ;;  %v1933_v6 = vld [vmem:[#allocation2 + $0x1a08] sm:$0xff]  ;;  %v1935_v55 = vld [vmem:[#allocation2 + $0x1a18] sm:$0xff] }
 0x339   :  { %2400 = vmatpush1.bf16.msra.mxu0 %v1852_v15  ;;  %2728 = vmatpush1.bf16.msra.mxu1 %v1854_v3  ;;  %v1932_v15 = vld [vmem:[#allocation2 + $0x1a00] sm:$0xff]  ;;  %v1934_v3 = vld [vmem:[#allocation2 + $0x1a10] sm:$0xff] }
 0x33a   :  { %2401 = vmatprep.subr.bf16.mxu0 %v1861_v32  ;;  %2729 = vmatprep.subr.bf16.mxu1 %v1863_v42  ;;  %v1941_v32 = vld [vmem:[#allocation2 + $0x1a48] sm:$0xff]  ;;  %v1943_v42 = vld [vmem:[#allocation2 + $0x1a58] sm:$0xff] }
 0x33d   :  { %2402 = vmatpush1.bf16.msra.mxu0 %v1860_v58  ;;  %2730 = vmatpush1.bf16.msra.mxu1 %v1862_v27  ;;  %v1940_v58 = vld [vmem:[#allocation2 + $0x1a40] sm:$0xff]  ;;  %v1942_v27 = vld [vmem:[#allocation2 + $0x1a50] sm:$0xff] }
 0x33e   :  { %2412 = vmatprep.subr.bf16.mxu0 %v1869_v33  ;;  %2740 = vmatprep.subr.bf16.mxu1 %v1871_v36  ;;  %v1949_v33 = vld [vmem:[#allocation2 + $0x1a88] sm:$0xff]  ;;  %v1951_v36 = vld [vmem:[#allocation2 + $0x1a98] sm:$0xff] }
 0x340   :  { %2404 = vmatmul.mubr.bf16.vlgmr.msra.gmra.mrb[16].mxu0 %v6548_v61  ;;  %2732 = vmatmul.mubr.bf16.vlgmr.msra.gmra.mrb[16].mxu1 %v6548_v61 }
 0x341   :  { %2413 = vmatpush1.bf16.msra.mxu0 %v1868_v2  ;;  %2741 = vmatpush1.bf16.msra.mxu1 %v1870_v43  ;;  %v1948_v2 = vld [vmem:[#allocation2 + $0x1a80] sm:$0xff]  ;;  %v1950_v43 = vld [vmem:[#allocation2 + $0x1a90] sm:$0xff] }
 0x342   :  { %2414 = vmatprep.subr.bf16.mxu0 %v1877_v56  ;;  %2742 = vmatprep.subr.bf16.mxu1 %v1879_v22  ;;  %v1957_v56 = vld [vmem:[#allocation2 + $0x1ac8] sm:$0xff]  ;;  %v1959_v22 = vld [vmem:[#allocation2 + $0x1ad8] sm:$0xff] }
 0x343   :  { %2444 = vmatprep.mubr.bf16.mxu0 %v6552_v49  ;;  %2772 = vmatprep.mubr.bf16.mxu1 %v6552_v49 }
 0x345   :  { %2415 = vmatpush1.bf16.msra.mxu0 %v1876_v12  ;;  %2743 = vmatpush1.bf16.msra.mxu1 %v1878_v26  ;;  %v1956_v12 = vld [vmem:[#allocation2 + $0x1ac0] sm:$0xff]  ;;  %v1958_v26 = vld [vmem:[#allocation2 + $0x1ad0] sm:$0xff] }
 0x346   :  { %2416 = vmatprep.subr.bf16.mxu0 %v1885_v48  ;;  %2744 = vmatprep.subr.bf16.mxu1 %v1887_v19  ;;  %v1965_v48 = vld [vmem:[#allocation2 + $0x1b08] sm:$0xff]  ;;  %v1967_v19 = vld [vmem:[#allocation2 + $0x1b18] sm:$0xff] }
 0x349   :  { %2417 = vmatpush1.bf16.msra.mxu0 %v1884_v53  ;;  %2745 = vmatpush1.bf16.msra.mxu1 %v1886_v54  ;;  %v1964_v53 = vld [vmem:[#allocation2 + $0x1b00] sm:$0xff]  ;;  %v1966_v54 = vld [vmem:[#allocation2 + $0x1b10] sm:$0xff] }
 0x34a   :  { %2418 = vmatprep.subr.bf16.mxu0 %v1893_v45  ;;  %2746 = vmatprep.subr.bf16.mxu1 %v1895_v41  ;;  %v1973_v45 = vld [vmem:[#allocation2 + $0x1b48] sm:$0xff]  ;;  %v1975_v41 = vld [vmem:[#allocation2 + $0x1b58] sm:$0xff] }
 0x34d   :  { %2419 = vmatpush1.bf16.msra.mxu0 %v1892_v17  ;;  %2747 = vmatpush1.bf16.msra.mxu1 %v1894_v25  ;;  %v1972_v17 = vld [vmem:[#allocation2 + $0x1b40] sm:$0xff]  ;;  %v1974_v25 = vld [vmem:[#allocation2 + $0x1b50] sm:$0xff] }
 0x34e   :  { %2420 = vmatprep.subr.bf16.mxu0 %v1901_v63  ;;  %2748 = vmatprep.subr.bf16.mxu1 %v1903_v21  ;;  %v1981_v63 = vld [vmem:[#allocation2 + $0x1b88] sm:$0xff]  ;;  %v1983_v21 = vld [vmem:[#allocation2 + $0x1b98] sm:$0xff] }
 0x351   :  { %2421 = vmatpush1.bf16.msra.mxu0 %v1900_v57  ;;  %2749 = vmatpush1.bf16.msra.mxu1 %v1902_v1  ;;  %v1980_v57 = vld [vmem:[#allocation2 + $0x1b80] sm:$0xff]  ;;  %v1982_v1 = vld [vmem:[#allocation2 + $0x1b90] sm:$0xff] }
 0x352   :  { %2422 = vmatprep.subr.bf16.mxu0 %v1909_v38  ;;  %2750 = vmatprep.subr.bf16.mxu1 %v1911_v39  ;;  %v1989_v38 = vld [vmem:[#allocation2 + $0x1bc8] sm:$0xff]  ;;  %v1991_v39 = vld [vmem:[#allocation2 + $0x1bd8] sm:$0xff] }
 0x355   :  { %2423 = vmatpush1.bf16.msra.mxu0 %v1908_v10  ;;  %2751 = vmatpush1.bf16.msra.mxu1 %v1910_v16  ;;  %v1988_v10 = vld [vmem:[#allocation2 + $0x1bc0] sm:$0xff]  ;;  %v1990_v16 = vld [vmem:[#allocation2 + $0x1bd0] sm:$0xff] }
 0x356   :  { %2424 = vmatprep.subr.bf16.mxu0 %v1917_v13  ;;  %2752 = vmatprep.subr.bf16.mxu1 %v1919_v11  ;;  %v1997_v13 = vld [vmem:[#allocation2 + $0x1c08] sm:$0xff]  ;;  %v1999_v11 = vld [vmem:[#allocation2 + $0x1c18] sm:$0xff] }
 0x359   :  { %2425 = vmatpush1.bf16.msra.mxu0 %v1916_v59  ;;  %2753 = vmatpush1.bf16.msra.mxu1 %v1918_v40  ;;  %v6560_v59 = vpack.c.bf16 %v6461_v44, %v6461_v44  ;;  %v1996_v40 = vld [vmem:[#allocation2 + $0x1c00] sm:$0xff] }
 0x35a   :  { %2426 = vmatprep.subr.bf16.mxu0 %v1925_v37  ;;  %2754 = vmatprep.subr.bf16.mxu1 %v1927_v30  ;;  %v1998_v37 = vld [vmem:[#allocation2 + $0x1c10] sm:$0xff]  ;;  %v2005_v30 = vld [vmem:[#allocation2 + $0x1c48] sm:$0xff]  ;;  %v2004_v44 = vld [vmem:[#allocation2 + $0x1c40] sm:$0xff] }
 0x35d   :  { %2427 = vmatpush1.bf16.msra.mxu0 %v1924_v60  ;;  %2755 = vmatpush1.bf16.msra.mxu1 %v1926_v51  ;;  %v2007_v60 = vld [vmem:[#allocation2 + $0x1c58] sm:$0xff]  ;;  %v6564_v51 = vpack.c.bf16 %v6478_v29, %v6478_v29  ;;  %v2012_v29 = vld [vmem:[#allocation2 + $0x1c80] sm:$0xff] }
 0x35e   :  { %2428 = vmatprep.subr.bf16.mxu0 %v1933_v6  ;;  %2756 = vmatprep.subr.bf16.mxu1 %v1935_v55  ;;  %v2006_v6 = vld [vmem:[#allocation2 + $0x1c50] sm:$0xff]  ;;  %v2013_v55 = vld [vmem:[#allocation2 + $0x1c88] sm:$0xff] }
 0x361   :  { %2429 = vmatpush1.bf16.msra.mxu0 %v1932_v15  ;;  %2757 = vmatpush1.bf16.msra.mxu1 %v1934_v3  ;;  %v2015_v15 = vld [vmem:[#allocation2 + $0x1c98] sm:$0xff]  ;;  %v2014_v3 = vld [vmem:[#allocation2 + $0x1c90] sm:$0xff] }
 0x362   :  { %2430 = vmatprep.subr.bf16.mxu0 %v1941_v32  ;;  %2758 = vmatprep.subr.bf16.mxu1 %v1943_v42  ;;  %v2021_v32 = vld [vmem:[#allocation2 + $0x1cc8] sm:$0xff]  ;;  %v2023_v42 = vld [vmem:[#allocation2 + $0x1cd8] sm:$0xff] }
 0x365   :  { %2431 = vmatpush1.bf16.msra.mxu0 %v1940_v58  ;;  %2759 = vmatpush1.bf16.msra.mxu1 %v1942_v27  ;;  %v2020_v58 = vld [vmem:[#allocation2 + $0x1cc0] sm:$0xff]  ;;  %v2022_v27 = vld [vmem:[#allocation2 + $0x1cd0] sm:$0xff] }
 0x366   :  { %2432 = vmatprep.subr.bf16.mxu0 %v1949_v33  ;;  %2760 = vmatprep.subr.bf16.mxu1 %v1951_v36  ;;  %v2029_v33 = vld [vmem:[#allocation2 + $0x1d08] sm:$0xff]  ;;  %v2031_v36 = vld [vmem:[#allocation2 + $0x1d18] sm:$0xff] }
 0x369   :  { %2433 = vmatpush1.bf16.msra.mxu0 %v1948_v2  ;;  %2761 = vmatpush1.bf16.msra.mxu1 %v1950_v43  ;;  %v2028_v2 = vld [vmem:[#allocation2 + $0x1d00] sm:$0xff]  ;;  %v2030_v43 = vld [vmem:[#allocation2 + $0x1d10] sm:$0xff] }
 0x36a   :  { %2434 = vmatprep.subr.bf16.mxu0 %v1957_v56  ;;  %2762 = vmatprep.subr.bf16.mxu1 %v1959_v22  ;;  %v2037_v56 = vld [vmem:[#allocation2 + $0x1d48] sm:$0xff]  ;;  %v2039_v22 = vld [vmem:[#allocation2 + $0x1d58] sm:$0xff] }
 0x36d   :  { %2435 = vmatpush1.bf16.msra.mxu0 %v1956_v12  ;;  %2763 = vmatpush1.bf16.msra.mxu1 %v1958_v26  ;;  %v2036_v12 = vld [vmem:[#allocation2 + $0x1d40] sm:$0xff]  ;;  %v2038_v26 = vld [vmem:[#allocation2 + $0x1d50] sm:$0xff] }
 0x36e   :  { %2436 = vmatprep.subr.bf16.mxu0 %v1965_v48  ;;  %2764 = vmatprep.subr.bf16.mxu1 %v1967_v19  ;;  %v2045_v48 = vld [vmem:[#allocation2 + $0x1d88] sm:$0xff]  ;;  %v2047_v19 = vld [vmem:[#allocation2 + $0x1d98] sm:$0xff] }
 0x371   :  { %2437 = vmatpush1.bf16.msra.mxu0 %v1964_v53  ;;  %2765 = vmatpush1.bf16.msra.mxu1 %v1966_v54  ;;  %v2044_v53 = vld [vmem:[#allocation2 + $0x1d80] sm:$0xff]  ;;  %v2046_v54 = vld [vmem:[#allocation2 + $0x1d90] sm:$0xff] }
 0x372   :  { %2438 = vmatprep.subr.bf16.mxu0 %v1973_v45  ;;  %2766 = vmatprep.subr.bf16.mxu1 %v1975_v41  ;;  %v2053_v45 = vld [vmem:[#allocation2 + $0x1dc8] sm:$0xff]  ;;  %v2055_v41 = vld [vmem:[#allocation2 + $0x1dd8] sm:$0xff] }
 0x375   :  { %2439 = vmatpush1.bf16.msra.mxu0 %v1972_v17  ;;  %2767 = vmatpush1.bf16.msra.mxu1 %v1974_v25  ;;  %v2052_v17 = vld [vmem:[#allocation2 + $0x1dc0] sm:$0xff]  ;;  %v2054_v25 = vld [vmem:[#allocation2 + $0x1dd0] sm:$0xff] }
 0x376   :  { %2440 = vmatprep.subr.bf16.mxu0 %v1981_v63  ;;  %2768 = vmatprep.subr.bf16.mxu1 %v1983_v21  ;;  %v2061_v63 = vld [vmem:[#allocation2 + $0x1e08] sm:$0xff]  ;;  %v2063_v21 = vld [vmem:[#allocation2 + $0x1e18] sm:$0xff] }
 0x379   :  { %2441 = vmatpush1.bf16.msra.mxu0 %v1980_v57  ;;  %2769 = vmatpush1.bf16.msra.mxu1 %v1982_v1  ;;  %v2060_v57 = vld [vmem:[#allocation2 + $0x1e00] sm:$0xff]  ;;  %v2062_v1 = vld [vmem:[#allocation2 + $0x1e10] sm:$0xff] }
 0x37a   :  { %2442 = vmatprep.subr.bf16.mxu0 %v1989_v38  ;;  %2770 = vmatprep.subr.bf16.mxu1 %v1991_v39  ;;  %v2069_v38 = vld [vmem:[#allocation2 + $0x1e48] sm:$0xff]  ;;  %v2071_v39 = vld [vmem:[#allocation2 + $0x1e58] sm:$0xff] }
 0x37d   :  { %2443 = vmatpush1.bf16.msra.mxu0 %v1988_v10  ;;  %2771 = vmatpush1.bf16.msra.mxu1 %v1990_v16  ;;  %v2068_v10 = vld [vmem:[#allocation2 + $0x1e40] sm:$0xff]  ;;  %v2070_v16 = vld [vmem:[#allocation2 + $0x1e50] sm:$0xff] }
 0x37e   :  { %2453 = vmatprep.subr.bf16.mxu0 %v1997_v13  ;;  %2781 = vmatprep.subr.bf16.mxu1 %v1999_v11  ;;  %v2077_v13 = vld [vmem:[#allocation2 + $0x1e88] sm:$0xff]  ;;  %v2079_v11 = vld [vmem:[#allocation2 + $0x1e98] sm:$0xff] }
 0x380   :  { %2445 = vmatmul.mubr.bf16.vlgmr.msra.gmra.mrb[16].mxu0 %v6560_v59  ;;  %2773 = vmatmul.mubr.bf16.vlgmr.msra.gmra.mrb[16].mxu1 %v6560_v59 }
 0x381   :  { %2454 = vmatpush1.bf16.msra.mxu0 %v1996_v40  ;;  %2782 = vmatpush1.bf16.msra.mxu1 %v1998_v37  ;;  %v2076_v40 = vld [vmem:[#allocation2 + $0x1e80] sm:$0xff]  ;;  %v2078_v37 = vld [vmem:[#allocation2 + $0x1e90] sm:$0xff] }
 0x382   :  { %2455 = vmatprep.subr.bf16.mxu0 %v2005_v30  ;;  %2783 = vmatprep.subr.bf16.mxu1 %v2007_v60  ;;  %v2085_v30 = vld [vmem:[#allocation2 + $0x1ec8] sm:$0xff]  ;;  %v2087_v60 = vld [vmem:[#allocation2 + $0x1ed8] sm:$0xff] }
 0x383   :  { %2485 = vmatprep.mubr.bf16.mxu0 %v6564_v51  ;;  %2813 = vmatprep.mubr.bf16.mxu1 %v6564_v51 }
 0x385   :  { %2456 = vmatpush1.bf16.msra.mxu0 %v2004_v44  ;;  %2784 = vmatpush1.bf16.msra.mxu1 %v2006_v6  ;;  %v2084_v44 = vld [vmem:[#allocation2 + $0x1ec0] sm:$0xff]  ;;  %v2086_v6 = vld [vmem:[#allocation2 + $0x1ed0] sm:$0xff] }
 0x386   :  { %2457 = vmatprep.subr.bf16.mxu0 %v2013_v55  ;;  %2785 = vmatprep.subr.bf16.mxu1 %v2015_v15  ;;  %v2093_v55 = vld [vmem:[#allocation2 + $0x1f08] sm:$0xff]  ;;  %v2095_v15 = vld [vmem:[#allocation2 + $0x1f18] sm:$0xff] }
 0x389   :  { %2458 = vmatpush1.bf16.msra.mxu0 %v2012_v29  ;;  %2786 = vmatpush1.bf16.msra.mxu1 %v2014_v3  ;;  %v2092_v29 = vld [vmem:[#allocation2 + $0x1f00] sm:$0xff]  ;;  %v2094_v3 = vld [vmem:[#allocation2 + $0x1f10] sm:$0xff] }
 0x38a   :  { %2459 = vmatprep.subr.bf16.mxu0 %v2021_v32  ;;  %2787 = vmatprep.subr.bf16.mxu1 %v2023_v42  ;;  %v2101_v32 = vld [vmem:[#allocation2 + $0x1f48] sm:$0xff]  ;;  %v2103_v42 = vld [vmem:[#allocation2 + $0x1f58] sm:$0xff] }
 0x38d   :  { %2460 = vmatpush1.bf16.msra.mxu0 %v2020_v58  ;;  %2788 = vmatpush1.bf16.msra.mxu1 %v2022_v27  ;;  %v2100_v58 = vld [vmem:[#allocation2 + $0x1f40] sm:$0xff]  ;;  %v2102_v27 = vld [vmem:[#allocation2 + $0x1f50] sm:$0xff] }
 0x38e   :  { %2461 = vmatprep.subr.bf16.mxu0 %v2029_v33  ;;  %2789 = vmatprep.subr.bf16.mxu1 %v2031_v36  ;;  %v2109_v33 = vld [vmem:[#allocation2 + $0x1f88] sm:$0xff]  ;;  %v2111_v36 = vld [vmem:[#allocation2 + $0x1f98] sm:$0xff] }
 0x391   :  { %2462 = vmatpush1.bf16.msra.mxu0 %v2028_v2  ;;  %2790 = vmatpush1.bf16.msra.mxu1 %v2030_v43  ;;  %v2108_v2 = vld [vmem:[#allocation2 + $0x1f80] sm:$0xff]  ;;  %v2110_v43 = vld [vmem:[#allocation2 + $0x1f90] sm:$0xff] }
 0x392   :  { %2463 = vmatprep.subr.bf16.mxu0 %v2037_v56  ;;  %2791 = vmatprep.subr.bf16.mxu1 %v2039_v22  ;;  %v2117_v56 = vld [vmem:[#allocation2 + $0x1fc8] sm:$0xff]  ;;  %v2119_v22 = vld [vmem:[#allocation2 + $0x1fd8] sm:$0xff] }
 0x395   :  { %2464 = vmatpush1.bf16.msra.mxu0 %v2036_v12  ;;  %2792 = vmatpush1.bf16.msra.mxu1 %v2038_v26  ;;  %v2116_v12 = vld [vmem:[#allocation2 + $0x1fc0] sm:$0xff]  ;;  %v2118_v26 = vld [vmem:[#allocation2 + $0x1fd0] sm:$0xff] }
 0x396   :  { %2465 = vmatprep.subr.bf16.mxu0 %v2045_v48  ;;  %2793 = vmatprep.subr.bf16.mxu1 %v2047_v19  ;;  %v1105_v48 = vld [vmem:[#allocation2 + $0x28] sm:$0xff]  ;;  %v1107_v19 = vld [vmem:[#allocation2 + $0x38] sm:$0xff] }
 0x399   :  { %2466 = vmatpush1.bf16.msra.mxu0 %v2044_v53  ;;  %2794 = vmatpush1.bf16.msra.mxu1 %v2046_v54  ;;  %v6572_v53 = vpack.c.bf16 %v6467_v47, %v6467_v47  ;;  %v1104_v54 = vld [vmem:[#allocation2 + $0x20] sm:$0xff]  ;;  %v1121_v47 = vld [vmem:[#allocation2 + $0xa8] sm:$0xff] }
 0x39a   :  { %2467 = vmatprep.subr.bf16.mxu0 %v2053_v45  ;;  %2795 = vmatprep.subr.bf16.mxu1 %v2055_v41  ;;  %v1106_v45 = vld [vmem:[#allocation2 + $0x30] sm:$0xff]  ;;  %v1113_v41 = vld [vmem:[#allocation2 + $0x68] sm:$0xff] }
 0x39d   :  { %2468 = vmatpush1.bf16.msra.mxu0 %v2052_v17  ;;  %2796 = vmatpush1.bf16.msra.mxu1 %v2054_v25  ;;  %v1115_v17 = vld [vmem:[#allocation2 + $0x78] sm:$0xff]  ;;  %v1112_v25 = vld [vmem:[#allocation2 + $0x60] sm:$0xff] }
 0x39e   :  { %2469 = vmatprep.subr.bf16.mxu0 %v2061_v63  ;;  %2797 = vmatprep.subr.bf16.mxu1 %v2063_v21  ;;  %v1114_v63 = vld [vmem:[#allocation2 + $0x70] sm:$0xff]  ;;  %v1123_v21 = vld [vmem:[#allocation2 + $0xb8] sm:$0xff] }
 0x3a1   :  { %2470 = vmatpush1.bf16.msra.mxu0 %v2060_v57  ;;  %2798 = vmatpush1.bf16.msra.mxu1 %v2062_v1  ;;  %v1120_v57 = vld [vmem:[#allocation2 + $0xa0] sm:$0xff]  ;;  %v1122_v1 = vld [vmem:[#allocation2 + $0xb0] sm:$0xff] }
 0x3a2   :  { %2471 = vmatprep.subr.bf16.mxu0 %v2069_v38  ;;  %2799 = vmatprep.subr.bf16.mxu1 %v2071_v39  ;;  %v1129_v38 = vld [vmem:[#allocation2 + $0xe8] sm:$0xff]  ;;  %v1131_v39 = vld [vmem:[#allocation2 + $0xf8] sm:$0xff] }
 0x3a5   :  { %2472 = vmatpush1.bf16.msra.mxu0 %v2068_v10  ;;  %2800 = vmatpush1.bf16.msra.mxu1 %v2070_v16  ;;  %v1128_v10 = vld [vmem:[#allocation2 + $0xe0] sm:$0xff]  ;;  %v1130_v16 = vld [vmem:[#allocation2 + $0xf0] sm:$0xff] }
 0x3a6   :  { %2473 = vmatprep.subr.bf16.mxu0 %v2077_v13  ;;  %2801 = vmatprep.subr.bf16.mxu1 %v2079_v11  ;;  %v1137_v13 = vld [vmem:[#allocation2 + $0x128] sm:$0xff]  ;;  %v1139_v11 = vld [vmem:[#allocation2 + $0x138] sm:$0xff] }
 0x3a9   :  { %2474 = vmatpush1.bf16.msra.mxu0 %v2076_v40  ;;  %2802 = vmatpush1.bf16.msra.mxu1 %v2078_v37  ;;  %v1138_v40 = vld [vmem:[#allocation2 + $0x130] sm:$0xff]  ;;  %v1145_v37 = vld [vmem:[#allocation2 + $0x168] sm:$0xff] }
 0x3aa   :  { %2475 = vmatprep.subr.bf16.mxu0 %v2085_v30  ;;  %2803 = vmatprep.subr.bf16.mxu1 %v2087_v60  ;;  %v1147_v30 = vld [vmem:[#allocation2 + $0x178] sm:$0xff]  ;;  %v1144_v60 = vld [vmem:[#allocation2 + $0x160] sm:$0xff] }
 0x3ad   :  { %2476 = vmatpush1.bf16.msra.mxu0 %v2084_v44  ;;  %2804 = vmatpush1.bf16.msra.mxu1 %v2086_v6  ;;  %v1146_v44 = vld [vmem:[#allocation2 + $0x170] sm:$0xff]  ;;  %v1153_v6 = vld [vmem:[#allocation2 + $0x1a8] sm:$0xff] }
 0x3ae   :  { %2477 = vmatprep.subr.bf16.mxu0 %v2093_v55  ;;  %2805 = vmatprep.subr.bf16.mxu1 %v2095_v15  ;;  %v1155_v55 = vld [vmem:[#allocation2 + $0x1b8] sm:$0xff]  ;;  %v1152_v15 = vld [vmem:[#allocation2 + $0x1a0] sm:$0xff] }
 0x3b1   :  { %2478 = vmatpush1.bf16.msra.mxu0 %v2092_v29  ;;  %2806 = vmatpush1.bf16.msra.mxu1 %v2094_v3  ;;  %v1154_v29 = vld [vmem:[#allocation2 + $0x1b0] sm:$0xff]  ;;  %v1161_v3 = vld [vmem:[#allocation2 + $0x1e8] sm:$0xff] }
 0x3b2   :  { %2479 = vmatprep.subr.bf16.mxu0 %v2101_v32  ;;  %2807 = vmatprep.subr.bf16.mxu1 %v2103_v42  ;;  %v1163_v32 = vld [vmem:[#allocation2 + $0x1f8] sm:$0xff]  ;;  %v1160_v42 = vld [vmem:[#allocation2 + $0x1e0] sm:$0xff] }
 0x3b5   :  { %2480 = vmatpush1.bf16.msra.mxu0 %v2100_v58  ;;  %2808 = vmatpush1.bf16.msra.mxu1 %v2102_v27  ;;  %v1162_v58 = vld [vmem:[#allocation2 + $0x1f0] sm:$0xff]  ;;  %v1169_v27 = vld [vmem:[#allocation2 + $0x228] sm:$0xff] }
 0x3b6   :  { %2481 = vmatprep.subr.bf16.mxu0 %v2109_v33  ;;  %2809 = vmatprep.subr.bf16.mxu1 %v2111_v36  ;;  %v1171_v33 = vld [vmem:[#allocation2 + $0x238] sm:$0xff]  ;;  %v1168_v36 = vld [vmem:[#allocation2 + $0x220] sm:$0xff] }
 0x3b9   :  { %2482 = vmatpush1.bf16.msra.mxu0 %v2108_v2  ;;  %2810 = vmatpush1.bf16.msra.mxu1 %v2110_v43  ;;  %v1170_v2 = vld [vmem:[#allocation2 + $0x230] sm:$0xff]  ;;  %v1177_v43 = vld [vmem:[#allocation2 + $0x268] sm:$0xff] }
 0x3ba   :  { %2483 = vmatprep.subr.bf16.mxu0 %v2117_v56  ;;  %2811 = vmatprep.subr.bf16.mxu1 %v2119_v22  ;;  %v1179_v56 = vld [vmem:[#allocation2 + $0x278] sm:$0xff]  ;;  %v1176_v22 = vld [vmem:[#allocation2 + $0x260] sm:$0xff] }
 0x3bd   :  { %2484 = vmatpush1.bf16.msra.mxu0 %v2116_v12  ;;  %2812 = vmatpush1.bf16.msra.mxu1 %v2118_v26  ;;  %v1178_v12 = vld [vmem:[#allocation2 + $0x270] sm:$0xff]  ;;  %v1185_v26 = vld [vmem:[#allocation2 + $0x2a8] sm:$0xff] }
 0x3be   :  { %2822 = vmatprep.subr.bf16.mxu0 %v1105_v48  ;;  %3150 = vmatprep.subr.bf16.mxu1 %v1107_v19  ;;  %v1187_v48 = vld [vmem:[#allocation2 + $0x2b8] sm:$0xff]  ;;  %v1184_v19 = vld [vmem:[#allocation2 + $0x2a0] sm:$0xff] }
 0x3c0   :  { %2486 = vmatmul.mubr.bf16.vlgmr.msra.gmra.mrb[16].mxu0 %v6572_v53  ;;  %2814 = vmatmul.mubr.bf16.vlgmr.msra.gmra.mrb[16].mxu1 %v6572_v53 }
 0x3c1   :  { %2823 = vmatpush1.bf16.msra.mxu0 %v1104_v54  ;;  %3151 = vmatpush1.bf16.msra.mxu1 %v1106_v45  ;;  %v1186_v54 = vld [vmem:[#allocation2 + $0x2b0] sm:$0xff]  ;;  %v1193_v45 = vld [vmem:[#allocation2 + $0x2e8] sm:$0xff] }
 0x3c2   :  { %2824 = vmatprep.subr.bf16.mxu0 %v1113_v41  ;;  %3152 = vmatprep.subr.bf16.mxu1 %v1115_v17  ;;  %v1195_v41 = vld [vmem:[#allocation2 + $0x2f8] sm:$0xff]  ;;  %v1192_v17 = vld [vmem:[#allocation2 + $0x2e0] sm:$0xff] }
 0x3c3   :  { %2854 = vmatprep.mubr.bf16.mxu0 %v6482_v4  ;;  %3182 = vmatprep.mubr.bf16.mxu1 %v6482_v4  ;;  %v1136_v4 = vld [vmem:[#allocation2 + $0x120] sm:$0xff] }
 0x3c5   :  { %2825 = vmatpush1.bf16.msra.mxu0 %v1112_v25  ;;  %3153 = vmatpush1.bf16.msra.mxu1 %v1114_v63  ;;  %v1194_v25 = vld [vmem:[#allocation2 + $0x2f0] sm:$0xff]  ;;  %v1201_v63 = vld [vmem:[#allocation2 + $0x328] sm:$0xff] }
 0x3c6   :  { %2826 = vmatprep.subr.bf16.mxu0 %v1121_v47  ;;  %3154 = vmatprep.subr.bf16.mxu1 %v1123_v21  ;;  %v1203_v47 = vld [vmem:[#allocation2 + $0x338] sm:$0xff]  ;;  %v1200_v21 = vld [vmem:[#allocation2 + $0x320] sm:$0xff] }
 0x3c9   :  { %2827 = vmatpush1.bf16.msra.mxu0 %v1120_v57  ;;  %3155 = vmatpush1.bf16.msra.mxu1 %v1122_v1  ;;  %v1202_v57 = vld [vmem:[#allocation2 + $0x330] sm:$0xff]  ;;  %v1209_v1 = vld [vmem:[#allocation2 + $0x368] sm:$0xff] }
 0x3ca   :  { %2828 = vmatprep.subr.bf16.mxu0 %v1129_v38  ;;  %3156 = vmatprep.subr.bf16.mxu1 %v1131_v39  ;;  %v1211_v38 = vld [vmem:[#allocation2 + $0x378] sm:$0xff]  ;;  %v1208_v39 = vld [vmem:[#allocation2 + $0x360] sm:$0xff] }
 0x3cd   :  { %2829 = vmatpush1.bf16.msra.mxu0 %v1128_v10  ;;  %3157 = vmatpush1.bf16.msra.mxu1 %v1130_v16  ;;  %v1210_v10 = vld [vmem:[#allocation2 + $0x370] sm:$0xff]  ;;  %v1217_v16 = vld [vmem:[#allocation2 + $0x3a8] sm:$0xff] }
 0x3ce   :  { %2830 = vmatprep.subr.bf16.mxu0 %v1137_v13  ;;  %3158 = vmatprep.subr.bf16.mxu1 %v1139_v11  ;;  %v1219_v13 = vld [vmem:[#allocation2 + $0x3b8] sm:$0xff]  ;;  %v1216_v11 = vld [vmem:[#allocation2 + $0x3a0] sm:$0xff] }
 0x3d1   :  { %2831 = vmatpush1.bf16.msra.mxu0 %v1136_v4  ;;  %3159 = vmatpush1.bf16.msra.mxu1 %v1138_v40  ;;  %v1218_v4 = vld [vmem:[#allocation2 + $0x3b0] sm:$0xff]  ;;  %v1225_v40 = vld [vmem:[#allocation2 + $0x3e8] sm:$0xff] }
 0x3d2   :  { %2832 = vmatprep.subr.bf16.mxu0 %v1145_v37  ;;  %3160 = vmatprep.subr.bf16.mxu1 %v1147_v30  ;;  %v1227_v37 = vld [vmem:[#allocation2 + $0x3f8] sm:$0xff]  ;;  %v1224_v30 = vld [vmem:[#allocation2 + $0x3e0] sm:$0xff] }
 0x3d5   :  { %2833 = vmatpush1.bf16.msra.mxu0 %v1144_v60  ;;  %3161 = vmatpush1.bf16.msra.mxu1 %v1146_v44  ;;  %v1226_v60 = vld [vmem:[#allocation2 + $0x3f0] sm:$0xff]  ;;  %v1233_v44 = vld [vmem:[#allocation2 + $0x428] sm:$0xff] }
 0x3d6   :  { %2834 = vmatprep.subr.bf16.mxu0 %v1153_v6  ;;  %3162 = vmatprep.subr.bf16.mxu1 %v1155_v55  ;;  %v1235_v6 = vld [vmem:[#allocation2 + $0x438] sm:$0xff]  ;;  %v1232_v55 = vld [vmem:[#allocation2 + $0x420] sm:$0xff] }
 0x3d9   :  { %2835 = vmatpush1.bf16.msra.mxu0 %v1152_v15  ;;  %3163 = vmatpush1.bf16.msra.mxu1 %v1154_v29  ;;  %v1234_v15 = vld [vmem:[#allocation2 + $0x430] sm:$0xff]  ;;  %v1241_v29 = vld [vmem:[#allocation2 + $0x468] sm:$0xff] }
 0x3da   :  { %2836 = vmatprep.subr.bf16.mxu0 %v1161_v3  ;;  %3164 = vmatprep.subr.bf16.mxu1 %v1163_v32  ;;  %v1243_v3 = vld [vmem:[#allocation2 + $0x478] sm:$0xff]  ;;  %v1240_v32 = vld [vmem:[#allocation2 + $0x460] sm:$0xff] }
 0x3dd   :  { %2837 = vmatpush1.bf16.msra.mxu0 %v1160_v42  ;;  %3165 = vmatpush1.bf16.msra.mxu1 %v1162_v58  ;;  %v1242_v42 = vld [vmem:[#allocation2 + $0x470] sm:$0xff]  ;;  %v1249_v58 = vld [vmem:[#allocation2 + $0x4a8] sm:$0xff] }
 0x3de   :  { %2838 = vmatprep.subr.bf16.mxu0 %v1169_v27  ;;  %3166 = vmatprep.subr.bf16.mxu1 %v1171_v33  ;;  %v1251_v27 = vld [vmem:[#allocation2 + $0x4b8] sm:$0xff]  ;;  %v1248_v33 = vld [vmem:[#allocation2 + $0x4a0] sm:$0xff] }
 0x3e1   :  { %2839 = vmatpush1.bf16.msra.mxu0 %v1168_v36  ;;  %3167 = vmatpush1.bf16.msra.mxu1 %v1170_v2  ;;  %v1250_v36 = vld [vmem:[#allocation2 + $0x4b0] sm:$0xff]  ;;  %v1257_v2 = vld [vmem:[#allocation2 + $0x4e8] sm:$0xff] }
 0x3e2   :  { %2840 = vmatprep.subr.bf16.mxu0 %v1177_v43  ;;  %3168 = vmatprep.subr.bf16.mxu1 %v1179_v56  ;;  %v1256_v43 = vld [vmem:[#allocation2 + $0x4e0] sm:$0xff]  ;;  %v1258_v56 = vld [vmem:[#allocation2 + $0x4f0] sm:$0xff] }
 0x3e5   :  { %2841 = vmatpush1.bf16.msra.mxu0 %v1176_v22  ;;  %3169 = vmatpush1.bf16.msra.mxu1 %v1178_v12  ;;  %v1265_v22 = vld [vmem:[#allocation2 + $0x528] sm:$0xff]  ;;  %v1267_v12 = vld [vmem:[#allocation2 + $0x538] sm:$0xff] }
 0x3e6   :  { %2842 = vmatprep.subr.bf16.mxu0 %v1185_v26  ;;  %3170 = vmatprep.subr.bf16.mxu1 %v1187_v48  ;;  %v1266_v26 = vld [vmem:[#allocation2 + $0x530] sm:$0xff]  ;;  %v1273_v48 = vld [vmem:[#allocation2 + $0x568] sm:$0xff] }
 0x3e9   :  { %2843 = vmatpush1.bf16.msra.mxu0 %v1184_v19  ;;  %3171 = vmatpush1.bf16.msra.mxu1 %v1186_v54  ;;  %v1275_v19 = vld [vmem:[#allocation2 + $0x578] sm:$0xff]  ;;  %v1272_v54 = vld [vmem:[#allocation2 + $0x560] sm:$0xff] }
 0x3ea   :  { %2844 = vmatprep.subr.bf16.mxu0 %v1193_v45  ;;  %3172 = vmatprep.subr.bf16.mxu1 %v1195_v41  ;;  %v1274_v45 = vld [vmem:[#allocation2 + $0x570] sm:$0xff]  ;;  %v1281_v41 = vld [vmem:[#allocation2 + $0x5a8] sm:$0xff] }
 0x3ed   :  { %2845 = vmatpush1.bf16.msra.mxu0 %v1192_v17  ;;  %3173 = vmatpush1.bf16.msra.mxu1 %v1194_v25  ;;  %v1283_v17 = vld [vmem:[#allocation2 + $0x5b8] sm:$0xff]  ;;  %v1280_v25 = vld [vmem:[#allocation2 + $0x5a0] sm:$0xff] }
 0x3ee   :  { %2846 = vmatprep.subr.bf16.mxu0 %v1201_v63  ;;  %3174 = vmatprep.subr.bf16.mxu1 %v1203_v47  ;;  %v1282_v63 = vld [vmem:[#allocation2 + $0x5b0] sm:$0xff]  ;;  %v1289_v47 = vld [vmem:[#allocation2 + $0x5e8] sm:$0xff] }
 0x3f1   :  { %2847 = vmatpush1.bf16.msra.mxu0 %v1200_v21  ;;  %3175 = vmatpush1.bf16.msra.mxu1 %v1202_v57  ;;  %v1291_v21 = vld [vmem:[#allocation2 + $0x5f8] sm:$0xff]  ;;  %v1288_v57 = vld [vmem:[#allocation2 + $0x5e0] sm:$0xff] }
 0x3f2   :  { %2848 = vmatprep.subr.bf16.mxu0 %v1209_v1  ;;  %3176 = vmatprep.subr.bf16.mxu1 %v1211_v38  ;;  %v1290_v1 = vld [vmem:[#allocation2 + $0x5f0] sm:$0xff]  ;;  %v1297_v38 = vld [vmem:[#allocation2 + $0x628] sm:$0xff] }
 0x3f5   :  { %2849 = vmatpush1.bf16.msra.mxu0 %v1208_v39  ;;  %3177 = vmatpush1.bf16.msra.mxu1 %v1210_v10  ;;  %v1299_v39 = vld [vmem:[#allocation2 + $0x638] sm:$0xff]  ;;  %v1296_v10 = vld [vmem:[#allocation2 + $0x620] sm:$0xff] }
 0x3f6   :  { %2850 = vmatprep.subr.bf16.mxu0 %v1217_v16  ;;  %3178 = vmatprep.subr.bf16.mxu1 %v1219_v13  ;;  %v1298_v16 = vld [vmem:[#allocation2 + $0x630] sm:$0xff]  ;;  %v1305_v13 = vld [vmem:[#allocation2 + $0x668] sm:$0xff] }
 0x3f9   :  { %2851 = vmatpush1.bf16.msra.mxu0 %v1216_v11  ;;  %3179 = vmatpush1.bf16.msra.mxu1 %v1218_v4  ;;  %v1307_v11 = vld [vmem:[#allocation2 + $0x678] sm:$0xff]  ;;  %v1304_v4 = vld [vmem:[#allocation2 + $0x660] sm:$0xff] }
 0x3fa   :  { %2852 = vmatprep.subr.bf16.mxu0 %v1225_v40  ;;  %3180 = vmatprep.subr.bf16.mxu1 %v1227_v37  ;;  %v1306_v40 = vld [vmem:[#allocation2 + $0x670] sm:$0xff]  ;;  %v1313_v37 = vld [vmem:[#allocation2 + $0x6a8] sm:$0xff] }
 0x3fd   :  { %2853 = vmatpush1.bf16.msra.mxu0 %v1224_v30  ;;  %3181 = vmatpush1.bf16.msra.mxu1 %v1226_v60  ;;  %v1315_v30 = vld [vmem:[#allocation2 + $0x6b8] sm:$0xff]  ;;  %v1312_v60 = vld [vmem:[#allocation2 + $0x6a0] sm:$0xff] }
 0x3fe   :  { %2863 = vmatprep.subr.bf16.mxu0 %v1233_v44  ;;  %3191 = vmatprep.subr.bf16.mxu1 %v1235_v6  ;;  %v1314_v44 = vld [vmem:[#allocation2 + $0x6b0] sm:$0xff]  ;;  %v1321_v6 = vld [vmem:[#allocation2 + $0x6e8] sm:$0xff] }
 0x400   :  { %2855 = vmatmul.mubr.bf16.vlgmr.msra.gmra.mrb[20].mxu0 %v6488_v28  ;;  %3183 = vmatmul.mubr.bf16.vlgmr.msra.gmra.mrb[20].mxu1 %v6488_v28  ;;  %v1259_v28 = vld [vmem:[#allocation2 + $0x4f8] sm:$0xff] }
 0x401   :  { %2864 = vmatpush1.bf16.msra.mxu0 %v1232_v55  ;;  %3192 = vmatpush1.bf16.msra.mxu1 %v1234_v15  ;;  %v1323_v55 = vld [vmem:[#allocation2 + $0x6f8] sm:$0xff]  ;;  %v1320_v15 = vld [vmem:[#allocation2 + $0x6e0] sm:$0xff] }
 0x402   :  { %2865 = vmatprep.subr.bf16.mxu0 %v1241_v29  ;;  %3193 = vmatprep.subr.bf16.mxu1 %v1243_v3  ;;  %v1322_v29 = vld [vmem:[#allocation2 + $0x6f0] sm:$0xff]  ;;  %v1329_v3 = vld [vmem:[#allocation2 + $0x728] sm:$0xff] }
 0x403   :  { %2895 = vmatprep.mubr.bf16.mxu0 %v6492_v31  ;;  %3223 = vmatprep.mubr.bf16.mxu1 %v6492_v31  ;;  %v1264_v31 = vld [vmem:[#allocation2 + $0x520] sm:$0xff] }
 0x405   :  { %2866 = vmatpush1.bf16.msra.mxu0 %v1240_v32  ;;  %3194 = vmatpush1.bf16.msra.mxu1 %v1242_v42  ;;  %v1331_v32 = vld [vmem:[#allocation2 + $0x738] sm:$0xff]  ;;  %v1328_v42 = vld [vmem:[#allocation2 + $0x720] sm:$0xff] }
 0x406   :  { %2867 = vmatprep.subr.bf16.mxu0 %v1249_v58  ;;  %3195 = vmatprep.subr.bf16.mxu1 %v1251_v27  ;;  %v1330_v58 = vld [vmem:[#allocation2 + $0x730] sm:$0xff]  ;;  %v1337_v27 = vld [vmem:[#allocation2 + $0x768] sm:$0xff] }
 0x409   :  { %2868 = vmatpush1.bf16.msra.mxu0 %v1248_v33  ;;  %3196 = vmatpush1.bf16.msra.mxu1 %v1250_v36  ;;  %v1339_v33 = vld [vmem:[#allocation2 + $0x778] sm:$0xff]  ;;  %v1336_v36 = vld [vmem:[#allocation2 + $0x760] sm:$0xff] }
 0x40a   :  { %2869 = vmatprep.subr.bf16.mxu0 %v1257_v2  ;;  %3197 = vmatprep.subr.bf16.mxu1 %v1259_v28  ;;  %v1338_v2 = vld [vmem:[#allocation2 + $0x770] sm:$0xff]  ;;  %v1345_v28 = vld [vmem:[#allocation2 + $0x7a8] sm:$0xff] }
 0x40d   :  { %2870 = vmatpush1.bf16.msra.mxu0 %v1256_v43  ;;  %3198 = vmatpush1.bf16.msra.mxu1 %v1258_v56  ;;  %v1347_v43 = vld [vmem:[#allocation2 + $0x7b8] sm:$0xff]  ;;  %v1344_v56 = vld [vmem:[#allocation2 + $0x7a0] sm:$0xff] }
 0x40e   :  { %2871 = vmatprep.subr.bf16.mxu0 %v1265_v22  ;;  %3199 = vmatprep.subr.bf16.mxu1 %v1267_v12  ;;  %v1346_v22 = vld [vmem:[#allocation2 + $0x7b0] sm:$0xff]  ;;  %v1353_v12 = vld [vmem:[#allocation2 + $0x7e8] sm:$0xff] }
 0x411   :  { %2872 = vmatpush1.bf16.msra.mxu0 %v1264_v31  ;;  %3200 = vmatpush1.bf16.msra.mxu1 %v1266_v26  ;;  %v1355_v31 = vld [vmem:[#allocation2 + $0x7f8] sm:$0xff]  ;;  %v1352_v26 = vld [vmem:[#allocation2 + $0x7e0] sm:$0xff] }
 0x412   :  { %2873 = vmatprep.subr.bf16.mxu0 %v1273_v48  ;;  %3201 = vmatprep.subr.bf16.mxu1 %v1275_v19  ;;  %v1354_v48 = vld [vmem:[#allocation2 + $0x7f0] sm:$0xff]  ;;  %v1361_v19 = vld [vmem:[#allocation2 + $0x828] sm:$0xff] }
 0x415   :  { %2874 = vmatpush1.bf16.msra.mxu0 %v1272_v54  ;;  %3202 = vmatpush1.bf16.msra.mxu1 %v1274_v45  ;;  %v1363_v54 = vld [vmem:[#allocation2 + $0x838] sm:$0xff]  ;;  %v1360_v45 = vld [vmem:[#allocation2 + $0x820] sm:$0xff] }
 0x416   :  { %2875 = vmatprep.subr.bf16.mxu0 %v1281_v41  ;;  %3203 = vmatprep.subr.bf16.mxu1 %v1283_v17  ;;  %v1362_v41 = vld [vmem:[#allocation2 + $0x830] sm:$0xff]  ;;  %v1369_v17 = vld [vmem:[#allocation2 + $0x868] sm:$0xff] }
 0x419   :  { %2876 = vmatpush1.bf16.msra.mxu0 %v1280_v25  ;;  %3204 = vmatpush1.bf16.msra.mxu1 %v1282_v63  ;;  %v1371_v25 = vld [vmem:[#allocation2 + $0x878] sm:$0xff]  ;;  %v1368_v63 = vld [vmem:[#allocation2 + $0x860] sm:$0xff] }
 0x41a   :  { %2877 = vmatprep.subr.bf16.mxu0 %v1289_v47  ;;  %3205 = vmatprep.subr.bf16.mxu1 %v1291_v21  ;;  %v1370_v47 = vld [vmem:[#allocation2 + $0x870] sm:$0xff]  ;;  %v1377_v21 = vld [vmem:[#allocation2 + $0x8a8] sm:$0xff] }
 0x41d   :  { %2878 = vmatpush1.bf16.msra.mxu0 %v1288_v57  ;;  %3206 = vmatpush1.bf16.msra.mxu1 %v1290_v1  ;;  %v1379_v57 = vld [vmem:[#allocation2 + $0x8b8] sm:$0xff]  ;;  %v1376_v1 = vld [vmem:[#allocation2 + $0x8a0] sm:$0xff] }
 0x41e   :  { %2879 = vmatprep.subr.bf16.mxu0 %v1297_v38  ;;  %3207 = vmatprep.subr.bf16.mxu1 %v1299_v39  ;;  %v1378_v38 = vld [vmem:[#allocation2 + $0x8b0] sm:$0xff]  ;;  %v1385_v39 = vld [vmem:[#allocation2 + $0x8e8] sm:$0xff] }
 0x421   :  { %2880 = vmatpush1.bf16.msra.mxu0 %v1296_v10  ;;  %3208 = vmatpush1.bf16.msra.mxu1 %v1298_v16  ;;  %v1384_v10 = vld [vmem:[#allocation2 + $0x8e0] sm:$0xff]  ;;  %v1386_v16 = vld [vmem:[#allocation2 + $0x8f0] sm:$0xff] }
 0x422   :  { %2881 = vmatprep.subr.bf16.mxu0 %v1305_v13  ;;  %3209 = vmatprep.subr.bf16.mxu1 %v1307_v11  ;;  %v1393_v13 = vld [vmem:[#allocation2 + $0x928] sm:$0xff]  ;;  %v1395_v11 = vld [vmem:[#allocation2 + $0x938] sm:$0xff] }
 0x425   :  { %2882 = vmatpush1.bf16.msra.mxu0 %v1304_v4  ;;  %3210 = vmatpush1.bf16.msra.mxu1 %v1306_v40  ;;  %v1394_v4 = vld [vmem:[#allocation2 + $0x930] sm:$0xff]  ;;  %v1401_v40 = vld [vmem:[#allocation2 + $0x968] sm:$0xff] }
 0x426   :  { %2883 = vmatprep.subr.bf16.mxu0 %v1313_v37  ;;  %3211 = vmatprep.subr.bf16.mxu1 %v1315_v30  ;;  %v1403_v37 = vld [vmem:[#allocation2 + $0x978] sm:$0xff]  ;;  %v1400_v30 = vld [vmem:[#allocation2 + $0x960] sm:$0xff] }
 0x429   :  { %2884 = vmatpush1.bf16.msra.mxu0 %v1312_v60  ;;  %3212 = vmatpush1.bf16.msra.mxu1 %v1314_v44  ;;  %v1402_v60 = vld [vmem:[#allocation2 + $0x970] sm:$0xff]  ;;  %v1409_v44 = vld [vmem:[#allocation2 + $0x9a8] sm:$0xff] }
 0x42a   :  { %2885 = vmatprep.subr.bf16.mxu0 %v1321_v6  ;;  %3213 = vmatprep.subr.bf16.mxu1 %v1323_v55  ;;  %v1411_v6 = vld [vmem:[#allocation2 + $0x9b8] sm:$0xff]  ;;  %v1408_v55 = vld [vmem:[#allocation2 + $0x9a0] sm:$0xff] }
 0x42d   :  { %2886 = vmatpush1.bf16.msra.mxu0 %v1320_v15  ;;  %3214 = vmatpush1.bf16.msra.mxu1 %v1322_v29  ;;  %v1410_v15 = vld [vmem:[#allocation2 + $0x9b0] sm:$0xff]  ;;  %v1417_v29 = vld [vmem:[#allocation2 + $0x9e8] sm:$0xff] }
 0x42e   :  { %2887 = vmatprep.subr.bf16.mxu0 %v1329_v3  ;;  %3215 = vmatprep.subr.bf16.mxu1 %v1331_v32  ;;  %v1419_v3 = vld [vmem:[#allocation2 + $0x9f8] sm:$0xff]  ;;  %v1416_v32 = vld [vmem:[#allocation2 + $0x9e0] sm:$0xff] }
 0x431   :  { %2888 = vmatpush1.bf16.msra.mxu0 %v1328_v42  ;;  %3216 = vmatpush1.bf16.msra.mxu1 %v1330_v58  ;;  %v1418_v42 = vld [vmem:[#allocation2 + $0x9f0] sm:$0xff]  ;;  %v1425_v58 = vld [vmem:[#allocation2 + $0xa28] sm:$0xff] }
 0x432   :  { %2889 = vmatprep.subr.bf16.mxu0 %v1337_v27  ;;  %3217 = vmatprep.subr.bf16.mxu1 %v1339_v33  ;;  %v1427_v27 = vld [vmem:[#allocation2 + $0xa38] sm:$0xff]  ;;  %v1424_v33 = vld [vmem:[#allocation2 + $0xa20] sm:$0xff] }
 0x435   :  { %2890 = vmatpush1.bf16.msra.mxu0 %v1336_v36  ;;  %3218 = vmatpush1.bf16.msra.mxu1 %v1338_v2  ;;  %v1426_v36 = vld [vmem:[#allocation2 + $0xa30] sm:$0xff]  ;;  %v1433_v2 = vld [vmem:[#allocation2 + $0xa68] sm:$0xff] }
 0x436   :  { %2891 = vmatprep.subr.bf16.mxu0 %v1345_v28  ;;  %3219 = vmatprep.subr.bf16.mxu1 %v1347_v43  ;;  %v1435_v28 = vld [vmem:[#allocation2 + $0xa78] sm:$0xff]  ;;  %v1432_v43 = vld [vmem:[#allocation2 + $0xa60] sm:$0xff] }
 0x439   :  { %2892 = vmatpush1.bf16.msra.mxu0 %v1344_v56  ;;  %3220 = vmatpush1.bf16.msra.mxu1 %v1346_v22  ;;  %v1434_v56 = vld [vmem:[#allocation2 + $0xa70] sm:$0xff]  ;;  %v1441_v22 = vld [vmem:[#allocation2 + $0xaa8] sm:$0xff] }
 0x43a   :  { %2893 = vmatprep.subr.bf16.mxu0 %v1353_v12  ;;  %3221 = vmatprep.subr.bf16.mxu1 %v1355_v31  ;;  %v1443_v12 = vld [vmem:[#allocation2 + $0xab8] sm:$0xff]  ;;  %v1440_v31 = vld [vmem:[#allocation2 + $0xaa0] sm:$0xff] }
 0x43d   :  { %2894 = vmatpush1.bf16.msra.mxu0 %v1352_v26  ;;  %3222 = vmatpush1.bf16.msra.mxu1 %v1354_v48  ;;  %v1442_v26 = vld [vmem:[#allocation2 + $0xab0] sm:$0xff]  ;;  %v1449_v48 = vld [vmem:[#allocation2 + $0xae8] sm:$0xff] }
 0x43e   :  { %2904 = vmatprep.subr.bf16.mxu0 %v1361_v19  ;;  %3232 = vmatprep.subr.bf16.mxu1 %v1363_v54  ;;  %v1451_v19 = vld [vmem:[#allocation2 + $0xaf8] sm:$0xff]  ;;  %v1448_v54 = vld [vmem:[#allocation2 + $0xae0] sm:$0xff] }
 0x440   :  { %2896 = vmatmul.mubr.bf16.vlgmr.msra.gmra.mrb[20].mxu0 %v6500_v35  ;;  %3224 = vmatmul.mubr.bf16.vlgmr.msra.gmra.mrb[20].mxu1 %v6500_v35  ;;  %v1387_v35 = vld [vmem:[#allocation2 + $0x8f8] sm:$0xff] }
 0x441   :  { %2905 = vmatpush1.bf16.msra.mxu0 %v1360_v45  ;;  %3233 = vmatpush1.bf16.msra.mxu1 %v1362_v41  ;;  %v1450_v45 = vld [vmem:[#allocation2 + $0xaf0] sm:$0xff]  ;;  %v1457_v41 = vld [vmem:[#allocation2 + $0xb28] sm:$0xff] }
 0x442   :  { %2906 = vmatprep.subr.bf16.mxu0 %v1369_v17  ;;  %3234 = vmatprep.subr.bf16.mxu1 %v1371_v25  ;;  %v1459_v17 = vld [vmem:[#allocation2 + $0xb38] sm:$0xff]  ;;  %v1456_v25 = vld [vmem:[#allocation2 + $0xb20] sm:$0xff] }
 0x443   :  { %2936 = vmatprep.mubr.bf16.mxu0 %v6504_v14  ;;  %3264 = vmatprep.mubr.bf16.mxu1 %v6504_v14  ;;  %v1392_v14 = vld [vmem:[#allocation2 + $0x920] sm:$0xff] }
 0x445   :  { %2907 = vmatpush1.bf16.msra.mxu0 %v1368_v63  ;;  %3235 = vmatpush1.bf16.msra.mxu1 %v1370_v47  ;;  %v1458_v63 = vld [vmem:[#allocation2 + $0xb30] sm:$0xff]  ;;  %v1465_v47 = vld [vmem:[#allocation2 + $0xb68] sm:$0xff] }
 0x446   :  { %2908 = vmatprep.subr.bf16.mxu0 %v1377_v21  ;;  %3236 = vmatprep.subr.bf16.mxu1 %v1379_v57  ;;  %v1467_v21 = vld [vmem:[#allocation2 + $0xb78] sm:$0xff]  ;;  %v1464_v57 = vld [vmem:[#allocation2 + $0xb60] sm:$0xff] }
 0x449   :  { %2909 = vmatpush1.bf16.msra.mxu0 %v1376_v1  ;;  %3237 = vmatpush1.bf16.msra.mxu1 %v1378_v38  ;;  %v1466_v1 = vld [vmem:[#allocation2 + $0xb70] sm:$0xff]  ;;  %v1473_v38 = vld [vmem:[#allocation2 + $0xba8] sm:$0xff] }
 0x44a   :  { %2910 = vmatprep.subr.bf16.mxu0 %v1385_v39  ;;  %3238 = vmatprep.subr.bf16.mxu1 %v1387_v35  ;;  %v1475_v39 = vld [vmem:[#allocation2 + $0xbb8] sm:$0xff]  ;;  %v1472_v35 = vld [vmem:[#allocation2 + $0xba0] sm:$0xff] }
 0x44d   :  { %2911 = vmatpush1.bf16.msra.mxu0 %v1384_v10  ;;  %3239 = vmatpush1.bf16.msra.mxu1 %v1386_v16  ;;  %v1474_v10 = vld [vmem:[#allocation2 + $0xbb0] sm:$0xff]  ;;  %v1481_v16 = vld [vmem:[#allocation2 + $0xbe8] sm:$0xff] }
 0x44e   :  { %2912 = vmatprep.subr.bf16.mxu0 %v1393_v13  ;;  %3240 = vmatprep.subr.bf16.mxu1 %v1395_v11  ;;  %v1483_v13 = vld [vmem:[#allocation2 + $0xbf8] sm:$0xff]  ;;  %v1480_v11 = vld [vmem:[#allocation2 + $0xbe0] sm:$0xff] }
 0x451   :  { %2913 = vmatpush1.bf16.msra.mxu0 %v1392_v14  ;;  %3241 = vmatpush1.bf16.msra.mxu1 %v1394_v4  ;;  %v1482_v14 = vld [vmem:[#allocation2 + $0xbf0] sm:$0xff]  ;;  %v1489_v4 = vld [vmem:[#allocation2 + $0xc28] sm:$0xff] }
 0x452   :  { %2914 = vmatprep.subr.bf16.mxu0 %v1401_v40  ;;  %3242 = vmatprep.subr.bf16.mxu1 %v1403_v37  ;;  %v1491_v40 = vld [vmem:[#allocation2 + $0xc38] sm:$0xff]  ;;  %v1488_v37 = vld [vmem:[#allocation2 + $0xc20] sm:$0xff] }
 0x455   :  { %2915 = vmatpush1.bf16.msra.mxu0 %v1400_v30  ;;  %3243 = vmatpush1.bf16.msra.mxu1 %v1402_v60  ;;  %v1490_v30 = vld [vmem:[#allocation2 + $0xc30] sm:$0xff]  ;;  %v1497_v60 = vld [vmem:[#allocation2 + $0xc68] sm:$0xff] }
 0x456   :  { %2916 = vmatprep.subr.bf16.mxu0 %v1409_v44  ;;  %3244 = vmatprep.subr.bf16.mxu1 %v1411_v6  ;;  %v1499_v44 = vld [vmem:[#allocation2 + $0xc78] sm:$0xff]  ;;  %v1496_v6 = vld [vmem:[#allocation2 + $0xc60] sm:$0xff] }
 0x459   :  { %2917 = vmatpush1.bf16.msra.mxu0 %v1408_v55  ;;  %3245 = vmatpush1.bf16.msra.mxu1 %v1410_v15  ;;  %v1498_v55 = vld [vmem:[#allocation2 + $0xc70] sm:$0xff]  ;;  %v1505_v15 = vld [vmem:[#allocation2 + $0xca8] sm:$0xff] }
 0x45a   :  { %2918 = vmatprep.subr.bf16.mxu0 %v1417_v29  ;;  %3246 = vmatprep.subr.bf16.mxu1 %v1419_v3  ;;  %v1507_v29 = vld [vmem:[#allocation2 + $0xcb8] sm:$0xff]  ;;  %v1504_v3 = vld [vmem:[#allocation2 + $0xca0] sm:$0xff] }
 0x45d   :  { %2919 = vmatpush1.bf16.msra.mxu0 %v1416_v32  ;;  %3247 = vmatpush1.bf16.msra.mxu1 %v1418_v42  ;;  %v1506_v32 = vld [vmem:[#allocation2 + $0xcb0] sm:$0xff]  ;;  %v1513_v42 = vld [vmem:[#allocation2 + $0xce8] sm:$0xff] }
 0x45e   :  { %2920 = vmatprep.subr.bf16.mxu0 %v1425_v58  ;;  %3248 = vmatprep.subr.bf16.mxu1 %v1427_v27  ;;  %v1512_v58 = vld [vmem:[#allocation2 + $0xce0] sm:$0xff]  ;;  %v1514_v27 = vld [vmem:[#allocation2 + $0xcf0] sm:$0xff] }
 0x461   :  { %2921 = vmatpush1.bf16.msra.mxu0 %v1424_v33  ;;  %3249 = vmatpush1.bf16.msra.mxu1 %v1426_v36  ;;  %v1521_v33 = vld [vmem:[#allocation2 + $0xd28] sm:$0xff]  ;;  %v1523_v36 = vld [vmem:[#allocation2 + $0xd38] sm:$0xff] }
 0x462   :  { %2922 = vmatprep.subr.bf16.mxu0 %v1433_v2  ;;  %3250 = vmatprep.subr.bf16.mxu1 %v1435_v28  ;;  %v2124_v2 = vld [vmem:[#allocation12] sm:$0xff]  ;;  %v1522_v28 = vld [vmem:[#allocation2 + $0xd30] sm:$0xff] }
 0x465   :  { %2923 = vmatpush1.bf16.msra.mxu0 %v1432_v43  ;;  %3251 = vmatpush1.bf16.msra.mxu1 %v1434_v56  ;;  %v1529_v43 = vld [vmem:[#allocation2 + $0xd68] sm:$0xff]  ;;  %v1531_v56 = vld [vmem:[#allocation2 + $0xd78] sm:$0xff] }
 0x466   :  { %2924 = vmatprep.subr.bf16.mxu0 %v1441_v22  ;;  %3252 = vmatprep.subr.bf16.mxu1 %v1443_v12  ;;  %v2129_v22 = vrot.slane %v2124_v2, %v6123_v5  ;;  %v2137_v12 = vrot.slane %v2124_v2, %v6127_v7 }
 0x469   :  { %2925 = vmatpush1.bf16.msra.mxu0 %v1440_v31  ;;  %3253 = vmatpush1.bf16.msra.mxu1 %v1442_v26  ;;  %v2133_v31 = vrot.slane %v2124_v2, %v6129_v8  ;;  %v2141_v26 = vrot.slane %v2124_v2, %v6131_v9  ;;  %v1561_v2 = vld [vmem:[#allocation2 + $0xe68] sm:$0xff] }
 0x46a   :  { %2926 = vmatprep.subr.bf16.mxu0 %v1449_v48  ;;  %3254 = vmatprep.subr.bf16.mxu1 %v1451_v19  ;;  %v1528_v48 = vld [vmem:[#allocation2 + $0xd60] sm:$0xff]  ;;  %v1530_v19 = vld [vmem:[#allocation2 + $0xd70] sm:$0xff] }
 0x46d   :  { %2927 = vmatpush1.bf16.msra.mxu0 %v1448_v54  ;;  %3255 = vmatpush1.bf16.msra.mxu1 %v1450_v45 }
 0x46e   :  { %2928 = vmatprep.subr.bf16.mxu0 %v1457_v41  ;;  %3256 = vmatprep.subr.bf16.mxu1 %v1459_v17  ;;  %v1537_v41 = vld [vmem:[#allocation2 + $0xda8] sm:$0xff]  ;;  %v1539_v17 = vld [vmem:[#allocation2 + $0xdb8] sm:$0xff] }
 0x471   :  { %2929 = vmatpush1.bf16.msra.mxu0 %v1456_v25  ;;  %3257 = vmatpush1.bf16.msra.mxu1 %v1458_v63 }
 0x472   :  { %2930 = vmatprep.subr.bf16.mxu0 %v1465_v47  ;;  %3258 = vmatprep.subr.bf16.mxu1 %v1467_v21 }
 0x475   :  { %2931 = vmatpush1.bf16.msra.mxu0 %v1464_v57  ;;  %3259 = vmatpush1.bf16.msra.mxu1 %v1466_v1 }
 0x476   :  { %2932 = vmatprep.subr.bf16.mxu0 %v1473_v38  ;;  %3260 = vmatprep.subr.bf16.mxu1 %v1475_v39 }
 0x479   :  { %2933 = vmatpush1.bf16.msra.mxu0 %v1472_v35  ;;  %3261 = vmatpush1.bf16.msra.mxu1 %v1474_v10 }
 0x47a   :  { %2934 = vmatprep.subr.bf16.mxu0 %v1481_v16  ;;  %3262 = vmatprep.subr.bf16.mxu1 %v1483_v13  ;;  %v1536_v13 = vld [vmem:[#allocation2 + $0xda0] sm:$0xff] }
 0x47d   :  { %2935 = vmatpush1.bf16.msra.mxu0 %v1480_v11  ;;  %3263 = vmatpush1.bf16.msra.mxu1 %v1482_v14  ;;  %v1538_v11 = vld [vmem:[#allocation2 + $0xdb0] sm:$0xff] }
 0x47e   :  { %2945 = vmatprep.subr.bf16.mxu0 %v1489_v4  ;;  %3273 = vmatprep.subr.bf16.mxu1 %v1491_v40  ;;  %v1545_v4 = vld [vmem:[#allocation2 + $0xde8] sm:$0xff]  ;;  %v1547_v40 = vld [vmem:[#allocation2 + $0xdf8] sm:$0xff] }
 0x480   :  { %2937 = vmatmul.mubr.bf16.vlgmr.msra.gmra.mrb[20].mxu0 %v6512_v20  ;;  %3265 = vmatmul.mubr.bf16.vlgmr.msra.gmra.mrb[20].mxu1 %v6512_v20  ;;  %v1515_v20 = vld [vmem:[#allocation2 + $0xcf8] sm:$0xff] }
 0x481   :  { %2946 = vmatpush1.bf16.msra.mxu0 %v1488_v37  ;;  %3274 = vmatpush1.bf16.msra.mxu1 %v1490_v30 }
 0x482   :  { %2947 = vmatprep.subr.bf16.mxu0 %v1497_v60  ;;  %3275 = vmatprep.subr.bf16.mxu1 %v1499_v44 }
 0x483   :  { %2977 = vmatprep.mubr.bf16.mxu0 %v6516_v46  ;;  %3305 = vmatprep.mubr.bf16.mxu1 %v6516_v46  ;;  %v1520_v46 = vld [vmem:[#allocation2 + $0xd20] sm:$0xff] }
 0x485   :  { %2948 = vmatpush1.bf16.msra.mxu0 %v1496_v6  ;;  %3276 = vmatpush1.bf16.msra.mxu1 %v1498_v55 }
 0x486   :  { %2949 = vmatprep.subr.bf16.mxu0 %v1505_v15  ;;  %3277 = vmatprep.subr.bf16.mxu1 %v1507_v29  ;;  %v1544_v15 = vld [vmem:[#allocation2 + $0xde0] sm:$0xff]  ;;  %v1546_v29 = vld [vmem:[#allocation2 + $0xdf0] sm:$0xff] }
 0x489   :  { %2950 = vmatpush1.bf16.msra.mxu0 %v1504_v3  ;;  %3278 = vmatpush1.bf16.msra.mxu1 %v1506_v32 }
 0x48a   :  { %2951 = vmatprep.subr.bf16.mxu0 %v1513_v42  ;;  %3279 = vmatprep.subr.bf16.mxu1 %v1515_v20  ;;  %v1553_v42 = vld [vmem:[#allocation2 + $0xe28] sm:$0xff]  ;;  %v1555_v20 = vld [vmem:[#allocation2 + $0xe38] sm:$0xff] }
 0x48d   :  { %2952 = vmatpush1.bf16.msra.mxu0 %v1512_v58  ;;  %3280 = vmatpush1.bf16.msra.mxu1 %v1514_v27 }
 0x48e   :  { %2953 = vmatprep.subr.bf16.mxu0 %v1521_v33  ;;  %3281 = vmatprep.subr.bf16.mxu1 %v1523_v36  ;;  %v1552_v33 = vld [vmem:[#allocation2 + $0xe20] sm:$0xff]  ;;  %v1554_v36 = vld [vmem:[#allocation2 + $0xe30] sm:$0xff] }
 0x491   :  { %2954 = vmatpush1.bf16.msra.mxu0 %v1520_v46  ;;  %3282 = vmatpush1.bf16.msra.mxu1 %v1522_v28  ;;  %v1563_v46 = vld [vmem:[#allocation2 + $0xe78] sm:$0xff]  ;;  %v1560_v28 = vld [vmem:[#allocation2 + $0xe60] sm:$0xff] }
 0x492   :  { %2955 = vmatprep.subr.bf16.mxu0 %v1529_v43  ;;  %3283 = vmatprep.subr.bf16.mxu1 %v1531_v56  ;;  %v1562_v43 = vld [vmem:[#allocation2 + $0xe70] sm:$0xff]  ;;  %v1569_v56 = vld [vmem:[#allocation2 + $0xea8] sm:$0xff] }
 0x493   :  { %v2487_v54 = vpop.f32.mrb[16].mxu0  ;;  %v2815_v45 = vpop.f32.mrb[16].mxu1 }
 0x494   :  { %v6594_v25 = vadd.f32 %v2487_v54, %v2129_v22  ;;  %v6596_v63 = vadd.f32 %v2815_v45, %v2137_v12  ;;  %v2489_v47 = vpop.f32.mrb[17].mxu0  ;;  %v2817_v21 = vpop.f32.mrb[17].mxu1  ;;  %v1571_v22 = vld [vmem:[#allocation2 + $0xeb8] sm:$0xff]  ;;  %v1577_v54 = vld [vmem:[#allocation2 + $0xee8] sm:$0xff] }
 0x495   :  { %v6598_v57 = vadd.f32 %v2489_v47, %v2133_v31  ;;  %v6600_v1 = vadd.f32 %v2817_v21, %v2141_v26  ;;  %v2491_v38 = vpop.f32.mrb[18].mxu0  ;;  %v2819_v39 = vpop.f32.mrb[18].mxu1  ;;  %2956 = vmatpush1.bf16.msra.mxu0 %v1528_v48  ;;  %3284 = vmatpush1.bf16.msra.mxu1 %v1530_v19  ;;  %v1568_v31 = vld [vmem:[#allocation2 + $0xea0] sm:$0xff]  ;;  %v1570_v26 = vld [vmem:[#allocation2 + $0xeb0] sm:$0xff]  ;;  %v1579_v45 = vld [vmem:[#allocation2 + $0xef8] sm:$0xff] }
 0x496   :  { %v3502_v35 = vand.u32 2147483647, %v6594_v25  ;;  %v2492_v10 = vpop.f32.mrb[19].mxu0  ;;  %v2820_v16 = vpop.f32.mrb[19].mxu1  ;;  %2957 = vmatprep.subr.bf16.mxu0 %v1537_v41  ;;  %3285 = vmatprep.subr.bf16.mxu1 %v1539_v17  ;;  %v3504_v14 = vand.u32 2147483647, %v6596_v63  ;;  %vm3486_vm1 = vcmp.ne.f32.partialorder %v6594_v25, %v6594_v25  ;;  %vm3488_vm2 = vcmp.ne.f32.partialorder %v6596_v63, %v6596_v63 }
 0x497   :  { %v3503_v30 = vand.u32 2147483647, %v6598_v57  ;;  %v3505_v44 = vand.u32 2147483647, %v6600_v1  ;;  %v1576_v38 = vld [vmem:[#allocation2 + $0xee0] sm:$0xff]  ;;  %v1578_v39 = vld [vmem:[#allocation2 + $0xef0] sm:$0xff]  ;;  %vm3487_vm7 = vcmp.ne.f32.partialorder %v6598_v57, %v6598_v57  ;;  %vm3489_vm8 = vcmp.ne.f32.partialorder %v6600_v1, %v6600_v1 }
 0x498   :  { %v3510_v37 = vsub.f32 0.0, %v3502_v35  ;;  %v3512_v60 = vsub.f32 0.0, %v3504_v14  ;;  %v1585_v10 = vld [vmem:[#allocation2 + $0xf28] sm:$0xff]  ;;  %v1587_v16 = vld [vmem:[#allocation2 + $0xf38] sm:$0xff] }
 0x499   :  { %2958 = vmatpush1.bf16.msra.mxu0 %v1536_v13  ;;  %3286 = vmatpush1.bf16.msra.mxu1 %v1538_v11  ;;  %v3511_v55 = vsub.f32 0.0, %v3503_v30  ;;  %v3513_v32 = vsub.f32 0.0, %v3505_v44  ;;  %v1595_v30 = vld [vmem:[#allocation2 + $0xf78] sm:$0xff] }
 0x49a   :  { %v3518_v6 = vmul.f32 1.442695, %v3510_v37  ;;  %2959 = vmatprep.subr.bf16.mxu0 %v1545_v4  ;;  %3287 = vmatprep.subr.bf16.mxu1 %v1547_v40  ;;  %v3522_v3 = vmul.f32 1.442695, %v3512_v60  ;;  %v1584_v4 = vld [vmem:[#allocation2 + $0xf20] sm:$0xff]  ;;  %v1586_v40 = vld [vmem:[#allocation2 + $0xf30] sm:$0xff] }
 0x49b   :  { %v3520_v58 = vmul.f32 1.442695, %v3511_v55  ;;  %v3524_v27 = vmul.f32 1.442695, %v3513_v32  ;;  %v1593_v37 = vld [vmem:[#allocation2 + $0xf68] sm:$0xff]  ;;  %v1594_v32 = vld [vmem:[#allocation2 + $0xf70] sm:$0xff] }
 0x49c   :  { %5667 = vpow2.f32 %v3518_v6 }
 0x49d   :  { %5669 = vpow2.f32 %v3522_v3  ;;  %2960 = vmatpush1.bf16.msra.mxu0 %v1544_v15  ;;  %3288 = vmatpush1.bf16.msra.mxu1 %v1546_v29  ;;  %v1592_v3 = vld [vmem:[#allocation2 + $0xf60] sm:$0xff] }
 0x49e   :  { %5671 = vpow2.f32 %v3520_v58  ;;  %2961 = vmatprep.subr.bf16.mxu0 %v1553_v42  ;;  %3289 = vmatprep.subr.bf16.mxu1 %v1555_v20  ;;  %v3478_v20 = vmax.f32 %v6594_v25, 0.0  ;;  %v3480_v58 = vmax.f32 %v6596_v63, 0.0 }
 0x49f   :  { %5673 = vpow2.f32 %v3524_v27 }
 0x4a1   :  { %2962 = vmatpush1.bf16.msra.mxu0 %v1552_v33  ;;  %3290 = vmatpush1.bf16.msra.mxu1 %v1554_v36  ;;  %v1601_v33 = vld [vmem:[#allocation2 + $0xfa8] sm:$0xff]  ;;  %v1603_v36 = vld [vmem:[#allocation2 + $0xfb8] sm:$0xff] }
 0x4a2   :  { %2963 = vmatprep.subr.bf16.mxu0 %v1561_v2  ;;  %3291 = vmatprep.subr.bf16.mxu1 %v1563_v46 }
 0x4a5   :  { %2964 = vmatpush1.bf16.msra.mxu0 %v1560_v28  ;;  %3292 = vmatpush1.bf16.msra.mxu1 %v1562_v43 }
 0x4a6   :  { %v5668_v12 = vpop.eup %5667  ;;  %2965 = vmatprep.subr.bf16.mxu0 %v1569_v56  ;;  %3293 = vmatprep.subr.bf16.mxu1 %v1571_v22 }
 0x4a7   :  { %v6606_v48 = vpop.eup %5669  ;;  %v3534_v19 = vadd.f32 1.0, %v5668_v12  ;;  %v3537_v13 = vmul.f32 -0.5, %v5668_v12  ;;  %v3540_v6 = vand.u32 2147483647, %v5668_v12 }
 0x4a8   :  { %v6608_v41 = vpop.eup %5671  ;;  %v3552_v17 = vadd.f32 1.0, %v6606_v48  ;;  %v3555_v11 = vmul.f32 -0.5, %v6606_v48  ;;  %v3558_v15 = vand.u32 2147483647, %v6606_v48 }
 0x4a9   :  { %v6611_v47 = vpop.eup %5673  ;;  %5675 = vlog2.f32 %v3534_v19  ;;  %v3543_v21 = vadd.f32 1.0, %v6608_v41  ;;  %2966 = vmatpush1.bf16.msra.mxu0 %v1568_v31  ;;  %3294 = vmatpush1.bf16.msra.mxu1 %v1570_v26  ;;  %v3546_v14 = vmul.f32 -0.5, %v6608_v41  ;;  %v3538_v60 = vadd.f32 1.0, %v3537_v13 }
 0x4aa   :  { %5677 = vlog2.f32 %v3552_v17  ;;  %2967 = vmatprep.subr.bf16.mxu0 %v1577_v54  ;;  %3295 = vmatprep.subr.bf16.mxu1 %v1579_v45  ;;  %v3561_v35 = vadd.f32 1.0, %v6611_v47  ;;  %v3564_v44 = vmul.f32 -0.5, %v6611_v47  ;;  %v3556_v55 = vadd.f32 1.0, %v3555_v11  ;;  %v1602_v17 = vld [vmem:[#allocation2 + $0xfb0] sm:$0xff] }
 0x4ab   :  { %5679 = vlog2.f32 %v3543_v21  ;;  %v3547_v29 = vadd.f32 1.0, %v3546_v14  ;;  %v3549_v27 = vand.u32 2147483647, %v6608_v41  ;;  %v3539_v28 = vmul.f32 %v5668_v12, %v3538_v60  ;;  %v1600_v12 = vld [vmem:[#allocation2 + $0xfa0] sm:$0xff] }
 0x4ac   :  { %5681 = vlog2.f32 %v3561_v35  ;;  %v3565_v43 = vadd.f32 1.0, %v3564_v44  ;;  %vm3541_vm3 = vcmp.lt.f32.partialorder %v3540_v6, 0.0004427343  ;;  %v3557_v31 = vmul.f32 %v6606_v48, %v3556_v55  ;;  %v1609_v48 = vld [vmem:[#allocation2 + $0xfe8] sm:$0xff]  ;;  %v1619_v55 = vld [vmem:[#allocation2 + $0x1038] sm:$0xff] }
 0x4ad   :  { %2968 = vmatpush1.bf16.msra.mxu0 %v1576_v38  ;;  %3296 = vmatpush1.bf16.msra.mxu1 %v1578_v39  ;;  %v3567_v26 = vand.u32 2147483647, %v6611_v47  ;;  %vm3559_vm4 = vcmp.lt.f32.partialorder %v3558_v15, 0.0004427343  ;;  %v3548_v45 = vmul.f32 %v6608_v41, %v3547_v29  ;;  %v3479_v35 = vmax.f32 %v6598_v57, 0.0  ;;  %v1617_v6 = vld [vmem:[#allocation2 + $0x1028] sm:$0xff] }
 0x4ae   :  { %2969 = vmatprep.subr.bf16.mxu0 %v1585_v10  ;;  %3297 = vmatprep.subr.bf16.mxu1 %v1587_v16  ;;  %vm3550_vm5 = vcmp.lt.f32.partialorder %v3549_v27, 0.0004427343  ;;  %v1611_v10 = vld [vmem:[#allocation2 + $0xff8] sm:$0xff]  ;;  %v3566_v14 = vmul.f32 %v6611_v47, %v3565_v43  ;;  %v1616_v15 = vld [vmem:[#allocation2 + $0x1020] sm:$0xff]  ;;  %v1618_v29 = vld [vmem:[#allocation2 + $0x1030] sm:$0xff] }
 0x4af   :  { %vm3568_vm6 = vcmp.lt.f32.partialorder %v3567_v26, 0.0004427343  ;;  %v1634_v27 = vld [vmem:[#allocation2 + $0x10b0] sm:$0xff] }
 0x4b0   :  { %v1650_v43 = vld [vmem:[#allocation2 + $0x1130] sm:$0xff] }
 0x4b1   :  { %2970 = vmatpush1.bf16.msra.mxu0 %v1584_v4  ;;  %3298 = vmatpush1.bf16.msra.mxu1 %v1586_v40  ;;  %v3481_v40 = vmax.f32 %v6600_v1, 0.0  ;;  %v1658_v26 = vld [vmem:[#allocation2 + $0x1170] sm:$0xff] }
 0x4b2   :  { %2971 = vmatprep.subr.bf16.mxu0 %v1593_v37  ;;  %3299 = vmatprep.subr.bf16.mxu1 %v1595_v30  ;;  %v1610_v30 = vld [vmem:[#allocation2 + $0xff0] sm:$0xff] }
 0x4b3   :  { %v5676_v42 = vpop.eup %5675 }
 0x4b4   :  { %v5678_v2 = vpop.eup %5677  ;;  %v3536_v46 = vmul.f32 0.6931472, %v5676_v42  ;;  %v1626_v42 = vld [vmem:[#allocation2 + $0x1070] sm:$0xff] }
 0x4b5   :  { %v5680_v56 = vpop.eup %5679  ;;  %v3554_v22 = vmul.f32 0.6931472, %v5678_v2  ;;  %2972 = vmatpush1.bf16.msra.mxu0 %v1592_v3  ;;  %3300 = vmatpush1.bf16.msra.mxu1 %v1594_v32  ;;  %v1625_v3 = vld [vmem:[#allocation2 + $0x1068] sm:$0xff]  ;;  %v1627_v32 = vld [vmem:[#allocation2 + $0x1078] sm:$0xff]  ;;  %v1642_v2 = vld [vmem:[#allocation2 + $0x10f0] sm:$0xff] }
 0x4b6   :  { %v3542_v19 = vsel %vm3541_vm3, %v3539_v28, %v3536_v46  ;;  %v3545_v54 = vmul.f32 0.6931472, %v5680_v56  ;;  %2973 = vmatprep.subr.bf16.mxu0 %v1601_v33  ;;  %3301 = vmatprep.subr.bf16.mxu1 %v1603_v36  ;;  %v5682_v21 = vpop.eup %5681  ;;  %v1641_v33 = vld [vmem:[#allocation2 + $0x10e8] sm:$0xff]  ;;  %v1640_v36 = vld [vmem:[#allocation2 + $0x10e0] sm:$0xff]  ;;  %v1651_v28 = vld [vmem:[#allocation2 + $0x1138] sm:$0xff] }
 0x4b7   :  { %v3606_v38 = vadd.f32 %v3542_v19, %v3478_v20  ;;  %v3560_v39 = vsel %vm3559_vm4, %v3557_v31, %v3554_v22  ;;  %v3563_v11 = vmul.f32 0.6931472, %v5682_v21  ;;  %v1635_v20 = vld [vmem:[#allocation2 + $0x10b8] sm:$0xff]  ;;  %v1649_v46 = vld [vmem:[#allocation2 + $0x1128] sm:$0xff]  ;;  %v1656_v31 = vld [vmem:[#allocation2 + $0x1160] sm:$0xff] }
 0x4b8   :  { %v3608_v16 = vadd.f32 %v3560_v39, %v3480_v58  ;;  %v3551_v13 = vsel %vm3550_vm5, %v3548_v45, %v3545_v54  ;;  %v1632_v58 = vld [vmem:[#allocation2 + $0x10a0] sm:$0xff]  ;;  %v1657_v56 = vld [vmem:[#allocation2 + $0x1168] sm:$0xff]  ;;  %v1659_v22 = vld [vmem:[#allocation2 + $0x1178] sm:$0xff] }
 0x4b9   :  { %v6635_v41 = vsel %vm3486_vm1, %v6594_v25, %v3606_v38  ;;  %v3607_v4 = vadd.f32 %v3551_v13, %v3479_v35  ;;  %2974 = vmatpush1.bf16.msra.mxu0 %v1600_v12  ;;  %3302 = vmatpush1.bf16.msra.mxu1 %v1602_v17  ;;  %v3569_v47 = vsel %vm3568_vm6, %v3566_v14, %v3563_v11  ;;  %v1608_v25 = vld [vmem:[#allocation2 + $0xfe0] sm:$0xff]  ;;  %v1665_v19 = vld [vmem:[#allocation2 + $0x11a8] sm:$0xff]  ;;  %v1667_v54 = vld [vmem:[#allocation2 + $0x11b8] sm:$0xff] }
 0x4ba   :  { %v6642_v37 = vsel %vm3488_vm2, %v6596_v63, %v3608_v16  ;;  %2975 = vmatprep.subr.bf16.mxu0 %v1609_v48  ;;  %3303 = vmatprep.subr.bf16.mxu1 %v1611_v10  ;;  %v3609_v44 = vadd.f32 %v3569_v47, %v3481_v40  ;;  %v1664_v45 = vld [vmem:[#allocation2 + $0x11a0] sm:$0xff]  ;;  %v1666_v12 = vld [vmem:[#allocation2 + $0x11b0] sm:$0xff]  ;;  %v1673_v17 = vld [vmem:[#allocation2 + $0x11e8] sm:$0xff] }
 0x4bb   :  { %v6647_v60 = vsel %vm3487_vm7, %v6598_v57, %v3607_v4  ;;  %v1624_v57 = vld [vmem:[#allocation2 + $0x1060] sm:$0xff]  ;;  %v1675_v21 = vld [vmem:[#allocation2 + $0x11f8] sm:$0xff]  ;;  %v1674_v39 = vld [vmem:[#allocation2 + $0x11f0] sm:$0xff] }
 0x4bc   :  { %v6652_v63 = vsel %vm3489_vm8, %v6600_v1, %v3609_v44  ;;  %v1633_v1 = vld [vmem:[#allocation2 + $0x10a8] sm:$0xff]  ;;  %v1672_v38 = vld [vmem:[#allocation2 + $0x11e0] sm:$0xff]  ;;  %v1683_v48 = vld [vmem:[#allocation2 + $0x1238] sm:$0xff] }
 0x4bd   :  { %2976 = vmatpush1.bf16.msra.mxu0 %v1608_v25  ;;  %3304 = vmatpush1.bf16.msra.mxu1 %v1610_v30  ;;  %v1681_v35 = vld [vmem:[#allocation2 + $0x1228] sm:$0xff]  ;;  %v1680_v10 = vld [vmem:[#allocation2 + $0x1220] sm:$0xff]  ;;  %v1682_v16 = vld [vmem:[#allocation2 + $0x1230] sm:$0xff] }
 0x4be   :  { %2986 = vmatprep.subr.bf16.mxu0 %v1617_v6  ;;  %3314 = vmatprep.subr.bf16.mxu1 %v1619_v55  ;;  %v1689_v13 = vld [vmem:[#allocation2 + $0x1268] sm:$0xff]  ;;  %v1691_v11 = vld [vmem:[#allocation2 + $0x1278] sm:$0xff]  ;;  %v1688_v14 = vld [vmem:[#allocation2 + $0x1260] sm:$0xff] }
 0x4bf   :  { %v1690_v4 = vld [vmem:[#allocation2 + $0x1270] sm:$0xff]  ;;  %v1697_v40 = vld [vmem:[#allocation2 + $0x12a8] sm:$0xff]  ;;  %v1699_v47 = vld [vmem:[#allocation2 + $0x12b8] sm:$0xff] }
 0x4c0   :  { %2978 = vmatmul.mubr.bf16.vlgmr.msra.gmra.mrb[20].mxu0 %v6524_v50  ;;  %3306 = vmatmul.mubr.bf16.vlgmr.msra.gmra.mrb[20].mxu1 %v6524_v50  ;;  %v1643_v50 = vld [vmem:[#allocation2 + $0x10f8] sm:$0xff]  ;;  %v1696_v25 = vld [vmem:[#allocation2 + $0x12a0] sm:$0xff]  ;;  %v1698_v30 = vld [vmem:[#allocation2 + $0x12b0] sm:$0xff] }
 0x4c1   :  { %2987 = vmatpush1.bf16.msra.mxu0 %v1616_v15  ;;  %3315 = vmatpush1.bf16.msra.mxu1 %v1618_v29  ;;  %v1705_v44 = vld [vmem:[#allocation2 + $0x12e8] sm:$0xff]  ;;  %v1707_v6 = vld [vmem:[#allocation2 + $0x12f8] sm:$0xff]  ;;  %v1704_v55 = vld [vmem:[#allocation2 + $0x12e0] sm:$0xff] }
 0x4c2   :  { %2988 = vmatprep.subr.bf16.mxu0 %v1625_v3  ;;  %3316 = vmatprep.subr.bf16.mxu1 %v1627_v32  ;;  %v1706_v15 = vld [vmem:[#allocation2 + $0x12f0] sm:$0xff]  ;;  %v1713_v29 = vld [vmem:[#allocation2 + $0x1328] sm:$0xff]  ;;  %v1715_v3 = vld [vmem:[#allocation2 + $0x1338] sm:$0xff] }
 0x4c3   :  { %3018 = vmatprep.mubr.bf16.mxu0 %v6528_v0  ;;  %3346 = vmatprep.mubr.bf16.mxu1 %v6528_v0  ;;  %v1648_v0 = vld [vmem:[#allocation2 + $0x1120] sm:$0xff] }
 0x4c4   :  { %v1712_v32 = vld [vmem:[#allocation2 + $0x1320] sm:$0xff] }
 0x4c5   :  { %2989 = vmatpush1.bf16.msra.mxu0 %v1624_v57  ;;  %3317 = vmatpush1.bf16.msra.mxu1 %v1626_v42  ;;  %v1714_v57 = vld [vmem:[#allocation2 + $0x1330] sm:$0xff]  ;;  %v1721_v42 = vld [vmem:[#allocation2 + $0x1368] sm:$0xff] }
 0x4c6   :  { %2990 = vmatprep.subr.bf16.mxu0 %v1633_v1  ;;  %3318 = vmatprep.subr.bf16.mxu1 %v1635_v20  ;;  %v1723_v1 = vld [vmem:[#allocation2 + $0x1378] sm:$0xff]  ;;  %v1720_v20 = vld [vmem:[#allocation2 + $0x1360] sm:$0xff] }
 0x4c9   :  { %2991 = vmatpush1.bf16.msra.mxu0 %v1632_v58  ;;  %3319 = vmatpush1.bf16.msra.mxu1 %v1634_v27  ;;  %v1722_v58 = vld [vmem:[#allocation2 + $0x1370] sm:$0xff]  ;;  %v1729_v27 = vld [vmem:[#allocation2 + $0x13a8] sm:$0xff] }
 0x4ca   :  { %2992 = vmatprep.subr.bf16.mxu0 %v1641_v33  ;;  %3320 = vmatprep.subr.bf16.mxu1 %v1643_v50  ;;  %v1731_v33 = vld [vmem:[#allocation2 + $0x13b8] sm:$0xff]  ;;  %v1728_v50 = vld [vmem:[#allocation2 + $0x13a0] sm:$0xff] }
 0x4cd   :  { %2993 = vmatpush1.bf16.msra.mxu0 %v1640_v36  ;;  %3321 = vmatpush1.bf16.msra.mxu1 %v1642_v2  ;;  %v1730_v36 = vld [vmem:[#allocation2 + $0x13b0] sm:$0xff]  ;;  %v1737_v2 = vld [vmem:[#allocation2 + $0x13e8] sm:$0xff] }
 0x4ce   :  { %2994 = vmatprep.subr.bf16.mxu0 %v1649_v46  ;;  %3322 = vmatprep.subr.bf16.mxu1 %v1651_v28  ;;  %v1739_v46 = vld [vmem:[#allocation2 + $0x13f8] sm:$0xff]  ;;  %v1736_v28 = vld [vmem:[#allocation2 + $0x13e0] sm:$0xff] }
 0x4d1   :  { %2995 = vmatpush1.bf16.msra.mxu0 %v1648_v0  ;;  %3323 = vmatpush1.bf16.msra.mxu1 %v1650_v43  ;;  %v1738_v0 = vld [vmem:[#allocation2 + $0x13f0] sm:$0xff]  ;;  %v1745_v43 = vld [vmem:[#allocation2 + $0x1428] sm:$0xff] }
 0x4d2   :  { %2996 = vmatprep.subr.bf16.mxu0 %v1657_v56  ;;  %3324 = vmatprep.subr.bf16.mxu1 %v1659_v22  ;;  %v1747_v56 = vld [vmem:[#allocation2 + $0x1438] sm:$0xff]  ;;  %v1744_v22 = vld [vmem:[#allocation2 + $0x1420] sm:$0xff] }
 0x4d5   :  { %2997 = vmatpush1.bf16.msra.mxu0 %v1656_v31  ;;  %3325 = vmatpush1.bf16.msra.mxu1 %v1658_v26  ;;  %v1746_v31 = vld [vmem:[#allocation2 + $0x1430] sm:$0xff]  ;;  %v1753_v26 = vld [vmem:[#allocation2 + $0x1468] sm:$0xff] }
 0x4d6   :  { %2998 = vmatprep.subr.bf16.mxu0 %v1665_v19  ;;  %3326 = vmatprep.subr.bf16.mxu1 %v1667_v54  ;;  %v1755_v19 = vld [vmem:[#allocation2 + $0x1478] sm:$0xff]  ;;  %v1752_v54 = vld [vmem:[#allocation2 + $0x1460] sm:$0xff] }
 0x4d9   :  { %2999 = vmatpush1.bf16.msra.mxu0 %v1664_v45  ;;  %3327 = vmatpush1.bf16.msra.mxu1 %v1666_v12  ;;  %v1754_v45 = vld [vmem:[#allocation2 + $0x1470] sm:$0xff]  ;;  %v1761_v12 = vld [vmem:[#allocation2 + $0x14a8] sm:$0xff] }
 0x4da   :  { %3000 = vmatprep.subr.bf16.mxu0 %v1673_v17  ;;  %3328 = vmatprep.subr.bf16.mxu1 %v1675_v21  ;;  %v1763_v17 = vld [vmem:[#allocation2 + $0x14b8] sm:$0xff]  ;;  %v1760_v21 = vld [vmem:[#allocation2 + $0x14a0] sm:$0xff] }
 0x4dd   :  { %3001 = vmatpush1.bf16.msra.mxu0 %v1672_v38  ;;  %3329 = vmatpush1.bf16.msra.mxu1 %v1674_v39  ;;  %v1762_v38 = vld [vmem:[#allocation2 + $0x14b0] sm:$0xff]  ;;  %v1769_v39 = vld [vmem:[#allocation2 + $0x14e8] sm:$0xff] }
 0x4de   :  { %3002 = vmatprep.subr.bf16.mxu0 %v1681_v35  ;;  %3330 = vmatprep.subr.bf16.mxu1 %v1683_v48  ;;  %v1768_v35 = vld [vmem:[#allocation2 + $0x14e0] sm:$0xff]  ;;  %v1770_v48 = vld [vmem:[#allocation2 + $0x14f0] sm:$0xff] }
 0x4e1   :  { %3003 = vmatpush1.bf16.msra.mxu0 %v1680_v10  ;;  %3331 = vmatpush1.bf16.msra.mxu1 %v1682_v16  ;;  %v1777_v10 = vld [vmem:[#allocation2 + $0x1528] sm:$0xff]  ;;  %v1779_v16 = vld [vmem:[#allocation2 + $0x1538] sm:$0xff] }
 0x4e2   :  { %3004 = vmatprep.subr.bf16.mxu0 %v1689_v13  ;;  %3332 = vmatprep.subr.bf16.mxu1 %v1691_v11  ;;  %v1778_v13 = vld [vmem:[#allocation2 + $0x1530] sm:$0xff]  ;;  %v1785_v11 = vld [vmem:[#allocation2 + $0x1568] sm:$0xff] }
 0x4e5   :  { %3005 = vmatpush1.bf16.msra.mxu0 %v1688_v14  ;;  %3333 = vmatpush1.bf16.msra.mxu1 %v1690_v4  ;;  %v1787_v14 = vld [vmem:[#allocation2 + $0x1578] sm:$0xff]  ;;  %v1784_v4 = vld [vmem:[#allocation2 + $0x1560] sm:$0xff] }
 0x4e6   :  { %3006 = vmatprep.subr.bf16.mxu0 %v1697_v40  ;;  %3334 = vmatprep.subr.bf16.mxu1 %v1699_v47  ;;  %v1786_v40 = vld [vmem:[#allocation2 + $0x1570] sm:$0xff]  ;;  %v1793_v47 = vld [vmem:[#allocation2 + $0x15a8] sm:$0xff] }
 0x4e9   :  { %3007 = vmatpush1.bf16.msra.mxu0 %v1696_v25  ;;  %3335 = vmatpush1.bf16.msra.mxu1 %v1698_v30  ;;  %v1795_v25 = vld [vmem:[#allocation2 + $0x15b8] sm:$0xff]  ;;  %v1792_v30 = vld [vmem:[#allocation2 + $0x15a0] sm:$0xff] }
 0x4ea   :  { %3008 = vmatprep.subr.bf16.mxu0 %v1705_v44  ;;  %3336 = vmatprep.subr.bf16.mxu1 %v1707_v6  ;;  %v1794_v44 = vld [vmem:[#allocation2 + $0x15b0] sm:$0xff]  ;;  %v1801_v6 = vld [vmem:[#allocation2 + $0x15e8] sm:$0xff] }
 0x4ed   :  { %3009 = vmatpush1.bf16.msra.mxu0 %v1704_v55  ;;  %3337 = vmatpush1.bf16.msra.mxu1 %v1706_v15  ;;  %v1803_v55 = vld [vmem:[#allocation2 + $0x15f8] sm:$0xff]  ;;  %v1800_v15 = vld [vmem:[#allocation2 + $0x15e0] sm:$0xff] }
 0x4ee   :  { %3010 = vmatprep.subr.bf16.mxu0 %v1713_v29  ;;  %3338 = vmatprep.subr.bf16.mxu1 %v1715_v3  ;;  %v1802_v29 = vld [vmem:[#allocation2 + $0x15f0] sm:$0xff]  ;;  %v1809_v3 = vld [vmem:[#allocation2 + $0x1628] sm:$0xff] }
 0x4f1   :  { %3011 = vmatpush1.bf16.msra.mxu0 %v1712_v32  ;;  %3339 = vmatpush1.bf16.msra.mxu1 %v1714_v57  ;;  %v1811_v32 = vld [vmem:[#allocation2 + $0x1638] sm:$0xff]  ;;  %v1808_v57 = vld [vmem:[#allocation2 + $0x1620] sm:$0xff] }
 0x4f2   :  { %3012 = vmatprep.subr.bf16.mxu0 %v1721_v42  ;;  %3340 = vmatprep.subr.bf16.mxu1 %v1723_v1  ;;  %v1810_v42 = vld [vmem:[#allocation2 + $0x1630] sm:$0xff]  ;;  %v1817_v1 = vld [vmem:[#allocation2 + $0x1668] sm:$0xff] }
 0x4f5   :  { %3013 = vmatpush1.bf16.msra.mxu0 %v1720_v20  ;;  %3341 = vmatpush1.bf16.msra.mxu1 %v1722_v58  ;;  %v1819_v20 = vld [vmem:[#allocation2 + $0x1678] sm:$0xff]  ;;  %v1816_v58 = vld [vmem:[#allocation2 + $0x1660] sm:$0xff] }
 0x4f6   :  { %3014 = vmatprep.subr.bf16.mxu0 %v1729_v27  ;;  %3342 = vmatprep.subr.bf16.mxu1 %v1731_v33  ;;  %v1818_v27 = vld [vmem:[#allocation2 + $0x1670] sm:$0xff]  ;;  %v1825_v33 = vld [vmem:[#allocation2 + $0x16a8] sm:$0xff] }
 0x4f9   :  { %3015 = vmatpush1.bf16.msra.mxu0 %v1728_v50  ;;  %3343 = vmatpush1.bf16.msra.mxu1 %v1730_v36  ;;  %v1827_v50 = vld [vmem:[#allocation2 + $0x16b8] sm:$0xff]  ;;  %v1824_v36 = vld [vmem:[#allocation2 + $0x16a0] sm:$0xff] }
 0x4fa   :  { %3016 = vmatprep.subr.bf16.mxu0 %v1737_v2  ;;  %3344 = vmatprep.subr.bf16.mxu1 %v1739_v46  ;;  %v1826_v2 = vld [vmem:[#allocation2 + $0x16b0] sm:$0xff]  ;;  %v1833_v46 = vld [vmem:[#allocation2 + $0x16e8] sm:$0xff] }
 0x4fd   :  { %3017 = vmatpush1.bf16.msra.mxu0 %v1736_v28  ;;  %3345 = vmatpush1.bf16.msra.mxu1 %v1738_v0  ;;  %v1835_v28 = vld [vmem:[#allocation2 + $0x16f8] sm:$0xff]  ;;  %v1832_v0 = vld [vmem:[#allocation2 + $0x16e0] sm:$0xff] }
 0x4fe   :  { %3027 = vmatprep.subr.bf16.mxu0 %v1745_v43  ;;  %3355 = vmatprep.subr.bf16.mxu1 %v1747_v56  ;;  %v1834_v43 = vld [vmem:[#allocation2 + $0x16f0] sm:$0xff]  ;;  %v1841_v56 = vld [vmem:[#allocation2 + $0x1728] sm:$0xff] }
 0x500   :  { %3019 = vmatmul.mubr.bf16.vlgmr.msra.gmra.mrb[20].mxu0 %v6536_v52  ;;  %3347 = vmatmul.mubr.bf16.vlgmr.msra.gmra.mrb[20].mxu1 %v6536_v52  ;;  %v1771_v52 = vld [vmem:[#allocation2 + $0x14f8] sm:$0xff] }
 0x501   :  { %3028 = vmatpush1.bf16.msra.mxu0 %v1744_v22  ;;  %3356 = vmatpush1.bf16.msra.mxu1 %v1746_v31  ;;  %v1843_v22 = vld [vmem:[#allocation2 + $0x1738] sm:$0xff]  ;;  %v1840_v31 = vld [vmem:[#allocation2 + $0x1720] sm:$0xff] }
 0x502   :  { %3029 = vmatprep.subr.bf16.mxu0 %v1753_v26  ;;  %3357 = vmatprep.subr.bf16.mxu1 %v1755_v19  ;;  %v1842_v26 = vld [vmem:[#allocation2 + $0x1730] sm:$0xff]  ;;  %v1849_v19 = vld [vmem:[#allocation2 + $0x1768] sm:$0xff] }
 0x503   :  { %3059 = vmatprep.mubr.bf16.mxu0 %v6540_v62  ;;  %3387 = vmatprep.mubr.bf16.mxu1 %v6540_v62  ;;  %v1776_v62 = vld [vmem:[#allocation2 + $0x1520] sm:$0xff] }
 0x505   :  { %3030 = vmatpush1.bf16.msra.mxu0 %v1752_v54  ;;  %3358 = vmatpush1.bf16.msra.mxu1 %v1754_v45  ;;  %v1851_v54 = vld [vmem:[#allocation2 + $0x1778] sm:$0xff]  ;;  %v1848_v45 = vld [vmem:[#allocation2 + $0x1760] sm:$0xff] }
 0x506   :  { %3031 = vmatprep.subr.bf16.mxu0 %v1761_v12  ;;  %3359 = vmatprep.subr.bf16.mxu1 %v1763_v17  ;;  %v1850_v12 = vld [vmem:[#allocation2 + $0x1770] sm:$0xff]  ;;  %v1857_v17 = vld [vmem:[#allocation2 + $0x17a8] sm:$0xff] }
 0x509   :  { %3032 = vmatpush1.bf16.msra.mxu0 %v1760_v21  ;;  %3360 = vmatpush1.bf16.msra.mxu1 %v1762_v38  ;;  %v1859_v21 = vld [vmem:[#allocation2 + $0x17b8] sm:$0xff]  ;;  %v1856_v38 = vld [vmem:[#allocation2 + $0x17a0] sm:$0xff] }
 0x50a   :  { %3033 = vmatprep.subr.bf16.mxu0 %v1769_v39  ;;  %3361 = vmatprep.subr.bf16.mxu1 %v1771_v52  ;;  %v1858_v39 = vld [vmem:[#allocation2 + $0x17b0] sm:$0xff]  ;;  %v1865_v52 = vld [vmem:[#allocation2 + $0x17e8] sm:$0xff] }
 0x50d   :  { %3034 = vmatpush1.bf16.msra.mxu0 %v1768_v35  ;;  %3362 = vmatpush1.bf16.msra.mxu1 %v1770_v48  ;;  %v1867_v35 = vld [vmem:[#allocation2 + $0x17f8] sm:$0xff]  ;;  %v1864_v48 = vld [vmem:[#allocation2 + $0x17e0] sm:$0xff] }
 0x50e   :  { %3035 = vmatprep.subr.bf16.mxu0 %v1777_v10  ;;  %3363 = vmatprep.subr.bf16.mxu1 %v1779_v16  ;;  %v1866_v10 = vld [vmem:[#allocation2 + $0x17f0] sm:$0xff]  ;;  %v1873_v16 = vld [vmem:[#allocation2 + $0x1828] sm:$0xff] }
 0x511   :  { %3036 = vmatpush1.bf16.msra.mxu0 %v1776_v62  ;;  %3364 = vmatpush1.bf16.msra.mxu1 %v1778_v13  ;;  %v1875_v62 = vld [vmem:[#allocation2 + $0x1838] sm:$0xff]  ;;  %v1872_v13 = vld [vmem:[#allocation2 + $0x1820] sm:$0xff] }
 0x512   :  { %3037 = vmatprep.subr.bf16.mxu0 %v1785_v11  ;;  %3365 = vmatprep.subr.bf16.mxu1 %v1787_v14  ;;  %v1874_v11 = vld [vmem:[#allocation2 + $0x1830] sm:$0xff]  ;;  %v1881_v14 = vld [vmem:[#allocation2 + $0x1868] sm:$0xff] }
 0x515   :  { %3038 = vmatpush1.bf16.msra.mxu0 %v1784_v4  ;;  %3366 = vmatpush1.bf16.msra.mxu1 %v1786_v40  ;;  %v1883_v4 = vld [vmem:[#allocation2 + $0x1878] sm:$0xff]  ;;  %v1880_v40 = vld [vmem:[#allocation2 + $0x1860] sm:$0xff] }
 0x516   :  { %3039 = vmatprep.subr.bf16.mxu0 %v1793_v47  ;;  %3367 = vmatprep.subr.bf16.mxu1 %v1795_v25  ;;  %v1882_v47 = vld [vmem:[#allocation2 + $0x1870] sm:$0xff]  ;;  %v1889_v25 = vld [vmem:[#allocation2 + $0x18a8] sm:$0xff] }
 0x519   :  { %3040 = vmatpush1.bf16.msra.mxu0 %v1792_v30  ;;  %3368 = vmatpush1.bf16.msra.mxu1 %v1794_v44  ;;  %v1891_v30 = vld [vmem:[#allocation2 + $0x18b8] sm:$0xff]  ;;  %v1888_v44 = vld [vmem:[#allocation2 + $0x18a0] sm:$0xff] }
 0x51a   :  { %3041 = vmatprep.subr.bf16.mxu0 %v1801_v6  ;;  %3369 = vmatprep.subr.bf16.mxu1 %v1803_v55  ;;  %v1890_v6 = vld [vmem:[#allocation2 + $0x18b0] sm:$0xff]  ;;  %v1897_v55 = vld [vmem:[#allocation2 + $0x18e8] sm:$0xff] }
 0x51d   :  { %3042 = vmatpush1.bf16.msra.mxu0 %v1800_v15  ;;  %3370 = vmatpush1.bf16.msra.mxu1 %v1802_v29  ;;  %v1896_v15 = vld [vmem:[#allocation2 + $0x18e0] sm:$0xff]  ;;  %v1898_v29 = vld [vmem:[#allocation2 + $0x18f0] sm:$0xff] }
 0x51e   :  { %3043 = vmatprep.subr.bf16.mxu0 %v1809_v3  ;;  %3371 = vmatprep.subr.bf16.mxu1 %v1811_v32  ;;  %v1905_v3 = vld [vmem:[#allocation2 + $0x1928] sm:$0xff]  ;;  %v1907_v32 = vld [vmem:[#allocation2 + $0x1938] sm:$0xff] }
 0x521   :  { %3044 = vmatpush1.bf16.msra.mxu0 %v1808_v57  ;;  %3372 = vmatpush1.bf16.msra.mxu1 %v1810_v42  ;;  %v1906_v57 = vld [vmem:[#allocation2 + $0x1930] sm:$0xff]  ;;  %v1913_v42 = vld [vmem:[#allocation2 + $0x1968] sm:$0xff] }
 0x522   :  { %3045 = vmatprep.subr.bf16.mxu0 %v1817_v1  ;;  %3373 = vmatprep.subr.bf16.mxu1 %v1819_v20  ;;  %v1915_v1 = vld [vmem:[#allocation2 + $0x1978] sm:$0xff]  ;;  %v1912_v20 = vld [vmem:[#allocation2 + $0x1960] sm:$0xff] }
 0x525   :  { %3046 = vmatpush1.bf16.msra.mxu0 %v1816_v58  ;;  %3374 = vmatpush1.bf16.msra.mxu1 %v1818_v27  ;;  %v1914_v58 = vld [vmem:[#allocation2 + $0x1970] sm:$0xff]  ;;  %v1921_v27 = vld [vmem:[#allocation2 + $0x19a8] sm:$0xff] }
 0x526   :  { %3047 = vmatprep.subr.bf16.mxu0 %v1825_v33  ;;  %3375 = vmatprep.subr.bf16.mxu1 %v1827_v50  ;;  %v1923_v33 = vld [vmem:[#allocation2 + $0x19b8] sm:$0xff]  ;;  %v1920_v50 = vld [vmem:[#allocation2 + $0x19a0] sm:$0xff] }
 0x529   :  { %3048 = vmatpush1.bf16.msra.mxu0 %v1824_v36  ;;  %3376 = vmatpush1.bf16.msra.mxu1 %v1826_v2  ;;  %v1922_v36 = vld [vmem:[#allocation2 + $0x19b0] sm:$0xff]  ;;  %v1929_v2 = vld [vmem:[#allocation2 + $0x19e8] sm:$0xff] }
 0x52a   :  { %3049 = vmatprep.subr.bf16.mxu0 %v1833_v46  ;;  %3377 = vmatprep.subr.bf16.mxu1 %v1835_v28  ;;  %v1931_v46 = vld [vmem:[#allocation2 + $0x19f8] sm:$0xff]  ;;  %v1928_v28 = vld [vmem:[#allocation2 + $0x19e0] sm:$0xff] }
 0x52d   :  { %3050 = vmatpush1.bf16.msra.mxu0 %v1832_v0  ;;  %3378 = vmatpush1.bf16.msra.mxu1 %v1834_v43  ;;  %v1930_v0 = vld [vmem:[#allocation2 + $0x19f0] sm:$0xff]  ;;  %v1937_v43 = vld [vmem:[#allocation2 + $0x1a28] sm:$0xff] }
 0x52e   :  { %3051 = vmatprep.subr.bf16.mxu0 %v1841_v56  ;;  %3379 = vmatprep.subr.bf16.mxu1 %v1843_v22  ;;  %v1939_v56 = vld [vmem:[#allocation2 + $0x1a38] sm:$0xff]  ;;  %v1936_v22 = vld [vmem:[#allocation2 + $0x1a20] sm:$0xff] }
 0x531   :  { %3052 = vmatpush1.bf16.msra.mxu0 %v1840_v31  ;;  %3380 = vmatpush1.bf16.msra.mxu1 %v1842_v26  ;;  %v1938_v31 = vld [vmem:[#allocation2 + $0x1a30] sm:$0xff]  ;;  %v1945_v26 = vld [vmem:[#allocation2 + $0x1a68] sm:$0xff] }
 0x532   :  { %3053 = vmatprep.subr.bf16.mxu0 %v1849_v19  ;;  %3381 = vmatprep.subr.bf16.mxu1 %v1851_v54  ;;  %v1947_v19 = vld [vmem:[#allocation2 + $0x1a78] sm:$0xff]  ;;  %v1944_v54 = vld [vmem:[#allocation2 + $0x1a60] sm:$0xff] }
 0x535   :  { %3054 = vmatpush1.bf16.msra.mxu0 %v1848_v45  ;;  %3382 = vmatpush1.bf16.msra.mxu1 %v1850_v12  ;;  %v1946_v45 = vld [vmem:[#allocation2 + $0x1a70] sm:$0xff]  ;;  %v1953_v12 = vld [vmem:[#allocation2 + $0x1aa8] sm:$0xff] }
 0x536   :  { %3055 = vmatprep.subr.bf16.mxu0 %v1857_v17  ;;  %3383 = vmatprep.subr.bf16.mxu1 %v1859_v21  ;;  %v1955_v17 = vld [vmem:[#allocation2 + $0x1ab8] sm:$0xff]  ;;  %v1952_v21 = vld [vmem:[#allocation2 + $0x1aa0] sm:$0xff] }
 0x539   :  { %3056 = vmatpush1.bf16.msra.mxu0 %v1856_v38  ;;  %3384 = vmatpush1.bf16.msra.mxu1 %v1858_v39  ;;  %v1954_v38 = vld [vmem:[#allocation2 + $0x1ab0] sm:$0xff]  ;;  %v1961_v39 = vld [vmem:[#allocation2 + $0x1ae8] sm:$0xff] }
 0x53a   :  { %3057 = vmatprep.subr.bf16.mxu0 %v1865_v52  ;;  %3385 = vmatprep.subr.bf16.mxu1 %v1867_v35  ;;  %v1963_v52 = vld [vmem:[#allocation2 + $0x1af8] sm:$0xff]  ;;  %v1960_v35 = vld [vmem:[#allocation2 + $0x1ae0] sm:$0xff] }
 0x53d   :  { %3058 = vmatpush1.bf16.msra.mxu0 %v1864_v48  ;;  %3386 = vmatpush1.bf16.msra.mxu1 %v1866_v10  ;;  %v1962_v48 = vld [vmem:[#allocation2 + $0x1af0] sm:$0xff]  ;;  %v1969_v10 = vld [vmem:[#allocation2 + $0x1b28] sm:$0xff] }
 0x53e   :  { %3068 = vmatprep.subr.bf16.mxu0 %v1873_v16  ;;  %3396 = vmatprep.subr.bf16.mxu1 %v1875_v62  ;;  %v1971_v16 = vld [vmem:[#allocation2 + $0x1b38] sm:$0xff]  ;;  %v1968_v62 = vld [vmem:[#allocation2 + $0x1b20] sm:$0xff] }
 0x540   :  { %3060 = vmatmul.mubr.bf16.vlgmr.msra.gmra.mrb[20].mxu0 %v6548_v61  ;;  %3388 = vmatmul.mubr.bf16.vlgmr.msra.gmra.mrb[20].mxu1 %v6548_v61  ;;  %v1899_v61 = vld [vmem:[#allocation2 + $0x18f8] sm:$0xff] }
 0x541   :  { %3069 = vmatpush1.bf16.msra.mxu0 %v1872_v13  ;;  %3397 = vmatpush1.bf16.msra.mxu1 %v1874_v11  ;;  %v1970_v13 = vld [vmem:[#allocation2 + $0x1b30] sm:$0xff]  ;;  %v1977_v11 = vld [vmem:[#allocation2 + $0x1b68] sm:$0xff] }
 0x542   :  { %3070 = vmatprep.subr.bf16.mxu0 %v1881_v14  ;;  %3398 = vmatprep.subr.bf16.mxu1 %v1883_v4  ;;  %v1979_v14 = vld [vmem:[#allocation2 + $0x1b78] sm:$0xff]  ;;  %v1976_v4 = vld [vmem:[#allocation2 + $0x1b60] sm:$0xff] }
 0x543   :  { %3100 = vmatprep.mubr.bf16.mxu0 %v6552_v49  ;;  %3428 = vmatprep.mubr.bf16.mxu1 %v6552_v49  ;;  %v1904_v49 = vld [vmem:[#allocation2 + $0x1920] sm:$0xff] }
 0x545   :  { %3071 = vmatpush1.bf16.msra.mxu0 %v1880_v40  ;;  %3399 = vmatpush1.bf16.msra.mxu1 %v1882_v47  ;;  %v1978_v40 = vld [vmem:[#allocation2 + $0x1b70] sm:$0xff]  ;;  %v1985_v47 = vld [vmem:[#allocation2 + $0x1ba8] sm:$0xff] }
 0x546   :  { %3072 = vmatprep.subr.bf16.mxu0 %v1889_v25  ;;  %3400 = vmatprep.subr.bf16.mxu1 %v1891_v30  ;;  %v1987_v25 = vld [vmem:[#allocation2 + $0x1bb8] sm:$0xff]  ;;  %v1984_v30 = vld [vmem:[#allocation2 + $0x1ba0] sm:$0xff] }
 0x549   :  { %3073 = vmatpush1.bf16.msra.mxu0 %v1888_v44  ;;  %3401 = vmatpush1.bf16.msra.mxu1 %v1890_v6  ;;  %v1986_v44 = vld [vmem:[#allocation2 + $0x1bb0] sm:$0xff]  ;;  %v1993_v6 = vld [vmem:[#allocation2 + $0x1be8] sm:$0xff] }
 0x54a   :  { %3074 = vmatprep.subr.bf16.mxu0 %v1897_v55  ;;  %3402 = vmatprep.subr.bf16.mxu1 %v1899_v61  ;;  %v1995_v55 = vld [vmem:[#allocation2 + $0x1bf8] sm:$0xff]  ;;  %v1992_v61 = vld [vmem:[#allocation2 + $0x1be0] sm:$0xff] }
 0x54d   :  { %3075 = vmatpush1.bf16.msra.mxu0 %v1896_v15  ;;  %3403 = vmatpush1.bf16.msra.mxu1 %v1898_v29  ;;  %v1994_v15 = vld [vmem:[#allocation2 + $0x1bf0] sm:$0xff]  ;;  %v2001_v29 = vld [vmem:[#allocation2 + $0x1c28] sm:$0xff] }
 0x54e   :  { %3076 = vmatprep.subr.bf16.mxu0 %v1905_v3  ;;  %3404 = vmatprep.subr.bf16.mxu1 %v1907_v32  ;;  %v2003_v3 = vld [vmem:[#allocation2 + $0x1c38] sm:$0xff]  ;;  %v2000_v32 = vld [vmem:[#allocation2 + $0x1c20] sm:$0xff] }
 0x551   :  { %3077 = vmatpush1.bf16.msra.mxu0 %v1904_v49  ;;  %3405 = vmatpush1.bf16.msra.mxu1 %v1906_v57  ;;  %v2002_v49 = vld [vmem:[#allocation2 + $0x1c30] sm:$0xff]  ;;  %v2009_v57 = vld [vmem:[#allocation2 + $0x1c68] sm:$0xff] }
 0x552   :  { %3078 = vmatprep.subr.bf16.mxu0 %v1913_v42  ;;  %3406 = vmatprep.subr.bf16.mxu1 %v1915_v1  ;;  %v2011_v42 = vld [vmem:[#allocation2 + $0x1c78] sm:$0xff]  ;;  %v2008_v1 = vld [vmem:[#allocation2 + $0x1c60] sm:$0xff] }
 0x555   :  { %3079 = vmatpush1.bf16.msra.mxu0 %v1912_v20  ;;  %3407 = vmatpush1.bf16.msra.mxu1 %v1914_v58  ;;  %v2010_v20 = vld [vmem:[#allocation2 + $0x1c70] sm:$0xff]  ;;  %v2017_v58 = vld [vmem:[#allocation2 + $0x1ca8] sm:$0xff] }
 0x556   :  { %3080 = vmatprep.subr.bf16.mxu0 %v1921_v27  ;;  %3408 = vmatprep.subr.bf16.mxu1 %v1923_v33  ;;  %v2019_v27 = vld [vmem:[#allocation2 + $0x1cb8] sm:$0xff]  ;;  %v2016_v33 = vld [vmem:[#allocation2 + $0x1ca0] sm:$0xff] }
 0x559   :  { %3081 = vmatpush1.bf16.msra.mxu0 %v1920_v50  ;;  %3409 = vmatpush1.bf16.msra.mxu1 %v1922_v36  ;;  %v2018_v50 = vld [vmem:[#allocation2 + $0x1cb0] sm:$0xff]  ;;  %v2025_v36 = vld [vmem:[#allocation2 + $0x1ce8] sm:$0xff] }
 0x55a   :  { %3082 = vmatprep.subr.bf16.mxu0 %v1929_v2  ;;  %3410 = vmatprep.subr.bf16.mxu1 %v1931_v46  ;;  %v2024_v2 = vld [vmem:[#allocation2 + $0x1ce0] sm:$0xff]  ;;  %v2026_v46 = vld [vmem:[#allocation2 + $0x1cf0] sm:$0xff] }
 0x55d   :  { %3083 = vmatpush1.bf16.msra.mxu0 %v1928_v28  ;;  %3411 = vmatpush1.bf16.msra.mxu1 %v1930_v0  ;;  %v2033_v28 = vld [vmem:[#allocation2 + $0x1d28] sm:$0xff]  ;;  %v2035_v0 = vld [vmem:[#allocation2 + $0x1d38] sm:$0xff] }
 0x55e   :  { %3084 = vmatprep.subr.bf16.mxu0 %v1937_v43  ;;  %3412 = vmatprep.subr.bf16.mxu1 %v1939_v56  ;;  %v2034_v43 = vld [vmem:[#allocation2 + $0x1d30] sm:$0xff]  ;;  %v2041_v56 = vld [vmem:[#allocation2 + $0x1d68] sm:$0xff] }
 0x561   :  { %3085 = vmatpush1.bf16.msra.mxu0 %v1936_v22  ;;  %3413 = vmatpush1.bf16.msra.mxu1 %v1938_v31  ;;  %v2043_v22 = vld [vmem:[#allocation2 + $0x1d78] sm:$0xff]  ;;  %v2040_v31 = vld [vmem:[#allocation2 + $0x1d60] sm:$0xff] }
 0x562   :  { %3086 = vmatprep.subr.bf16.mxu0 %v1945_v26  ;;  %3414 = vmatprep.subr.bf16.mxu1 %v1947_v19  ;;  %v2042_v26 = vld [vmem:[#allocation2 + $0x1d70] sm:$0xff]  ;;  %v2049_v19 = vld [vmem:[#allocation2 + $0x1da8] sm:$0xff] }
 0x565   :  { %3087 = vmatpush1.bf16.msra.mxu0 %v1944_v54  ;;  %3415 = vmatpush1.bf16.msra.mxu1 %v1946_v45  ;;  %v2051_v54 = vld [vmem:[#allocation2 + $0x1db8] sm:$0xff]  ;;  %v2048_v45 = vld [vmem:[#allocation2 + $0x1da0] sm:$0xff] }
 0x566   :  { %3088 = vmatprep.subr.bf16.mxu0 %v1953_v12  ;;  %3416 = vmatprep.subr.bf16.mxu1 %v1955_v17  ;;  %v2050_v12 = vld [vmem:[#allocation2 + $0x1db0] sm:$0xff]  ;;  %v2057_v17 = vld [vmem:[#allocation2 + $0x1de8] sm:$0xff] }
 0x569   :  { %3089 = vmatpush1.bf16.msra.mxu0 %v1952_v21  ;;  %3417 = vmatpush1.bf16.msra.mxu1 %v1954_v38  ;;  %v2059_v21 = vld [vmem:[#allocation2 + $0x1df8] sm:$0xff]  ;;  %v2056_v38 = vld [vmem:[#allocation2 + $0x1de0] sm:$0xff] }
 0x56a   :  { %3090 = vmatprep.subr.bf16.mxu0 %v1961_v39  ;;  %3418 = vmatprep.subr.bf16.mxu1 %v1963_v52  ;;  %v2058_v39 = vld [vmem:[#allocation2 + $0x1df0] sm:$0xff]  ;;  %v2065_v52 = vld [vmem:[#allocation2 + $0x1e28] sm:$0xff] }
 0x56d   :  { %3091 = vmatpush1.bf16.msra.mxu0 %v1960_v35  ;;  %3419 = vmatpush1.bf16.msra.mxu1 %v1962_v48  ;;  %v2067_v35 = vld [vmem:[#allocation2 + $0x1e38] sm:$0xff]  ;;  %v2064_v48 = vld [vmem:[#allocation2 + $0x1e20] sm:$0xff] }
 0x56e   :  { %3092 = vmatprep.subr.bf16.mxu0 %v1969_v10  ;;  %3420 = vmatprep.subr.bf16.mxu1 %v1971_v16  ;;  %v2066_v10 = vld [vmem:[#allocation2 + $0x1e30] sm:$0xff]  ;;  %v2073_v16 = vld [vmem:[#allocation2 + $0x1e68] sm:$0xff] }
 0x571   :  { %3093 = vmatpush1.bf16.msra.mxu0 %v1968_v62  ;;  %3421 = vmatpush1.bf16.msra.mxu1 %v1970_v13  ;;  %v2075_v62 = vld [vmem:[#allocation2 + $0x1e78] sm:$0xff]  ;;  %v2072_v13 = vld [vmem:[#allocation2 + $0x1e60] sm:$0xff] }
 0x572   :  { %3094 = vmatprep.subr.bf16.mxu0 %v1977_v11  ;;  %3422 = vmatprep.subr.bf16.mxu1 %v1979_v14  ;;  %v2074_v11 = vld [vmem:[#allocation2 + $0x1e70] sm:$0xff]  ;;  %v2081_v14 = vld [vmem:[#allocation2 + $0x1ea8] sm:$0xff] }
 0x575   :  { %3095 = vmatpush1.bf16.msra.mxu0 %v1976_v4  ;;  %3423 = vmatpush1.bf16.msra.mxu1 %v1978_v40  ;;  %v2083_v4 = vld [vmem:[#allocation2 + $0x1eb8] sm:$0xff]  ;;  %v2080_v40 = vld [vmem:[#allocation2 + $0x1ea0] sm:$0xff] }
 0x576   :  { %3096 = vmatprep.subr.bf16.mxu0 %v1985_v47  ;;  %3424 = vmatprep.subr.bf16.mxu1 %v1987_v25  ;;  %v2082_v47 = vld [vmem:[#allocation2 + $0x1eb0] sm:$0xff]  ;;  %v2089_v25 = vld [vmem:[#allocation2 + $0x1ee8] sm:$0xff] }
 0x579   :  { %3097 = vmatpush1.bf16.msra.mxu0 %v1984_v30  ;;  %3425 = vmatpush1.bf16.msra.mxu1 %v1986_v44  ;;  %v2091_v30 = vld [vmem:[#allocation2 + $0x1ef8] sm:$0xff]  ;;  %v2088_v44 = vld [vmem:[#allocation2 + $0x1ee0] sm:$0xff] }
 0x57a   :  { %3098 = vmatprep.subr.bf16.mxu0 %v1993_v6  ;;  %3426 = vmatprep.subr.bf16.mxu1 %v1995_v55  ;;  %v2090_v6 = vld [vmem:[#allocation2 + $0x1ef0] sm:$0xff]  ;;  %v2097_v55 = vld [vmem:[#allocation2 + $0x1f28] sm:$0xff] }
 0x57d   :  { %3099 = vmatpush1.bf16.msra.mxu0 %v1992_v61  ;;  %3427 = vmatpush1.bf16.msra.mxu1 %v1994_v15  ;;  %v2099_v61 = vld [vmem:[#allocation2 + $0x1f38] sm:$0xff]  ;;  %v2096_v15 = vld [vmem:[#allocation2 + $0x1f20] sm:$0xff] }
 0x57e   :  { %3109 = vmatprep.subr.bf16.mxu0 %v2001_v29  ;;  %3437 = vmatprep.subr.bf16.mxu1 %v2003_v3  ;;  %v2098_v29 = vld [vmem:[#allocation2 + $0x1f30] sm:$0xff]  ;;  %v2105_v3 = vld [vmem:[#allocation2 + $0x1f68] sm:$0xff] }
 0x580   :  { %3101 = vmatmul.mubr.bf16.vlgmr.msra.gmra.mrb[20].mxu0 %v6560_v59  ;;  %3429 = vmatmul.mubr.bf16.vlgmr.msra.gmra.mrb[20].mxu1 %v6560_v59  ;;  %v2027_v59 = vld [vmem:[#allocation2 + $0x1cf8] sm:$0xff] }
 0x581   :  { %3110 = vmatpush1.bf16.msra.mxu0 %v2000_v32  ;;  %3438 = vmatpush1.bf16.msra.mxu1 %v2002_v49  ;;  %v2107_v32 = vld [vmem:[#allocation2 + $0x1f78] sm:$0xff]  ;;  %v2104_v49 = vld [vmem:[#allocation2 + $0x1f60] sm:$0xff] }
 0x582   :  { %3111 = vmatprep.subr.bf16.mxu0 %v2009_v57  ;;  %3439 = vmatprep.subr.bf16.mxu1 %v2011_v42  ;;  %v2106_v57 = vld [vmem:[#allocation2 + $0x1f70] sm:$0xff]  ;;  %v2113_v42 = vld [vmem:[#allocation2 + $0x1fa8] sm:$0xff] }
 0x583   :  { %3141 = vmatprep.mubr.bf16.mxu0 %v6564_v51  ;;  %3469 = vmatprep.mubr.bf16.mxu1 %v6564_v51  ;;  %v2032_v51 = vld [vmem:[#allocation2 + $0x1d20] sm:$0xff] }
 0x585   :  { %3112 = vmatpush1.bf16.msra.mxu0 %v2008_v1  ;;  %3440 = vmatpush1.bf16.msra.mxu1 %v2010_v20  ;;  %v2115_v1 = vld [vmem:[#allocation2 + $0x1fb8] sm:$0xff]  ;;  %v2112_v20 = vld [vmem:[#allocation2 + $0x1fa0] sm:$0xff] }
 0x586   :  { %3113 = vmatprep.subr.bf16.mxu0 %v2017_v58  ;;  %3441 = vmatprep.subr.bf16.mxu1 %v2019_v27  ;;  %v2114_v58 = vld [vmem:[#allocation2 + $0x1fb0] sm:$0xff]  ;;  %v2121_v27 = vld [vmem:[#allocation2 + $0x1fe8] sm:$0xff] }
 0x589   :  { %3114 = vmatpush1.bf16.msra.mxu0 %v2016_v33  ;;  %3442 = vmatpush1.bf16.msra.mxu1 %v2018_v50  ;;  %v2123_v33 = vld [vmem:[#allocation2 + $0x1ff8] sm:$0xff]  ;;  %v2120_v50 = vld [vmem:[#allocation2 + $0x1fe0] sm:$0xff] }
 0x58a   :  { %3115 = vmatprep.subr.bf16.mxu0 %v2025_v36  ;;  %3443 = vmatprep.subr.bf16.mxu1 %v2027_v59  ;;  %v2122_v36 = vld [vmem:[#allocation2 + $0x1ff0] sm:$0xff]  ;;  %v5699_v59 = vld [vmem:[#allocation12] sm:$0xff] }
 0x58d   :  { %3116 = vmatpush1.bf16.msra.mxu0 %v2024_v2  ;;  %3444 = vmatpush1.bf16.msra.mxu1 %v2026_v46  ;;  %v2145_v2 = vrot.slane %v5699_v59, %v6143_v18  ;;  %v2153_v46 = vrot.slane %v5699_v59, %v6149_v23 }
 0x58e   :  { %3117 = vmatprep.subr.bf16.mxu0 %v2033_v28  ;;  %3445 = vmatprep.subr.bf16.mxu1 %v2035_v0  ;;  %v2149_v28 = vrot.slane %v5699_v59, %v6151_v24  ;;  %v2157_v0 = vrot.slane %v5699_v59, %v6160_v34 }
 0x591   :  { %3118 = vmatpush1.bf16.msra.mxu0 %v2032_v51  ;;  %3446 = vmatpush1.bf16.msra.mxu1 %v2034_v43 }
 0x592   :  { %3119 = vmatprep.subr.bf16.mxu0 %v2041_v56  ;;  %3447 = vmatprep.subr.bf16.mxu1 %v2043_v22 }
 0x595   :  { %3120 = vmatpush1.bf16.msra.mxu0 %v2040_v31  ;;  %3448 = vmatpush1.bf16.msra.mxu1 %v2042_v26 }
 0x596   :  { %3121 = vmatprep.subr.bf16.mxu0 %v2049_v19  ;;  %3449 = vmatprep.subr.bf16.mxu1 %v2051_v54 }
 0x599   :  { %3122 = vmatpush1.bf16.msra.mxu0 %v2048_v45  ;;  %3450 = vmatpush1.bf16.msra.mxu1 %v2050_v12 }
 0x59a   :  { %3123 = vmatprep.subr.bf16.mxu0 %v2057_v17  ;;  %3451 = vmatprep.subr.bf16.mxu1 %v2059_v21 }
 0x59d   :  { %3124 = vmatpush1.bf16.msra.mxu0 %v2056_v38  ;;  %3452 = vmatpush1.bf16.msra.mxu1 %v2058_v39 }
 0x59e   :  { %3125 = vmatprep.subr.bf16.mxu0 %v2065_v52  ;;  %3453 = vmatprep.subr.bf16.mxu1 %v2067_v35 }
 0x5a1   :  { %3126 = vmatpush1.bf16.msra.mxu0 %v2064_v48  ;;  %3454 = vmatpush1.bf16.msra.mxu1 %v2066_v10 }
 0x5a2   :  { %3127 = vmatprep.subr.bf16.mxu0 %v2073_v16  ;;  %3455 = vmatprep.subr.bf16.mxu1 %v2075_v62 }
 0x5a5   :  { %3128 = vmatpush1.bf16.msra.mxu0 %v2072_v13  ;;  %3456 = vmatpush1.bf16.msra.mxu1 %v2074_v11 }
 0x5a6   :  { %3129 = vmatprep.subr.bf16.mxu0 %v2081_v14  ;;  %3457 = vmatprep.subr.bf16.mxu1 %v2083_v4 }
 0x5a9   :  { %3130 = vmatpush1.bf16.msra.mxu0 %v2080_v40  ;;  %3458 = vmatpush1.bf16.msra.mxu1 %v2082_v47 }
 0x5aa   :  { %3131 = vmatprep.subr.bf16.mxu0 %v2089_v25  ;;  %3459 = vmatprep.subr.bf16.mxu1 %v2091_v30 }
 0x5ad   :  { %3132 = vmatpush1.bf16.msra.mxu0 %v2088_v44  ;;  %3460 = vmatpush1.bf16.msra.mxu1 %v2090_v6 }
 0x5ae   :  { %3133 = vmatprep.subr.bf16.mxu0 %v2097_v55  ;;  %3461 = vmatprep.subr.bf16.mxu1 %v2099_v61 }
 0x5b1   :  { %3134 = vmatpush1.bf16.msra.mxu0 %v2096_v15  ;;  %3462 = vmatpush1.bf16.msra.mxu1 %v2098_v29 }
 0x5b2   :  { %3135 = vmatprep.subr.bf16.mxu0 %v2105_v3  ;;  %3463 = vmatprep.subr.bf16.mxu1 %v2107_v32 }
 0x5b5   :  { %3136 = vmatpush1.bf16.msra.mxu0 %v2104_v49  ;;  %3464 = vmatpush1.bf16.msra.mxu1 %v2106_v57 }
 0x5b6   :  { %3137 = vmatprep.subr.bf16.mxu0 %v2113_v42  ;;  %3465 = vmatprep.subr.bf16.mxu1 %v2115_v1 }
 0x5b9   :  { %3138 = vmatpush1.bf16.msra.mxu0 %v2112_v20  ;;  %3466 = vmatpush1.bf16.msra.mxu1 %v2114_v58 }
 0x5ba   :  { %3139 = vmatprep.subr.bf16.mxu0 %v2121_v27  ;;  %3467 = vmatprep.subr.bf16.mxu1 %v2123_v33 }
 0x5bd   :  { %3140 = vmatpush1.bf16.msra.mxu0 %v2120_v50  ;;  %3468 = vmatpush1.bf16.msra.mxu1 %v2122_v36 }
 0x5c0   :  { %3142 = vmatmul.mubr.bf16.vlgmr.msra.gmra.mrb[20].mxu0 %v6572_v53  ;;  %3470 = vmatmul.mubr.bf16.vlgmr.msra.gmra.mrb[20].mxu1 %v6572_v53 }
 0x693   :  { %v3143_v51 = vpop.f32.mrb[20].mxu0  ;;  %v3471_v43 = vpop.f32.mrb[20].mxu1 }
 0x694   :  { %v6676_v56 = vadd.f32 %v3143_v51, %v2145_v2  ;;  %v6678_v22 = vadd.f32 %v3471_v43, %v2153_v46  ;;  %v3145_v31 = vpop.f32.mrb[21].mxu0  ;;  %v3473_v26 = vpop.f32.mrb[21].mxu1 }
 0x695   :  { %v6680_v19 = vadd.f32 %v3145_v31, %v2149_v28  ;;  %v6682_v53 = vadd.f32 %v3473_v26, %v2157_v0  ;;  %v3147_v54 = vpop.f32.mrb[22].mxu0  ;;  %v3475_v45 = vpop.f32.mrb[22].mxu1 }
 0x696   :  { %v3506_v12 = vand.u32 2147483647, %v6676_v56  ;;  %v3148_v17 = vpop.f32.mrb[23].mxu0  ;;  %v3476_v21 = vpop.f32.mrb[23].mxu1  ;;  %v3508_v38 = vand.u32 2147483647, %v6678_v22  ;;  %vm3490_vm9 = vcmp.ne.f32.partialorder %v6676_v56, %v6676_v56  ;;  %vm3492_vm10 = vcmp.ne.f32.partialorder %v6678_v22, %v6678_v22 }
 0x697   :  { %v3507_v52 = vand.u32 2147483647, %v6680_v19  ;;  %v3509_v48 = vand.u32 2147483647, %v6682_v53  ;;  %v3482_v58 = vmax.f32 %v6676_v56, 0.0  ;;  %v3484_v27 = vmax.f32 %v6678_v22, 0.0 }
 0x698   :  { %v3514_v39 = vsub.f32 0.0, %v3506_v12  ;;  %v3516_v35 = vsub.f32 0.0, %v3508_v38  ;;  %v3483_v17 = vmax.f32 %v6680_v19, 0.0  ;;  %vm3491_vm15 = vcmp.ne.f32.partialorder %v6680_v19, %v6680_v19 }
 0x699   :  { %v3515_v16 = vsub.f32 0.0, %v3507_v52  ;;  %v3517_v13 = vsub.f32 0.0, %v3509_v48  ;;  %vm3493_vm0 = vcmp.ne.f32.partialorder %v6682_v53, %v6682_v53 }
 0x69a   :  { %v3526_v10 = vmul.f32 1.442695, %v3514_v39  ;;  %v3530_v62 = vmul.f32 1.442695, %v3516_v35 }
 0x69b   :  { %v3528_v11 = vmul.f32 1.442695, %v3515_v16  ;;  %v3532_v14 = vmul.f32 1.442695, %v3517_v13 }
 0x69c   :  { %5683 = vpow2.f32 %v3526_v10  ;;  %v3485_v10 = vmax.f32 %v6682_v53, 0.0 }
 0x69d   :  { %5685 = vpow2.f32 %v3530_v62 }
 0x69e   :  { %5687 = vpow2.f32 %v3528_v11 }
 0x69f   :  { %5689 = vpow2.f32 %v3532_v14 }
 0x6a6   :  { %v5684_v4 = vpop.eup %5683 }
 0x6a7   :  { %v5686_v40 = vpop.eup %5685  ;;  %v3570_v47 = vadd.f32 1.0, %v5684_v4  ;;  %v3573_v61 = vmul.f32 -0.5, %v5684_v4  ;;  %v3576_v49 = vand.u32 2147483647, %v5684_v4 }
 0x6a8   :  { %v5688_v25 = vpop.eup %5687  ;;  %v3588_v30 = vadd.f32 1.0, %v5686_v40  ;;  %v3591_v15 = vmul.f32 -0.5, %v5686_v40  ;;  %v3594_v42 = vand.u32 2147483647, %v5686_v40 }
 0x6a9   :  { %v5690_v44 = vpop.eup %5689  ;;  %5691 = vlog2.f32 %v3570_v47  ;;  %v3579_v6 = vadd.f32 1.0, %v5688_v25  ;;  %v3582_v29 = vmul.f32 -0.5, %v5688_v25  ;;  %v3574_v3 = vadd.f32 1.0, %v3573_v61 }
 0x6aa   :  { %5693 = vlog2.f32 %v3588_v30  ;;  %v3597_v55 = vadd.f32 1.0, %v5690_v44  ;;  %v3600_v32 = vmul.f32 -0.5, %v5690_v44  ;;  %v3592_v57 = vadd.f32 1.0, %v3591_v15 }
 0x6ab   :  { %5695 = vlog2.f32 %v3579_v6  ;;  %v3583_v1 = vadd.f32 1.0, %v3582_v29  ;;  %v3585_v33 = vand.u32 2147483647, %v5688_v25  ;;  %v3575_v59 = vmul.f32 %v5684_v4, %v3574_v3 }
 0x6ac   :  { %5697 = vlog2.f32 %v3597_v55  ;;  %v3601_v2 = vadd.f32 1.0, %v3600_v32  ;;  %vm3577_vm11 = vcmp.lt.f32.partialorder %v3576_v49, 0.0004427343  ;;  %v3593_v0 = vmul.f32 %v5686_v40, %v3592_v57 }
 0x6ad   :  { %v3603_v51 = vand.u32 2147483647, %v5690_v44  ;;  %vm3595_vm12 = vcmp.lt.f32.partialorder %v3594_v42, 0.0004427343  ;;  %v3584_v26 = vmul.f32 %v5688_v25, %v3583_v1  ;;  %vm3586_vm13 = vcmp.lt.f32.partialorder %v3585_v33, 0.0004427343 }
 0x6ae   :  { %v3602_v52 = vmul.f32 %v5690_v44, %v3601_v2 }
 0x6af   :  { %vm3604_vm14 = vcmp.lt.f32.partialorder %v3603_v51, 0.0004427343 }
 0x6b3   :  { %v5692_v20 = vpop.eup %5691 }
 0x6b4   :  { %v5694_v50 = vpop.eup %5693  ;;  %v3572_v36 = vmul.f32 0.6931472, %v5692_v20 }
 0x6b5   :  { %v5696_v46 = vpop.eup %5695  ;;  %v3590_v28 = vmul.f32 0.6931472, %v5694_v50 }
 0x6b6   :  { %v3578_v43 = vsel %vm3577_vm11, %v3575_v59, %v3572_v36  ;;  %v3581_v31 = vmul.f32 0.6931472, %v5696_v46  ;;  %v5698_v54 = vpop.eup %5697 }
 0x6b7   :  { %v3610_v45 = vadd.f32 %v3578_v43, %v3482_v58  ;;  %v3596_v12 = vsel %vm3595_vm12, %v3593_v0, %v3590_v28  ;;  %v3599_v39 = vmul.f32 0.6931472, %v5698_v54 }
 0x6b8   :  { %v3612_v21 = vadd.f32 %v3596_v12, %v3484_v27  ;;  %v3587_v38 = vsel %vm3586_vm13, %v3584_v26, %v3581_v31 }
 0x6b9   :  { %v6699_v35 = vsel %vm3490_vm9, %v6676_v56, %v3610_v45  ;;  %v3611_v48 = vadd.f32 %v3587_v38, %v3483_v17  ;;  %v3605_v62 = vsel %vm3604_vm14, %v3602_v52, %v3599_v39 }
 0x6ba   :  { %v6706_v16 = vsel %vm3492_vm10, %v6678_v22, %v3612_v21  ;;  %v3613_v11 = vadd.f32 %v3605_v62, %v3485_v10 }
 0x6bb   :  { %v6711_v13 = vsel %vm3491_vm15, %v6680_v19, %v3611_v48 }
 0x6bc   :  { %v6716_v56 = vsel %vm3493_vm0, %v6682_v53, %v3613_v11 }
 0x6bd   :  { %5918 = dma.done.wait [#allocation5 + $0x1], 65536 }
 0x6be   :  { %5919 = vsyncadd [#allocation5 + $0x1], 4294901760  ;;  %v6720_v22 = vpack.c.bf16 %v6647_v60, %v6647_v60  ;;  %v3635_v14 = vld [vmem:[#allocation3 + $0x8] sm:$0xff]  ;;  %v3637_v19 = vld [vmem:[#allocation3 + $0x18] sm:$0xff] }
 0x6bf   :  { %v3634_v4 = vld [vmem:[#allocation3] sm:$0xff]  ;;  %4188 = vmatprep.subr.bf16.mxu0 %v3635_v14  ;;  %4352 = vmatprep.subr.bf16.mxu1 %v3637_v19  ;;  %v3636_v40 = vld [vmem:[#allocation3 + $0x10] sm:$0xff]  ;;  %v3643_v47 = vld [vmem:[#allocation3 + $0x48] sm:$0xff] }
 0x6c0   :  { %4220 = vmatprep.mubr.bf16.mxu0 %v6720_v22  ;;  %4384 = vmatprep.mubr.bf16.mxu1 %v6720_v22  ;;  %v3645_v25 = vld [vmem:[#allocation3 + $0x58] sm:$0xff]  ;;  %v3642_v53 = vld [vmem:[#allocation3 + $0x40] sm:$0xff]  ;;  %v3644_v30 = vld [vmem:[#allocation3 + $0x50] sm:$0xff] }
 0x6c1   :  { %4189 = vmatpush1.bf16.msra.mxu0 %v3634_v4  ;;  %4353 = vmatpush1.bf16.msra.mxu1 %v3636_v40  ;;  %v3651_v60 = vld [vmem:[#allocation3 + $0x88] sm:$0xff]  ;;  %v3653_v44 = vld [vmem:[#allocation3 + $0x98] sm:$0xff]  ;;  %v3650_v6 = vld [vmem:[#allocation3 + $0x80] sm:$0xff] }
 0x6c2   :  { %4190 = vmatprep.subr.bf16.mxu0 %v3643_v47  ;;  %4354 = vmatprep.subr.bf16.mxu1 %v3645_v25  ;;  %v3652_v55 = vld [vmem:[#allocation3 + $0x90] sm:$0xff]  ;;  %v3659_v61 = vld [vmem:[#allocation3 + $0xc8] sm:$0xff]  ;;  %v3661_v15 = vld [vmem:[#allocation3 + $0xd8] sm:$0xff] }
 0x6c3   :  { %v3658_v29 = vld [vmem:[#allocation3 + $0xc0] sm:$0xff]  ;;  %v3660_v3 = vld [vmem:[#allocation3 + $0xd0] sm:$0xff]  ;;  %v3667_v32 = vld [vmem:[#allocation3 + $0x108] sm:$0xff] }
 0x6c4   :  { %v3669_v49 = vld [vmem:[#allocation3 + $0x118] sm:$0xff]  ;;  %v3666_v57 = vld [vmem:[#allocation3 + $0x100] sm:$0xff]  ;;  %v3668_v42 = vld [vmem:[#allocation3 + $0x110] sm:$0xff] }
 0x6c5   :  { %4191 = vmatpush1.bf16.msra.mxu0 %v3642_v53  ;;  %4355 = vmatpush1.bf16.msra.mxu1 %v3644_v30  ;;  %v3675_v1 = vld [vmem:[#allocation3 + $0x148] sm:$0xff]  ;;  %v3677_v20 = vld [vmem:[#allocation3 + $0x158] sm:$0xff]  ;;  %v3674_v58 = vld [vmem:[#allocation3 + $0x140] sm:$0xff] }
 0x6c6   :  { %4192 = vmatprep.subr.bf16.mxu0 %v3651_v60  ;;  %4356 = vmatprep.subr.bf16.mxu1 %v3653_v44  ;;  %v3676_v27 = vld [vmem:[#allocation3 + $0x150] sm:$0xff]  ;;  %v3683_v33 = vld [vmem:[#allocation3 + $0x188] sm:$0xff]  ;;  %v3685_v50 = vld [vmem:[#allocation3 + $0x198] sm:$0xff] }
 0x6c7   :  { %v3682_v36 = vld [vmem:[#allocation3 + $0x180] sm:$0xff]  ;;  %v3684_v59 = vld [vmem:[#allocation3 + $0x190] sm:$0xff]  ;;  %v3691_v2 = vld [vmem:[#allocation3 + $0x1c8] sm:$0xff] }
 0x6c8   :  { %v3693_v46 = vld [vmem:[#allocation3 + $0x1d8] sm:$0xff]  ;;  %v3690_v28 = vld [vmem:[#allocation3 + $0x1c0] sm:$0xff]  ;;  %v3692_v0 = vld [vmem:[#allocation3 + $0x1d0] sm:$0xff] }
 0x6c9   :  { %4193 = vmatpush1.bf16.msra.mxu0 %v3650_v6  ;;  %4357 = vmatpush1.bf16.msra.mxu1 %v3652_v55  ;;  %v3699_v51 = vld [vmem:[#allocation3 + $0x208] sm:$0xff]  ;;  %v3701_v43 = vld [vmem:[#allocation3 + $0x218] sm:$0xff]  ;;  %v3698_v31 = vld [vmem:[#allocation3 + $0x200] sm:$0xff] }
 0x6ca   :  { %4194 = vmatprep.subr.bf16.mxu0 %v3659_v61  ;;  %4358 = vmatprep.subr.bf16.mxu1 %v3661_v15  ;;  %v3700_v26 = vld [vmem:[#allocation3 + $0x210] sm:$0xff]  ;;  %v3707_v54 = vld [vmem:[#allocation3 + $0x248] sm:$0xff]  ;;  %v3709_v45 = vld [vmem:[#allocation3 + $0x258] sm:$0xff] }
 0x6cb   :  { %v3706_v12 = vld [vmem:[#allocation3 + $0x240] sm:$0xff]  ;;  %v3708_v17 = vld [vmem:[#allocation3 + $0x250] sm:$0xff]  ;;  %v3715_v21 = vld [vmem:[#allocation3 + $0x288] sm:$0xff] }
 0x6cc   :  { %v3717_v38 = vld [vmem:[#allocation3 + $0x298] sm:$0xff]  ;;  %v3714_v39 = vld [vmem:[#allocation3 + $0x280] sm:$0xff]  ;;  %v3716_v52 = vld [vmem:[#allocation3 + $0x290] sm:$0xff] }
 0x6cd   :  { %4195 = vmatpush1.bf16.msra.mxu0 %v3658_v29  ;;  %4359 = vmatpush1.bf16.msra.mxu1 %v3660_v3  ;;  %v3723_v48 = vld [vmem:[#allocation3 + $0x2c8] sm:$0xff]  ;;  %v3725_v10 = vld [vmem:[#allocation3 + $0x2d8] sm:$0xff]  ;;  %v3722_v62 = vld [vmem:[#allocation3 + $0x2c0] sm:$0xff] }
 0x6ce   :  { %4196 = vmatprep.subr.bf16.mxu0 %v3667_v32  ;;  %4360 = vmatprep.subr.bf16.mxu1 %v3669_v49  ;;  %v3724_v11 = vld [vmem:[#allocation3 + $0x2d0] sm:$0xff]  ;;  %v3731_v14 = vld [vmem:[#allocation3 + $0x308] sm:$0xff]  ;;  %v3733_v19 = vld [vmem:[#allocation3 + $0x318] sm:$0xff] }
 0x6cf   :  { %v3730_v4 = vld [vmem:[#allocation3 + $0x300] sm:$0xff]  ;;  %v3732_v40 = vld [vmem:[#allocation3 + $0x310] sm:$0xff]  ;;  %v3739_v47 = vld [vmem:[#allocation3 + $0x348] sm:$0xff] }
 0x6d0   :  { %v3741_v25 = vld [vmem:[#allocation3 + $0x358] sm:$0xff]  ;;  %v3738_v53 = vld [vmem:[#allocation3 + $0x340] sm:$0xff]  ;;  %v3740_v30 = vld [vmem:[#allocation3 + $0x350] sm:$0xff] }
 0x6d1   :  { %4197 = vmatpush1.bf16.msra.mxu0 %v3666_v57  ;;  %4361 = vmatpush1.bf16.msra.mxu1 %v3668_v42  ;;  %v3747_v60 = vld [vmem:[#allocation3 + $0x388] sm:$0xff]  ;;  %v3749_v44 = vld [vmem:[#allocation3 + $0x398] sm:$0xff]  ;;  %v3746_v6 = vld [vmem:[#allocation3 + $0x380] sm:$0xff]  ;;  %v6726_v57 = vpack.c.bf16 %v6635_v41, %v6635_v41 }
 0x6d2   :  { %4198 = vmatprep.subr.bf16.mxu0 %v3675_v1  ;;  %4362 = vmatprep.subr.bf16.mxu1 %v3677_v20  ;;  %v3748_v55 = vld [vmem:[#allocation3 + $0x390] sm:$0xff]  ;;  %v3755_v61 = vld [vmem:[#allocation3 + $0x3c8] sm:$0xff]  ;;  %v3757_v15 = vld [vmem:[#allocation3 + $0x3d8] sm:$0xff] }
 0x6d3   :  { %v3754_v29 = vld [vmem:[#allocation3 + $0x3c0] sm:$0xff]  ;;  %v3756_v3 = vld [vmem:[#allocation3 + $0x3d0] sm:$0xff]  ;;  %v3763_v32 = vld [vmem:[#allocation3 + $0x408] sm:$0xff] }
 0x6d4   :  { %v3765_v49 = vld [vmem:[#allocation3 + $0x418] sm:$0xff]  ;;  %v3762_v42 = vld [vmem:[#allocation3 + $0x400] sm:$0xff]  ;;  %v3764_v1 = vld [vmem:[#allocation3 + $0x410] sm:$0xff] }
 0x6d5   :  { %4199 = vmatpush1.bf16.msra.mxu0 %v3674_v58  ;;  %4363 = vmatpush1.bf16.msra.mxu1 %v3676_v27  ;;  %v3771_v20 = vld [vmem:[#allocation3 + $0x448] sm:$0xff]  ;;  %v3773_v58 = vld [vmem:[#allocation3 + $0x458] sm:$0xff]  ;;  %v6730_v27 = vpack.c.bf16 %v6652_v63, %v6652_v63  ;;  %v3770_v41 = vld [vmem:[#allocation3 + $0x440] sm:$0xff] }
 0x6d6   :  { %4200 = vmatprep.subr.bf16.mxu0 %v3683_v33  ;;  %4364 = vmatprep.subr.bf16.mxu1 %v3685_v50  ;;  %v3772_v33 = vld [vmem:[#allocation3 + $0x450] sm:$0xff]  ;;  %v3779_v50 = vld [vmem:[#allocation3 + $0x488] sm:$0xff]  ;;  %v3778_v63 = vld [vmem:[#allocation3 + $0x480] sm:$0xff] }
 0x6d9   :  { %4201 = vmatpush1.bf16.msra.mxu0 %v3682_v36  ;;  %4365 = vmatpush1.bf16.msra.mxu1 %v3684_v59  ;;  %v3781_v36 = vld [vmem:[#allocation3 + $0x498] sm:$0xff]  ;;  %v3780_v59 = vld [vmem:[#allocation3 + $0x490] sm:$0xff] }
 0x6da   :  { %4202 = vmatprep.subr.bf16.mxu0 %v3691_v2  ;;  %4366 = vmatprep.subr.bf16.mxu1 %v3693_v46  ;;  %v3787_v2 = vld [vmem:[#allocation3 + $0x4c8] sm:$0xff]  ;;  %v3789_v46 = vld [vmem:[#allocation3 + $0x4d8] sm:$0xff] }
 0x6dd   :  { %4203 = vmatpush1.bf16.msra.mxu0 %v3690_v28  ;;  %4367 = vmatpush1.bf16.msra.mxu1 %v3692_v0  ;;  %v3786_v28 = vld [vmem:[#allocation3 + $0x4c0] sm:$0xff]  ;;  %v3788_v0 = vld [vmem:[#allocation3 + $0x4d0] sm:$0xff] }
 0x6de   :  { %4204 = vmatprep.subr.bf16.mxu0 %v3699_v51  ;;  %4368 = vmatprep.subr.bf16.mxu1 %v3701_v43  ;;  %v3795_v51 = vld [vmem:[#allocation3 + $0x508] sm:$0xff]  ;;  %v3797_v43 = vld [vmem:[#allocation3 + $0x518] sm:$0xff] }
 0x6e1   :  { %4205 = vmatpush1.bf16.msra.mxu0 %v3698_v31  ;;  %4369 = vmatpush1.bf16.msra.mxu1 %v3700_v26  ;;  %v3794_v31 = vld [vmem:[#allocation3 + $0x500] sm:$0xff]  ;;  %v3796_v26 = vld [vmem:[#allocation3 + $0x510] sm:$0xff] }
 0x6e2   :  { %4206 = vmatprep.subr.bf16.mxu0 %v3707_v54  ;;  %4370 = vmatprep.subr.bf16.mxu1 %v3709_v45  ;;  %v3803_v54 = vld [vmem:[#allocation3 + $0x548] sm:$0xff]  ;;  %v3805_v45 = vld [vmem:[#allocation3 + $0x558] sm:$0xff] }
 0x6e5   :  { %4207 = vmatpush1.bf16.msra.mxu0 %v3706_v12  ;;  %4371 = vmatpush1.bf16.msra.mxu1 %v3708_v17  ;;  %v3802_v12 = vld [vmem:[#allocation3 + $0x540] sm:$0xff]  ;;  %v3804_v17 = vld [vmem:[#allocation3 + $0x550] sm:$0xff] }
 0x6e6   :  { %4208 = vmatprep.subr.bf16.mxu0 %v3715_v21  ;;  %4372 = vmatprep.subr.bf16.mxu1 %v3717_v38  ;;  %v3811_v21 = vld [vmem:[#allocation3 + $0x588] sm:$0xff]  ;;  %v3813_v38 = vld [vmem:[#allocation3 + $0x598] sm:$0xff] }
 0x6e9   :  { %4209 = vmatpush1.bf16.msra.mxu0 %v3714_v39  ;;  %4373 = vmatpush1.bf16.msra.mxu1 %v3716_v52  ;;  %v3810_v39 = vld [vmem:[#allocation3 + $0x580] sm:$0xff]  ;;  %v3812_v52 = vld [vmem:[#allocation3 + $0x590] sm:$0xff] }
 0x6ea   :  { %4210 = vmatprep.subr.bf16.mxu0 %v3723_v48  ;;  %4374 = vmatprep.subr.bf16.mxu1 %v3725_v10  ;;  %v3819_v48 = vld [vmem:[#allocation3 + $0x5c8] sm:$0xff]  ;;  %v3821_v10 = vld [vmem:[#allocation3 + $0x5d8] sm:$0xff] }
 0x6ed   :  { %4211 = vmatpush1.bf16.msra.mxu0 %v3722_v62  ;;  %4375 = vmatpush1.bf16.msra.mxu1 %v3724_v11  ;;  %v3818_v62 = vld [vmem:[#allocation3 + $0x5c0] sm:$0xff]  ;;  %v3820_v11 = vld [vmem:[#allocation3 + $0x5d0] sm:$0xff] }
 0x6ee   :  { %4212 = vmatprep.subr.bf16.mxu0 %v3731_v14  ;;  %4376 = vmatprep.subr.bf16.mxu1 %v3733_v19  ;;  %v3827_v14 = vld [vmem:[#allocation3 + $0x608] sm:$0xff]  ;;  %v3829_v19 = vld [vmem:[#allocation3 + $0x618] sm:$0xff] }
 0x6f1   :  { %4213 = vmatpush1.bf16.msra.mxu0 %v3730_v4  ;;  %4377 = vmatpush1.bf16.msra.mxu1 %v3732_v40  ;;  %v3826_v4 = vld [vmem:[#allocation3 + $0x600] sm:$0xff]  ;;  %v3828_v40 = vld [vmem:[#allocation3 + $0x610] sm:$0xff] }
 0x6f2   :  { %4214 = vmatprep.subr.bf16.mxu0 %v3739_v47  ;;  %4378 = vmatprep.subr.bf16.mxu1 %v3741_v25  ;;  %v3835_v47 = vld [vmem:[#allocation3 + $0x648] sm:$0xff]  ;;  %v3837_v25 = vld [vmem:[#allocation3 + $0x658] sm:$0xff] }
 0x6f5   :  { %4215 = vmatpush1.bf16.msra.mxu0 %v3738_v53  ;;  %4379 = vmatpush1.bf16.msra.mxu1 %v3740_v30  ;;  %v3834_v53 = vld [vmem:[#allocation3 + $0x640] sm:$0xff]  ;;  %v3836_v30 = vld [vmem:[#allocation3 + $0x650] sm:$0xff] }
 0x6f6   :  { %4216 = vmatprep.subr.bf16.mxu0 %v3747_v60  ;;  %4380 = vmatprep.subr.bf16.mxu1 %v3749_v44  ;;  %v3843_v60 = vld [vmem:[#allocation3 + $0x688] sm:$0xff]  ;;  %v3845_v44 = vld [vmem:[#allocation3 + $0x698] sm:$0xff] }
 0x6f9   :  { %4217 = vmatpush1.bf16.msra.mxu0 %v3746_v6  ;;  %4381 = vmatpush1.bf16.msra.mxu1 %v3748_v55  ;;  %v3842_v6 = vld [vmem:[#allocation3 + $0x680] sm:$0xff]  ;;  %v3844_v55 = vld [vmem:[#allocation3 + $0x690] sm:$0xff] }
 0x6fa   :  { %4218 = vmatprep.subr.bf16.mxu0 %v3755_v61  ;;  %4382 = vmatprep.subr.bf16.mxu1 %v3757_v15  ;;  %v3851_v61 = vld [vmem:[#allocation3 + $0x6c8] sm:$0xff]  ;;  %v3853_v15 = vld [vmem:[#allocation3 + $0x6d8] sm:$0xff] }
 0x6fd   :  { %4219 = vmatpush1.bf16.msra.mxu0 %v3754_v29  ;;  %4383 = vmatpush1.bf16.msra.mxu1 %v3756_v3  ;;  %v3850_v29 = vld [vmem:[#allocation3 + $0x6c0] sm:$0xff]  ;;  %v3852_v3 = vld [vmem:[#allocation3 + $0x6d0] sm:$0xff] }
 0x6fe   :  { %4229 = vmatprep.subr.bf16.mxu0 %v3763_v32  ;;  %4393 = vmatprep.subr.bf16.mxu1 %v3765_v49  ;;  %v3859_v32 = vld [vmem:[#allocation3 + $0x708] sm:$0xff]  ;;  %v3861_v49 = vld [vmem:[#allocation3 + $0x718] sm:$0xff] }
 0x700   :  { %4221 = vmatmul.mubr.bf16.vlgmr.msra.gmra.mrb[24].mxu0 %v6726_v57  ;;  %4385 = vmatmul.mubr.bf16.vlgmr.msra.gmra.mrb[24].mxu1 %v6726_v57 }
 0x701   :  { %4230 = vmatpush1.bf16.msra.mxu0 %v3762_v42  ;;  %4394 = vmatpush1.bf16.msra.mxu1 %v3764_v1  ;;  %v3858_v42 = vld [vmem:[#allocation3 + $0x700] sm:$0xff]  ;;  %v3860_v1 = vld [vmem:[#allocation3 + $0x710] sm:$0xff] }
 0x702   :  { %4231 = vmatprep.subr.bf16.mxu0 %v3771_v20  ;;  %4395 = vmatprep.subr.bf16.mxu1 %v3773_v58  ;;  %v3867_v20 = vld [vmem:[#allocation3 + $0x748] sm:$0xff]  ;;  %v3869_v58 = vld [vmem:[#allocation3 + $0x758] sm:$0xff] }
 0x703   :  { %4261 = vmatprep.mubr.bf16.mxu0 %v6730_v27  ;;  %4425 = vmatprep.mubr.bf16.mxu1 %v6730_v27 }
 0x705   :  { %4232 = vmatpush1.bf16.msra.mxu0 %v3770_v41  ;;  %4396 = vmatpush1.bf16.msra.mxu1 %v3772_v33  ;;  %v3866_v41 = vld [vmem:[#allocation3 + $0x740] sm:$0xff]  ;;  %v3868_v33 = vld [vmem:[#allocation3 + $0x750] sm:$0xff] }
 0x706   :  { %4233 = vmatprep.subr.bf16.mxu0 %v3779_v50  ;;  %4397 = vmatprep.subr.bf16.mxu1 %v3781_v36  ;;  %v3875_v50 = vld [vmem:[#allocation3 + $0x788] sm:$0xff]  ;;  %v3877_v36 = vld [vmem:[#allocation3 + $0x798] sm:$0xff] }
 0x709   :  { %4234 = vmatpush1.bf16.msra.mxu0 %v3778_v63  ;;  %4398 = vmatpush1.bf16.msra.mxu1 %v3780_v59  ;;  %v3874_v63 = vld [vmem:[#allocation3 + $0x780] sm:$0xff]  ;;  %v3876_v59 = vld [vmem:[#allocation3 + $0x790] sm:$0xff] }
 0x70a   :  { %4235 = vmatprep.subr.bf16.mxu0 %v3787_v2  ;;  %4399 = vmatprep.subr.bf16.mxu1 %v3789_v46  ;;  %v3883_v2 = vld [vmem:[#allocation3 + $0x7c8] sm:$0xff]  ;;  %v3885_v46 = vld [vmem:[#allocation3 + $0x7d8] sm:$0xff] }
 0x70d   :  { %4236 = vmatpush1.bf16.msra.mxu0 %v3786_v28  ;;  %4400 = vmatpush1.bf16.msra.mxu1 %v3788_v0  ;;  %v3882_v28 = vld [vmem:[#allocation3 + $0x7c0] sm:$0xff]  ;;  %v3884_v0 = vld [vmem:[#allocation3 + $0x7d0] sm:$0xff] }
 0x70e   :  { %4237 = vmatprep.subr.bf16.mxu0 %v3795_v51  ;;  %4401 = vmatprep.subr.bf16.mxu1 %v3797_v43  ;;  %v3891_v51 = vld [vmem:[#allocation3 + $0x808] sm:$0xff]  ;;  %v3893_v43 = vld [vmem:[#allocation3 + $0x818] sm:$0xff] }
 0x711   :  { %4238 = vmatpush1.bf16.msra.mxu0 %v3794_v31  ;;  %4402 = vmatpush1.bf16.msra.mxu1 %v3796_v26  ;;  %v6738_v31 = vpack.c.bf16 %v6642_v37, %v6642_v37  ;;  %v3890_v26 = vld [vmem:[#allocation3 + $0x800] sm:$0xff] }
 0x712   :  { %4239 = vmatprep.subr.bf16.mxu0 %v3803_v54  ;;  %4403 = vmatprep.subr.bf16.mxu1 %v3805_v45  ;;  %v3892_v54 = vld [vmem:[#allocation3 + $0x810] sm:$0xff]  ;;  %v3899_v45 = vld [vmem:[#allocation3 + $0x848] sm:$0xff]  ;;  %v3898_v37 = vld [vmem:[#allocation3 + $0x840] sm:$0xff] }
 0x715   :  { %4240 = vmatpush1.bf16.msra.mxu0 %v3802_v12  ;;  %4404 = vmatpush1.bf16.msra.mxu1 %v3804_v17  ;;  %v3901_v12 = vld [vmem:[#allocation3 + $0x858] sm:$0xff]  ;;  %v6742_v17 = vpack.c.bf16 %v6711_v13, %v6711_v13  ;;  %v3906_v13 = vld [vmem:[#allocation3 + $0x880] sm:$0xff] }
 0x716   :  { %4241 = vmatprep.subr.bf16.mxu0 %v3811_v21  ;;  %4405 = vmatprep.subr.bf16.mxu1 %v3813_v38  ;;  %v3900_v21 = vld [vmem:[#allocation3 + $0x850] sm:$0xff]  ;;  %v3907_v38 = vld [vmem:[#allocation3 + $0x888] sm:$0xff] }
 0x719   :  { %4242 = vmatpush1.bf16.msra.mxu0 %v3810_v39  ;;  %4406 = vmatpush1.bf16.msra.mxu1 %v3812_v52  ;;  %v3909_v39 = vld [vmem:[#allocation3 + $0x898] sm:$0xff]  ;;  %v3908_v52 = vld [vmem:[#allocation3 + $0x890] sm:$0xff] }
 0x71a   :  { %4243 = vmatprep.subr.bf16.mxu0 %v3819_v48  ;;  %4407 = vmatprep.subr.bf16.mxu1 %v3821_v10  ;;  %v3915_v48 = vld [vmem:[#allocation3 + $0x8c8] sm:$0xff]  ;;  %v3917_v10 = vld [vmem:[#allocation3 + $0x8d8] sm:$0xff] }
 0x71d   :  { %4244 = vmatpush1.bf16.msra.mxu0 %v3818_v62  ;;  %4408 = vmatpush1.bf16.msra.mxu1 %v3820_v11  ;;  %v3914_v62 = vld [vmem:[#allocation3 + $0x8c0] sm:$0xff]  ;;  %v3916_v11 = vld [vmem:[#allocation3 + $0x8d0] sm:$0xff] }
 0x71e   :  { %4245 = vmatprep.subr.bf16.mxu0 %v3827_v14  ;;  %4409 = vmatprep.subr.bf16.mxu1 %v3829_v19  ;;  %v3923_v14 = vld [vmem:[#allocation3 + $0x908] sm:$0xff]  ;;  %v3925_v19 = vld [vmem:[#allocation3 + $0x918] sm:$0xff] }
 0x721   :  { %4246 = vmatpush1.bf16.msra.mxu0 %v3826_v4  ;;  %4410 = vmatpush1.bf16.msra.mxu1 %v3828_v40  ;;  %v3922_v4 = vld [vmem:[#allocation3 + $0x900] sm:$0xff]  ;;  %v3924_v40 = vld [vmem:[#allocation3 + $0x910] sm:$0xff] }
 0x722   :  { %4247 = vmatprep.subr.bf16.mxu0 %v3835_v47  ;;  %4411 = vmatprep.subr.bf16.mxu1 %v3837_v25  ;;  %v3931_v47 = vld [vmem:[#allocation3 + $0x948] sm:$0xff]  ;;  %v3933_v25 = vld [vmem:[#allocation3 + $0x958] sm:$0xff] }
 0x725   :  { %4248 = vmatpush1.bf16.msra.mxu0 %v3834_v53  ;;  %4412 = vmatpush1.bf16.msra.mxu1 %v3836_v30  ;;  %v3930_v53 = vld [vmem:[#allocation3 + $0x940] sm:$0xff]  ;;  %v3932_v30 = vld [vmem:[#allocation3 + $0x950] sm:$0xff] }
 0x726   :  { %4249 = vmatprep.subr.bf16.mxu0 %v3843_v60  ;;  %4413 = vmatprep.subr.bf16.mxu1 %v3845_v44  ;;  %v3939_v60 = vld [vmem:[#allocation3 + $0x988] sm:$0xff]  ;;  %v3941_v44 = vld [vmem:[#allocation3 + $0x998] sm:$0xff] }
 0x729   :  { %4250 = vmatpush1.bf16.msra.mxu0 %v3842_v6  ;;  %4414 = vmatpush1.bf16.msra.mxu1 %v3844_v55  ;;  %v3938_v6 = vld [vmem:[#allocation3 + $0x980] sm:$0xff]  ;;  %v3940_v55 = vld [vmem:[#allocation3 + $0x990] sm:$0xff] }
 0x72a   :  { %4251 = vmatprep.subr.bf16.mxu0 %v3851_v61  ;;  %4415 = vmatprep.subr.bf16.mxu1 %v3853_v15  ;;  %v3947_v61 = vld [vmem:[#allocation3 + $0x9c8] sm:$0xff]  ;;  %v3949_v15 = vld [vmem:[#allocation3 + $0x9d8] sm:$0xff] }
 0x72d   :  { %4252 = vmatpush1.bf16.msra.mxu0 %v3850_v29  ;;  %4416 = vmatpush1.bf16.msra.mxu1 %v3852_v3  ;;  %v3946_v29 = vld [vmem:[#allocation3 + $0x9c0] sm:$0xff]  ;;  %v3948_v3 = vld [vmem:[#allocation3 + $0x9d0] sm:$0xff] }
 0x72e   :  { %4253 = vmatprep.subr.bf16.mxu0 %v3859_v32  ;;  %4417 = vmatprep.subr.bf16.mxu1 %v3861_v49  ;;  %v3955_v32 = vld [vmem:[#allocation3 + $0xa08] sm:$0xff]  ;;  %v3957_v49 = vld [vmem:[#allocation3 + $0xa18] sm:$0xff] }
 0x731   :  { %4254 = vmatpush1.bf16.msra.mxu0 %v3858_v42  ;;  %4418 = vmatpush1.bf16.msra.mxu1 %v3860_v1  ;;  %v3954_v42 = vld [vmem:[#allocation3 + $0xa00] sm:$0xff]  ;;  %v3956_v1 = vld [vmem:[#allocation3 + $0xa10] sm:$0xff] }
 0x732   :  { %4255 = vmatprep.subr.bf16.mxu0 %v3867_v20  ;;  %4419 = vmatprep.subr.bf16.mxu1 %v3869_v58  ;;  %v3963_v20 = vld [vmem:[#allocation3 + $0xa48] sm:$0xff]  ;;  %v3965_v58 = vld [vmem:[#allocation3 + $0xa58] sm:$0xff] }
 0x735   :  { %4256 = vmatpush1.bf16.msra.mxu0 %v3866_v41  ;;  %4420 = vmatpush1.bf16.msra.mxu1 %v3868_v33  ;;  %v3962_v41 = vld [vmem:[#allocation3 + $0xa40] sm:$0xff]  ;;  %v3964_v33 = vld [vmem:[#allocation3 + $0xa50] sm:$0xff] }
 0x736   :  { %4257 = vmatprep.subr.bf16.mxu0 %v3875_v50  ;;  %4421 = vmatprep.subr.bf16.mxu1 %v3877_v36  ;;  %v3971_v50 = vld [vmem:[#allocation3 + $0xa88] sm:$0xff]  ;;  %v3973_v36 = vld [vmem:[#allocation3 + $0xa98] sm:$0xff] }
 0x739   :  { %4258 = vmatpush1.bf16.msra.mxu0 %v3874_v63  ;;  %4422 = vmatpush1.bf16.msra.mxu1 %v3876_v59  ;;  %v3970_v63 = vld [vmem:[#allocation3 + $0xa80] sm:$0xff]  ;;  %v3972_v59 = vld [vmem:[#allocation3 + $0xa90] sm:$0xff] }
 0x73a   :  { %4259 = vmatprep.subr.bf16.mxu0 %v3883_v2  ;;  %4423 = vmatprep.subr.bf16.mxu1 %v3885_v46  ;;  %v3979_v2 = vld [vmem:[#allocation3 + $0xac8] sm:$0xff]  ;;  %v3981_v46 = vld [vmem:[#allocation3 + $0xad8] sm:$0xff] }
 0x73d   :  { %4260 = vmatpush1.bf16.msra.mxu0 %v3882_v28  ;;  %4424 = vmatpush1.bf16.msra.mxu1 %v3884_v0  ;;  %v3978_v28 = vld [vmem:[#allocation3 + $0xac0] sm:$0xff]  ;;  %v3980_v0 = vld [vmem:[#allocation3 + $0xad0] sm:$0xff] }
 0x73e   :  { %4270 = vmatprep.subr.bf16.mxu0 %v3891_v51  ;;  %4434 = vmatprep.subr.bf16.mxu1 %v3893_v43  ;;  %v3987_v51 = vld [vmem:[#allocation3 + $0xb08] sm:$0xff]  ;;  %v3989_v43 = vld [vmem:[#allocation3 + $0xb18] sm:$0xff] }
 0x740   :  { %4262 = vmatmul.mubr.bf16.vlgmr.msra.gmra.mrb[24].mxu0 %v6738_v31  ;;  %4426 = vmatmul.mubr.bf16.vlgmr.msra.gmra.mrb[24].mxu1 %v6738_v31 }
 0x741   :  { %4271 = vmatpush1.bf16.msra.mxu0 %v3890_v26  ;;  %4435 = vmatpush1.bf16.msra.mxu1 %v3892_v54  ;;  %v3986_v26 = vld [vmem:[#allocation3 + $0xb00] sm:$0xff]  ;;  %v3988_v54 = vld [vmem:[#allocation3 + $0xb10] sm:$0xff] }
 0x742   :  { %4272 = vmatprep.subr.bf16.mxu0 %v3899_v45  ;;  %4436 = vmatprep.subr.bf16.mxu1 %v3901_v12  ;;  %v3995_v45 = vld [vmem:[#allocation3 + $0xb48] sm:$0xff]  ;;  %v3997_v12 = vld [vmem:[#allocation3 + $0xb58] sm:$0xff] }
 0x743   :  { %4302 = vmatprep.mubr.bf16.mxu0 %v6742_v17  ;;  %4466 = vmatprep.mubr.bf16.mxu1 %v6742_v17 }
 0x745   :  { %4273 = vmatpush1.bf16.msra.mxu0 %v3898_v37  ;;  %4437 = vmatpush1.bf16.msra.mxu1 %v3900_v21  ;;  %v3994_v37 = vld [vmem:[#allocation3 + $0xb40] sm:$0xff]  ;;  %v3996_v21 = vld [vmem:[#allocation3 + $0xb50] sm:$0xff] }
 0x746   :  { %4274 = vmatprep.subr.bf16.mxu0 %v3907_v38  ;;  %4438 = vmatprep.subr.bf16.mxu1 %v3909_v39  ;;  %v4003_v38 = vld [vmem:[#allocation3 + $0xb88] sm:$0xff]  ;;  %v4005_v39 = vld [vmem:[#allocation3 + $0xb98] sm:$0xff] }
 0x749   :  { %4275 = vmatpush1.bf16.msra.mxu0 %v3906_v13  ;;  %4439 = vmatpush1.bf16.msra.mxu1 %v3908_v52  ;;  %v4002_v13 = vld [vmem:[#allocation3 + $0xb80] sm:$0xff]  ;;  %v4004_v52 = vld [vmem:[#allocation3 + $0xb90] sm:$0xff] }
 0x74a   :  { %4276 = vmatprep.subr.bf16.mxu0 %v3915_v48  ;;  %4440 = vmatprep.subr.bf16.mxu1 %v3917_v10  ;;  %v4011_v48 = vld [vmem:[#allocation3 + $0xbc8] sm:$0xff]  ;;  %v4013_v10 = vld [vmem:[#allocation3 + $0xbd8] sm:$0xff] }
 0x74d   :  { %4277 = vmatpush1.bf16.msra.mxu0 %v3914_v62  ;;  %4441 = vmatpush1.bf16.msra.mxu1 %v3916_v11  ;;  %v4010_v62 = vld [vmem:[#allocation3 + $0xbc0] sm:$0xff]  ;;  %v4012_v11 = vld [vmem:[#allocation3 + $0xbd0] sm:$0xff] }
 0x74e   :  { %4278 = vmatprep.subr.bf16.mxu0 %v3923_v14  ;;  %4442 = vmatprep.subr.bf16.mxu1 %v3925_v19  ;;  %v4019_v14 = vld [vmem:[#allocation3 + $0xc08] sm:$0xff]  ;;  %v4021_v19 = vld [vmem:[#allocation3 + $0xc18] sm:$0xff] }
 0x751   :  { %4279 = vmatpush1.bf16.msra.mxu0 %v3922_v4  ;;  %4443 = vmatpush1.bf16.msra.mxu1 %v3924_v40  ;;  %v6750_v4 = vpack.c.bf16 %v6699_v35, %v6699_v35  ;;  %v4018_v40 = vld [vmem:[#allocation3 + $0xc00] sm:$0xff] }
 0x752   :  { %4280 = vmatprep.subr.bf16.mxu0 %v3931_v47  ;;  %4444 = vmatprep.subr.bf16.mxu1 %v3933_v25  ;;  %v4020_v47 = vld [vmem:[#allocation3 + $0xc10] sm:$0xff]  ;;  %v4027_v25 = vld [vmem:[#allocation3 + $0xc48] sm:$0xff]  ;;  %v4026_v35 = vld [vmem:[#allocation3 + $0xc40] sm:$0xff] }
 0x755   :  { %4281 = vmatpush1.bf16.msra.mxu0 %v3930_v53  ;;  %4445 = vmatpush1.bf16.msra.mxu1 %v3932_v30  ;;  %v4029_v53 = vld [vmem:[#allocation3 + $0xc58] sm:$0xff]  ;;  %v6754_v30 = vpack.c.bf16 %v6716_v56, %v6716_v56  ;;  %v4034_v56 = vld [vmem:[#allocation3 + $0xc80] sm:$0xff] }
 0x756   :  { %4282 = vmatprep.subr.bf16.mxu0 %v3939_v60  ;;  %4446 = vmatprep.subr.bf16.mxu1 %v3941_v44  ;;  %v4028_v60 = vld [vmem:[#allocation3 + $0xc50] sm:$0xff]  ;;  %v4035_v44 = vld [vmem:[#allocation3 + $0xc88] sm:$0xff] }
 0x759   :  { %4283 = vmatpush1.bf16.msra.mxu0 %v3938_v6  ;;  %4447 = vmatpush1.bf16.msra.mxu1 %v3940_v55  ;;  %v4037_v6 = vld [vmem:[#allocation3 + $0xc98] sm:$0xff]  ;;  %v4036_v55 = vld [vmem:[#allocation3 + $0xc90] sm:$0xff] }
 0x75a   :  { %4284 = vmatprep.subr.bf16.mxu0 %v3947_v61  ;;  %4448 = vmatprep.subr.bf16.mxu1 %v3949_v15  ;;  %v4043_v61 = vld [vmem:[#allocation3 + $0xcc8] sm:$0xff]  ;;  %v4045_v15 = vld [vmem:[#allocation3 + $0xcd8] sm:$0xff] }
 0x75d   :  { %4285 = vmatpush1.bf16.msra.mxu0 %v3946_v29  ;;  %4449 = vmatpush1.bf16.msra.mxu1 %v3948_v3  ;;  %v4042_v29 = vld [vmem:[#allocation3 + $0xcc0] sm:$0xff]  ;;  %v4044_v3 = vld [vmem:[#allocation3 + $0xcd0] sm:$0xff] }
 0x75e   :  { %4286 = vmatprep.subr.bf16.mxu0 %v3955_v32  ;;  %4450 = vmatprep.subr.bf16.mxu1 %v3957_v49  ;;  %v4051_v32 = vld [vmem:[#allocation3 + $0xd08] sm:$0xff]  ;;  %v4053_v49 = vld [vmem:[#allocation3 + $0xd18] sm:$0xff] }
 0x761   :  { %4287 = vmatpush1.bf16.msra.mxu0 %v3954_v42  ;;  %4451 = vmatpush1.bf16.msra.mxu1 %v3956_v1  ;;  %v4050_v42 = vld [vmem:[#allocation3 + $0xd00] sm:$0xff]  ;;  %v4052_v1 = vld [vmem:[#allocation3 + $0xd10] sm:$0xff] }
 0x762   :  { %4288 = vmatprep.subr.bf16.mxu0 %v3963_v20  ;;  %4452 = vmatprep.subr.bf16.mxu1 %v3965_v58  ;;  %v4059_v20 = vld [vmem:[#allocation3 + $0xd48] sm:$0xff]  ;;  %v4061_v58 = vld [vmem:[#allocation3 + $0xd58] sm:$0xff] }
 0x765   :  { %4289 = vmatpush1.bf16.msra.mxu0 %v3962_v41  ;;  %4453 = vmatpush1.bf16.msra.mxu1 %v3964_v33  ;;  %v4058_v41 = vld [vmem:[#allocation3 + $0xd40] sm:$0xff]  ;;  %v4060_v33 = vld [vmem:[#allocation3 + $0xd50] sm:$0xff] }
 0x766   :  { %4290 = vmatprep.subr.bf16.mxu0 %v3971_v50  ;;  %4454 = vmatprep.subr.bf16.mxu1 %v3973_v36  ;;  %v4067_v50 = vld [vmem:[#allocation3 + $0xd88] sm:$0xff]  ;;  %v4069_v36 = vld [vmem:[#allocation3 + $0xd98] sm:$0xff] }
 0x769   :  { %4291 = vmatpush1.bf16.msra.mxu0 %v3970_v63  ;;  %4455 = vmatpush1.bf16.msra.mxu1 %v3972_v59  ;;  %v4066_v63 = vld [vmem:[#allocation3 + $0xd80] sm:$0xff]  ;;  %v4068_v59 = vld [vmem:[#allocation3 + $0xd90] sm:$0xff] }
 0x76a   :  { %4292 = vmatprep.subr.bf16.mxu0 %v3979_v2  ;;  %4456 = vmatprep.subr.bf16.mxu1 %v3981_v46  ;;  %v4075_v2 = vld [vmem:[#allocation3 + $0xdc8] sm:$0xff]  ;;  %v4077_v46 = vld [vmem:[#allocation3 + $0xdd8] sm:$0xff] }
 0x76d   :  { %4293 = vmatpush1.bf16.msra.mxu0 %v3978_v28  ;;  %4457 = vmatpush1.bf16.msra.mxu1 %v3980_v0  ;;  %v4074_v28 = vld [vmem:[#allocation3 + $0xdc0] sm:$0xff]  ;;  %v4076_v0 = vld [vmem:[#allocation3 + $0xdd0] sm:$0xff] }
 0x76e   :  { %4294 = vmatprep.subr.bf16.mxu0 %v3987_v51  ;;  %4458 = vmatprep.subr.bf16.mxu1 %v3989_v43  ;;  %v4083_v51 = vld [vmem:[#allocation3 + $0xe08] sm:$0xff]  ;;  %v4085_v43 = vld [vmem:[#allocation3 + $0xe18] sm:$0xff] }
 0x771   :  { %4295 = vmatpush1.bf16.msra.mxu0 %v3986_v26  ;;  %4459 = vmatpush1.bf16.msra.mxu1 %v3988_v54  ;;  %v4082_v26 = vld [vmem:[#allocation3 + $0xe00] sm:$0xff]  ;;  %v4084_v54 = vld [vmem:[#allocation3 + $0xe10] sm:$0xff] }
 0x772   :  { %4296 = vmatprep.subr.bf16.mxu0 %v3995_v45  ;;  %4460 = vmatprep.subr.bf16.mxu1 %v3997_v12  ;;  %v4091_v45 = vld [vmem:[#allocation3 + $0xe48] sm:$0xff]  ;;  %v4093_v12 = vld [vmem:[#allocation3 + $0xe58] sm:$0xff] }
 0x775   :  { %4297 = vmatpush1.bf16.msra.mxu0 %v3994_v37  ;;  %4461 = vmatpush1.bf16.msra.mxu1 %v3996_v21  ;;  %v4090_v37 = vld [vmem:[#allocation3 + $0xe40] sm:$0xff]  ;;  %v4092_v21 = vld [vmem:[#allocation3 + $0xe50] sm:$0xff] }
 0x776   :  { %4298 = vmatprep.subr.bf16.mxu0 %v4003_v38  ;;  %4462 = vmatprep.subr.bf16.mxu1 %v4005_v39  ;;  %v4099_v38 = vld [vmem:[#allocation3 + $0xe88] sm:$0xff]  ;;  %v4101_v39 = vld [vmem:[#allocation3 + $0xe98] sm:$0xff] }
 0x779   :  { %4299 = vmatpush1.bf16.msra.mxu0 %v4002_v13  ;;  %4463 = vmatpush1.bf16.msra.mxu1 %v4004_v52  ;;  %v4098_v13 = vld [vmem:[#allocation3 + $0xe80] sm:$0xff]  ;;  %v4100_v52 = vld [vmem:[#allocation3 + $0xe90] sm:$0xff] }
 0x77a   :  { %4300 = vmatprep.subr.bf16.mxu0 %v4011_v48  ;;  %4464 = vmatprep.subr.bf16.mxu1 %v4013_v10  ;;  %v4107_v48 = vld [vmem:[#allocation3 + $0xec8] sm:$0xff]  ;;  %v4109_v10 = vld [vmem:[#allocation3 + $0xed8] sm:$0xff] }
 0x77d   :  { %4301 = vmatpush1.bf16.msra.mxu0 %v4010_v62  ;;  %4465 = vmatpush1.bf16.msra.mxu1 %v4012_v11  ;;  %v4106_v62 = vld [vmem:[#allocation3 + $0xec0] sm:$0xff]  ;;  %v4108_v11 = vld [vmem:[#allocation3 + $0xed0] sm:$0xff] }
 0x77e   :  { %4311 = vmatprep.subr.bf16.mxu0 %v4019_v14  ;;  %4475 = vmatprep.subr.bf16.mxu1 %v4021_v19  ;;  %v4115_v14 = vld [vmem:[#allocation3 + $0xf08] sm:$0xff]  ;;  %v4117_v19 = vld [vmem:[#allocation3 + $0xf18] sm:$0xff] }
 0x780   :  { %4303 = vmatmul.mubr.bf16.vlgmr.msra.gmra.mrb[24].mxu0 %v6750_v4  ;;  %4467 = vmatmul.mubr.bf16.vlgmr.msra.gmra.mrb[24].mxu1 %v6750_v4 }
 0x781   :  { %4312 = vmatpush1.bf16.msra.mxu0 %v4018_v40  ;;  %4476 = vmatpush1.bf16.msra.mxu1 %v4020_v47  ;;  %v4114_v40 = vld [vmem:[#allocation3 + $0xf00] sm:$0xff]  ;;  %v4116_v47 = vld [vmem:[#allocation3 + $0xf10] sm:$0xff] }
 0x782   :  { %4313 = vmatprep.subr.bf16.mxu0 %v4027_v25  ;;  %4477 = vmatprep.subr.bf16.mxu1 %v4029_v53  ;;  %v4123_v25 = vld [vmem:[#allocation3 + $0xf48] sm:$0xff]  ;;  %v4125_v53 = vld [vmem:[#allocation3 + $0xf58] sm:$0xff] }
 0x783   :  { %4343 = vmatprep.mubr.bf16.mxu0 %v6754_v30  ;;  %4507 = vmatprep.mubr.bf16.mxu1 %v6754_v30 }
 0x785   :  { %4314 = vmatpush1.bf16.msra.mxu0 %v4026_v35  ;;  %4478 = vmatpush1.bf16.msra.mxu1 %v4028_v60  ;;  %v4122_v35 = vld [vmem:[#allocation3 + $0xf40] sm:$0xff]  ;;  %v4124_v60 = vld [vmem:[#allocation3 + $0xf50] sm:$0xff] }
 0x786   :  { %4315 = vmatprep.subr.bf16.mxu0 %v4035_v44  ;;  %4479 = vmatprep.subr.bf16.mxu1 %v4037_v6  ;;  %v4131_v44 = vld [vmem:[#allocation3 + $0xf88] sm:$0xff]  ;;  %v4133_v6 = vld [vmem:[#allocation3 + $0xf98] sm:$0xff] }
 0x789   :  { %4316 = vmatpush1.bf16.msra.mxu0 %v4034_v56  ;;  %4480 = vmatpush1.bf16.msra.mxu1 %v4036_v55  ;;  %v4130_v56 = vld [vmem:[#allocation3 + $0xf80] sm:$0xff]  ;;  %v4132_v55 = vld [vmem:[#allocation3 + $0xf90] sm:$0xff] }
 0x78a   :  { %4317 = vmatprep.subr.bf16.mxu0 %v4043_v61  ;;  %4481 = vmatprep.subr.bf16.mxu1 %v4045_v15  ;;  %v4139_v61 = vld [vmem:[#allocation3 + $0xfc8] sm:$0xff]  ;;  %v4141_v15 = vld [vmem:[#allocation3 + $0xfd8] sm:$0xff] }
 0x78d   :  { %4318 = vmatpush1.bf16.msra.mxu0 %v4042_v29  ;;  %4482 = vmatpush1.bf16.msra.mxu1 %v4044_v3  ;;  %v4138_v29 = vld [vmem:[#allocation3 + $0xfc0] sm:$0xff]  ;;  %v4140_v3 = vld [vmem:[#allocation3 + $0xfd0] sm:$0xff] }
 0x78e   :  { %4319 = vmatprep.subr.bf16.mxu0 %v4051_v32  ;;  %4483 = vmatprep.subr.bf16.mxu1 %v4053_v49  ;;  %v3639_v32 = vld [vmem:[#allocation3 + $0x28] sm:$0xff]  ;;  %v3641_v49 = vld [vmem:[#allocation3 + $0x38] sm:$0xff] }
 0x791   :  { %4320 = vmatpush1.bf16.msra.mxu0 %v4050_v42  ;;  %4484 = vmatpush1.bf16.msra.mxu1 %v4052_v1  ;;  %v6762_v42 = vpack.c.bf16 %v6706_v16, %v6706_v16  ;;  %v3638_v1 = vld [vmem:[#allocation3 + $0x20] sm:$0xff]  ;;  %v3655_v16 = vld [vmem:[#allocation3 + $0xa8] sm:$0xff] }
 0x792   :  { %4321 = vmatprep.subr.bf16.mxu0 %v4059_v20  ;;  %4485 = vmatprep.subr.bf16.mxu1 %v4061_v58  ;;  %v3640_v20 = vld [vmem:[#allocation3 + $0x30] sm:$0xff]  ;;  %v3647_v58 = vld [vmem:[#allocation3 + $0x68] sm:$0xff] }
 0x795   :  { %4322 = vmatpush1.bf16.msra.mxu0 %v4058_v41  ;;  %4486 = vmatpush1.bf16.msra.mxu1 %v4060_v33  ;;  %v3649_v41 = vld [vmem:[#allocation3 + $0x78] sm:$0xff]  ;;  %v3646_v33 = vld [vmem:[#allocation3 + $0x60] sm:$0xff] }
 0x796   :  { %4323 = vmatprep.subr.bf16.mxu0 %v4067_v50  ;;  %4487 = vmatprep.subr.bf16.mxu1 %v4069_v36  ;;  %v3648_v50 = vld [vmem:[#allocation3 + $0x70] sm:$0xff]  ;;  %v3657_v36 = vld [vmem:[#allocation3 + $0xb8] sm:$0xff] }
 0x799   :  { %4324 = vmatpush1.bf16.msra.mxu0 %v4066_v63  ;;  %4488 = vmatpush1.bf16.msra.mxu1 %v4068_v59  ;;  %v3654_v63 = vld [vmem:[#allocation3 + $0xa0] sm:$0xff]  ;;  %v3656_v59 = vld [vmem:[#allocation3 + $0xb0] sm:$0xff] }
 0x79a   :  { %4325 = vmatprep.subr.bf16.mxu0 %v4075_v2  ;;  %4489 = vmatprep.subr.bf16.mxu1 %v4077_v46  ;;  %v3663_v2 = vld [vmem:[#allocation3 + $0xe8] sm:$0xff]  ;;  %v3665_v46 = vld [vmem:[#allocation3 + $0xf8] sm:$0xff] }
 0x79d   :  { %4326 = vmatpush1.bf16.msra.mxu0 %v4074_v28  ;;  %4490 = vmatpush1.bf16.msra.mxu1 %v4076_v0  ;;  %v3662_v28 = vld [vmem:[#allocation3 + $0xe0] sm:$0xff]  ;;  %v3664_v0 = vld [vmem:[#allocation3 + $0xf0] sm:$0xff] }
 0x79e   :  { %4327 = vmatprep.subr.bf16.mxu0 %v4083_v51  ;;  %4491 = vmatprep.subr.bf16.mxu1 %v4085_v43  ;;  %v3671_v51 = vld [vmem:[#allocation3 + $0x128] sm:$0xff]  ;;  %v3673_v43 = vld [vmem:[#allocation3 + $0x138] sm:$0xff] }
 0x7a1   :  { %4328 = vmatpush1.bf16.msra.mxu0 %v4082_v26  ;;  %4492 = vmatpush1.bf16.msra.mxu1 %v4084_v54  ;;  %v3672_v26 = vld [vmem:[#allocation3 + $0x130] sm:$0xff]  ;;  %v3679_v54 = vld [vmem:[#allocation3 + $0x168] sm:$0xff] }
 0x7a2   :  { %4329 = vmatprep.subr.bf16.mxu0 %v4091_v45  ;;  %4493 = vmatprep.subr.bf16.mxu1 %v4093_v12  ;;  %v3681_v45 = vld [vmem:[#allocation3 + $0x178] sm:$0xff]  ;;  %v3678_v12 = vld [vmem:[#allocation3 + $0x160] sm:$0xff] }
 0x7a5   :  { %4330 = vmatpush1.bf16.msra.mxu0 %v4090_v37  ;;  %4494 = vmatpush1.bf16.msra.mxu1 %v4092_v21  ;;  %v3680_v37 = vld [vmem:[#allocation3 + $0x170] sm:$0xff]  ;;  %v3687_v21 = vld [vmem:[#allocation3 + $0x1a8] sm:$0xff] }
 0x7a6   :  { %4331 = vmatprep.subr.bf16.mxu0 %v4099_v38  ;;  %4495 = vmatprep.subr.bf16.mxu1 %v4101_v39  ;;  %v3689_v38 = vld [vmem:[#allocation3 + $0x1b8] sm:$0xff]  ;;  %v3686_v39 = vld [vmem:[#allocation3 + $0x1a0] sm:$0xff] }
 0x7a9   :  { %4332 = vmatpush1.bf16.msra.mxu0 %v4098_v13  ;;  %4496 = vmatpush1.bf16.msra.mxu1 %v4100_v52  ;;  %v3688_v13 = vld [vmem:[#allocation3 + $0x1b0] sm:$0xff]  ;;  %v3695_v52 = vld [vmem:[#allocation3 + $0x1e8] sm:$0xff] }
 0x7aa   :  { %4333 = vmatprep.subr.bf16.mxu0 %v4107_v48  ;;  %4497 = vmatprep.subr.bf16.mxu1 %v4109_v10  ;;  %v3697_v48 = vld [vmem:[#allocation3 + $0x1f8] sm:$0xff]  ;;  %v3694_v10 = vld [vmem:[#allocation3 + $0x1e0] sm:$0xff] }
 0x7ad   :  { %4334 = vmatpush1.bf16.msra.mxu0 %v4106_v62  ;;  %4498 = vmatpush1.bf16.msra.mxu1 %v4108_v11  ;;  %v3696_v62 = vld [vmem:[#allocation3 + $0x1f0] sm:$0xff]  ;;  %v3703_v11 = vld [vmem:[#allocation3 + $0x228] sm:$0xff] }
 0x7ae   :  { %4335 = vmatprep.subr.bf16.mxu0 %v4115_v14  ;;  %4499 = vmatprep.subr.bf16.mxu1 %v4117_v19  ;;  %v3705_v14 = vld [vmem:[#allocation3 + $0x238] sm:$0xff]  ;;  %v3702_v19 = vld [vmem:[#allocation3 + $0x220] sm:$0xff] }
 0x7b1   :  { %4336 = vmatpush1.bf16.msra.mxu0 %v4114_v40  ;;  %4500 = vmatpush1.bf16.msra.mxu1 %v4116_v47  ;;  %v3704_v40 = vld [vmem:[#allocation3 + $0x230] sm:$0xff]  ;;  %v3711_v47 = vld [vmem:[#allocation3 + $0x268] sm:$0xff] }
 0x7b2   :  { %4337 = vmatprep.subr.bf16.mxu0 %v4123_v25  ;;  %4501 = vmatprep.subr.bf16.mxu1 %v4125_v53  ;;  %v3713_v25 = vld [vmem:[#allocation3 + $0x278] sm:$0xff]  ;;  %v3710_v53 = vld [vmem:[#allocation3 + $0x260] sm:$0xff] }
 0x7b5   :  { %4338 = vmatpush1.bf16.msra.mxu0 %v4122_v35  ;;  %4502 = vmatpush1.bf16.msra.mxu1 %v4124_v60  ;;  %v3712_v35 = vld [vmem:[#allocation3 + $0x270] sm:$0xff]  ;;  %v3719_v60 = vld [vmem:[#allocation3 + $0x2a8] sm:$0xff] }
 0x7b6   :  { %4339 = vmatprep.subr.bf16.mxu0 %v4131_v44  ;;  %4503 = vmatprep.subr.bf16.mxu1 %v4133_v6  ;;  %v3721_v44 = vld [vmem:[#allocation3 + $0x2b8] sm:$0xff]  ;;  %v3718_v6 = vld [vmem:[#allocation3 + $0x2a0] sm:$0xff] }
 0x7b9   :  { %4340 = vmatpush1.bf16.msra.mxu0 %v4130_v56  ;;  %4504 = vmatpush1.bf16.msra.mxu1 %v4132_v55  ;;  %v3720_v56 = vld [vmem:[#allocation3 + $0x2b0] sm:$0xff]  ;;  %v3727_v55 = vld [vmem:[#allocation3 + $0x2e8] sm:$0xff] }
 0x7ba   :  { %4341 = vmatprep.subr.bf16.mxu0 %v4139_v61  ;;  %4505 = vmatprep.subr.bf16.mxu1 %v4141_v15  ;;  %v3729_v61 = vld [vmem:[#allocation3 + $0x2f8] sm:$0xff]  ;;  %v3726_v15 = vld [vmem:[#allocation3 + $0x2e0] sm:$0xff] }
 0x7bd   :  { %4342 = vmatpush1.bf16.msra.mxu0 %v4138_v29  ;;  %4506 = vmatpush1.bf16.msra.mxu1 %v4140_v3  ;;  %v3728_v29 = vld [vmem:[#allocation3 + $0x2f0] sm:$0xff]  ;;  %v3735_v3 = vld [vmem:[#allocation3 + $0x328] sm:$0xff] }
 0x7be   :  { %4516 = vmatprep.subr.bf16.mxu0 %v3639_v32  ;;  %4680 = vmatprep.subr.bf16.mxu1 %v3641_v49  ;;  %v3737_v32 = vld [vmem:[#allocation3 + $0x338] sm:$0xff]  ;;  %v3734_v49 = vld [vmem:[#allocation3 + $0x320] sm:$0xff] }
 0x7c0   :  { %4344 = vmatmul.mubr.bf16.vlgmr.msra.gmra.mrb[24].mxu0 %v6762_v42  ;;  %4508 = vmatmul.mubr.bf16.vlgmr.msra.gmra.mrb[24].mxu1 %v6762_v42 }
 0x7c1   :  { %4517 = vmatpush1.bf16.msra.mxu0 %v3638_v1  ;;  %4681 = vmatpush1.bf16.msra.mxu1 %v3640_v20  ;;  %v3736_v1 = vld [vmem:[#allocation3 + $0x330] sm:$0xff]  ;;  %v3743_v20 = vld [vmem:[#allocation3 + $0x368] sm:$0xff] }
 0x7c2   :  { %4518 = vmatprep.subr.bf16.mxu0 %v3647_v58  ;;  %4682 = vmatprep.subr.bf16.mxu1 %v3649_v41  ;;  %v3745_v58 = vld [vmem:[#allocation3 + $0x378] sm:$0xff]  ;;  %v3742_v41 = vld [vmem:[#allocation3 + $0x360] sm:$0xff] }
 0x7c3   :  { %4548 = vmatprep.mubr.bf16.mxu0 %v6720_v22  ;;  %4712 = vmatprep.mubr.bf16.mxu1 %v6720_v22  ;;  %v3670_v22 = vld [vmem:[#allocation3 + $0x120] sm:$0xff] }
 0x7c5   :  { %4519 = vmatpush1.bf16.msra.mxu0 %v3646_v33  ;;  %4683 = vmatpush1.bf16.msra.mxu1 %v3648_v50  ;;  %v3744_v33 = vld [vmem:[#allocation3 + $0x370] sm:$0xff]  ;;  %v3751_v50 = vld [vmem:[#allocation3 + $0x3a8] sm:$0xff] }
 0x7c6   :  { %4520 = vmatprep.subr.bf16.mxu0 %v3655_v16  ;;  %4684 = vmatprep.subr.bf16.mxu1 %v3657_v36  ;;  %v3753_v16 = vld [vmem:[#allocation3 + $0x3b8] sm:$0xff]  ;;  %v3750_v36 = vld [vmem:[#allocation3 + $0x3a0] sm:$0xff] }
 0x7c9   :  { %4521 = vmatpush1.bf16.msra.mxu0 %v3654_v63  ;;  %4685 = vmatpush1.bf16.msra.mxu1 %v3656_v59  ;;  %v3752_v63 = vld [vmem:[#allocation3 + $0x3b0] sm:$0xff]  ;;  %v3759_v59 = vld [vmem:[#allocation3 + $0x3e8] sm:$0xff] }
 0x7ca   :  { %4522 = vmatprep.subr.bf16.mxu0 %v3663_v2  ;;  %4686 = vmatprep.subr.bf16.mxu1 %v3665_v46  ;;  %v3761_v2 = vld [vmem:[#allocation3 + $0x3f8] sm:$0xff]  ;;  %v3758_v46 = vld [vmem:[#allocation3 + $0x3e0] sm:$0xff] }
 0x7cd   :  { %4523 = vmatpush1.bf16.msra.mxu0 %v3662_v28  ;;  %4687 = vmatpush1.bf16.msra.mxu1 %v3664_v0  ;;  %v3760_v28 = vld [vmem:[#allocation3 + $0x3f0] sm:$0xff]  ;;  %v3767_v0 = vld [vmem:[#allocation3 + $0x428] sm:$0xff] }
 0x7ce   :  { %4524 = vmatprep.subr.bf16.mxu0 %v3671_v51  ;;  %4688 = vmatprep.subr.bf16.mxu1 %v3673_v43  ;;  %v3769_v51 = vld [vmem:[#allocation3 + $0x438] sm:$0xff]  ;;  %v3766_v43 = vld [vmem:[#allocation3 + $0x420] sm:$0xff] }
 0x7d1   :  { %4525 = vmatpush1.bf16.msra.mxu0 %v3670_v22  ;;  %4689 = vmatpush1.bf16.msra.mxu1 %v3672_v26  ;;  %v3768_v22 = vld [vmem:[#allocation3 + $0x430] sm:$0xff]  ;;  %v3775_v26 = vld [vmem:[#allocation3 + $0x468] sm:$0xff] }
 0x7d2   :  { %4526 = vmatprep.subr.bf16.mxu0 %v3679_v54  ;;  %4690 = vmatprep.subr.bf16.mxu1 %v3681_v45  ;;  %v3777_v54 = vld [vmem:[#allocation3 + $0x478] sm:$0xff]  ;;  %v3774_v45 = vld [vmem:[#allocation3 + $0x460] sm:$0xff] }
 0x7d5   :  { %4527 = vmatpush1.bf16.msra.mxu0 %v3678_v12  ;;  %4691 = vmatpush1.bf16.msra.mxu1 %v3680_v37  ;;  %v3776_v12 = vld [vmem:[#allocation3 + $0x470] sm:$0xff]  ;;  %v3783_v37 = vld [vmem:[#allocation3 + $0x4a8] sm:$0xff] }
 0x7d6   :  { %4528 = vmatprep.subr.bf16.mxu0 %v3687_v21  ;;  %4692 = vmatprep.subr.bf16.mxu1 %v3689_v38  ;;  %v3785_v21 = vld [vmem:[#allocation3 + $0x4b8] sm:$0xff]  ;;  %v3782_v38 = vld [vmem:[#allocation3 + $0x4a0] sm:$0xff] }
 0x7d9   :  { %4529 = vmatpush1.bf16.msra.mxu0 %v3686_v39  ;;  %4693 = vmatpush1.bf16.msra.mxu1 %v3688_v13  ;;  %v3784_v39 = vld [vmem:[#allocation3 + $0x4b0] sm:$0xff]  ;;  %v3791_v13 = vld [vmem:[#allocation3 + $0x4e8] sm:$0xff] }
 0x7da   :  { %4530 = vmatprep.subr.bf16.mxu0 %v3695_v52  ;;  %4694 = vmatprep.subr.bf16.mxu1 %v3697_v48  ;;  %v3790_v52 = vld [vmem:[#allocation3 + $0x4e0] sm:$0xff]  ;;  %v3792_v48 = vld [vmem:[#allocation3 + $0x4f0] sm:$0xff] }
 0x7dd   :  { %4531 = vmatpush1.bf16.msra.mxu0 %v3694_v10  ;;  %4695 = vmatpush1.bf16.msra.mxu1 %v3696_v62  ;;  %v3799_v10 = vld [vmem:[#allocation3 + $0x528] sm:$0xff]  ;;  %v3801_v62 = vld [vmem:[#allocation3 + $0x538] sm:$0xff] }
 0x7de   :  { %4532 = vmatprep.subr.bf16.mxu0 %v3703_v11  ;;  %4696 = vmatprep.subr.bf16.mxu1 %v3705_v14  ;;  %v3800_v11 = vld [vmem:[#allocation3 + $0x530] sm:$0xff]  ;;  %v3807_v14 = vld [vmem:[#allocation3 + $0x568] sm:$0xff] }
 0x7e1   :  { %4533 = vmatpush1.bf16.msra.mxu0 %v3702_v19  ;;  %4697 = vmatpush1.bf16.msra.mxu1 %v3704_v40  ;;  %v3809_v19 = vld [vmem:[#allocation3 + $0x578] sm:$0xff]  ;;  %v3806_v40 = vld [vmem:[#allocation3 + $0x560] sm:$0xff] }
 0x7e2   :  { %4534 = vmatprep.subr.bf16.mxu0 %v3711_v47  ;;  %4698 = vmatprep.subr.bf16.mxu1 %v3713_v25  ;;  %v3808_v47 = vld [vmem:[#allocation3 + $0x570] sm:$0xff]  ;;  %v3815_v25 = vld [vmem:[#allocation3 + $0x5a8] sm:$0xff] }
 0x7e5   :  { %4535 = vmatpush1.bf16.msra.mxu0 %v3710_v53  ;;  %4699 = vmatpush1.bf16.msra.mxu1 %v3712_v35  ;;  %v3817_v53 = vld [vmem:[#allocation3 + $0x5b8] sm:$0xff]  ;;  %v3814_v35 = vld [vmem:[#allocation3 + $0x5a0] sm:$0xff] }
 0x7e6   :  { %4536 = vmatprep.subr.bf16.mxu0 %v3719_v60  ;;  %4700 = vmatprep.subr.bf16.mxu1 %v3721_v44  ;;  %v3816_v60 = vld [vmem:[#allocation3 + $0x5b0] sm:$0xff]  ;;  %v3823_v44 = vld [vmem:[#allocation3 + $0x5e8] sm:$0xff] }
 0x7e9   :  { %4537 = vmatpush1.bf16.msra.mxu0 %v3718_v6  ;;  %4701 = vmatpush1.bf16.msra.mxu1 %v3720_v56  ;;  %v3825_v6 = vld [vmem:[#allocation3 + $0x5f8] sm:$0xff]  ;;  %v3822_v56 = vld [vmem:[#allocation3 + $0x5e0] sm:$0xff] }
 0x7ea   :  { %4538 = vmatprep.subr.bf16.mxu0 %v3727_v55  ;;  %4702 = vmatprep.subr.bf16.mxu1 %v3729_v61  ;;  %v3824_v55 = vld [vmem:[#allocation3 + $0x5f0] sm:$0xff]  ;;  %v3831_v61 = vld [vmem:[#allocation3 + $0x628] sm:$0xff] }
 0x7ed   :  { %4539 = vmatpush1.bf16.msra.mxu0 %v3726_v15  ;;  %4703 = vmatpush1.bf16.msra.mxu1 %v3728_v29  ;;  %v3833_v15 = vld [vmem:[#allocation3 + $0x638] sm:$0xff]  ;;  %v3830_v29 = vld [vmem:[#allocation3 + $0x620] sm:$0xff] }
 0x7ee   :  { %4540 = vmatprep.subr.bf16.mxu0 %v3735_v3  ;;  %4704 = vmatprep.subr.bf16.mxu1 %v3737_v32  ;;  %v3832_v3 = vld [vmem:[#allocation3 + $0x630] sm:$0xff]  ;;  %v3839_v32 = vld [vmem:[#allocation3 + $0x668] sm:$0xff] }
 0x7f1   :  { %4541 = vmatpush1.bf16.msra.mxu0 %v3734_v49  ;;  %4705 = vmatpush1.bf16.msra.mxu1 %v3736_v1  ;;  %v3841_v49 = vld [vmem:[#allocation3 + $0x678] sm:$0xff]  ;;  %v3838_v1 = vld [vmem:[#allocation3 + $0x660] sm:$0xff] }
 0x7f2   :  { %4542 = vmatprep.subr.bf16.mxu0 %v3743_v20  ;;  %4706 = vmatprep.subr.bf16.mxu1 %v3745_v58  ;;  %v3840_v20 = vld [vmem:[#allocation3 + $0x670] sm:$0xff]  ;;  %v3847_v58 = vld [vmem:[#allocation3 + $0x6a8] sm:$0xff] }
 0x7f5   :  { %4543 = vmatpush1.bf16.msra.mxu0 %v3742_v41  ;;  %4707 = vmatpush1.bf16.msra.mxu1 %v3744_v33  ;;  %v3849_v41 = vld [vmem:[#allocation3 + $0x6b8] sm:$0xff]  ;;  %v3846_v33 = vld [vmem:[#allocation3 + $0x6a0] sm:$0xff] }
 0x7f6   :  { %4544 = vmatprep.subr.bf16.mxu0 %v3751_v50  ;;  %4708 = vmatprep.subr.bf16.mxu1 %v3753_v16  ;;  %v3848_v50 = vld [vmem:[#allocation3 + $0x6b0] sm:$0xff]  ;;  %v3855_v16 = vld [vmem:[#allocation3 + $0x6e8] sm:$0xff] }
 0x7f9   :  { %4545 = vmatpush1.bf16.msra.mxu0 %v3750_v36  ;;  %4709 = vmatpush1.bf16.msra.mxu1 %v3752_v63  ;;  %v3857_v36 = vld [vmem:[#allocation3 + $0x6f8] sm:$0xff]  ;;  %v3854_v63 = vld [vmem:[#allocation3 + $0x6e0] sm:$0xff] }
 0x7fa   :  { %4546 = vmatprep.subr.bf16.mxu0 %v3759_v59  ;;  %4710 = vmatprep.subr.bf16.mxu1 %v3761_v2  ;;  %v3856_v59 = vld [vmem:[#allocation3 + $0x6f0] sm:$0xff]  ;;  %v3863_v2 = vld [vmem:[#allocation3 + $0x728] sm:$0xff] }
 0x7fd   :  { %4547 = vmatpush1.bf16.msra.mxu0 %v3758_v46  ;;  %4711 = vmatpush1.bf16.msra.mxu1 %v3760_v28  ;;  %v3865_v46 = vld [vmem:[#allocation3 + $0x738] sm:$0xff]  ;;  %v3862_v28 = vld [vmem:[#allocation3 + $0x720] sm:$0xff] }
 0x7fe   :  { %4557 = vmatprep.subr.bf16.mxu0 %v3767_v0  ;;  %4721 = vmatprep.subr.bf16.mxu1 %v3769_v51  ;;  %v3864_v0 = vld [vmem:[#allocation3 + $0x730] sm:$0xff]  ;;  %v3871_v51 = vld [vmem:[#allocation3 + $0x768] sm:$0xff] }
 0x800   :  { %4549 = vmatmul.mubr.bf16.vlgmr.msra.gmra.mrb[28].mxu0 %v6726_v57  ;;  %4713 = vmatmul.mubr.bf16.vlgmr.msra.gmra.mrb[28].mxu1 %v6726_v57  ;;  %v3793_v57 = vld [vmem:[#allocation3 + $0x4f8] sm:$0xff] }
 0x801   :  { %4558 = vmatpush1.bf16.msra.mxu0 %v3766_v43  ;;  %4722 = vmatpush1.bf16.msra.mxu1 %v3768_v22  ;;  %v3873_v43 = vld [vmem:[#allocation3 + $0x778] sm:$0xff]  ;;  %v3870_v22 = vld [vmem:[#allocation3 + $0x760] sm:$0xff] }
 0x802   :  { %4559 = vmatprep.subr.bf16.mxu0 %v3775_v26  ;;  %4723 = vmatprep.subr.bf16.mxu1 %v3777_v54  ;;  %v3872_v26 = vld [vmem:[#allocation3 + $0x770] sm:$0xff]  ;;  %v3879_v54 = vld [vmem:[#allocation3 + $0x7a8] sm:$0xff] }
 0x803   :  { %4589 = vmatprep.mubr.bf16.mxu0 %v6730_v27  ;;  %4753 = vmatprep.mubr.bf16.mxu1 %v6730_v27  ;;  %v3798_v27 = vld [vmem:[#allocation3 + $0x520] sm:$0xff] }
 0x805   :  { %4560 = vmatpush1.bf16.msra.mxu0 %v3774_v45  ;;  %4724 = vmatpush1.bf16.msra.mxu1 %v3776_v12  ;;  %v3881_v45 = vld [vmem:[#allocation3 + $0x7b8] sm:$0xff]  ;;  %v3878_v12 = vld [vmem:[#allocation3 + $0x7a0] sm:$0xff] }
 0x806   :  { %4561 = vmatprep.subr.bf16.mxu0 %v3783_v37  ;;  %4725 = vmatprep.subr.bf16.mxu1 %v3785_v21  ;;  %v3880_v37 = vld [vmem:[#allocation3 + $0x7b0] sm:$0xff]  ;;  %v3887_v21 = vld [vmem:[#allocation3 + $0x7e8] sm:$0xff] }
 0x809   :  { %4562 = vmatpush1.bf16.msra.mxu0 %v3782_v38  ;;  %4726 = vmatpush1.bf16.msra.mxu1 %v3784_v39  ;;  %v3889_v38 = vld [vmem:[#allocation3 + $0x7f8] sm:$0xff]  ;;  %v3886_v39 = vld [vmem:[#allocation3 + $0x7e0] sm:$0xff] }
 0x80a   :  { %4563 = vmatprep.subr.bf16.mxu0 %v3791_v13  ;;  %4727 = vmatprep.subr.bf16.mxu1 %v3793_v57  ;;  %v3888_v13 = vld [vmem:[#allocation3 + $0x7f0] sm:$0xff]  ;;  %v3895_v57 = vld [vmem:[#allocation3 + $0x828] sm:$0xff] }
 0x80d   :  { %4564 = vmatpush1.bf16.msra.mxu0 %v3790_v52  ;;  %4728 = vmatpush1.bf16.msra.mxu1 %v3792_v48  ;;  %v3897_v52 = vld [vmem:[#allocation3 + $0x838] sm:$0xff]  ;;  %v3894_v48 = vld [vmem:[#allocation3 + $0x820] sm:$0xff] }
 0x80e   :  { %4565 = vmatprep.subr.bf16.mxu0 %v3799_v10  ;;  %4729 = vmatprep.subr.bf16.mxu1 %v3801_v62  ;;  %v3896_v10 = vld [vmem:[#allocation3 + $0x830] sm:$0xff]  ;;  %v3903_v62 = vld [vmem:[#allocation3 + $0x868] sm:$0xff] }
 0x811   :  { %4566 = vmatpush1.bf16.msra.mxu0 %v3798_v27  ;;  %4730 = vmatpush1.bf16.msra.mxu1 %v3800_v11  ;;  %v3905_v27 = vld [vmem:[#allocation3 + $0x878] sm:$0xff]  ;;  %v3902_v11 = vld [vmem:[#allocation3 + $0x860] sm:$0xff] }
 0x812   :  { %4567 = vmatprep.subr.bf16.mxu0 %v3807_v14  ;;  %4731 = vmatprep.subr.bf16.mxu1 %v3809_v19  ;;  %v3904_v14 = vld [vmem:[#allocation3 + $0x870] sm:$0xff]  ;;  %v3911_v19 = vld [vmem:[#allocation3 + $0x8a8] sm:$0xff] }
 0x815   :  { %4568 = vmatpush1.bf16.msra.mxu0 %v3806_v40  ;;  %4732 = vmatpush1.bf16.msra.mxu1 %v3808_v47  ;;  %v3913_v40 = vld [vmem:[#allocation3 + $0x8b8] sm:$0xff]  ;;  %v3910_v47 = vld [vmem:[#allocation3 + $0x8a0] sm:$0xff] }
 0x816   :  { %4569 = vmatprep.subr.bf16.mxu0 %v3815_v25  ;;  %4733 = vmatprep.subr.bf16.mxu1 %v3817_v53  ;;  %v3912_v25 = vld [vmem:[#allocation3 + $0x8b0] sm:$0xff]  ;;  %v3919_v53 = vld [vmem:[#allocation3 + $0x8e8] sm:$0xff] }
 0x819   :  { %4570 = vmatpush1.bf16.msra.mxu0 %v3814_v35  ;;  %4734 = vmatpush1.bf16.msra.mxu1 %v3816_v60  ;;  %v3918_v35 = vld [vmem:[#allocation3 + $0x8e0] sm:$0xff]  ;;  %v3920_v60 = vld [vmem:[#allocation3 + $0x8f0] sm:$0xff] }
 0x81a   :  { %4571 = vmatprep.subr.bf16.mxu0 %v3823_v44  ;;  %4735 = vmatprep.subr.bf16.mxu1 %v3825_v6  ;;  %v3927_v44 = vld [vmem:[#allocation3 + $0x928] sm:$0xff]  ;;  %v3929_v6 = vld [vmem:[#allocation3 + $0x938] sm:$0xff] }
 0x81d   :  { %4572 = vmatpush1.bf16.msra.mxu0 %v3822_v56  ;;  %4736 = vmatpush1.bf16.msra.mxu1 %v3824_v55  ;;  %v3928_v56 = vld [vmem:[#allocation3 + $0x930] sm:$0xff]  ;;  %v3935_v55 = vld [vmem:[#allocation3 + $0x968] sm:$0xff] }
 0x81e   :  { %4573 = vmatprep.subr.bf16.mxu0 %v3831_v61  ;;  %4737 = vmatprep.subr.bf16.mxu1 %v3833_v15  ;;  %v3937_v61 = vld [vmem:[#allocation3 + $0x978] sm:$0xff]  ;;  %v3934_v15 = vld [vmem:[#allocation3 + $0x960] sm:$0xff] }
 0x821   :  { %4574 = vmatpush1.bf16.msra.mxu0 %v3830_v29  ;;  %4738 = vmatpush1.bf16.msra.mxu1 %v3832_v3  ;;  %v3936_v29 = vld [vmem:[#allocation3 + $0x970] sm:$0xff]  ;;  %v3943_v3 = vld [vmem:[#allocation3 + $0x9a8] sm:$0xff] }
 0x822   :  { %4575 = vmatprep.subr.bf16.mxu0 %v3839_v32  ;;  %4739 = vmatprep.subr.bf16.mxu1 %v3841_v49  ;;  %v3945_v32 = vld [vmem:[#allocation3 + $0x9b8] sm:$0xff]  ;;  %v3942_v49 = vld [vmem:[#allocation3 + $0x9a0] sm:$0xff] }
 0x825   :  { %4576 = vmatpush1.bf16.msra.mxu0 %v3838_v1  ;;  %4740 = vmatpush1.bf16.msra.mxu1 %v3840_v20  ;;  %v3944_v1 = vld [vmem:[#allocation3 + $0x9b0] sm:$0xff]  ;;  %v3951_v20 = vld [vmem:[#allocation3 + $0x9e8] sm:$0xff] }
 0x826   :  { %4577 = vmatprep.subr.bf16.mxu0 %v3847_v58  ;;  %4741 = vmatprep.subr.bf16.mxu1 %v3849_v41  ;;  %v3953_v58 = vld [vmem:[#allocation3 + $0x9f8] sm:$0xff]  ;;  %v3950_v41 = vld [vmem:[#allocation3 + $0x9e0] sm:$0xff] }
 0x829   :  { %4578 = vmatpush1.bf16.msra.mxu0 %v3846_v33  ;;  %4742 = vmatpush1.bf16.msra.mxu1 %v3848_v50  ;;  %v3952_v33 = vld [vmem:[#allocation3 + $0x9f0] sm:$0xff]  ;;  %v3959_v50 = vld [vmem:[#allocation3 + $0xa28] sm:$0xff] }
 0x82a   :  { %4579 = vmatprep.subr.bf16.mxu0 %v3855_v16  ;;  %4743 = vmatprep.subr.bf16.mxu1 %v3857_v36  ;;  %v3961_v16 = vld [vmem:[#allocation3 + $0xa38] sm:$0xff]  ;;  %v3958_v36 = vld [vmem:[#allocation3 + $0xa20] sm:$0xff] }
 0x82d   :  { %4580 = vmatpush1.bf16.msra.mxu0 %v3854_v63  ;;  %4744 = vmatpush1.bf16.msra.mxu1 %v3856_v59  ;;  %v3960_v63 = vld [vmem:[#allocation3 + $0xa30] sm:$0xff]  ;;  %v3967_v59 = vld [vmem:[#allocation3 + $0xa68] sm:$0xff] }
 0x82e   :  { %4581 = vmatprep.subr.bf16.mxu0 %v3863_v2  ;;  %4745 = vmatprep.subr.bf16.mxu1 %v3865_v46  ;;  %v3969_v2 = vld [vmem:[#allocation3 + $0xa78] sm:$0xff]  ;;  %v3966_v46 = vld [vmem:[#allocation3 + $0xa60] sm:$0xff] }
 0x831   :  { %4582 = vmatpush1.bf16.msra.mxu0 %v3862_v28  ;;  %4746 = vmatpush1.bf16.msra.mxu1 %v3864_v0  ;;  %v3968_v28 = vld [vmem:[#allocation3 + $0xa70] sm:$0xff]  ;;  %v3975_v0 = vld [vmem:[#allocation3 + $0xaa8] sm:$0xff] }
 0x832   :  { %4583 = vmatprep.subr.bf16.mxu0 %v3871_v51  ;;  %4747 = vmatprep.subr.bf16.mxu1 %v3873_v43  ;;  %v3977_v51 = vld [vmem:[#allocation3 + $0xab8] sm:$0xff]  ;;  %v3974_v43 = vld [vmem:[#allocation3 + $0xaa0] sm:$0xff] }
 0x835   :  { %4584 = vmatpush1.bf16.msra.mxu0 %v3870_v22  ;;  %4748 = vmatpush1.bf16.msra.mxu1 %v3872_v26  ;;  %v3976_v22 = vld [vmem:[#allocation3 + $0xab0] sm:$0xff]  ;;  %v3983_v26 = vld [vmem:[#allocation3 + $0xae8] sm:$0xff] }
 0x836   :  { %4585 = vmatprep.subr.bf16.mxu0 %v3879_v54  ;;  %4749 = vmatprep.subr.bf16.mxu1 %v3881_v45  ;;  %v3985_v54 = vld [vmem:[#allocation3 + $0xaf8] sm:$0xff]  ;;  %v3982_v45 = vld [vmem:[#allocation3 + $0xae0] sm:$0xff] }
 0x839   :  { %4586 = vmatpush1.bf16.msra.mxu0 %v3878_v12  ;;  %4750 = vmatpush1.bf16.msra.mxu1 %v3880_v37  ;;  %v3984_v12 = vld [vmem:[#allocation3 + $0xaf0] sm:$0xff]  ;;  %v3991_v37 = vld [vmem:[#allocation3 + $0xb28] sm:$0xff] }
 0x83a   :  { %4587 = vmatprep.subr.bf16.mxu0 %v3887_v21  ;;  %4751 = vmatprep.subr.bf16.mxu1 %v3889_v38  ;;  %v3993_v21 = vld [vmem:[#allocation3 + $0xb38] sm:$0xff]  ;;  %v3990_v38 = vld [vmem:[#allocation3 + $0xb20] sm:$0xff] }
 0x83d   :  { %4588 = vmatpush1.bf16.msra.mxu0 %v3886_v39  ;;  %4752 = vmatpush1.bf16.msra.mxu1 %v3888_v13  ;;  %v3992_v39 = vld [vmem:[#allocation3 + $0xb30] sm:$0xff]  ;;  %v3999_v13 = vld [vmem:[#allocation3 + $0xb68] sm:$0xff] }
 0x83e   :  { %4598 = vmatprep.subr.bf16.mxu0 %v3895_v57  ;;  %4762 = vmatprep.subr.bf16.mxu1 %v3897_v52  ;;  %v4001_v57 = vld [vmem:[#allocation3 + $0xb78] sm:$0xff]  ;;  %v3998_v52 = vld [vmem:[#allocation3 + $0xb60] sm:$0xff] }
 0x840   :  { %4590 = vmatmul.mubr.bf16.vlgmr.msra.gmra.mrb[28].mxu0 %v6738_v31  ;;  %4754 = vmatmul.mubr.bf16.vlgmr.msra.gmra.mrb[28].mxu1 %v6738_v31  ;;  %v3921_v31 = vld [vmem:[#allocation3 + $0x8f8] sm:$0xff] }
 0x841   :  { %4599 = vmatpush1.bf16.msra.mxu0 %v3894_v48  ;;  %4763 = vmatpush1.bf16.msra.mxu1 %v3896_v10  ;;  %v4000_v48 = vld [vmem:[#allocation3 + $0xb70] sm:$0xff]  ;;  %v4007_v10 = vld [vmem:[#allocation3 + $0xba8] sm:$0xff] }
 0x842   :  { %4600 = vmatprep.subr.bf16.mxu0 %v3903_v62  ;;  %4764 = vmatprep.subr.bf16.mxu1 %v3905_v27  ;;  %v4009_v62 = vld [vmem:[#allocation3 + $0xbb8] sm:$0xff]  ;;  %v4006_v27 = vld [vmem:[#allocation3 + $0xba0] sm:$0xff] }
 0x843   :  { %4630 = vmatprep.mubr.bf16.mxu0 %v6742_v17  ;;  %4794 = vmatprep.mubr.bf16.mxu1 %v6742_v17  ;;  %v3926_v17 = vld [vmem:[#allocation3 + $0x920] sm:$0xff] }
 0x845   :  { %4601 = vmatpush1.bf16.msra.mxu0 %v3902_v11  ;;  %4765 = vmatpush1.bf16.msra.mxu1 %v3904_v14  ;;  %v4008_v11 = vld [vmem:[#allocation3 + $0xbb0] sm:$0xff]  ;;  %v4015_v14 = vld [vmem:[#allocation3 + $0xbe8] sm:$0xff] }
 0x846   :  { %4602 = vmatprep.subr.bf16.mxu0 %v3911_v19  ;;  %4766 = vmatprep.subr.bf16.mxu1 %v3913_v40  ;;  %v4017_v19 = vld [vmem:[#allocation3 + $0xbf8] sm:$0xff]  ;;  %v4014_v40 = vld [vmem:[#allocation3 + $0xbe0] sm:$0xff] }
 0x849   :  { %4603 = vmatpush1.bf16.msra.mxu0 %v3910_v47  ;;  %4767 = vmatpush1.bf16.msra.mxu1 %v3912_v25  ;;  %v4016_v47 = vld [vmem:[#allocation3 + $0xbf0] sm:$0xff]  ;;  %v4023_v25 = vld [vmem:[#allocation3 + $0xc28] sm:$0xff] }
 0x84a   :  { %4604 = vmatprep.subr.bf16.mxu0 %v3919_v53  ;;  %4768 = vmatprep.subr.bf16.mxu1 %v3921_v31  ;;  %v4025_v53 = vld [vmem:[#allocation3 + $0xc38] sm:$0xff]  ;;  %v4022_v31 = vld [vmem:[#allocation3 + $0xc20] sm:$0xff] }
 0x84d   :  { %4605 = vmatpush1.bf16.msra.mxu0 %v3918_v35  ;;  %4769 = vmatpush1.bf16.msra.mxu1 %v3920_v60  ;;  %v4024_v35 = vld [vmem:[#allocation3 + $0xc30] sm:$0xff]  ;;  %v4031_v60 = vld [vmem:[#allocation3 + $0xc68] sm:$0xff] }
 0x84e   :  { %4606 = vmatprep.subr.bf16.mxu0 %v3927_v44  ;;  %4770 = vmatprep.subr.bf16.mxu1 %v3929_v6  ;;  %v4033_v44 = vld [vmem:[#allocation3 + $0xc78] sm:$0xff]  ;;  %v4030_v6 = vld [vmem:[#allocation3 + $0xc60] sm:$0xff] }
 0x851   :  { %4607 = vmatpush1.bf16.msra.mxu0 %v3926_v17  ;;  %4771 = vmatpush1.bf16.msra.mxu1 %v3928_v56  ;;  %v4032_v17 = vld [vmem:[#allocation3 + $0xc70] sm:$0xff]  ;;  %v4039_v56 = vld [vmem:[#allocation3 + $0xca8] sm:$0xff] }
 0x852   :  { %4608 = vmatprep.subr.bf16.mxu0 %v3935_v55  ;;  %4772 = vmatprep.subr.bf16.mxu1 %v3937_v61  ;;  %v4041_v55 = vld [vmem:[#allocation3 + $0xcb8] sm:$0xff]  ;;  %v4038_v61 = vld [vmem:[#allocation3 + $0xca0] sm:$0xff] }
 0x855   :  { %4609 = vmatpush1.bf16.msra.mxu0 %v3934_v15  ;;  %4773 = vmatpush1.bf16.msra.mxu1 %v3936_v29  ;;  %v4040_v15 = vld [vmem:[#allocation3 + $0xcb0] sm:$0xff]  ;;  %v4047_v29 = vld [vmem:[#allocation3 + $0xce8] sm:$0xff] }
 0x856   :  { %4610 = vmatprep.subr.bf16.mxu0 %v3943_v3  ;;  %4774 = vmatprep.subr.bf16.mxu1 %v3945_v32  ;;  %v4046_v3 = vld [vmem:[#allocation3 + $0xce0] sm:$0xff]  ;;  %v4048_v32 = vld [vmem:[#allocation3 + $0xcf0] sm:$0xff] }
 0x859   :  { %4611 = vmatpush1.bf16.msra.mxu0 %v3942_v49  ;;  %4775 = vmatpush1.bf16.msra.mxu1 %v3944_v1  ;;  %v4055_v49 = vld [vmem:[#allocation3 + $0xd28] sm:$0xff]  ;;  %v4057_v1 = vld [vmem:[#allocation3 + $0xd38] sm:$0xff] }
 0x85a   :  { %4612 = vmatprep.subr.bf16.mxu0 %v3951_v20  ;;  %4776 = vmatprep.subr.bf16.mxu1 %v3953_v58  ;;  %v6780_v20 = vld [vmem:[#allocation14] sm:$0xff]  ;;  %v4056_v58 = vld [vmem:[#allocation3 + $0xd30] sm:$0xff] }
 0x85d   :  { %4613 = vmatpush1.bf16.msra.mxu0 %v3950_v41  ;;  %4777 = vmatpush1.bf16.msra.mxu1 %v3952_v33  ;;  %v4063_v41 = vld [vmem:[#allocation3 + $0xd68] sm:$0xff]  ;;  %v4065_v33 = vld [vmem:[#allocation3 + $0xd78] sm:$0xff] }
 0x85e   :  { %4614 = vmatprep.subr.bf16.mxu0 %v3959_v50  ;;  %4778 = vmatprep.subr.bf16.mxu1 %v3961_v16  ;;  %v4151_v50 = vrot.slane %v6780_v20, %v6123_v5  ;;  %v4159_v16 = vrot.slane %v6780_v20, %v6127_v7 }
 0x861   :  { %4615 = vmatpush1.bf16.msra.mxu0 %v3958_v36  ;;  %4779 = vmatpush1.bf16.msra.mxu1 %v3960_v63  ;;  %v4155_v36 = vrot.slane %v6780_v20, %v6129_v8  ;;  %v4163_v63 = vrot.slane %v6780_v20, %v6131_v9 }
 0x862   :  { %4616 = vmatprep.subr.bf16.mxu0 %v3967_v59  ;;  %4780 = vmatprep.subr.bf16.mxu1 %v3969_v2  ;;  %v4062_v59 = vld [vmem:[#allocation3 + $0xd60] sm:$0xff]  ;;  %v4064_v2 = vld [vmem:[#allocation3 + $0xd70] sm:$0xff] }
 0x865   :  { %4617 = vmatpush1.bf16.msra.mxu0 %v3966_v46  ;;  %4781 = vmatpush1.bf16.msra.mxu1 %v3968_v28 }
 0x866   :  { %4618 = vmatprep.subr.bf16.mxu0 %v3975_v0  ;;  %4782 = vmatprep.subr.bf16.mxu1 %v3977_v51  ;;  %v4071_v0 = vld [vmem:[#allocation3 + $0xda8] sm:$0xff]  ;;  %v4073_v51 = vld [vmem:[#allocation3 + $0xdb8] sm:$0xff] }
 0x869   :  { %4619 = vmatpush1.bf16.msra.mxu0 %v3974_v43  ;;  %4783 = vmatpush1.bf16.msra.mxu1 %v3976_v22 }
 0x86a   :  { %4620 = vmatprep.subr.bf16.mxu0 %v3983_v26  ;;  %4784 = vmatprep.subr.bf16.mxu1 %v3985_v54 }
 0x86d   :  { %4621 = vmatpush1.bf16.msra.mxu0 %v3982_v45  ;;  %4785 = vmatpush1.bf16.msra.mxu1 %v3984_v12 }
 0x86e   :  { %4622 = vmatprep.subr.bf16.mxu0 %v3991_v37  ;;  %4786 = vmatprep.subr.bf16.mxu1 %v3993_v21  ;;  %v4070_v21 = vld [vmem:[#allocation3 + $0xda0] sm:$0xff] }
 0x871   :  { %4623 = vmatpush1.bf16.msra.mxu0 %v3990_v38  ;;  %4787 = vmatpush1.bf16.msra.mxu1 %v3992_v39  ;;  %v4072_v38 = vld [vmem:[#allocation3 + $0xdb0] sm:$0xff] }
 0x872   :  { %4624 = vmatprep.subr.bf16.mxu0 %v3999_v13  ;;  %4788 = vmatprep.subr.bf16.mxu1 %v4001_v57  ;;  %v4079_v13 = vld [vmem:[#allocation3 + $0xde8] sm:$0xff]  ;;  %v4081_v57 = vld [vmem:[#allocation3 + $0xdf8] sm:$0xff] }
 0x875   :  { %4625 = vmatpush1.bf16.msra.mxu0 %v3998_v52  ;;  %4789 = vmatpush1.bf16.msra.mxu1 %v4000_v48 }
 0x876   :  { %4626 = vmatprep.subr.bf16.mxu0 %v4007_v10  ;;  %4790 = vmatprep.subr.bf16.mxu1 %v4009_v62 }
 0x879   :  { %4627 = vmatpush1.bf16.msra.mxu0 %v4006_v27  ;;  %4791 = vmatpush1.bf16.msra.mxu1 %v4008_v11 }
 0x87a   :  { %4628 = vmatprep.subr.bf16.mxu0 %v4015_v14  ;;  %4792 = vmatprep.subr.bf16.mxu1 %v4017_v19  ;;  %v4078_v14 = vld [vmem:[#allocation3 + $0xde0] sm:$0xff]  ;;  %v4080_v19 = vld [vmem:[#allocation3 + $0xdf0] sm:$0xff] }
 0x87d   :  { %4629 = vmatpush1.bf16.msra.mxu0 %v4014_v40  ;;  %4793 = vmatpush1.bf16.msra.mxu1 %v4016_v47 }
 0x87e   :  { %4639 = vmatprep.subr.bf16.mxu0 %v4023_v25  ;;  %4803 = vmatprep.subr.bf16.mxu1 %v4025_v53  ;;  %v4087_v25 = vld [vmem:[#allocation3 + $0xe28] sm:$0xff]  ;;  %v4089_v53 = vld [vmem:[#allocation3 + $0xe38] sm:$0xff] }
 0x880   :  { %4631 = vmatmul.mubr.bf16.vlgmr.msra.gmra.mrb[28].mxu0 %v6750_v4  ;;  %4795 = vmatmul.mubr.bf16.vlgmr.msra.gmra.mrb[28].mxu1 %v6750_v4  ;;  %v4049_v4 = vld [vmem:[#allocation3 + $0xcf8] sm:$0xff] }
 0x881   :  { %4640 = vmatpush1.bf16.msra.mxu0 %v4022_v31  ;;  %4804 = vmatpush1.bf16.msra.mxu1 %v4024_v35 }
 0x882   :  { %4641 = vmatprep.subr.bf16.mxu0 %v4031_v60  ;;  %4805 = vmatprep.subr.bf16.mxu1 %v4033_v44  ;;  %v4086_v60 = vld [vmem:[#allocation3 + $0xe20] sm:$0xff]  ;;  %v4088_v44 = vld [vmem:[#allocation3 + $0xe30] sm:$0xff] }
 0x883   :  { %4671 = vmatprep.mubr.bf16.mxu0 %v6754_v30  ;;  %4835 = vmatprep.mubr.bf16.mxu1 %v6754_v30  ;;  %v4054_v30 = vld [vmem:[#allocation3 + $0xd20] sm:$0xff] }
 0x885   :  { %4642 = vmatpush1.bf16.msra.mxu0 %v4030_v6  ;;  %4806 = vmatpush1.bf16.msra.mxu1 %v4032_v17  ;;  %v4095_v6 = vld [vmem:[#allocation3 + $0xe68] sm:$0xff]  ;;  %v4097_v17 = vld [vmem:[#allocation3 + $0xe78] sm:$0xff] }
 0x886   :  { %4643 = vmatprep.subr.bf16.mxu0 %v4039_v56  ;;  %4807 = vmatprep.subr.bf16.mxu1 %v4041_v55  ;;  %v4094_v56 = vld [vmem:[#allocation3 + $0xe60] sm:$0xff]  ;;  %v4096_v55 = vld [vmem:[#allocation3 + $0xe70] sm:$0xff] }
 0x889   :  { %4644 = vmatpush1.bf16.msra.mxu0 %v4038_v61  ;;  %4808 = vmatpush1.bf16.msra.mxu1 %v4040_v15  ;;  %v4103_v61 = vld [vmem:[#allocation3 + $0xea8] sm:$0xff]  ;;  %v4105_v15 = vld [vmem:[#allocation3 + $0xeb8] sm:$0xff] }
 0x88a   :  { %4645 = vmatprep.subr.bf16.mxu0 %v4047_v29  ;;  %4809 = vmatprep.subr.bf16.mxu1 %v4049_v4  ;;  %v4102_v4 = vld [vmem:[#allocation3 + $0xea0] sm:$0xff] }
 0x88d   :  { %4646 = vmatpush1.bf16.msra.mxu0 %v4046_v3  ;;  %4810 = vmatpush1.bf16.msra.mxu1 %v4048_v32  ;;  %v4104_v3 = vld [vmem:[#allocation3 + $0xeb0] sm:$0xff] }
 0x88e   :  { %4647 = vmatprep.subr.bf16.mxu0 %v4055_v49  ;;  %4811 = vmatprep.subr.bf16.mxu1 %v4057_v1  ;;  %v4111_v1 = vld [vmem:[#allocation3 + $0xee8] sm:$0xff] }
 0x891   :  { %4648 = vmatpush1.bf16.msra.mxu0 %v4054_v30  ;;  %4812 = vmatpush1.bf16.msra.mxu1 %v4056_v58  ;;  %v4113_v30 = vld [vmem:[#allocation3 + $0xef8] sm:$0xff] }
 0x892   :  { %4649 = vmatprep.subr.bf16.mxu0 %v4063_v41  ;;  %4813 = vmatprep.subr.bf16.mxu1 %v4065_v33 }
 0x893   :  { %v4345_v46 = vpop.f32.mrb[24].mxu0  ;;  %v4509_v28 = vpop.f32.mrb[24].mxu1 }
 0x894   :  { %v6790_v5 = vadd.f32 %v4345_v46, %v4151_v50  ;;  %v6792_v43 = vadd.f32 %v4509_v28, %v4159_v16  ;;  %v4347_v7 = vpop.f32.mrb[25].mxu0  ;;  %v4511_v22 = vpop.f32.mrb[25].mxu1  ;;  %v4110_v16 = vld [vmem:[#allocation3 + $0xee0] sm:$0xff] }
 0x895   :  { %v6794_v26 = vadd.f32 %v4347_v7, %v4155_v36  ;;  %v6796_v8 = vadd.f32 %v4511_v22, %v4163_v63  ;;  %v4349_v54 = vpop.f32.mrb[26].mxu0  ;;  %v4513_v9 = vpop.f32.mrb[26].mxu1  ;;  %4650 = vmatpush1.bf16.msra.mxu0 %v4062_v59  ;;  %4814 = vmatpush1.bf16.msra.mxu1 %v4064_v2  ;;  %v4112_v36 = vld [vmem:[#allocation3 + $0xef0] sm:$0xff]  ;;  %v4119_v59 = vld [vmem:[#allocation3 + $0xf28] sm:$0xff]  ;;  %v4121_v2 = vld [vmem:[#allocation3 + $0xf38] sm:$0xff] }
 0x896   :  { %v4868_v45 = vand.u32 2147483647, %v6790_v5  ;;  %v4350_v12 = vpop.f32.mrb[27].mxu0  ;;  %v4514_v37 = vpop.f32.mrb[27].mxu1  ;;  %4651 = vmatprep.subr.bf16.mxu0 %v4071_v0  ;;  %4815 = vmatprep.subr.bf16.mxu1 %v4073_v51  ;;  %v4870_v39 = vand.u32 2147483647, %v6792_v43  ;;  %vm4852_vm1 = vcmp.ne.f32.partialorder %v6790_v5, %v6790_v5  ;;  %vm4854_vm2 = vcmp.ne.f32.partialorder %v6792_v43, %v6792_v43 }
 0x897   :  { %v4869_v48 = vand.u32 2147483647, %v6794_v26  ;;  %v4871_v62 = vand.u32 2147483647, %v6796_v8  ;;  %v4118_v51 = vld [vmem:[#allocation3 + $0xf20] sm:$0xff]  ;;  %v4120_v7 = vld [vmem:[#allocation3 + $0xf30] sm:$0xff]  ;;  %vm4853_vm7 = vcmp.ne.f32.partialorder %v6794_v26, %v6794_v26  ;;  %vm4855_vm8 = vcmp.ne.f32.partialorder %v6796_v8, %v6796_v8 }
 0x898   :  { %v4876_v52 = vsub.f32 0.0, %v4868_v45  ;;  %v4878_v10 = vsub.f32 0.0, %v4870_v39  ;;  %v4127_v22 = vld [vmem:[#allocation3 + $0xf68] sm:$0xff]  ;;  %v4129_v54 = vld [vmem:[#allocation3 + $0xf78] sm:$0xff]  ;;  %v4126_v39 = vld [vmem:[#allocation3 + $0xf60] sm:$0xff] }
 0x899   :  { %4652 = vmatpush1.bf16.msra.mxu0 %v4070_v21  ;;  %4816 = vmatpush1.bf16.msra.mxu1 %v4072_v38  ;;  %v4877_v11 = vsub.f32 0.0, %v4869_v48  ;;  %v4879_v47 = vsub.f32 0.0, %v4871_v62  ;;  %v4846_v48 = vmax.f32 %v6792_v43, 0.0  ;;  %v4135_v62 = vld [vmem:[#allocation3 + $0xfa8] sm:$0xff] }
 0x89a   :  { %v4884_v27 = vmul.f32 1.442695, %v4876_v52  ;;  %4653 = vmatprep.subr.bf16.mxu0 %v4079_v13  ;;  %4817 = vmatprep.subr.bf16.mxu1 %v4081_v57  ;;  %v4888_v40 = vmul.f32 1.442695, %v4878_v10  ;;  %v4128_v13 = vld [vmem:[#allocation3 + $0xf70] sm:$0xff]  ;;  %v4844_v52 = vmax.f32 %v6790_v5, 0.0 }
 0x89b   :  { %v4886_v31 = vmul.f32 1.442695, %v4877_v11  ;;  %v4890_v35 = vmul.f32 1.442695, %v4879_v47 }
 0x89c   :  { %5700 = vpow2.f32 %v4884_v27  ;;  %v4137_v27 = vld [vmem:[#allocation3 + $0xfb8] sm:$0xff] }
 0x89d   :  { %5702 = vpow2.f32 %v4888_v40  ;;  %4654 = vmatpush1.bf16.msra.mxu0 %v4078_v14  ;;  %4818 = vmatpush1.bf16.msra.mxu1 %v4080_v19 }
 0x89e   :  { %5704 = vpow2.f32 %v4886_v31  ;;  %4655 = vmatprep.subr.bf16.mxu0 %v4087_v25  ;;  %4819 = vmatprep.subr.bf16.mxu1 %v4089_v53 }
 0x89f   :  { %5706 = vpow2.f32 %v4890_v35 }
 0x8a1   :  { %4656 = vmatpush1.bf16.msra.mxu0 %v4086_v60  ;;  %4820 = vmatpush1.bf16.msra.mxu1 %v4088_v44 }
 0x8a2   :  { %4657 = vmatprep.subr.bf16.mxu0 %v4095_v6  ;;  %4821 = vmatprep.subr.bf16.mxu1 %v4097_v17  ;;  %v4134_v6 = vld [vmem:[#allocation3 + $0xfa0] sm:$0xff]  ;;  %v4136_v17 = vld [vmem:[#allocation3 + $0xfb0] sm:$0xff] }
 0x8a5   :  { %4658 = vmatpush1.bf16.msra.mxu0 %v4094_v56  ;;  %4822 = vmatpush1.bf16.msra.mxu1 %v4096_v55 }
 0x8a6   :  { %v5701_v29 = vpop.eup %5700  ;;  %4659 = vmatprep.subr.bf16.mxu0 %v4103_v61  ;;  %4823 = vmatprep.subr.bf16.mxu1 %v4105_v15  ;;  %v4845_v15 = vmax.f32 %v6794_v26, 0.0 }
 0x8a7   :  { %v6802_v32 = vpop.eup %5702  ;;  %v4900_v49 = vadd.f32 1.0, %v5701_v29  ;;  %v4903_v46 = vmul.f32 -0.5, %v5701_v29  ;;  %v4906_v12 = vand.u32 2147483647, %v5701_v29 }
 0x8a8   :  { %v6804_v58 = vpop.eup %5704  ;;  %v4918_v41 = vadd.f32 1.0, %v6802_v32  ;;  %v4921_v28 = vmul.f32 -0.5, %v6802_v32  ;;  %v4924_v21 = vand.u32 2147483647, %v6802_v32 }
 0x8a9   :  { %v6807_v33 = vpop.eup %5706  ;;  %5708 = vlog2.f32 %v4900_v49  ;;  %v4909_v50 = vadd.f32 1.0, %v6804_v58  ;;  %4660 = vmatpush1.bf16.msra.mxu0 %v4102_v4  ;;  %4824 = vmatpush1.bf16.msra.mxu1 %v4104_v3  ;;  %v4912_v0 = vmul.f32 -0.5, %v6804_v58  ;;  %v4904_v9 = vadd.f32 1.0, %v4903_v46  ;;  %v4145_v4 = vld [vmem:[#allocation3 + $0xff8] sm:$0xff] }
 0x8aa   :  { %5710 = vlog2.f32 %v4918_v41  ;;  %4661 = vmatprep.subr.bf16.mxu0 %v4111_v1  ;;  %4825 = vmatprep.subr.bf16.mxu1 %v4113_v30  ;;  %v4927_v63 = vadd.f32 1.0, %v6807_v33  ;;  %v4930_v45 = vmul.f32 -0.5, %v6807_v33  ;;  %v4922_v37 = vadd.f32 1.0, %v4921_v28 }
 0x8ab   :  { %5712 = vlog2.f32 %v4909_v50  ;;  %v4913_v38 = vadd.f32 1.0, %v4912_v0  ;;  %v4915_v10 = vand.u32 2147483647, %v6804_v58  ;;  %v4905_v19 = vmul.f32 %v5701_v29, %v4904_v9  ;;  %v4143_v29 = vld [vmem:[#allocation3 + $0xfe8] sm:$0xff] }
 0x8ac   :  { %5714 = vlog2.f32 %v4927_v63  ;;  %v4931_v40 = vadd.f32 1.0, %v4930_v45  ;;  %vm4907_vm3 = vcmp.lt.f32.partialorder %v4906_v12, 0.0004427343  ;;  %v4923_v53 = vmul.f32 %v6802_v32, %v4922_v37 }
 0x8ad   :  { %4662 = vmatpush1.bf16.msra.mxu0 %v4110_v16  ;;  %4826 = vmatpush1.bf16.msra.mxu1 %v4112_v36  ;;  %v4933_v31 = vand.u32 2147483647, %v6807_v33  ;;  %vm4925_vm4 = vcmp.lt.f32.partialorder %v4924_v21, 0.0004427343  ;;  %v4914_v44 = vmul.f32 %v6804_v58, %v4913_v38  ;;  %vm4916_vm5 = vcmp.lt.f32.partialorder %v4915_v10, 0.0004427343 }
 0x8ae   :  { %4663 = vmatprep.subr.bf16.mxu0 %v4119_v59  ;;  %4827 = vmatprep.subr.bf16.mxu1 %v4121_v2  ;;  %v4932_v1 = vmul.f32 %v6807_v33, %v4931_v40  ;;  %v4847_v41 = vmax.f32 %v6796_v8, 0.0  ;;  %v4144_v16 = vld [vmem:[#allocation3 + $0xff0] sm:$0xff]  ;;  %v4171_v2 = vrot.slane %v6780_v20, %v6151_v24  ;;  %v4179_v46 = vrot.slane %v6780_v20, %v6160_v34 }
 0x8af   :  { %vm4934_vm6 = vcmp.lt.f32.partialorder %v4933_v31, 0.0004427343 }
 0x8b1   :  { %4664 = vmatpush1.bf16.msra.mxu0 %v4118_v51  ;;  %4828 = vmatpush1.bf16.msra.mxu1 %v4120_v7 }
 0x8b2   :  { %4665 = vmatprep.subr.bf16.mxu0 %v4127_v22  ;;  %4829 = vmatprep.subr.bf16.mxu1 %v4129_v54 }
 0x8b3   :  { %v5709_v57 = vpop.eup %5708 }
 0x8b4   :  { %v5711_v11 = vpop.eup %5710  ;;  %v4902_v14 = vmul.f32 0.6931472, %v5709_v57 }
 0x8b5   :  { %v5713_v47 = vpop.eup %5712  ;;  %v4920_v25 = vmul.f32 0.6931472, %v5711_v11  ;;  %4666 = vmatpush1.bf16.msra.mxu0 %v4126_v39  ;;  %4830 = vmatpush1.bf16.msra.mxu1 %v4128_v13 }
 0x8b6   :  { %v4908_v35 = vsel %vm4907_vm3, %v4905_v19, %v4902_v14  ;;  %v4911_v60 = vmul.f32 0.6931472, %v5713_v47  ;;  %4667 = vmatprep.subr.bf16.mxu0 %v4135_v62  ;;  %4831 = vmatprep.subr.bf16.mxu1 %v4137_v27  ;;  %v5715_v56 = vpop.eup %5714 }
 0x8b7   :  { %v4972_v55 = vadd.f32 %v4908_v35, %v4844_v52  ;;  %v4926_v61 = vsel %vm4925_vm4, %v4923_v53, %v4920_v25  ;;  %v4929_v49 = vmul.f32 0.6931472, %v5715_v56 }
 0x8b8   :  { %v4974_v3 = vadd.f32 %v4926_v61, %v4846_v48  ;;  %v4917_v32 = vsel %vm4916_vm5, %v4914_v44, %v4911_v60 }
 0x8b9   :  { %v6831_v30 = vsel %vm4852_vm1, %v6790_v5, %v4972_v55  ;;  %v4973_v58 = vadd.f32 %v4917_v32, %v4845_v15  ;;  %4668 = vmatpush1.bf16.msra.mxu0 %v4134_v6  ;;  %4832 = vmatpush1.bf16.msra.mxu1 %v4136_v17  ;;  %v4935_v33 = vsel %vm4934_vm6, %v4932_v1, %v4929_v49  ;;  %v4142_v5 = vld [vmem:[#allocation3 + $0xfe0] sm:$0xff] }
 0x8ba   :  { %v6838_v50 = vsel %vm4854_vm2, %v6792_v43, %v4974_v3  ;;  %4669 = vmatprep.subr.bf16.mxu0 %v4143_v29  ;;  %4833 = vmatprep.subr.bf16.mxu1 %v4145_v4  ;;  %v4975_v63 = vadd.f32 %v4935_v33, %v4847_v41  ;;  %v4167_v43 = vrot.slane %v6780_v20, %v6143_v18 }
 0x8bb   :  { %v6843_v36 = vsel %vm4853_vm7, %v6794_v26, %v4973_v58  ;;  %v4175_v26 = vrot.slane %v6780_v20, %v6149_v23 }
 0x8bc   :  { %v6848_v59 = vsel %vm4855_vm8, %v6796_v8, %v4975_v63 }
 0x8bd   :  { %4670 = vmatpush1.bf16.msra.mxu0 %v4142_v5  ;;  %4834 = vmatpush1.bf16.msra.mxu1 %v4144_v16 }
 0x8c0   :  { %4672 = vmatmul.mubr.bf16.vlgmr.msra.gmra.mrb[28].mxu0 %v6762_v42  ;;  %4836 = vmatmul.mubr.bf16.vlgmr.msra.gmra.mrb[28].mxu1 %v6762_v42 }
 0x993   :  { %v4673_v8 = vpop.f32.mrb[28].mxu0  ;;  %v4837_v28 = vpop.f32.mrb[28].mxu1 }
 0x994   :  { %v6860_v0 = vadd.f32 %v4673_v8, %v4167_v43  ;;  %v6862_v51 = vadd.f32 %v4837_v28, %v4175_v26  ;;  %v4675_v7 = vpop.f32.mrb[29].mxu0  ;;  %v4839_v42 = vpop.f32.mrb[29].mxu1 }
 0x995   :  { %v6864_v22 = vadd.f32 %v4675_v7, %v4171_v2  ;;  %v6866_v18 = vadd.f32 %v4839_v42, %v4179_v46  ;;  %v4677_v54 = vpop.f32.mrb[30].mxu0  ;;  %v4841_v23 = vpop.f32.mrb[30].mxu1 }
 0x996   :  { %v4872_v9 = vand.u32 2147483647, %v6860_v0  ;;  %v4678_v24 = vpop.f32.mrb[31].mxu0  ;;  %v4842_v45 = vpop.f32.mrb[31].mxu1  ;;  %v4874_v34 = vand.u32 2147483647, %v6862_v51  ;;  %vm4856_vm9 = vcmp.ne.f32.partialorder %v6860_v0, %v6860_v0  ;;  %vm4858_vm10 = vcmp.ne.f32.partialorder %v6862_v51, %v6862_v51 }
 0x997   :  { %v4873_v12 = vand.u32 2147483647, %v6864_v22  ;;  %v4875_v21 = vand.u32 2147483647, %v6866_v18  ;;  %v4848_v61 = vmax.f32 %v6860_v0, 0.0  ;;  %v4850_v15 = vmax.f32 %v6862_v51, 0.0 }
 0x998   :  { %v4880_v20 = vsub.f32 0.0, %v4872_v9  ;;  %v4882_v37 = vsub.f32 0.0, %v4874_v34  ;;  %v4849_v46 = vmax.f32 %v6864_v22, 0.0  ;;  %v4851_v9 = vmax.f32 %v6866_v18, 0.0 }
 0x999   :  { %v4881_v39 = vsub.f32 0.0, %v4873_v12  ;;  %v4883_v57 = vsub.f32 0.0, %v4875_v21  ;;  %vm4857_vm15 = vcmp.ne.f32.partialorder %v6864_v22, %v6864_v22  ;;  %vm4859_vm0 = vcmp.ne.f32.partialorder %v6866_v18, %v6866_v18 }
 0x99a   :  { %v4892_v38 = vmul.f32 1.442695, %v4880_v20  ;;  %v4896_v13 = vmul.f32 1.442695, %v4882_v37 }
 0x99b   :  { %v4894_v52 = vmul.f32 1.442695, %v4881_v39  ;;  %v4898_v48 = vmul.f32 1.442695, %v4883_v57 }
 0x99c   :  { %5716 = vpow2.f32 %v4892_v38 }
 0x99d   :  { %5718 = vpow2.f32 %v4896_v13 }
 0x99e   :  { %5720 = vpow2.f32 %v4894_v52 }
 0x99f   :  { %5722 = vpow2.f32 %v4898_v48 }
 0x9a6   :  { %v5717_v10 = vpop.eup %5716 }
 0x9a7   :  { %v5719_v62 = vpop.eup %5718  ;;  %v4936_v27 = vadd.f32 1.0, %v5717_v10  ;;  %v4939_v25 = vmul.f32 -0.5, %v5717_v10  ;;  %v4942_v44 = vand.u32 2147483647, %v5717_v10 }
 0x9a8   :  { %v5721_v11 = vpop.eup %5720  ;;  %v4954_v14 = vadd.f32 1.0, %v5719_v62  ;;  %v4957_v53 = vmul.f32 -0.5, %v5719_v62  ;;  %v4960_v17 = vand.u32 2147483647, %v5719_v62 }
 0x9a9   :  { %v5723_v19 = vpop.eup %5722  ;;  %5724 = vlog2.f32 %v4936_v27  ;;  %v4945_v40 = vadd.f32 1.0, %v5721_v11  ;;  %v4948_v31 = vmul.f32 -0.5, %v5721_v11  ;;  %v4940_v35 = vadd.f32 1.0, %v4939_v25 }
 0x9aa   :  { %5726 = vlog2.f32 %v4954_v14  ;;  %v4963_v47 = vadd.f32 1.0, %v5723_v19  ;;  %v4966_v60 = vmul.f32 -0.5, %v5723_v19  ;;  %v4958_v6 = vadd.f32 1.0, %v4957_v53 }
 0x9ab   :  { %5728 = vlog2.f32 %v4945_v40  ;;  %v4949_v56 = vadd.f32 1.0, %v4948_v31  ;;  %v4951_v29 = vand.u32 2147483647, %v5721_v11  ;;  %v4941_v32 = vmul.f32 %v5717_v10, %v4940_v35 }
 0x9ac   :  { %5730 = vlog2.f32 %v4963_v47  ;;  %v4967_v49 = vadd.f32 1.0, %v4966_v60  ;;  %vm4943_vm11 = vcmp.lt.f32.partialorder %v4942_v44, 0.0004427343  ;;  %v4959_v41 = vmul.f32 %v5719_v62, %v4958_v6 }
 0x9ad   :  { %v4969_v33 = vand.u32 2147483647, %v5723_v19  ;;  %vm4961_vm12 = vcmp.lt.f32.partialorder %v4960_v17, 0.0004427343  ;;  %v4950_v63 = vmul.f32 %v5721_v11, %v4949_v56  ;;  %vm4952_vm13 = vcmp.lt.f32.partialorder %v4951_v29, 0.0004427343 }
 0x9ae   :  { %v4968_v42 = vmul.f32 %v5723_v19, %v4967_v49 }
 0x9af   :  { %vm4970_vm14 = vcmp.lt.f32.partialorder %v4969_v33, 0.0004427343 }
 0x9b3   :  { %v5725_v55 = vpop.eup %5724 }
 0x9b4   :  { %v5727_v4 = vpop.eup %5726  ;;  %v4938_v3 = vmul.f32 0.6931472, %v5725_v55 }
 0x9b5   :  { %v5729_v1 = vpop.eup %5728  ;;  %v4956_v58 = vmul.f32 0.6931472, %v5727_v4 }
 0x9b6   :  { %v4944_v5 = vsel %vm4943_vm11, %v4941_v32, %v4938_v3  ;;  %v4947_v16 = vmul.f32 0.6931472, %v5729_v1  ;;  %v5731_v43 = vpop.eup %5730 }
 0x9b7   :  { %v4976_v26 = vadd.f32 %v4944_v5, %v4848_v61  ;;  %v4962_v2 = vsel %vm4961_vm12, %v4959_v41, %v4956_v58  ;;  %v4965_v7 = vmul.f32 0.6931472, %v5731_v43 }
 0x9b8   :  { %v4978_v8 = vadd.f32 %v4962_v2, %v4850_v15  ;;  %v4953_v28 = vsel %vm4952_vm13, %v4950_v63, %v4947_v16 }
 0x9b9   :  { %v6883_v54 = vsel %vm4856_vm9, %v6860_v0, %v4976_v26  ;;  %v4977_v23 = vadd.f32 %v4953_v28, %v4849_v46  ;;  %v4971_v45 = vsel %vm4970_vm14, %v4968_v42, %v4965_v7 }
 0x9ba   :  { %v6890_v24 = vsel %vm4858_vm10, %v6862_v51, %v4978_v8  ;;  %v4979_v20 = vadd.f32 %v4971_v45, %v4851_v9 }
 0x9bb   :  { %v6895_v34 = vsel %vm4857_vm15, %v6864_v22, %v4977_v23 }
 0x9bc   :  { %v6900_v0 = vsel %vm4859_vm0, %v6866_v18, %v4979_v20 }
 0x9bd   :  { %5920 = dma.done.wait [#allocation5 + $0x2], 8192 }
 0x9be   :  { %5921 = vsyncadd [#allocation5 + $0x2], 4294959104  ;;  %v4992_v51 = vpack.c.bf16 %v6843_v36, %v6843_v36  ;;  %v4994_v12 = vpack.c.bf16 %v6848_v59, %v6848_v59  ;;  %v5007_v37 = vld [vmem:[#allocation4 + $0x40] sm:$0xff]  ;;  %v5008_v39 = vld [vmem:[#allocation4 + $0x48] sm:$0xff]  ;;  %v4991_v3 = vpack.c.bf16 %v6831_v30, %v6831_v30  ;;  %v4993_v32 = vpack.c.bf16 %v6838_v50, %v6838_v50  ;;  %s5945_s7 = smov [#allocation17]  }
 0x9bf   :  { %v5023_v22 = vld [vmem:[#allocation4 + $0xc0] sm:$0xff]  ;;  %5317 = vmatprep.subr.bf16.mxu0 %v5007_v37  ;;  %v5024_v13 = vld [vmem:[#allocation4 + $0xc8] sm:$0xff]  ;;  %v5009_v36 = vld [vmem:[#allocation4 + $0x50] sm:$0xff]  ;;  %v4996_v33 = vpack.c.bf16 %v6895_v34, %v6895_v34  ;;  %v4998_v5 = vpack.c.bf16 %v6900_v0, %v6900_v0  ;;  %s5237_s18 = sshll.u32 %s5945_s7, 4  ;;  %s5238_s18 = int_to_ptr.vmem [resolvable:$true] %s5237_s18 }
 0x9c0   :  { %5102 = vmatprep.mubr.bf16.mxu0 %v4992_v51  ;;  %5142 = vmatprep.mubr.bf16.mxu1 %v4994_v12  ;;  %v4999_v21 = vld [vmem:[#allocation4] sm:$0xff]  ;;  %v5000_v18 = vld [vmem:[#allocation4 + $0x8] sm:$0xff]  ;;  %v5025_v52 = vld [vmem:[#allocation4 + $0xd0] sm:$0xff]  ;;  %s5886_s21 = scalar_lea.vmem %s5238_s18, 128  ;;  %p5891_p1 = scmp.lt.s32.totalorder %s5238_s18, %s5238_s18 }
 0x9c1   :  { %5339 = vmatprep.subr.bf16.mxu1 %v5023_v22  ;;  %v5015_v38 = vld [vmem:[#allocation4 + $0x80] sm:$0xff]  ;;  %5318 = vmatpush3.bf16.msra.mxu0 %v4999_v21  ;;  %v5016_v57 = vld [vmem:[#allocation4 + $0x88] sm:$0xff]  ;;  %v5001_v59 = vld [vmem:[#allocation4 + $0x10] sm:$0xff]  ;;  %p5887_p0 = scmp.ne.s32.totalorder %s5238_s18, %s5886_s21  ;;  %p5892_p2 = scmp.lt.s32.totalorder %s5886_s21, %s5886_s21 }
 0x9c2   :  { %5340 = vmatpush3.bf16.msra.mxu1 %v5015_v38  ;;  %5319 = vmatprep.subr.bf16.mxu0 %v5008_v39  ;;  %v5017_v48 = vld [vmem:[#allocation4 + $0x90] sm:$0xff]  ;;  %v5010_v10 = vld [vmem:[#allocation4 + $0x58] sm:$0xff]  ;;  %v5011_v14 = vld [vmem:[#allocation4 + $0x60] sm:$0xff] }
 0x9c3   :  { %5341 = vmatprep.subr.bf16.mxu1 %v5024_v13  ;;  %v5026_v62 = vld [vmem:[#allocation4 + $0xd8] sm:$0xff]  ;;  %v5027_v19 = vld [vmem:[#allocation4 + $0xe0] sm:$0xff]  ;;  %v5012_v25 = vld [vmem:[#allocation4 + $0x68] sm:$0xff]  ;;  %p5893_p3 = por %p5892_p2, %p5891_p1 }
 0x9c4   :  { %v5002_v27 = vld [vmem:[#allocation4 + $0x18] sm:$0xff]  ;;  %v5003_v40 = vld [vmem:[#allocation4 + $0x20] sm:$0xff]  ;;  %v5028_v53 = vld [vmem:[#allocation4 + $0xe8] sm:$0xff] }
 0x9c5   :  { %5320 = vmatpush3.bf16.msra.mxu0 %v5000_v18  ;;  %v5018_v11 = vld [vmem:[#allocation4 + $0x98] sm:$0xff]  ;;  %v5019_v47 = vld [vmem:[#allocation4 + $0xa0] sm:$0xff]  ;;  %v5004_v31 = vld [vmem:[#allocation4 + $0x28] sm:$0xff]  ;;  %v4995_v18 = vpack.c.bf16 %v6883_v54, %v6883_v54  ;;  %p5894_p4 = pnand %p5893_p3, %p5887_p0 }
 0x9c6   :  { %5342 = vmatpush3.bf16.msra.mxu1 %v5016_v57  ;;  %5321 = vmatprep.subr.bf16.mxu0 %v5009_v36  ;;  %v5020_v35 = vld [vmem:[#allocation4 + $0xa8] sm:$0xff]  ;;  %v5013_v60 = vld [vmem:[#allocation4 + $0x70] sm:$0xff]  ;;  %v5014_v56 = vld [vmem:[#allocation4 + $0x78] sm:$0xff]  ;;  %v4997_v57 = vpack.c.bf16 %v6890_v24, %v6890_v24 }
 0x9c7   :  { %5343 = vmatprep.subr.bf16.mxu1 %v5025_v52  ;;  %v5029_v44 = vld [vmem:[#allocation4 + $0xf0] sm:$0xff]  ;;  %v5030_v55 = vld [vmem:[#allocation4 + $0xf8] sm:$0xff]  ;;  %v5039_v29 = vld [vmem:[#allocation4 + $0x140] sm:$0xff] }
 0x9c8   :  { %v5005_v6 = vld [vmem:[#allocation4 + $0x30] sm:$0xff]  ;;  %v5006_v61 = vld [vmem:[#allocation4 + $0x38] sm:$0xff]  ;;  %v5055_v4 = vld [vmem:[#allocation4 + $0x1c0] sm:$0xff] }
 0x9c9   :  { %5322 = vmatpush3.bf16.msra.mxu0 %v5001_v59  ;;  %v5021_v17 = vld [vmem:[#allocation4 + $0xb0] sm:$0xff]  ;;  %v5022_v15 = vld [vmem:[#allocation4 + $0xb8] sm:$0xff]  ;;  %v5031_v49 = vld [vmem:[#allocation4 + $0x100] sm:$0xff] }
 0x9ca   :  { %5344 = vmatpush3.bf16.msra.mxu1 %v5017_v48  ;;  %5323 = vmatprep.subr.bf16.mxu0 %v5010_v10  ;;  %v5047_v1 = vld [vmem:[#allocation4 + $0x180] sm:$0xff]  ;;  %v5040_v58 = vld [vmem:[#allocation4 + $0x148] sm:$0xff]  ;;  %v5041_v16 = vld [vmem:[#allocation4 + $0x150] sm:$0xff] }
 0x9cb   :  { %5345 = vmatprep.subr.bf16.mxu1 %v5026_v62  ;;  %v5056_v41 = vld [vmem:[#allocation4 + $0x1c8] sm:$0xff]  ;;  %v5057_v63 = vld [vmem:[#allocation4 + $0x1d0] sm:$0xff]  ;;  %v5042_v2 = vld [vmem:[#allocation4 + $0x158] sm:$0xff] }
 0x9cc   :  { %v5032_v30 = vld [vmem:[#allocation4 + $0x108] sm:$0xff]  ;;  %v5033_v43 = vld [vmem:[#allocation4 + $0x110] sm:$0xff]  ;;  %v5058_v46 = vld [vmem:[#allocation4 + $0x1d8] sm:$0xff] }
 0x9cd   :  { %5324 = vmatpush3.bf16.msra.mxu0 %v5002_v27  ;;  %v5048_v50 = vld [vmem:[#allocation4 + $0x188] sm:$0xff]  ;;  %v5049_v26 = vld [vmem:[#allocation4 + $0x190] sm:$0xff]  ;;  %v5034_v8 = vld [vmem:[#allocation4 + $0x118] sm:$0xff] }
 0x9ce   :  { %5346 = vmatpush3.bf16.msra.mxu1 %v5018_v11  ;;  %5325 = vmatprep.subr.bf16.mxu0 %v5011_v14  ;;  %v5050_v28 = vld [vmem:[#allocation4 + $0x198] sm:$0xff]  ;;  %v5043_v7 = vld [vmem:[#allocation4 + $0x160] sm:$0xff]  ;;  %v5044_v45 = vld [vmem:[#allocation4 + $0x168] sm:$0xff] }
 0x9cf   :  { %5347 = vmatprep.subr.bf16.mxu1 %v5027_v19  ;;  %v5059_v42 = vld [vmem:[#allocation4 + $0x1e0] sm:$0xff]  ;;  %v5060_v34 = vld [vmem:[#allocation4 + $0x1e8] sm:$0xff]  ;;  %v5045_v51 = vld [vmem:[#allocation4 + $0x170] sm:$0xff] }
 0x9d0   :  { %v5035_v23 = vld [vmem:[#allocation4 + $0x120] sm:$0xff]  ;;  %v5036_v20 = vld [vmem:[#allocation4 + $0x128] sm:$0xff]  ;;  %v5061_v12 = vld [vmem:[#allocation4 + $0x1f0] sm:$0xff] }
 0x9d1   :  { %5326 = vmatpush3.bf16.msra.mxu0 %v5003_v40  ;;  %v5051_v9 = vld [vmem:[#allocation4 + $0x1a0] sm:$0xff]  ;;  %v5052_v0 = vld [vmem:[#allocation4 + $0x1a8] sm:$0xff]  ;;  %v5037_v37 = vld [vmem:[#allocation4 + $0x130] sm:$0xff] }
 0x9d2   :  { %5348 = vmatpush3.bf16.msra.mxu1 %v5019_v47  ;;  %5327 = vmatprep.subr.bf16.mxu0 %v5012_v25  ;;  %v5053_v22 = vld [vmem:[#allocation4 + $0x1b0] sm:$0xff]  ;;  %v5046_v21 = vld [vmem:[#allocation4 + $0x178] sm:$0xff]  ;;  %v5313_v59 = vld [vmem:[#allocation15] ss:$0 sm:$0xff] }
 0x9d3   :  { %5349 = vmatprep.subr.bf16.mxu1 %v5028_v53  ;;  %v5062_v38 = vld [vmem:[#allocation4 + $0x1f8] sm:$0xff] }
 0x9d4   :  { %v5038_v39 = vld [vmem:[#allocation4 + $0x138] sm:$0xff] }
 0x9d5   :  { %5328 = vmatpush3.bf16.msra.mxu0 %v5004_v31  ;;  %v5054_v13 = vld [vmem:[#allocation4 + $0x1b8] sm:$0xff] }
 0x9d6   :  { %5350 = vmatpush3.bf16.msra.mxu1 %v5020_v35  ;;  %5329 = vmatprep.subr.bf16.mxu0 %v5013_v60 }
 0x9d7   :  { %5351 = vmatprep.subr.bf16.mxu1 %v5029_v44 }
 0x9d9   :  { %5330 = vmatpush3.bf16.msra.mxu0 %v5005_v6 }
 0x9da   :  { %5352 = vmatpush3.bf16.msra.mxu1 %v5021_v17  ;;  %5331 = vmatprep.subr.bf16.mxu0 %v5014_v56 }
 0x9db   :  { %5353 = vmatprep.subr.bf16.mxu1 %v5030_v55 }
 0x9dd   :  { %5332 = vmatpush3.bf16.msra.mxu0 %v5006_v61 }
 0x9de   :  { %5354 = vmatpush3.bf16.msra.mxu1 %v5022_v15  ;;  %5361 = vmatprep.subr.bf16.mxu0 %v5039_v29 }
 0x9df   :  { %5383 = vmatprep.subr.bf16.mxu1 %v5055_v4 }
 0x9e0   :  { %5103 = vmatmul.mubr.bf16.vlgmr.msra.gmra.mrb[32].mxu0 %v4991_v3 }
 0x9e1   :  { %5143 = vmatmul.mubr.bf16.vlgmr.msra.gmra.mrb[32].mxu1 %v4993_v32  ;;  %5362 = vmatpush3.bf16.msra.mxu0 %v5031_v49 }
 0x9e2   :  { %5384 = vmatpush3.bf16.msra.mxu1 %v5047_v1  ;;  %5363 = vmatprep.subr.bf16.mxu0 %v5040_v58 }
 0x9e3   :  { %5385 = vmatprep.subr.bf16.mxu1 %v5056_v41  ;;  %5182 = vmatprep.mubr.bf16.mxu0 %v4996_v33 }
 0x9e4   :  { %5222 = vmatprep.mubr.bf16.mxu1 %v4998_v5 }
 0x9e5   :  { %5364 = vmatpush3.bf16.msra.mxu0 %v5032_v30 }
 0x9e6   :  { %5386 = vmatpush3.bf16.msra.mxu1 %v5048_v50  ;;  %5365 = vmatprep.subr.bf16.mxu0 %v5041_v16 }
 0x9e7   :  { %5387 = vmatprep.subr.bf16.mxu1 %v5057_v63 }
 0x9e9   :  { %5366 = vmatpush3.bf16.msra.mxu0 %v5033_v43 }
 0x9ea   :  { %5388 = vmatpush3.bf16.msra.mxu1 %v5049_v26  ;;  %5367 = vmatprep.subr.bf16.mxu0 %v5042_v2 }
 0x9eb   :  { %5389 = vmatprep.subr.bf16.mxu1 %v5058_v46 }
 0x9ed   :  { %5368 = vmatpush3.bf16.msra.mxu0 %v5034_v8 }
 0x9ee   :  { %5390 = vmatpush3.bf16.msra.mxu1 %v5050_v28  ;;  %5369 = vmatprep.subr.bf16.mxu0 %v5043_v7 }
 0x9ef   :  { %5391 = vmatprep.subr.bf16.mxu1 %v5059_v42 }
 0x9f1   :  { %5370 = vmatpush3.bf16.msra.mxu0 %v5035_v23 }
 0x9f2   :  { %5392 = vmatpush3.bf16.msra.mxu1 %v5051_v9  ;;  %5371 = vmatprep.subr.bf16.mxu0 %v5044_v45 }
 0x9f3   :  { %5393 = vmatprep.subr.bf16.mxu1 %v5060_v34 }
 0x9f5   :  { %5372 = vmatpush3.bf16.msra.mxu0 %v5036_v20 }
 0x9f6   :  { %5394 = vmatpush3.bf16.msra.mxu1 %v5052_v0  ;;  %5373 = vmatprep.subr.bf16.mxu0 %v5045_v51 }
 0x9f7   :  { %5395 = vmatprep.subr.bf16.mxu1 %v5061_v12 }
 0x9f9   :  { %5374 = vmatpush3.bf16.msra.mxu0 %v5037_v37 }
 0x9fa   :  { %5396 = vmatpush3.bf16.msra.mxu1 %v5053_v22  ;;  %5375 = vmatprep.subr.bf16.mxu0 %v5046_v21 }
 0x9fb   :  { %5397 = vmatprep.subr.bf16.mxu1 %v5062_v38 }
 0x9fd   :  { %5376 = vmatpush3.bf16.msra.mxu0 %v5038_v39 }
 0x9fe   :  { %5398 = vmatpush3.bf16.msra.mxu1 %v5054_v13 }
 0xa00   :  { %5183 = vmatmul.mubr.bf16.vlgmr.msra.gmra.mrb[36].mxu0 %v4995_v18 }
 0xa01   :  { %5223 = vmatmul.mubr.bf16.vlgmr.msra.gmra.mrb[36].mxu1 %v4997_v57 }
 0xab3   :  { %v5333_v36 = vpop.f32.mrb[32].mxu0 }
 0xab4   :  { %v5355_v52 = vpop.f32.mrb[32].mxu1  ;;  %v5334_v48 = vpop.f32.mrb[33].mxu0 }
 0xab5   :  { %v5356_v10 = vpop.f32.mrb[33].mxu1  ;;  %v5335_v62 = vadd.f32 %v5334_v48, %v5333_v36  ;;  %v5336_v11 = vpop.f32.mrb[34].mxu0 }
 0xab6   :  { %v5357_v27 = vadd.f32 %v5356_v10, %v5355_v52  ;;  %v5358_v14 = vpop.f32.mrb[34].mxu1  ;;  %v5337_v19 = vpop.f32.mrb[35].mxu0 }
 0xab7   :  { %v5359_v40 = vpop.f32.mrb[35].mxu1  ;;  %v5105_v47 = vadd.f32 %v5335_v62, %v5313_v59 }
 0xab9   :  { %v5145_v54 = vadd.f32 %v5357_v27, %v5105_v47 }
 0xad3   :  { %v5377_v25 = vpop.f32.mrb[36].mxu0 }
 0xad4   :  { %v5399_v53 = vpop.f32.mrb[36].mxu1  ;;  %v5378_v24 = vpop.f32.mrb[37].mxu0 }
 0xad5   :  { %v5400_v31 = vpop.f32.mrb[37].mxu1  ;;  %v5379_v35 = vadd.f32 %v5378_v24, %v5377_v25  ;;  %v5380_v44 = vpop.f32.mrb[38].mxu0 }
 0xad6   :  { %v5401_v60 = vadd.f32 %v5400_v31, %v5399_v53  ;;  %v5402_v6 = vpop.f32.mrb[38].mxu1  ;;  %v5381_v17 = vpop.f32.mrb[39].mxu0 }
 0xad7   :  { %v5403_v56 = vpop.f32.mrb[39].mxu1  ;;  %v5185_v55 = vadd.f32 %v5379_v35, %v5145_v54 }
 0xad9   :  { %v5225_v61 = vadd.f32 %v5401_v60, %v5185_v55 }
 0xadb   :  { %5230 = vst [vmem:[#allocation17] sm:$0xff] %v5225_v61 }
 0xadc   :  { %5897 = shalt.err (!%p5894_p4)
}
 0xadd   :  { %s5898_s25 = scalar_lea.hbm %s6939_s9, 128 }
 0xade   :  { %p5899_p5 = scmp.ne.s32.totalorder %s6939_s9, %s5898_s25  ;;  %p5902_p6 = scmp.lt.u32.totalorder %s5898_s25, %s6939_s9 }
 0xae0   :  { %p5904_p7 = pnand %p5902_p6, %p5899_p5 }
 0xae2   :  { %5907 = shalt.err (!%p5904_p7)
}
 0xae3   :  { %5240 = dma.vmem_to_hbm [thread:$0]  %s5238_s18, 128, %s6939_s9, [#allocation8]  }
 0xae4   :  { %5922 = dma.done.wait [#allocation8], 128  }
 0xae5   :  { %5923 = vsyncadd [#allocation8], 4294967168 }
 0xae6   :  { %5244 = vsyncpa [#allocation7], 1 }
 0xae7   :  { %5245 = vsyncpa [#allocation10], 1 }
 0xae8   :  { %5246 = vsyncpa [#allocation13], 1 }
 0xae9   :  { %5247 = vsyncpa [#allocation16], 1 }
 0xaea   :  { %5248 = vsyncpa [#allocation8], 1 }
 0xaeb   :  { %5249 = vsyncmov [#allocation5] }
 0xaee   :  { %s5250_s11 = vpop.sfrf %5249 }
 0xaef   :  { %p5314_p8 = scmp.ne.s32.totalorder %s5250_s11, 0 }
 0xaf1   :  { %5254 = shalt.err (%p5314_p8)  }
 0xaf2   :  { %5256 = vsyncmov [#allocation5 + $0x1] }
 0xaf5   :  { %s5257_s12 = vpop.sfrf %5256 }
 0xaf6   :  { %p5315_p9 = scmp.ne.s32.totalorder %s5257_s12, 0 }
 0xaf8   :  { %5261 = shalt.err (%p5315_p9)  }
 0xaf9   :  { %5263 = vsyncmov [#allocation5 + $0x2] }
 0xafc   :  { %s5264_s13 = vpop.sfrf %5263 }
 0xafd   :  { %p5316_p10 = scmp.ne.s32.totalorder %s5264_s13, 0 }
 0xaff   :  { %5268 = shalt.err (%p5316_p10)  }

</bundles_post_ra>
